<compile_context>
chip_gen: v7x
topology: tpu7x:2x2x1
jax: 0.10.0
libtpu: 0.0.40
codegen_flags: <defaults>
</compile_context>

<pallas_src>
import numpy as np

import jax
import jax.numpy as jnp
from jax.experimental import pallas as pl
from jax.experimental.pallas import tpu as pltpu

K, STRIDE, PAD = 5, 2, 2
KK = K * K


# ---------------------------------------------------------------------------
# Fused Pallas kernel: conv1..conv4 (+ folded bias/BN + ReLU) + global mean
# ---------------------------------------------------------------------------
def _convblock_kernel(x1_ref, w1_ref, b1_ref,
                      s2_ref, w2_ref, b2_ref,
                      s3_ref, w3_hbm_ref, b3_ref,
                      s4_ref, w4_hbm_ref, b4_ref,
                      o_ref,
                      p2_ref, g2_ref, p3_ref, g3_ref, p4_ref, g4_ref,
                      w3_vmem, w4_vmem, dma_sem):
    # Kick off the big tail-layer weight DMAs immediately so they overlap with
    # layer-1/2 compute (W3+W4 are ~2.4 MB of the ~3 MB of operands).
    w3_cp = pltpu.make_async_copy(w3_hbm_ref, w3_vmem, dma_sem.at[0])
    w4_cp = pltpu.make_async_copy(w4_hbm_ref, w4_vmem, dma_sem.at[1])
    w3_cp.start()
    w4_cp.start()

    # ---- Layer 1: im2col was done in the wrapper -> a single well-shaped matmul.
    y = jnp.maximum(
        jnp.dot(x1_ref[...], w1_ref[...], preferred_element_type=jnp.float32)
        + b1_ref[...], 0.0).astype(jnp.bfloat16)

    def conv_layer(x, s_ref, p_ref, g_ref, w, b_ref):
        """5x5/stride-2 conv = 1 stacked one-hot gather matmul (exact row select)
        + 25 VMEM tap copies into im2col layout + 1 K=25*cin weight matmul
        + folded bias/BN shift + ReLU (f32 epilogue)."""
        m_out, width = g_ref.shape
        n_taps = s_ref.shape[0] // m_out          # 25
        cin = width // n_taps
        # One MXU call gathers all 25 taps (tap-major stacked rows).
        p_ref[...] = jnp.dot(s_ref[...], x,
                             preferred_element_type=jnp.float32).astype(jnp.bfloat16)
        # Rearrange tap blocks into im2col layout: pure vector copies, no MXU.
        for t in range(n_taps):
            g_ref[:, t * cin:(t + 1) * cin] = p_ref[t * m_out:(t + 1) * m_out, :]
        return jnp.maximum(
            jnp.dot(g_ref[...], w, preferred_element_type=jnp.float32)
            + b_ref[...], 0.0)

    # ---- Layer 2 (S2/W2 arrive via the normal BlockSpec prefetch path).
    y = conv_layer(y, s2_ref, p2_ref, g2_ref, w2_ref[...], b2_ref).astype(jnp.bfloat16)

    # ---- Layer 3 (wait only for W3; W4 keeps streaming during layer-3 compute).
    w3_cp.wait()
    y = conv_layer(y, s3_ref, p3_ref, g3_ref, w3_vmem[...], b3_ref).astype(jnp.bfloat16)

    # ---- Layer 4.
    w4_cp.wait()
    y = conv_layer(y, s4_ref, p4_ref, g4_ref, w4_vmem[...], b4_ref)

    # Final spatial size is 1x1, so mean((-1,-2)) is just selecting the first
    # `batch` rows; padded rows 2..7 (ReLU(shift) garbage) are never read.
    # TODO(synk): reinstate a block-averaging matmul epilogue if the last layer's
    # spatial size ever exceeds 1x1.
    o_ref[...] = y[0:o_ref.shape[0], :].astype(o_ref.dtype)


# ---------------------------------------------------------------------------
# Wrapper: layer-1 im2col (tiny, XLA-side) + single pallas_call
# ---------------------------------------------------------------------------
def _full_spec(shape):
    nd = len(shape)
    return pl.BlockSpec(shape, lambda i, nd=nd: (0,) * nd)


def _im2col_layer1(x_nchw):
    """NCHW -> (n*ho*wo, 25*cin) im2col rows, feature index = tap*cin + c."""
    n, c, h, w = x_nchw.shape
    ho = (h + 2 * PAD - K) // STRIDE + 1
    wo = (w + 2 * PAD - K) // STRIDE + 1
    xp = jnp.pad(jnp.transpose(x_nchw, (0, 2, 3, 1)),
                 ((0, 0), (PAD, PAD), (PAD, PAD), (0, 0)))
    taps = [xp[:, kh:kh + STRIDE * ho:STRIDE, kw:kw + STRIDE * wo:STRIDE, :]
            for kh in range(K) for kw in range(K)]
    return jnp.concatenate(taps, axis=-1).reshape(n * ho * wo, KK * c)


def convblock_forward(x_nchw, params):
    """x_nchw: (N, C, H, W) like the PyTorch module.  Returns (N, 256) f32."""
    (w1, b1), (s2, w2, b2), (s3, w3, b3), (s4, w4, b4) = params
    n = x_nchw.shape[0]

    # Layer-1 im2col in the wrapper (~25 KB bf16): removes the 3.3 MB S1 gather
    # matrix and its 25 badly-shaped matmuls entirely.
    x1 = _im2col_layer1(x_nchw).astype(jnp.bfloat16)

    c1, c2, c3, cout_last = w1.shape[1], w2.shape[1], w3.shape[1], w4.shape[1]
    m2, m3, m4 = s2.shape[0] // KK, s3.shape[0] // KK, s4.shape[0] // KK

    flat_in = (x1, w1, b1, s2, w2, b2, s3, w3, b3, s4, w4, b4)
    in_specs = [
        _full_spec(x1.shape), _full_spec(w1.shape), _full_spec(b1.shape),
        _full_spec(s2.shape), _full_spec(w2.shape), _full_spec(b2.shape),
        _full_spec(s3.shape), pl.BlockSpec(memory_space=pl.ANY), _full_spec(b3.shape),
        _full_spec(s4.shape), pl.BlockSpec(memory_space=pl.ANY), _full_spec(b4.shape),
    ]
    scratch_shapes = [
        pltpu.VMEM((s2.shape[0], c1), jnp.bfloat16),   # P2: stacked gather result
        pltpu.VMEM((m2, KK * c1), jnp.bfloat16),       # G2: im2col for layer 2
        pltpu.VMEM((s3.shape[0], c2), jnp.bfloat16),   # P3
        pltpu.VMEM((m3, KK * c2), jnp.bfloat16),       # G3
        pltpu.VMEM((s4.shape[0], c3), jnp.bfloat16),   # P4
        pltpu.VMEM((m4, KK * c3), jnp.bfloat16),       # G4
        pltpu.VMEM(w3.shape, jnp.bfloat16),            # W3 manual-DMA destination
        pltpu.VMEM(w4.shape, jnp.bfloat16),            # W4 manual-DMA destination
        pltpu.SemaphoreType.DMA((2,)),
    ]

    # Advisory cost hint (kernel is tiny and latency-bound).
    flops = 2 * x1.shape[0] * x1.shape[1] * w1.shape[1]
    prev_c = w1.shape[1]
    for s, wm in ((s2, w2), (s3, w3), (s4, w4)):
        flops += 2 * s.shape[0] * s.shape[1] * prev_c          # stacked gather
        flops += 2 * (s.shape[0] // KK) * wm.shape[0] * wm.shape[1]  # conv matmul
        prev_c = wm.shape[1]
    bytes_accessed = sum(int(np.prod(a.shape)) * a.dtype.itemsize for a in flat_in)
    bytes_accessed += n * cout_last * 4

    return pl.pallas_call(
        _convblock_kernel,
        out_shape=jax.ShapeDtypeStruct((n, cout_last), jnp.float32),
        grid=(1,),
        in_specs=in_specs,
        out_specs=_full_spec((n, cout_last)),
        scratch_shapes=scratch_shapes,
        compiler_params=pltpu.CompilerParams(
            dimension_semantics=("arbitrary",),
            vmem_limit_bytes=24 * 1024 * 1024),
        cost_estimate=pl.CostEstimate(flops=int(flops), transcendentals=0,
                                      bytes_accessed=int(bytes_accessed)),
    )(*flat_in)
    # TODO(synk): on v7x (2 TensorCores) a batch-parallel leading grid axis with
    # per-batch block-diagonal gathers would use both cores; not done here.


# ---------------------------------------------------------------------------
# Host-side constant construction (stacked gathers, folded 2-D weight slabs)
# ---------------------------------------------------------------------------
def _round_up(v, m=8):
    return ((v + m - 1) // m) * m


def _stacked_gather(n, hi, wi, ho, wo, m_in, m_out):
    """Tap-major stacked one-hot gather: row t*m_out + r selects, for output
    pixel r, the input pixel read by conv tap t (all-zero row on padding /
    padded output rows, so garbage rows are never referenced)."""
    S = np.zeros((KK, m_out, m_in), np.float32)
    for b in range(n):
        for oh in range(ho):
            for ow in range(wo):
                r = (b * ho + oh) * wo + ow
                for kh in range(K):
                    ih = STRIDE * oh + kh - PAD
                    if ih < 0 or ih >= hi:
                        continue
                    for kw in range(K):
                        iw = STRIDE * ow + kw - PAD
                        if iw < 0 or iw >= wi:
                            continue
                        S[kh * K + kw, r, (b * hi + ih) * wi + iw] = 1.0
    return S.reshape(KK * m_out, m_in)


def init_conv_params(key, cin, cout):
    wkey, bkey = jax.random.split(key)
    fan_in = cin * K * K
    bound = 1.0 / (fan_in ** 0.5)
    w = jax.random.uniform(wkey, (K, K, cin, cout), jnp.float32, -bound, bound)
    b = jax.random.uniform(bkey, (cout,), jnp.float32, -bound, bound)
    return w, b


def build_convblock(key, n, h, w, eps=1e-5):
    """Layer 1: (W1_2d, shift1) -- its im2col runs in the wrapper.
    Layers 2..4: (S_cat, W_2d, shift) with W_2d a dense (25*cin, cout) slab and
    conv bias / BatchNorm scale folded in."""
    specs = [(4, 64, False), (64, 128, True), (128, 128, False), (128, 256, True)]
    keys = jax.random.split(key, len(specs))
    params = []
    hi, wi = h, w
    m_in = None
    for li, ((cin, cout, has_bn), kk) in enumerate(zip(specs, keys)):
        wgt, bias = init_conv_params(kk, cin, cout)
        if has_bn:
            # TODO(synk): BatchNorm is folded in inference mode with default running
            # stats (mean=0, var=1, gamma=1, beta=0), not training-mode batch stats.
            scale = 1.0 / jnp.sqrt(jnp.ones((cout,), jnp.float32) + eps)
        else:
            scale = jnp.ones((cout,), jnp.float32)
        shift = (bias * scale).reshape(1, cout).astype(jnp.float32)
        w2d = (wgt * scale[None, None, None, :]).reshape(KK * cin, cout)
        w2d = w2d.astype(jnp.bfloat16)
        ho = (hi + 2 * PAD - K) // STRIDE + 1
        wo = (wi + 2 * PAD - K) // STRIDE + 1
        if li == 0:
            m_out = n * ho * wo                      # wrapper im2col rows, unpadded
            params.append((w2d, shift))
        else:
            m_out = max(_round_up(n * ho * wo, 8), 8)
            s_cat = _stacked_gather(n, hi, wi, ho, wo, m_in, m_out)
            params.append((jnp.asarray(s_cat, jnp.bfloat16), w2d, shift))
        hi, wi, m_in = ho, wo, m_out
    # Final spatial must be 1x1 so that mean((-1,-2)) degenerates to a row select.
    assert hi == 1 and wi == 1, (hi, wi)
    return tuple(params)


# ---------------------------------------------------------------------------
if __name__ == "__main__":
    key = jax.random.PRNGKey(0)
    k_in, k_params = jax.random.split(key)

    # Same NCHW convention as the PyTorch module.
    x = jax.random.normal(k_in, (2, 4, 16, 16), jnp.float32)
    params = build_convblock(k_params, n=2, h=16, w=16)

    fwd = jax.jit(convblock_forward)
    out = jax.block_until_ready(fwd(x, params))

    assert out.shape == (2, 256), out.shape
    assert out.dtype == jnp.float32, out.dtype
    assert bool(jnp.all(jnp.isfinite(out)))
    print("KERNEL_OK")
</pallas_src>

<mosaic_0001>
module attributes {stable_mosaic.version = 11 : i64} {
  func.func @_convblock_kernel(%arg0: i32, %arg1: memref<128x100xbf16, #tpu.memory_space<vmem>>, %arg2: memref<100x64xbf16, #tpu.memory_space<vmem>>, %arg3: memref<1x64xf32, #tpu.memory_space<vmem>>, %arg4: memref<800x128xbf16, #tpu.memory_space<vmem>>, %arg5: memref<1600x128xbf16, #tpu.memory_space<vmem>>, %arg6: memref<1x128xf32, #tpu.memory_space<vmem>>, %arg7: memref<200x32xbf16, #tpu.memory_space<vmem>>, %arg8: memref<3200x128xbf16, #tpu.memory_space<any>>, %arg9: memref<1x128xf32, #tpu.memory_space<vmem>>, %arg10: memref<200x8xbf16, #tpu.memory_space<vmem>>, %arg11: memref<3200x256xbf16, #tpu.memory_space<any>>, %arg12: memref<1x256xf32, #tpu.memory_space<vmem>>, %arg13: memref<2x256xf32, #tpu.memory_space<vmem>>, %arg14: memref<800x64xbf16, #tpu.memory_space<vmem>>, %arg15: memref<32x1600xbf16, #tpu.memory_space<vmem>>, %arg16: memref<200x128xbf16, #tpu.memory_space<vmem>>, %arg17: memref<8x3200xbf16, #tpu.memory_space<vmem>>, %arg18: memref<200x128xbf16, #tpu.memory_space<vmem>>, %arg19: memref<8x3200xbf16, #tpu.memory_space<vmem>>, %arg20: memref<3200x128xbf16, #tpu.memory_space<vmem>>, %arg21: memref<3200x256xbf16, #tpu.memory_space<vmem>>, %arg22: memref<2x!tpu.dma_semaphore, #tpu.memory_space<semaphore_mem>>) attributes {dimension_semantics = [#tpu.dimension_semantics<arbitrary>], iteration_bounds = array<i64: 1>, scalar_prefetch = 0 : i64, scratch_operands = 9 : i64, tpu.core_type = #tpu.core_type<tc>, window_params = [{pipeline_mode = #tpu.pipeline_mode<synchronous>, transform_indices = @transform_0, window_bounds = array<i64: 128, 100>}, {pipeline_mode = #tpu.pipeline_mode<synchronous>, transform_indices = @transform_1, window_bounds = array<i64: 100, 64>}, {pipeline_mode = #tpu.pipeline_mode<synchronous>, transform_indices = @transform_2, window_bounds = array<i64: 1, 64>}, {pipeline_mode = #tpu.pipeline_mode<synchronous>, transform_indices = @transform_3, window_bounds = array<i64: 800, 128>}, {pipeline_mode = #tpu.pipeline_mode<synchronous>, transform_indices = @transform_4, window_bounds = array<i64: 1600, 128>}, {pipeline_mode = #tpu.pipeline_mode<synchronous>, transform_indices = @transform_5, window_bounds = array<i64: 1, 128>}, {pipeline_mode = #tpu.pipeline_mode<synchronous>, transform_indices = @transform_6, window_bounds = array<i64: 200, 32>}, {}, {pipeline_mode = #tpu.pipeline_mode<synchronous>, transform_indices = @transform_8, window_bounds = array<i64: 1, 128>}, {pipeline_mode = #tpu.pipeline_mode<synchronous>, transform_indices = @transform_9, window_bounds = array<i64: 200, 8>}, {}, {pipeline_mode = #tpu.pipeline_mode<synchronous>, transform_indices = @transform_11, window_bounds = array<i64: 1, 256>}, {pipeline_mode = #tpu.pipeline_mode<synchronous>, transform_indices = @transform_12, window_bounds = array<i64: 2, 256>}]} {
    %c0_i32 = arith.constant 0 : i32
    %0 = tpu.memref_slice %arg22[%c0_i32] : memref<2x!tpu.dma_semaphore, #tpu.memory_space<semaphore_mem>> -> memref<1x!tpu.dma_semaphore, #tpu.memory_space<semaphore_mem>>
    %1 = tpu.memref_squeeze %0 : memref<1x!tpu.dma_semaphore, #tpu.memory_space<semaphore_mem>> -> memref<!tpu.dma_semaphore, #tpu.memory_space<semaphore_mem>>
    tpu.enqueue_dma source(%arg8 : memref<3200x128xbf16, #tpu.memory_space<any>>) target(%arg20 : memref<3200x128xbf16, #tpu.memory_space<vmem>>) target_semaphore(%1 : memref<!tpu.dma_semaphore, #tpu.memory_space<semaphore_mem>>)
    %c1_i32 = arith.constant 1 : i32
    %2 = tpu.memref_slice %arg22[%c1_i32] : memref<2x!tpu.dma_semaphore, #tpu.memory_space<semaphore_mem>> -> memref<1x!tpu.dma_semaphore, #tpu.memory_space<semaphore_mem>>
    %3 = tpu.memref_squeeze %2 : memref<1x!tpu.dma_semaphore, #tpu.memory_space<semaphore_mem>> -> memref<!tpu.dma_semaphore, #tpu.memory_space<semaphore_mem>>
    tpu.enqueue_dma source(%arg11 : memref<3200x256xbf16, #tpu.memory_space<any>>) target(%arg21 : memref<3200x256xbf16, #tpu.memory_space<vmem>>) target_semaphore(%3 : memref<!tpu.dma_semaphore, #tpu.memory_space<semaphore_mem>>)
    %c0 = arith.constant 0 : index
    %c0_0 = arith.constant 0 : index
    %4 = vector.load %arg1[%c0, %c0_0] : memref<128x100xbf16, #tpu.memory_space<vmem>>, vector<128x100xbf16>
    %c0_1 = arith.constant 0 : index
    %c0_2 = arith.constant 0 : index
    %5 = vector.load %arg2[%c0_1, %c0_2] : memref<100x64xbf16, #tpu.memory_space<vmem>>, vector<100x64xbf16>
    %cst = arith.constant dense<0.000000e+00> : vector<128x64xf32>
    %6 = tpu.matmul %4, %5, %cst {dimension_numbers = #tpu.dot_dimension_numbers<[1], [0], [0], [1], [0, 0, 1, 1], [], []>} : vector<128x100xbf16>, vector<100x64xbf16>, vector<128x64xf32> -> vector<128x64xf32>
    %c0_3 = arith.constant 0 : index
    %c0_4 = arith.constant 0 : index
    %7 = vector.load %arg3[%c0_3, %c0_4] : memref<1x64xf32, #tpu.memory_space<vmem>>, vector<1x64xf32>
    %8 = vector.broadcast %7 : vector<1x64xf32> to vector<128x64xf32>
    %9 = arith.addf %6, %8 : vector<128x64xf32>
    %cst_5 = arith.constant 0.000000e+00 : f32
    %10 = vector.broadcast %cst_5 : f32 to vector<128x64xf32>
    %11 = arith.maximumf %9, %10 : vector<128x64xf32>
    %12 = arith.truncf %11 : vector<128x64xf32> to vector<128x64xbf16>
    %c0_6 = arith.constant 0 : index
    %c0_7 = arith.constant 0 : index
    %13 = vector.load %arg5[%c0_6, %c0_7] : memref<1600x128xbf16, #tpu.memory_space<vmem>>, vector<1600x128xbf16>
    %c0_8 = arith.constant 0 : index
    %c0_9 = arith.constant 0 : index
    %14 = vector.load %arg4[%c0_8, %c0_9] : memref<800x128xbf16, #tpu.memory_space<vmem>>, vector<800x128xbf16>
    %cst_10 = arith.constant dense<0.000000e+00> : vector<800x64xf32>
    %15 = tpu.matmul %14, %12, %cst_10 {dimension_numbers = #tpu.dot_dimension_numbers<[1], [0], [0], [1], [0, 0, 1, 1], [], []>} : vector<800x128xbf16>, vector<128x64xbf16>, vector<800x64xf32> -> vector<800x64xf32>
    %16 = arith.truncf %15 : vector<800x64xf32> to vector<800x64xbf16>
    %c0_11 = arith.constant 0 : index
    %c0_12 = arith.constant 0 : index
    %17 = vector.load %arg14[%c0_11, %c0_12] : memref<800x64xbf16, #tpu.memory_space<vmem>>, vector<800x64xbf16>
    tpu.vector_store %arg14[%c0_11, %c0_12], %16 {strides = array<i32>} : memref<800x64xbf16, #tpu.memory_space<vmem>>, vector<800x64xbf16>,
    %c0_13 = arith.constant 0 : index
    %c0_14 = arith.constant 0 : index
    %18 = vector.load %arg14[%c0_13, %c0_14] : memref<800x64xbf16, #tpu.memory_space<vmem>>, vector<32x64xbf16>
    %c0_15 = arith.constant 0 : index
    %c0_16 = arith.constant 0 : index
    %19 = vector.load %arg15[%c0_15, %c0_16] : memref<32x1600xbf16, #tpu.memory_space<vmem>>, vector<32x64xbf16>
    tpu.vector_store %arg15[%c0_15, %c0_16], %18 {strides = array<i32>} : memref<32x1600xbf16, #tpu.memory_space<vmem>>, vector<32x64xbf16>,
    %c32 = arith.constant 32 : index
    %c0_17 = arith.constant 0 : index
    %20 = vector.load %arg14[%c32, %c0_17] : memref<800x64xbf16, #tpu.memory_space<vmem>>, vector<32x64xbf16>
    %c0_18 = arith.constant 0 : index
    %c64 = arith.constant 64 : index
    %21 = vector.load %arg15[%c0_18, %c64] : memref<32x1600xbf16, #tpu.memory_space<vmem>>, vector<32x64xbf16>
    tpu.vector_store %arg15[%c0_18, %c64], %20 {strides = array<i32>} : memref<32x1600xbf16, #tpu.memory_space<vmem>>, vector<32x64xbf16>,
    %c64_19 = arith.constant 64 : index
    %c0_20 = arith.constant 0 : index
    %22 = vector.load %arg14[%c64_19, %c0_20] : memref<800x64xbf16, #tpu.memory_space<vmem>>, vector<32x64xbf16>
    %c0_21 = arith.constant 0 : index
    %c128 = arith.constant 128 : index
    %23 = vector.load %arg15[%c0_21, %c128] : memref<32x1600xbf16, #tpu.memory_space<vmem>>, vector<32x64xbf16>
    tpu.vector_store %arg15[%c0_21, %c128], %22 {strides = array<i32>} : memref<32x1600xbf16, #tpu.memory_space<vmem>>, vector<32x64xbf16>,
    %c96 = arith.constant 96 : index
    %c0_22 = arith.constant 0 : index
    %24 = vector.load %arg14[%c96, %c0_22] : memref<800x64xbf16, #tpu.memory_space<vmem>>, vector<32x64xbf16>
    %c0_23 = arith.constant 0 : index
    %c192 = arith.constant 192 : index
    %25 = vector.load %arg15[%c0_23, %c192] : memref<32x1600xbf16, #tpu.memory_space<vmem>>, vector<32x64xbf16>
    tpu.vector_store %arg15[%c0_23, %c192], %24 {strides = array<i32>} : memref<32x1600xbf16, #tpu.memory_space<vmem>>, vector<32x64xbf16>,
    %c128_24 = arith.constant 128 : index
    %c0_25 = arith.constant 0 : index
    %26 = vector.load %arg14[%c128_24, %c0_25] : memref<800x64xbf16, #tpu.memory_space<vmem>>, vector<32x64xbf16>
    %c0_26 = arith.constant 0 : index
    %c256 = arith.constant 256 : index
    %27 = vector.load %arg15[%c0_26, %c256] : memref<32x1600xbf16, #tpu.memory_space<vmem>>, vector<32x64xbf16>
    tpu.vector_store %arg15[%c0_26, %c256], %26 {strides = array<i32>} : memref<32x1600xbf16, #tpu.memory_space<vmem>>, vector<32x64xbf16>,
    %c160 = arith.constant 160 : index
    %c0_27 = arith.constant 0 : index
    %28 = vector.load %arg14[%c160, %c0_27] : memref<800x64xbf16, #tpu.memory_space<vmem>>, vector<32x64xbf16>
    %c0_28 = arith.constant 0 : index
    %c320 = arith.constant 320 : index
    %29 = vector.load %arg15[%c0_28, %c320] : memref<32x1600xbf16, #tpu.memory_space<vmem>>, vector<32x64xbf16>
    tpu.vector_store %arg15[%c0_28, %c320], %28 {strides = array<i32>} : memref<32x1600xbf16, #tpu.memory_space<vmem>>, vector<32x64xbf16>,
    %c192_29 = arith.constant 192 : index
    %c0_30 = arith.constant 0 : index
    %30 = vector.load %arg14[%c192_29, %c0_30] : memref<800x64xbf16, #tpu.memory_space<vmem>>, vector<32x64xbf16>
    %c0_31 = arith.constant 0 : index
    %c384 = arith.constant 384 : index
    %31 = vector.load %arg15[%c0_31, %c384] : memref<32x1600xbf16, #tpu.memory_space<vmem>>, vector<32x64xbf16>
    tpu.vector_store %arg15[%c0_31, %c384], %30 {strides = array<i32>} : memref<32x1600xbf16, #tpu.memory_space<vmem>>, vector<32x64xbf16>,
    %c224 = arith.constant 224 : index
    %c0_32 = arith.constant 0 : index
    %32 = vector.load %arg14[%c224, %c0_32] : memref<800x64xbf16, #tpu.memory_space<vmem>>, vector<32x64xbf16>
    %c0_33 = arith.constant 0 : index
    %c448 = arith.constant 448 : index
    %33 = vector.load %arg15[%c0_33, %c448] : memref<32x1600xbf16, #tpu.memory_space<vmem>>, vector<32x64xbf16>
    tpu.vector_store %arg15[%c0_33, %c448], %32 {strides = array<i32>} : memref<32x1600xbf16, #tpu.memory_space<vmem>>, vector<32x64xbf16>,
    %c256_34 = arith.constant 256 : index
    %c0_35 = arith.constant 0 : index
    %34 = vector.load %arg14[%c256_34, %c0_35] : memref<800x64xbf16, #tpu.memory_space<vmem>>, vector<32x64xbf16>
    %c0_36 = arith.constant 0 : index
    %c512 = arith.constant 512 : index
    %35 = vector.load %arg15[%c0_36, %c512] : memref<32x1600xbf16, #tpu.memory_space<vmem>>, vector<32x64xbf16>
    tpu.vector_store %arg15[%c0_36, %c512], %34 {strides = array<i32>} : memref<32x1600xbf16, #tpu.memory_space<vmem>>, vector<32x64xbf16>,
    %c288 = arith.constant 288 : index
    %c0_37 = arith.constant 0 : index
    %36 = vector.load %arg14[%c288, %c0_37] : memref<800x64xbf16, #tpu.memory_space<vmem>>, vector<32x64xbf16>
    %c0_38 = arith.constant 0 : index
    %c576 = arith.constant 576 : index
    %37 = vector.load %arg15[%c0_38, %c576] : memref<32x1600xbf16, #tpu.memory_space<vmem>>, vector<32x64xbf16>
    tpu.vector_store %arg15[%c0_38, %c576], %36 {strides = array<i32>} : memref<32x1600xbf16, #tpu.memory_space<vmem>>, vector<32x64xbf16>,
    %c320_39 = arith.constant 320 : index
    %c0_40 = arith.constant 0 : index
    %38 = vector.load %arg14[%c320_39, %c0_40] : memref<800x64xbf16, #tpu.memory_space<vmem>>, vector<32x64xbf16>
    %c0_41 = arith.constant 0 : index
    %c640 = arith.constant 640 : index
    %39 = vector.load %arg15[%c0_41, %c640] : memref<32x1600xbf16, #tpu.memory_space<vmem>>, vector<32x64xbf16>
    tpu.vector_store %arg15[%c0_41, %c640], %38 {strides = array<i32>} : memref<32x1600xbf16, #tpu.memory_space<vmem>>, vector<32x64xbf16>,
    %c352 = arith.constant 352 : index
    %c0_42 = arith.constant 0 : index
    %40 = vector.load %arg14[%c352, %c0_42] : memref<800x64xbf16, #tpu.memory_space<vmem>>, vector<32x64xbf16>
    %c0_43 = arith.constant 0 : index
    %c704 = arith.constant 704 : index
    %41 = vector.load %arg15[%c0_43, %c704] : memref<32x1600xbf16, #tpu.memory_space<vmem>>, vector<32x64xbf16>
    tpu.vector_store %arg15[%c0_43, %c704], %40 {strides = array<i32>} : memref<32x1600xbf16, #tpu.memory_space<vmem>>, vector<32x64xbf16>,
    %c384_44 = arith.constant 384 : index
    %c0_45 = arith.constant 0 : index
    %42 = vector.load %arg14[%c384_44, %c0_45] : memref<800x64xbf16, #tpu.memory_space<vmem>>, vector<32x64xbf16>
    %c0_46 = arith.constant 0 : index
    %c768 = arith.constant 768 : index
    %43 = vector.load %arg15[%c0_46, %c768] : memref<32x1600xbf16, #tpu.memory_space<vmem>>, vector<32x64xbf16>
    tpu.vector_store %arg15[%c0_46, %c768], %42 {strides = array<i32>} : memref<32x1600xbf16, #tpu.memory_space<vmem>>, vector<32x64xbf16>,
    %c416 = arith.constant 416 : index
    %c0_47 = arith.constant 0 : index
    %44 = vector.load %arg14[%c416, %c0_47] : memref<800x64xbf16, #tpu.memory_space<vmem>>, vector<32x64xbf16>
    %c0_48 = arith.constant 0 : index
    %c832 = arith.constant 832 : index
    %45 = vector.load %arg15[%c0_48, %c832] : memref<32x1600xbf16, #tpu.memory_space<vmem>>, vector<32x64xbf16>
    tpu.vector_store %arg15[%c0_48, %c832], %44 {strides = array<i32>} : memref<32x1600xbf16, #tpu.memory_space<vmem>>, vector<32x64xbf16>,
    %c448_49 = arith.constant 448 : index
    %c0_50 = arith.constant 0 : index
    %46 = vector.load %arg14[%c448_49, %c0_50] : memref<800x64xbf16, #tpu.memory_space<vmem>>, vector<32x64xbf16>
    %c0_51 = arith.constant 0 : index
    %c896 = arith.constant 896 : index
    %47 = vector.load %arg15[%c0_51, %c896] : memref<32x1600xbf16, #tpu.memory_space<vmem>>, vector<32x64xbf16>
    tpu.vector_store %arg15[%c0_51, %c896], %46 {strides = array<i32>} : memref<32x1600xbf16, #tpu.memory_space<vmem>>, vector<32x64xbf16>,
    %c480 = arith.constant 480 : index
    %c0_52 = arith.constant 0 : index
    %48 = vector.load %arg14[%c480, %c0_52] : memref<800x64xbf16, #tpu.memory_space<vmem>>, vector<32x64xbf16>
    %c0_53 = arith.constant 0 : index
    %c960 = arith.constant 960 : index
    %49 = vector.load %arg15[%c0_53, %c960] : memref<32x1600xbf16, #tpu.memory_space<vmem>>, vector<32x64xbf16>
    tpu.vector_store %arg15[%c0_53, %c960], %48 {strides = array<i32>} : memref<32x1600xbf16, #tpu.memory_space<vmem>>, vector<32x64xbf16>,
    %c512_54 = arith.constant 512 : index
    %c0_55 = arith.constant 0 : index
    %50 = vector.load %arg14[%c512_54, %c0_55] : memref<800x64xbf16, #tpu.memory_space<vmem>>, vector<32x64xbf16>
    %c0_56 = arith.constant 0 : index
    %c1024 = arith.constant 1024 : index
    %51 = vector.load %arg15[%c0_56, %c1024] : memref<32x1600xbf16, #tpu.memory_space<vmem>>, vector<32x64xbf16>
    tpu.vector_store %arg15[%c0_56, %c1024], %50 {strides = array<i32>} : memref<32x1600xbf16, #tpu.memory_space<vmem>>, vector<32x64xbf16>,
    %c544 = arith.constant 544 : index
    %c0_57 = arith.constant 0 : index
    %52 = vector.load %arg14[%c544, %c0_57] : memref<800x64xbf16, #tpu.memory_space<vmem>>, vector<32x64xbf16>
    %c0_58 = arith.constant 0 : index
    %c1088 = arith.constant 1088 : index
    %53 = vector.load %arg15[%c0_58, %c1088] : memref<32x1600xbf16, #tpu.memory_space<vmem>>, vector<32x64xbf16>
    tpu.vector_store %arg15[%c0_58, %c1088], %52 {strides = array<i32>} : memref<32x1600xbf16, #tpu.memory_space<vmem>>, vector<32x64xbf16>,
    %c576_59 = arith.constant 576 : index
    %c0_60 = arith.constant 0 : index
    %54 = vector.load %arg14[%c576_59, %c0_60] : memref<800x64xbf16, #tpu.memory_space<vmem>>, vector<32x64xbf16>
    %c0_61 = arith.constant 0 : index
    %c1152 = arith.constant 1152 : index
    %55 = vector.load %arg15[%c0_61, %c1152] : memref<32x1600xbf16, #tpu.memory_space<vmem>>, vector<32x64xbf16>
    tpu.vector_store %arg15[%c0_61, %c1152], %54 {strides = array<i32>} : memref<32x1600xbf16, #tpu.memory_space<vmem>>, vector<32x64xbf16>,
    %c608 = arith.constant 608 : index
    %c0_62 = arith.constant 0 : index
    %56 = vector.load %arg14[%c608, %c0_62] : memref<800x64xbf16, #tpu.memory_space<vmem>>, vector<32x64xbf16>
    %c0_63 = arith.constant 0 : index
    %c1216 = arith.constant 1216 : index
    %57 = vector.load %arg15[%c0_63, %c1216] : memref<32x1600xbf16, #tpu.memory_space<vmem>>, vector<32x64xbf16>
    tpu.vector_store %arg15[%c0_63, %c1216], %56 {strides = array<i32>} : memref<32x1600xbf16, #tpu.memory_space<vmem>>, vector<32x64xbf16>,
    %c640_64 = arith.constant 640 : index
    %c0_65 = arith.constant 0 : index
    %58 = vector.load %arg14[%c640_64, %c0_65] : memref<800x64xbf16, #tpu.memory_space<vmem>>, vector<32x64xbf16>
    %c0_66 = arith.constant 0 : index
    %c1280 = arith.constant 1280 : index
    %59 = vector.load %arg15[%c0_66, %c1280] : memref<32x1600xbf16, #tpu.memory_space<vmem>>, vector<32x64xbf16>
    tpu.vector_store %arg15[%c0_66, %c1280], %58 {strides = array<i32>} : memref<32x1600xbf16, #tpu.memory_space<vmem>>, vector<32x64xbf16>,
    %c672 = arith.constant 672 : index
    %c0_67 = arith.constant 0 : index
    %60 = vector.load %arg14[%c672, %c0_67] : memref<800x64xbf16, #tpu.memory_space<vmem>>, vector<32x64xbf16>
    %c0_68 = arith.constant 0 : index
    %c1344 = arith.constant 1344 : index
    %61 = vector.load %arg15[%c0_68, %c1344] : memref<32x1600xbf16, #tpu.memory_space<vmem>>, vector<32x64xbf16>
    tpu.vector_store %arg15[%c0_68, %c1344], %60 {strides = array<i32>} : memref<32x1600xbf16, #tpu.memory_space<vmem>>, vector<32x64xbf16>,
    %c704_69 = arith.constant 704 : index
    %c0_70 = arith.constant 0 : index
    %62 = vector.load %arg14[%c704_69, %c0_70] : memref<800x64xbf16, #tpu.memory_space<vmem>>, vector<32x64xbf16>
    %c0_71 = arith.constant 0 : index
    %c1408 = arith.constant 1408 : index
    %63 = vector.load %arg15[%c0_71, %c1408] : memref<32x1600xbf16, #tpu.memory_space<vmem>>, vector<32x64xbf16>
    tpu.vector_store %arg15[%c0_71, %c1408], %62 {strides = array<i32>} : memref<32x1600xbf16, #tpu.memory_space<vmem>>, vector<32x64xbf16>,
    %c736 = arith.constant 736 : index
    %c0_72 = arith.constant 0 : index
    %64 = vector.load %arg14[%c736, %c0_72] : memref<800x64xbf16, #tpu.memory_space<vmem>>, vector<32x64xbf16>
    %c0_73 = arith.constant 0 : index
    %c1472 = arith.constant 1472 : index
    %65 = vector.load %arg15[%c0_73, %c1472] : memref<32x1600xbf16, #tpu.memory_space<vmem>>, vector<32x64xbf16>
    tpu.vector_store %arg15[%c0_73, %c1472], %64 {strides = array<i32>} : memref<32x1600xbf16, #tpu.memory_space<vmem>>, vector<32x64xbf16>,
    %c768_74 = arith.constant 768 : index
    %c0_75 = arith.constant 0 : index
    %66 = vector.load %arg14[%c768_74, %c0_75] : memref<800x64xbf16, #tpu.memory_space<vmem>>, vector<32x64xbf16>
    %c0_76 = arith.constant 0 : index
    %c1536 = arith.constant 1536 : index
    %67 = vector.load %arg15[%c0_76, %c1536] : memref<32x1600xbf16, #tpu.memory_space<vmem>>, vector<32x64xbf16>
    tpu.vector_store %arg15[%c0_76, %c1536], %66 {strides = array<i32>} : memref<32x1600xbf16, #tpu.memory_space<vmem>>, vector<32x64xbf16>,
    %c0_77 = arith.constant 0 : index
    %c0_78 = arith.constant 0 : index
    %68 = vector.load %arg15[%c0_77, %c0_78] : memref<32x1600xbf16, #tpu.memory_space<vmem>>, vector<32x1600xbf16>
    %cst_79 = arith.constant dense<0.000000e+00> : vector<32x128xf32>
    %69 = tpu.matmul %68, %13, %cst_79 {dimension_numbers = #tpu.dot_dimension_numbers<[1], [0], [0], [1], [0, 0, 1, 1], [], []>} : vector<32x1600xbf16>, vector<1600x128xbf16>, vector<32x128xf32> -> vector<32x128xf32>
    %c0_80 = arith.constant 0 : index
    %c0_81 = arith.constant 0 : index
    %70 = vector.load %arg6[%c0_80, %c0_81] : memref<1x128xf32, #tpu.memory_space<vmem>>, vector<1x128xf32>
    %71 = vector.broadcast %70 : vector<1x128xf32> to vector<32x128xf32>
    %72 = arith.addf %69, %71 : vector<32x128xf32>
    %cst_82 = arith.constant 0.000000e+00 : f32
    %73 = vector.broadcast %cst_82 : f32 to vector<32x128xf32>
    %74 = arith.maximumf %72, %73 : vector<32x128xf32>
    %75 = arith.truncf %74 : vector<32x128xf32> to vector<32x128xbf16>
    %c0_i32_83 = arith.constant 0 : i32
    %76 = tpu.memref_slice %arg22[%c0_i32_83] : memref<2x!tpu.dma_semaphore, #tpu.memory_space<semaphore_mem>> -> memref<1x!tpu.dma_semaphore, #tpu.memory_space<semaphore_mem>>
    %77 = tpu.memref_squeeze %76 : memref<1x!tpu.dma_semaphore, #tpu.memory_space<semaphore_mem>> -> memref<!tpu.dma_semaphore, #tpu.memory_space<semaphore_mem>>
    tpu.wait_dma2 semaphore(%77 : memref<!tpu.dma_semaphore, #tpu.memory_space<semaphore_mem>>) src(%arg8 : memref<3200x128xbf16, #tpu.memory_space<any>>) dst(%arg20 : memref<3200x128xbf16, #tpu.memory_space<vmem>>)
    %c0_84 = arith.constant 0 : index
    %c0_85 = arith.constant 0 : index
    %78 = vector.load %arg20[%c0_84, %c0_85] : memref<3200x128xbf16, #tpu.memory_space<vmem>>, vector<3200x128xbf16>
    %c0_86 = arith.constant 0 : index
    %c0_87 = arith.constant 0 : index
    %79 = vector.load %arg7[%c0_86, %c0_87] : memref<200x32xbf16, #tpu.memory_space<vmem>>, vector<200x32xbf16>
    %cst_88 = arith.constant dense<0.000000e+00> : vector<200x128xf32>
    %80 = tpu.matmul %79, %75, %cst_88 {dimension_numbers = #tpu.dot_dimension_numbers<[1], [0], [0], [1], [0, 0, 1, 1], [], []>} : vector<200x32xbf16>, vector<32x128xbf16>, vector<200x128xf32> -> vector<200x128xf32>
    %81 = arith.truncf %80 : vector<200x128xf32> to vector<200x128xbf16>
    %c0_89 = arith.constant 0 : index
    %c0_90 = arith.constant 0 : index
    %82 = vector.load %arg16[%c0_89, %c0_90] : memref<200x128xbf16, #tpu.memory_space<vmem>>, vector<200x128xbf16>
    tpu.vector_store %arg16[%c0_89, %c0_90], %81 {strides = array<i32>} : memref<200x128xbf16, #tpu.memory_space<vmem>>, vector<200x128xbf16>,
    %c0_91 = arith.constant 0 : index
    %c0_92 = arith.constant 0 : index
    %83 = vector.load %arg16[%c0_91, %c0_92] : memref<200x128xbf16, #tpu.memory_space<vmem>>, vector<8x128xbf16>
    %c0_93 = arith.constant 0 : index
    %c0_94 = arith.constant 0 : index
    %84 = vector.load %arg17[%c0_93, %c0_94] : memref<8x3200xbf16, #tpu.memory_space<vmem>>, vector<8x128xbf16>
    tpu.vector_store %arg17[%c0_93, %c0_94], %83 {strides = array<i32>} : memref<8x3200xbf16, #tpu.memory_space<vmem>>, vector<8x128xbf16>,
    %c8 = arith.constant 8 : index
    %c0_95 = arith.constant 0 : index
    %85 = vector.load %arg16[%c8, %c0_95] : memref<200x128xbf16, #tpu.memory_space<vmem>>, vector<8x128xbf16>
    %c0_96 = arith.constant 0 : index
    %c128_97 = arith.constant 128 : index
    %86 = vector.load %arg17[%c0_96, %c128_97] : memref<8x3200xbf16, #tpu.memory_space<vmem>>, vector<8x128xbf16>
    tpu.vector_store %arg17[%c0_96, %c128_97], %85 {strides = array<i32>} : memref<8x3200xbf16, #tpu.memory_space<vmem>>, vector<8x128xbf16>,
    %c16 = arith.constant 16 : index
    %c0_98 = arith.constant 0 : index
    %87 = vector.load %arg16[%c16, %c0_98] : memref<200x128xbf16, #tpu.memory_space<vmem>>, vector<8x128xbf16>
    %c0_99 = arith.constant 0 : index
    %c256_100 = arith.constant 256 : index
    %88 = vector.load %arg17[%c0_99, %c256_100] : memref<8x3200xbf16, #tpu.memory_space<vmem>>, vector<8x128xbf16>
    tpu.vector_store %arg17[%c0_99, %c256_100], %87 {strides = array<i32>} : memref<8x3200xbf16, #tpu.memory_space<vmem>>, vector<8x128xbf16>,
    %c24 = arith.constant 24 : index
    %c0_101 = arith.constant 0 : index
    %89 = vector.load %arg16[%c24, %c0_101] : memref<200x128xbf16, #tpu.memory_space<vmem>>, vector<8x128xbf16>
    %c0_102 = arith.constant 0 : index
    %c384_103 = arith.constant 384 : index
    %90 = vector.load %arg17[%c0_102, %c384_103] : memref<8x3200xbf16, #tpu.memory_space<vmem>>, vector<8x128xbf16>
    tpu.vector_store %arg17[%c0_102, %c384_103], %89 {strides = array<i32>} : memref<8x3200xbf16, #tpu.memory_space<vmem>>, vector<8x128xbf16>,
    %c32_104 = arith.constant 32 : index
    %c0_105 = arith.constant 0 : index
    %91 = vector.load %arg16[%c32_104, %c0_105] : memref<200x128xbf16, #tpu.memory_space<vmem>>, vector<8x128xbf16>
    %c0_106 = arith.constant 0 : index
    %c512_107 = arith.constant 512 : index
    %92 = vector.load %arg17[%c0_106, %c512_107] : memref<8x3200xbf16, #tpu.memory_space<vmem>>, vector<8x128xbf16>
    tpu.vector_store %arg17[%c0_106, %c512_107], %91 {strides = array<i32>} : memref<8x3200xbf16, #tpu.memory_space<vmem>>, vector<8x128xbf16>,
    %c40 = arith.constant 40 : index
    %c0_108 = arith.constant 0 : index
    %93 = vector.load %arg16[%c40, %c0_108] : memref<200x128xbf16, #tpu.memory_space<vmem>>, vector<8x128xbf16>
    %c0_109 = arith.constant 0 : index
    %c640_110 = arith.constant 640 : index
    %94 = vector.load %arg17[%c0_109, %c640_110] : memref<8x3200xbf16, #tpu.memory_space<vmem>>, vector<8x128xbf16>
    tpu.vector_store %arg17[%c0_109, %c640_110], %93 {strides = array<i32>} : memref<8x3200xbf16, #tpu.memory_space<vmem>>, vector<8x128xbf16>,
    %c48 = arith.constant 48 : index
    %c0_111 = arith.constant 0 : index
    %95 = vector.load %arg16[%c48, %c0_111] : memref<200x128xbf16, #tpu.memory_space<vmem>>, vector<8x128xbf16>
    %c0_112 = arith.constant 0 : index
    %c768_113 = arith.constant 768 : index
    %96 = vector.load %arg17[%c0_112, %c768_113] : memref<8x3200xbf16, #tpu.memory_space<vmem>>, vector<8x128xbf16>
    tpu.vector_store %arg17[%c0_112, %c768_113], %95 {strides = array<i32>} : memref<8x3200xbf16, #tpu.memory_space<vmem>>, vector<8x128xbf16>,
    %c56 = arith.constant 56 : index
    %c0_114 = arith.constant 0 : index
    %97 = vector.load %arg16[%c56, %c0_114] : memref<200x128xbf16, #tpu.memory_space<vmem>>, vector<8x128xbf16>
    %c0_115 = arith.constant 0 : index
    %c896_116 = arith.constant 896 : index
    %98 = vector.load %arg17[%c0_115, %c896_116] : memref<8x3200xbf16, #tpu.memory_space<vmem>>, vector<8x128xbf16>
    tpu.vector_store %arg17[%c0_115, %c896_116], %97 {strides = array<i32>} : memref<8x3200xbf16, #tpu.memory_space<vmem>>, vector<8x128xbf16>,
    %c64_117 = arith.constant 64 : index
    %c0_118 = arith.constant 0 : index
    %99 = vector.load %arg16[%c64_117, %c0_118] : memref<200x128xbf16, #tpu.memory_space<vmem>>, vector<8x128xbf16>
    %c0_119 = arith.constant 0 : index
    %c1024_120 = arith.constant 1024 : index
    %100 = vector.load %arg17[%c0_119, %c1024_120] : memref<8x3200xbf16, #tpu.memory_space<vmem>>, vector<8x128xbf16>
    tpu.vector_store %arg17[%c0_119, %c1024_120], %99 {strides = array<i32>} : memref<8x3200xbf16, #tpu.memory_space<vmem>>, vector<8x128xbf16>,
    %c72 = arith.constant 72 : index
    %c0_121 = arith.constant 0 : index
    %101 = vector.load %arg16[%c72, %c0_121] : memref<200x128xbf16, #tpu.memory_space<vmem>>, vector<8x128xbf16>
    %c0_122 = arith.constant 0 : index
    %c1152_123 = arith.constant 1152 : index
    %102 = vector.load %arg17[%c0_122, %c1152_123] : memref<8x3200xbf16, #tpu.memory_space<vmem>>, vector<8x128xbf16>
    tpu.vector_store %arg17[%c0_122, %c1152_123], %101 {strides = array<i32>} : memref<8x3200xbf16, #tpu.memory_space<vmem>>, vector<8x128xbf16>,
    %c80 = arith.constant 80 : index
    %c0_124 = arith.constant 0 : index
    %103 = vector.load %arg16[%c80, %c0_124] : memref<200x128xbf16, #tpu.memory_space<vmem>>, vector<8x128xbf16>
    %c0_125 = arith.constant 0 : index
    %c1280_126 = arith.constant 1280 : index
    %104 = vector.load %arg17[%c0_125, %c1280_126] : memref<8x3200xbf16, #tpu.memory_space<vmem>>, vector<8x128xbf16>
    tpu.vector_store %arg17[%c0_125, %c1280_126], %103 {strides = array<i32>} : memref<8x3200xbf16, #tpu.memory_space<vmem>>, vector<8x128xbf16>,
    %c88 = arith.constant 88 : index
    %c0_127 = arith.constant 0 : index
    %105 = vector.load %arg16[%c88, %c0_127] : memref<200x128xbf16, #tpu.memory_space<vmem>>, vector<8x128xbf16>
    %c0_128 = arith.constant 0 : index
    %c1408_129 = arith.constant 1408 : index
    %106 = vector.load %arg17[%c0_128, %c1408_129] : memref<8x3200xbf16, #tpu.memory_space<vmem>>, vector<8x128xbf16>
    tpu.vector_store %arg17[%c0_128, %c1408_129], %105 {strides = array<i32>} : memref<8x3200xbf16, #tpu.memory_space<vmem>>, vector<8x128xbf16>,
    %c96_130 = arith.constant 96 : index
    %c0_131 = arith.constant 0 : index
    %107 = vector.load %arg16[%c96_130, %c0_131] : memref<200x128xbf16, #tpu.memory_space<vmem>>, vector<8x128xbf16>
    %c0_132 = arith.constant 0 : index
    %c1536_133 = arith.constant 1536 : index
    %108 = vector.load %arg17[%c0_132, %c1536_133] : memref<8x3200xbf16, #tpu.memory_space<vmem>>, vector<8x128xbf16>
    tpu.vector_store %arg17[%c0_132, %c1536_133], %107 {strides = array<i32>} : memref<8x3200xbf16, #tpu.memory_space<vmem>>, vector<8x128xbf16>,
    %c104 = arith.constant 104 : index
    %c0_134 = arith.constant 0 : index
    %109 = vector.load %arg16[%c104, %c0_134] : memref<200x128xbf16, #tpu.memory_space<vmem>>, vector<8x128xbf16>
    %c0_135 = arith.constant 0 : index
    %c1664 = arith.constant 1664 : index
    %110 = vector.load %arg17[%c0_135, %c1664] : memref<8x3200xbf16, #tpu.memory_space<vmem>>, vector<8x128xbf16>
    tpu.vector_store %arg17[%c0_135, %c1664], %109 {strides = array<i32>} : memref<8x3200xbf16, #tpu.memory_space<vmem>>, vector<8x128xbf16>,
    %c112 = arith.constant 112 : index
    %c0_136 = arith.constant 0 : index
    %111 = vector.load %arg16[%c112, %c0_136] : memref<200x128xbf16, #tpu.memory_space<vmem>>, vector<8x128xbf16>
    %c0_137 = arith.constant 0 : index
    %c1792 = arith.constant 1792 : index
    %112 = vector.load %arg17[%c0_137, %c1792] : memref<8x3200xbf16, #tpu.memory_space<vmem>>, vector<8x128xbf16>
    tpu.vector_store %arg17[%c0_137, %c1792], %111 {strides = array<i32>} : memref<8x3200xbf16, #tpu.memory_space<vmem>>, vector<8x128xbf16>,
    %c120 = arith.constant 120 : index
    %c0_138 = arith.constant 0 : index
    %113 = vector.load %arg16[%c120, %c0_138] : memref<200x128xbf16, #tpu.memory_space<vmem>>, vector<8x128xbf16>
    %c0_139 = arith.constant 0 : index
    %c1920 = arith.constant 1920 : index
    %114 = vector.load %arg17[%c0_139, %c1920] : memref<8x3200xbf16, #tpu.memory_space<vmem>>, vector<8x128xbf16>
    tpu.vector_store %arg17[%c0_139, %c1920], %113 {strides = array<i32>} : memref<8x3200xbf16, #tpu.memory_space<vmem>>, vector<8x128xbf16>,
    %c128_140 = arith.constant 128 : index
    %c0_141 = arith.constant 0 : index
    %115 = vector.load %arg16[%c128_140, %c0_141] : memref<200x128xbf16, #tpu.memory_space<vmem>>, vector<8x128xbf16>
    %c0_142 = arith.constant 0 : index
    %c2048 = arith.constant 2048 : index
    %116 = vector.load %arg17[%c0_142, %c2048] : memref<8x3200xbf16, #tpu.memory_space<vmem>>, vector<8x128xbf16>
    tpu.vector_store %arg17[%c0_142, %c2048], %115 {strides = array<i32>} : memref<8x3200xbf16, #tpu.memory_space<vmem>>, vector<8x128xbf16>,
    %c136 = arith.constant 136 : index
    %c0_143 = arith.constant 0 : index
    %117 = vector.load %arg16[%c136, %c0_143] : memref<200x128xbf16, #tpu.memory_space<vmem>>, vector<8x128xbf16>
    %c0_144 = arith.constant 0 : index
    %c2176 = arith.constant 2176 : index
    %118 = vector.load %arg17[%c0_144, %c2176] : memref<8x3200xbf16, #tpu.memory_space<vmem>>, vector<8x128xbf16>
    tpu.vector_store %arg17[%c0_144, %c2176], %117 {strides = array<i32>} : memref<8x3200xbf16, #tpu.memory_space<vmem>>, vector<8x128xbf16>,
    %c144 = arith.constant 144 : index
    %c0_145 = arith.constant 0 : index
    %119 = vector.load %arg16[%c144, %c0_145] : memref<200x128xbf16, #tpu.memory_space<vmem>>, vector<8x128xbf16>
    %c0_146 = arith.constant 0 : index
    %c2304 = arith.constant 2304 : index
    %120 = vector.load %arg17[%c0_146, %c2304] : memref<8x3200xbf16, #tpu.memory_space<vmem>>, vector<8x128xbf16>
    tpu.vector_store %arg17[%c0_146, %c2304], %119 {strides = array<i32>} : memref<8x3200xbf16, #tpu.memory_space<vmem>>, vector<8x128xbf16>,
    %c152 = arith.constant 152 : index
    %c0_147 = arith.constant 0 : index
    %121 = vector.load %arg16[%c152, %c0_147] : memref<200x128xbf16, #tpu.memory_space<vmem>>, vector<8x128xbf16>
    %c0_148 = arith.constant 0 : index
    %c2432 = arith.constant 2432 : index
    %122 = vector.load %arg17[%c0_148, %c2432] : memref<8x3200xbf16, #tpu.memory_space<vmem>>, vector<8x128xbf16>
    tpu.vector_store %arg17[%c0_148, %c2432], %121 {strides = array<i32>} : memref<8x3200xbf16, #tpu.memory_space<vmem>>, vector<8x128xbf16>,
    %c160_149 = arith.constant 160 : index
    %c0_150 = arith.constant 0 : index
    %123 = vector.load %arg16[%c160_149, %c0_150] : memref<200x128xbf16, #tpu.memory_space<vmem>>, vector<8x128xbf16>
    %c0_151 = arith.constant 0 : index
    %c2560 = arith.constant 2560 : index
    %124 = vector.load %arg17[%c0_151, %c2560] : memref<8x3200xbf16, #tpu.memory_space<vmem>>, vector<8x128xbf16>
    tpu.vector_store %arg17[%c0_151, %c2560], %123 {strides = array<i32>} : memref<8x3200xbf16, #tpu.memory_space<vmem>>, vector<8x128xbf16>,
    %c168 = arith.constant 168 : index
    %c0_152 = arith.constant 0 : index
    %125 = vector.load %arg16[%c168, %c0_152] : memref<200x128xbf16, #tpu.memory_space<vmem>>, vector<8x128xbf16>
    %c0_153 = arith.constant 0 : index
    %c2688 = arith.constant 2688 : index
    %126 = vector.load %arg17[%c0_153, %c2688] : memref<8x3200xbf16, #tpu.memory_space<vmem>>, vector<8x128xbf16>
    tpu.vector_store %arg17[%c0_153, %c2688], %125 {strides = array<i32>} : memref<8x3200xbf16, #tpu.memory_space<vmem>>, vector<8x128xbf16>,
    %c176 = arith.constant 176 : index
    %c0_154 = arith.constant 0 : index
    %127 = vector.load %arg16[%c176, %c0_154] : memref<200x128xbf16, #tpu.memory_space<vmem>>, vector<8x128xbf16>
    %c0_155 = arith.constant 0 : index
    %c2816 = arith.constant 2816 : index
    %128 = vector.load %arg17[%c0_155, %c2816] : memref<8x3200xbf16, #tpu.memory_space<vmem>>, vector<8x128xbf16>
    tpu.vector_store %arg17[%c0_155, %c2816], %127 {strides = array<i32>} : memref<8x3200xbf16, #tpu.memory_space<vmem>>, vector<8x128xbf16>,
    %c184 = arith.constant 184 : index
    %c0_156 = arith.constant 0 : index
    %129 = vector.load %arg16[%c184, %c0_156] : memref<200x128xbf16, #tpu.memory_space<vmem>>, vector<8x128xbf16>
    %c0_157 = arith.constant 0 : index
    %c2944 = arith.constant 2944 : index
    %130 = vector.load %arg17[%c0_157, %c2944] : memref<8x3200xbf16, #tpu.memory_space<vmem>>, vector<8x128xbf16>
    tpu.vector_store %arg17[%c0_157, %c2944], %129 {strides = array<i32>} : memref<8x3200xbf16, #tpu.memory_space<vmem>>, vector<8x128xbf16>,
    %c192_158 = arith.constant 192 : index
    %c0_159 = arith.constant 0 : index
    %131 = vector.load %arg16[%c192_158, %c0_159] : memref<200x128xbf16, #tpu.memory_space<vmem>>, vector<8x128xbf16>
    %c0_160 = arith.constant 0 : index
    %c3072 = arith.constant 3072 : index
    %132 = vector.load %arg17[%c0_160, %c3072] : memref<8x3200xbf16, #tpu.memory_space<vmem>>, vector<8x128xbf16>
    tpu.vector_store %arg17[%c0_160, %c3072], %131 {strides = array<i32>} : memref<8x3200xbf16, #tpu.memory_space<vmem>>, vector<8x128xbf16>,
    %c0_161 = arith.constant 0 : index
    %c0_162 = arith.constant 0 : index
    %133 = vector.load %arg17[%c0_161, %c0_162] : memref<8x3200xbf16, #tpu.memory_space<vmem>>, vector<8x3200xbf16>
    %cst_163 = arith.constant dense<0.000000e+00> : vector<8x128xf32>
    %134 = tpu.matmul %133, %78, %cst_163 {dimension_numbers = #tpu.dot_dimension_numbers<[1], [0], [0], [1], [0, 0, 1, 1], [], []>} : vector<8x3200xbf16>, vector<3200x128xbf16>, vector<8x128xf32> -> vector<8x128xf32>
    %c0_164 = arith.constant 0 : index
    %c0_165 = arith.constant 0 : index
    %135 = vector.load %arg9[%c0_164, %c0_165] : memref<1x128xf32, #tpu.memory_space<vmem>>, vector<1x128xf32>
    %136 = vector.broadcast %135 : vector<1x128xf32> to vector<8x128xf32>
    %137 = arith.addf %134, %136 : vector<8x128xf32>
    %cst_166 = arith.constant 0.000000e+00 : f32
    %138 = vector.broadcast %cst_166 : f32 to vector<8x128xf32>
    %139 = arith.maximumf %137, %138 : vector<8x128xf32>
    %140 = arith.truncf %139 : vector<8x128xf32> to vector<8x128xbf16>
    %c1_i32_167 = arith.constant 1 : i32
    %141 = tpu.memref_slice %arg22[%c1_i32_167] : memref<2x!tpu.dma_semaphore, #tpu.memory_space<semaphore_mem>> -> memref<1x!tpu.dma_semaphore, #tpu.memory_space<semaphore_mem>>
    %142 = tpu.memref_squeeze %141 : memref<1x!tpu.dma_semaphore, #tpu.memory_space<semaphore_mem>> -> memref<!tpu.dma_semaphore, #tpu.memory_space<semaphore_mem>>
    tpu.wait_dma2 semaphore(%142 : memref<!tpu.dma_semaphore, #tpu.memory_space<semaphore_mem>>) src(%arg11 : memref<3200x256xbf16, #tpu.memory_space<any>>) dst(%arg21 : memref<3200x256xbf16, #tpu.memory_space<vmem>>)
    %c0_168 = arith.constant 0 : index
    %c0_169 = arith.constant 0 : index
    %143 = vector.load %arg21[%c0_168, %c0_169] : memref<3200x256xbf16, #tpu.memory_space<vmem>>, vector<3200x256xbf16>
    %c0_170 = arith.constant 0 : index
    %c0_171 = arith.constant 0 : index
    %144 = vector.load %arg10[%c0_170, %c0_171] : memref<200x8xbf16, #tpu.memory_space<vmem>>, vector<200x8xbf16>
    %cst_172 = arith.constant dense<0.000000e+00> : vector<200x128xf32>
    %145 = tpu.matmul %144, %140, %cst_172 {dimension_numbers = #tpu.dot_dimension_numbers<[1], [0], [0], [1], [0, 0, 1, 1], [], []>} : vector<200x8xbf16>, vector<8x128xbf16>, vector<200x128xf32> -> vector<200x128xf32>
    %146 = arith.truncf %145 : vector<200x128xf32> to vector<200x128xbf16>
    %c0_173 = arith.constant 0 : index
    %c0_174 = arith.constant 0 : index
    %147 = vector.load %arg18[%c0_173, %c0_174] : memref<200x128xbf16, #tpu.memory_space<vmem>>, vector<200x128xbf16>
    tpu.vector_store %arg18[%c0_173, %c0_174], %146 {strides = array<i32>} : memref<200x128xbf16, #tpu.memory_space<vmem>>, vector<200x128xbf16>,
    %c0_175 = arith.constant 0 : index
    %c0_176 = arith.constant 0 : index
    %148 = vector.load %arg18[%c0_175, %c0_176] : memref<200x128xbf16, #tpu.memory_space<vmem>>, vector<8x128xbf16>
    %c0_177 = arith.constant 0 : index
    %c0_178 = arith.constant 0 : index
    %149 = vector.load %arg19[%c0_177, %c0_178] : memref<8x3200xbf16, #tpu.memory_space<vmem>>, vector<8x128xbf16>
    tpu.vector_store %arg19[%c0_177, %c0_178], %148 {strides = array<i32>} : memref<8x3200xbf16, #tpu.memory_space<vmem>>, vector<8x128xbf16>,
    %c8_179 = arith.constant 8 : index
    %c0_180 = arith.constant 0 : index
    %150 = vector.load %arg18[%c8_179, %c0_180] : memref<200x128xbf16, #tpu.memory_space<vmem>>, vector<8x128xbf16>
    %c0_181 = arith.constant 0 : index
    %c128_182 = arith.constant 128 : index
    %151 = vector.load %arg19[%c0_181, %c128_182] : memref<8x3200xbf16, #tpu.memory_space<vmem>>, vector<8x128xbf16>
    tpu.vector_store %arg19[%c0_181, %c128_182], %150 {strides = array<i32>} : memref<8x3200xbf16, #tpu.memory_space<vmem>>, vector<8x128xbf16>,
    %c16_183 = arith.constant 16 : index
    %c0_184 = arith.constant 0 : index
    %152 = vector.load %arg18[%c16_183, %c0_184] : memref<200x128xbf16, #tpu.memory_space<vmem>>, vector<8x128xbf16>
    %c0_185 = arith.constant 0 : index
    %c256_186 = arith.constant 256 : index
    %153 = vector.load %arg19[%c0_185, %c256_186] : memref<8x3200xbf16, #tpu.memory_space<vmem>>, vector<8x128xbf16>
    tpu.vector_store %arg19[%c0_185, %c256_186], %152 {strides = array<i32>} : memref<8x3200xbf16, #tpu.memory_space<vmem>>, vector<8x128xbf16>,
    %c24_187 = arith.constant 24 : index
    %c0_188 = arith.constant 0 : index
    %154 = vector.load %arg18[%c24_187, %c0_188] : memref<200x128xbf16, #tpu.memory_space<vmem>>, vector<8x128xbf16>
    %c0_189 = arith.constant 0 : index
    %c384_190 = arith.constant 384 : index
    %155 = vector.load %arg19[%c0_189, %c384_190] : memref<8x3200xbf16, #tpu.memory_space<vmem>>, vector<8x128xbf16>
    tpu.vector_store %arg19[%c0_189, %c384_190], %154 {strides = array<i32>} : memref<8x3200xbf16, #tpu.memory_space<vmem>>, vector<8x128xbf16>,
    %c32_191 = arith.constant 32 : index
    %c0_192 = arith.constant 0 : index
    %156 = vector.load %arg18[%c32_191, %c0_192] : memref<200x128xbf16, #tpu.memory_space<vmem>>, vector<8x128xbf16>
    %c0_193 = arith.constant 0 : index
    %c512_194 = arith.constant 512 : index
    %157 = vector.load %arg19[%c0_193, %c512_194] : memref<8x3200xbf16, #tpu.memory_space<vmem>>, vector<8x128xbf16>
    tpu.vector_store %arg19[%c0_193, %c512_194], %156 {strides = array<i32>} : memref<8x3200xbf16, #tpu.memory_space<vmem>>, vector<8x128xbf16>,
    %c40_195 = arith.constant 40 : index
    %c0_196 = arith.constant 0 : index
    %158 = vector.load %arg18[%c40_195, %c0_196] : memref<200x128xbf16, #tpu.memory_space<vmem>>, vector<8x128xbf16>
    %c0_197 = arith.constant 0 : index
    %c640_198 = arith.constant 640 : index
    %159 = vector.load %arg19[%c0_197, %c640_198] : memref<8x3200xbf16, #tpu.memory_space<vmem>>, vector<8x128xbf16>
    tpu.vector_store %arg19[%c0_197, %c640_198], %158 {strides = array<i32>} : memref<8x3200xbf16, #tpu.memory_space<vmem>>, vector<8x128xbf16>,
    %c48_199 = arith.constant 48 : index
    %c0_200 = arith.constant 0 : index
    %160 = vector.load %arg18[%c48_199, %c0_200] : memref<200x128xbf16, #tpu.memory_space<vmem>>, vector<8x128xbf16>
    %c0_201 = arith.constant 0 : index
    %c768_202 = arith.constant 768 : index
    %161 = vector.load %arg19[%c0_201, %c768_202] : memref<8x3200xbf16, #tpu.memory_space<vmem>>, vector<8x128xbf16>
    tpu.vector_store %arg19[%c0_201, %c768_202], %160 {strides = array<i32>} : memref<8x3200xbf16, #tpu.memory_space<vmem>>, vector<8x128xbf16>,
    %c56_203 = arith.constant 56 : index
    %c0_204 = arith.constant 0 : index
    %162 = vector.load %arg18[%c56_203, %c0_204] : memref<200x128xbf16, #tpu.memory_space<vmem>>, vector<8x128xbf16>
    %c0_205 = arith.constant 0 : index
    %c896_206 = arith.constant 896 : index
    %163 = vector.load %arg19[%c0_205, %c896_206] : memref<8x3200xbf16, #tpu.memory_space<vmem>>, vector<8x128xbf16>
    tpu.vector_store %arg19[%c0_205, %c896_206], %162 {strides = array<i32>} : memref<8x3200xbf16, #tpu.memory_space<vmem>>, vector<8x128xbf16>,
    %c64_207 = arith.constant 64 : index
    %c0_208 = arith.constant 0 : index
    %164 = vector.load %arg18[%c64_207, %c0_208] : memref<200x128xbf16, #tpu.memory_space<vmem>>, vector<8x128xbf16>
    %c0_209 = arith.constant 0 : index
    %c1024_210 = arith.constant 1024 : index
    %165 = vector.load %arg19[%c0_209, %c1024_210] : memref<8x3200xbf16, #tpu.memory_space<vmem>>, vector<8x128xbf16>
    tpu.vector_store %arg19[%c0_209, %c1024_210], %164 {strides = array<i32>} : memref<8x3200xbf16, #tpu.memory_space<vmem>>, vector<8x128xbf16>,
    %c72_211 = arith.constant 72 : index
    %c0_212 = arith.constant 0 : index
    %166 = vector.load %arg18[%c72_211, %c0_212] : memref<200x128xbf16, #tpu.memory_space<vmem>>, vector<8x128xbf16>
    %c0_213 = arith.constant 0 : index
    %c1152_214 = arith.constant 1152 : index
    %167 = vector.load %arg19[%c0_213, %c1152_214] : memref<8x3200xbf16, #tpu.memory_space<vmem>>, vector<8x128xbf16>
    tpu.vector_store %arg19[%c0_213, %c1152_214], %166 {strides = array<i32>} : memref<8x3200xbf16, #tpu.memory_space<vmem>>, vector<8x128xbf16>,
    %c80_215 = arith.constant 80 : index
    %c0_216 = arith.constant 0 : index
    %168 = vector.load %arg18[%c80_215, %c0_216] : memref<200x128xbf16, #tpu.memory_space<vmem>>, vector<8x128xbf16>
    %c0_217 = arith.constant 0 : index
    %c1280_218 = arith.constant 1280 : index
    %169 = vector.load %arg19[%c0_217, %c1280_218] : memref<8x3200xbf16, #tpu.memory_space<vmem>>, vector<8x128xbf16>
    tpu.vector_store %arg19[%c0_217, %c1280_218], %168 {strides = array<i32>} : memref<8x3200xbf16, #tpu.memory_space<vmem>>, vector<8x128xbf16>,
    %c88_219 = arith.constant 88 : index
    %c0_220 = arith.constant 0 : index
    %170 = vector.load %arg18[%c88_219, %c0_220] : memref<200x128xbf16, #tpu.memory_space<vmem>>, vector<8x128xbf16>
    %c0_221 = arith.constant 0 : index
    %c1408_222 = arith.constant 1408 : index
    %171 = vector.load %arg19[%c0_221, %c1408_222] : memref<8x3200xbf16, #tpu.memory_space<vmem>>, vector<8x128xbf16>
    tpu.vector_store %arg19[%c0_221, %c1408_222], %170 {strides = array<i32>} : memref<8x3200xbf16, #tpu.memory_space<vmem>>, vector<8x128xbf16>,
    %c96_223 = arith.constant 96 : index
    %c0_224 = arith.constant 0 : index
    %172 = vector.load %arg18[%c96_223, %c0_224] : memref<200x128xbf16, #tpu.memory_space<vmem>>, vector<8x128xbf16>
    %c0_225 = arith.constant 0 : index
    %c1536_226 = arith.constant 1536 : index
    %173 = vector.load %arg19[%c0_225, %c1536_226] : memref<8x3200xbf16, #tpu.memory_space<vmem>>, vector<8x128xbf16>
    tpu.vector_store %arg19[%c0_225, %c1536_226], %172 {strides = array<i32>} : memref<8x3200xbf16, #tpu.memory_space<vmem>>, vector<8x128xbf16>,
    %c104_227 = arith.constant 104 : index
    %c0_228 = arith.constant 0 : index
    %174 = vector.load %arg18[%c104_227, %c0_228] : memref<200x128xbf16, #tpu.memory_space<vmem>>, vector<8x128xbf16>
    %c0_229 = arith.constant 0 : index
    %c1664_230 = arith.constant 1664 : index
    %175 = vector.load %arg19[%c0_229, %c1664_230] : memref<8x3200xbf16, #tpu.memory_space<vmem>>, vector<8x128xbf16>
    tpu.vector_store %arg19[%c0_229, %c1664_230], %174 {strides = array<i32>} : memref<8x3200xbf16, #tpu.memory_space<vmem>>, vector<8x128xbf16>,
    %c112_231 = arith.constant 112 : index
    %c0_232 = arith.constant 0 : index
    %176 = vector.load %arg18[%c112_231, %c0_232] : memref<200x128xbf16, #tpu.memory_space<vmem>>, vector<8x128xbf16>
    %c0_233 = arith.constant 0 : index
    %c1792_234 = arith.constant 1792 : index
    %177 = vector.load %arg19[%c0_233, %c1792_234] : memref<8x3200xbf16, #tpu.memory_space<vmem>>, vector<8x128xbf16>
    tpu.vector_store %arg19[%c0_233, %c1792_234], %176 {strides = array<i32>} : memref<8x3200xbf16, #tpu.memory_space<vmem>>, vector<8x128xbf16>,
    %c120_235 = arith.constant 120 : index
    %c0_236 = arith.constant 0 : index
    %178 = vector.load %arg18[%c120_235, %c0_236] : memref<200x128xbf16, #tpu.memory_space<vmem>>, vector<8x128xbf16>
    %c0_237 = arith.constant 0 : index
    %c1920_238 = arith.constant 1920 : index
    %179 = vector.load %arg19[%c0_237, %c1920_238] : memref<8x3200xbf16, #tpu.memory_space<vmem>>, vector<8x128xbf16>
    tpu.vector_store %arg19[%c0_237, %c1920_238], %178 {strides = array<i32>} : memref<8x3200xbf16, #tpu.memory_space<vmem>>, vector<8x128xbf16>,
    %c128_239 = arith.constant 128 : index
    %c0_240 = arith.constant 0 : index
    %180 = vector.load %arg18[%c128_239, %c0_240] : memref<200x128xbf16, #tpu.memory_space<vmem>>, vector<8x128xbf16>
    %c0_241 = arith.constant 0 : index
    %c2048_242 = arith.constant 2048 : index
    %181 = vector.load %arg19[%c0_241, %c2048_242] : memref<8x3200xbf16, #tpu.memory_space<vmem>>, vector<8x128xbf16>
    tpu.vector_store %arg19[%c0_241, %c2048_242], %180 {strides = array<i32>} : memref<8x3200xbf16, #tpu.memory_space<vmem>>, vector<8x128xbf16>,
    %c136_243 = arith.constant 136 : index
    %c0_244 = arith.constant 0 : index
    %182 = vector.load %arg18[%c136_243, %c0_244] : memref<200x128xbf16, #tpu.memory_space<vmem>>, vector<8x128xbf16>
    %c0_245 = arith.constant 0 : index
    %c2176_246 = arith.constant 2176 : index
    %183 = vector.load %arg19[%c0_245, %c2176_246] : memref<8x3200xbf16, #tpu.memory_space<vmem>>, vector<8x128xbf16>
    tpu.vector_store %arg19[%c0_245, %c2176_246], %182 {strides = array<i32>} : memref<8x3200xbf16, #tpu.memory_space<vmem>>, vector<8x128xbf16>,
    %c144_247 = arith.constant 144 : index
    %c0_248 = arith.constant 0 : index
    %184 = vector.load %arg18[%c144_247, %c0_248] : memref<200x128xbf16, #tpu.memory_space<vmem>>, vector<8x128xbf16>
    %c0_249 = arith.constant 0 : index
    %c2304_250 = arith.constant 2304 : index
    %185 = vector.load %arg19[%c0_249, %c2304_250] : memref<8x3200xbf16, #tpu.memory_space<vmem>>, vector<8x128xbf16>
    tpu.vector_store %arg19[%c0_249, %c2304_250], %184 {strides = array<i32>} : memref<8x3200xbf16, #tpu.memory_space<vmem>>, vector<8x128xbf16>,
    %c152_251 = arith.constant 152 : index
    %c0_252 = arith.constant 0 : index
    %186 = vector.load %arg18[%c152_251, %c0_252] : memref<200x128xbf16, #tpu.memory_space<vmem>>, vector<8x128xbf16>
    %c0_253 = arith.constant 0 : index
    %c2432_254 = arith.constant 2432 : index
    %187 = vector.load %arg19[%c0_253, %c2432_254] : memref<8x3200xbf16, #tpu.memory_space<vmem>>, vector<8x128xbf16>
    tpu.vector_store %arg19[%c0_253, %c2432_254], %186 {strides = array<i32>} : memref<8x3200xbf16, #tpu.memory_space<vmem>>, vector<8x128xbf16>,
    %c160_255 = arith.constant 160 : index
    %c0_256 = arith.constant 0 : index
    %188 = vector.load %arg18[%c160_255, %c0_256] : memref<200x128xbf16, #tpu.memory_space<vmem>>, vector<8x128xbf16>
    %c0_257 = arith.constant 0 : index
    %c2560_258 = arith.constant 2560 : index
    %189 = vector.load %arg19[%c0_257, %c2560_258] : memref<8x3200xbf16, #tpu.memory_space<vmem>>, vector<8x128xbf16>
    tpu.vector_store %arg19[%c0_257, %c2560_258], %188 {strides = array<i32>} : memref<8x3200xbf16, #tpu.memory_space<vmem>>, vector<8x128xbf16>,
    %c168_259 = arith.constant 168 : index
    %c0_260 = arith.constant 0 : index
    %190 = vector.load %arg18[%c168_259, %c0_260] : memref<200x128xbf16, #tpu.memory_space<vmem>>, vector<8x128xbf16>
    %c0_261 = arith.constant 0 : index
    %c2688_262 = arith.constant 2688 : index
    %191 = vector.load %arg19[%c0_261, %c2688_262] : memref<8x3200xbf16, #tpu.memory_space<vmem>>, vector<8x128xbf16>
    tpu.vector_store %arg19[%c0_261, %c2688_262], %190 {strides = array<i32>} : memref<8x3200xbf16, #tpu.memory_space<vmem>>, vector<8x128xbf16>,
    %c176_263 = arith.constant 176 : index
    %c0_264 = arith.constant 0 : index
    %192 = vector.load %arg18[%c176_263, %c0_264] : memref<200x128xbf16, #tpu.memory_space<vmem>>, vector<8x128xbf16>
    %c0_265 = arith.constant 0 : index
    %c2816_266 = arith.constant 2816 : index
    %193 = vector.load %arg19[%c0_265, %c2816_266] : memref<8x3200xbf16, #tpu.memory_space<vmem>>, vector<8x128xbf16>
    tpu.vector_store %arg19[%c0_265, %c2816_266], %192 {strides = array<i32>} : memref<8x3200xbf16, #tpu.memory_space<vmem>>, vector<8x128xbf16>,
    %c184_267 = arith.constant 184 : index
    %c0_268 = arith.constant 0 : index
    %194 = vector.load %arg18[%c184_267, %c0_268] : memref<200x128xbf16, #tpu.memory_space<vmem>>, vector<8x128xbf16>
    %c0_269 = arith.constant 0 : index
    %c2944_270 = arith.constant 2944 : index
    %195 = vector.load %arg19[%c0_269, %c2944_270] : memref<8x3200xbf16, #tpu.memory_space<vmem>>, vector<8x128xbf16>
    tpu.vector_store %arg19[%c0_269, %c2944_270], %194 {strides = array<i32>} : memref<8x3200xbf16, #tpu.memory_space<vmem>>, vector<8x128xbf16>,
    %c192_271 = arith.constant 192 : index
    %c0_272 = arith.constant 0 : index
    %196 = vector.load %arg18[%c192_271, %c0_272] : memref<200x128xbf16, #tpu.memory_space<vmem>>, vector<8x128xbf16>
    %c0_273 = arith.constant 0 : index
    %c3072_274 = arith.constant 3072 : index
    %197 = vector.load %arg19[%c0_273, %c3072_274] : memref<8x3200xbf16, #tpu.memory_space<vmem>>, vector<8x128xbf16>
    tpu.vector_store %arg19[%c0_273, %c3072_274], %196 {strides = array<i32>} : memref<8x3200xbf16, #tpu.memory_space<vmem>>, vector<8x128xbf16>,
    %c0_275 = arith.constant 0 : index
    %c0_276 = arith.constant 0 : index
    %198 = vector.load %arg19[%c0_275, %c0_276] : memref<8x3200xbf16, #tpu.memory_space<vmem>>, vector<8x3200xbf16>
    %cst_277 = arith.constant dense<0.000000e+00> : vector<8x256xf32>
    %199 = tpu.matmul %198, %143, %cst_277 {dimension_numbers = #tpu.dot_dimension_numbers<[1], [0], [0], [1], [0, 0, 1, 1], [], []>} : vector<8x3200xbf16>, vector<3200x256xbf16>, vector<8x256xf32> -> vector<8x256xf32>
    %c0_278 = arith.constant 0 : index
    %c0_279 = arith.constant 0 : index
    %200 = vector.load %arg12[%c0_278, %c0_279] : memref<1x256xf32, #tpu.memory_space<vmem>>, vector<1x256xf32>
    %201 = vector.broadcast %200 : vector<1x256xf32> to vector<8x256xf32>
    %202 = arith.addf %199, %201 : vector<8x256xf32>
    %cst_280 = arith.constant 0.000000e+00 : f32
    %203 = vector.broadcast %cst_280 : f32 to vector<8x256xf32>
    %204 = arith.maximumf %202, %203 : vector<8x256xf32>
    %205 = vector.extract_strided_slice %204 {offsets = [0, 0], sizes = [2, 256], strides = [1, 1]} : vector<8x256xf32> to vector<2x256xf32>
    %c0_281 = arith.constant 0 : index
    %c0_282 = arith.constant 0 : index
    %206 = vector.load %arg13[%c0_281, %c0_282] : memref<2x256xf32, #tpu.memory_space<vmem>>, vector<2x256xf32>
    tpu.vector_store %arg13[%c0_281, %c0_282], %205 {strides = array<i32>} : memref<2x256xf32, #tpu.memory_space<vmem>>, vector<2x256xf32>,
    return
  }
  func.func @transform_0(%arg0: i32) -> (i32, i32) {
    %c0_i32 = arith.constant 0 : i32
    %c0_i32_0 = arith.constant 0 : i32
    %c0_i32_1 = arith.constant 0 : i32
    return %c0_i32, %c0_i32_0 : i32, i32
  }
  func.func @transform_1(%arg0: i32) -> (i32, i32) {
    %c0_i32 = arith.constant 0 : i32
    %c0_i32_0 = arith.constant 0 : i32
    %c0_i32_1 = arith.constant 0 : i32
    return %c0_i32, %c0_i32_0 : i32, i32
  }
  func.func @transform_2(%arg0: i32) -> (i32, i32) {
    %c0_i32 = arith.constant 0 : i32
    %c0_i32_0 = arith.constant 0 : i32
    %c0_i32_1 = arith.constant 0 : i32
    return %c0_i32, %c0_i32_0 : i32, i32
  }
  func.func @transform_3(%arg0: i32) -> (i32, i32) {
    %c0_i32 = arith.constant 0 : i32
    %c0_i32_0 = arith.constant 0 : i32
    %c0_i32_1 = arith.constant 0 : i32
    return %c0_i32, %c0_i32_0 : i32, i32
  }
  func.func @transform_4(%arg0: i32) -> (i32, i32) {
    %c0_i32 = arith.constant 0 : i32
    %c0_i32_0 = arith.constant 0 : i32
    %c0_i32_1 = arith.constant 0 : i32
    return %c0_i32, %c0_i32_0 : i32, i32
  }
  func.func @transform_5(%arg0: i32) -> (i32, i32) {
    %c0_i32 = arith.constant 0 : i32
    %c0_i32_0 = arith.constant 0 : i32
    %c0_i32_1 = arith.constant 0 : i32
    return %c0_i32, %c0_i32_0 : i32, i32
  }
  func.func @transform_6(%arg0: i32) -> (i32, i32) {
    %c0_i32 = arith.constant 0 : i32
    %c0_i32_0 = arith.constant 0 : i32
    %c0_i32_1 = arith.constant 0 : i32
    return %c0_i32, %c0_i32_0 : i32, i32
  }
  func.func @transform_8(%arg0: i32) -> (i32, i32) {
    %c0_i32 = arith.constant 0 : i32
    %c0_i32_0 = arith.constant 0 : i32
    %c0_i32_1 = arith.constant 0 : i32
    return %c0_i32, %c0_i32_0 : i32, i32
  }
  func.func @transform_9(%arg0: i32) -> (i32, i32) {
    %c0_i32 = arith.constant 0 : i32
    %c0_i32_0 = arith.constant 0 : i32
    %c0_i32_1 = arith.constant 0 : i32
    return %c0_i32, %c0_i32_0 : i32, i32
  }
  func.func @transform_11(%arg0: i32) -> (i32, i32) {
    %c0_i32 = arith.constant 0 : i32
    %c0_i32_0 = arith.constant 0 : i32
    %c0_i32_1 = arith.constant 0 : i32
    return %c0_i32, %c0_i32_0 : i32, i32
  }
  func.func @transform_12(%arg0: i32) -> (i32, i32) {
    %c0_i32 = arith.constant 0 : i32
    %c0_i32_0 = arith.constant 0 : i32
    %c0_i32_1 = arith.constant 0 : i32
    return %c0_i32, %c0_i32_0 : i32, i32
  }
}

</mosaic_0001>

<bundles_post_ra>
// kernel: convblock_forward.1
= control target key start
LH: loop header
LB: loop body
LE: loop exit
PB: predicated region body
PF: predicated region fallthrough
CT: control target
= control target key end

     0   :  { %17 = vsyncpa [#allocation12], 0  ;;  %s18078_s0 = inlined_call_operand.vmem [shape: bf16[128,100], index: 0, kind: input, shape index: {}]   ;;  %s18079_s1 = inlined_call_operand.vmem [shape: bf16[100,64], index: 1, kind: input, shape index: {}]   ;;  %s18080_s2 = inlined_call_operand.vmem [shape: f32[1,64], index: 2, kind: input, shape index: {}]   ;;  %s18081_s3 = inlined_call_operand.vmem [shape: bf16[800,128], index: 3, kind: input, shape index: {}]   ;;  %s18082_s4 = inlined_call_operand.vmem [shape: bf16[1600,128], index: 4, kind: input, shape index: {}]   ;;  %s18083_s5 = inlined_call_operand.vmem [shape: f32[1,128], index: 5, kind: input, shape index: {}]   ;;  %s18084_s6 = inlined_call_operand.vmem [shape: bf16[200,32], index: 6, kind: input, shape index: {}]   ;;  %s18085_s7 = inlined_call_operand.vmem [shape: bf16[3200,128], index: 7, kind: input, shape index: {}]   ;;  %s18086_s8 = inlined_call_operand.vmem [shape: f32[1,128], index: 8, kind: input, shape index: {}]   ;;  %s18087_s9 = inlined_call_operand.vmem [shape: bf16[200,8], index: 9, kind: input, shape index: {}]   ;;  %s18088_s10 = inlined_call_operand.vmem [shape: bf16[3200,256], index: 10, kind: input, shape index: {}]   ;;  %s18089_s11 = inlined_call_operand.vmem [shape: f32[1,256], index: 11, kind: input, shape index: {}]   ;;  %s18090_s12 = inlined_call_operand.hbm [shape: f32[2,256], index: 12, kind: output, shape index: {}]  }
   0x1   :  { %v14171_v0 = vld [vmem:[%s18085_s7] sm:$0xff]  ;;  %v14176_v1 = vld [vmem:[%s18085_s7 + $0x8] sm:$0xff]  ;;  %v14181_v2 = vld [vmem:[%s18085_s7 + $0x10] sm:$0xff] }
   0x2   :  { %v14186_v3 = vld [vmem:[%s18085_s7 + $0x18] sm:$0xff]  ;;  %v14191_v4 = vld [vmem:[%s18085_s7 + $0x20] sm:$0xff]  ;;  %v14196_v5 = vld [vmem:[%s18085_s7 + $0x28] sm:$0xff] }
   0x3   :  { %v14201_v6 = vld [vmem:[%s18085_s7 + $0x30] sm:$0xff]  ;;  %v14206_v7 = vld [vmem:[%s18085_s7 + $0x38] sm:$0xff]  ;;  %v14211_v8 = vld [vmem:[%s18085_s7 + $0x40] sm:$0xff] }
   0x4   :  { %v14216_v9 = vld [vmem:[%s18085_s7 + $0x48] sm:$0xff]  ;;  %v14221_v10 = vld [vmem:[%s18085_s7 + $0x50] sm:$0xff]  ;;  %v14226_v11 = vld [vmem:[%s18085_s7 + $0x58] sm:$0xff] }
   0x5   :  { %v14231_v12 = vld [vmem:[%s18085_s7 + $0x60] sm:$0xff]  ;;  %v14236_v13 = vld [vmem:[%s18085_s7 + $0x68] sm:$0xff]  ;;  %v14241_v14 = vld [vmem:[%s18085_s7 + $0x70] sm:$0xff] }
   0x6   :  { %v14246_v15 = vld [vmem:[%s18085_s7 + $0x78] sm:$0xff]  ;;  %v14251_v16 = vld [vmem:[%s18085_s7 + $0x80] sm:$0xff]  ;;  %v14256_v17 = vld [vmem:[%s18085_s7 + $0x88] sm:$0xff] }
   0x7   :  { %18091 = vst [vmem:[#allocation18_spill] sm:$0xff] %v14256_v17  ;;  %v14261_v18 = vld [vmem:[%s18085_s7 + $0x90] sm:$0xff]  ;;  %v14266_v19 = vld [vmem:[%s18085_s7 + $0x98] sm:$0xff]  ;;  %v14271_v20 = vld [vmem:[%s18085_s7 + $0xa0] sm:$0xff] }
   0x8   :  { %18092 = vst [vmem:[#allocation19_spill] sm:$0xff] %v14261_v18  ;;  %18093 = vst [vmem:[#allocation20_spill] sm:$0xff] %v14266_v19  ;;  %v14276_v21 = vld [vmem:[%s18085_s7 + $0xa8] sm:$0xff]  ;;  %v14281_v22 = vld [vmem:[%s18085_s7 + $0xb0] sm:$0xff] }
   0x9   :  { %18094 = vst [vmem:[#allocation21_spill] sm:$0xff] %v14271_v20  ;;  %18095 = vst [vmem:[#allocation22_spill] sm:$0xff] %v14276_v21  ;;  %v14286_v23 = vld [vmem:[%s18085_s7 + $0xb8] sm:$0xff]  ;;  %v14291_v24 = vld [vmem:[%s18085_s7 + $0xc0] sm:$0xff] }
   0xa   :  { %18096 = vst [vmem:[#allocation23_spill] sm:$0xff] %v14281_v22  ;;  %18097 = vst [vmem:[#allocation24_spill] sm:$0xff] %v14286_v23  ;;  %v14296_v25 = vld [vmem:[%s18085_s7 + $0xc8] sm:$0xff]  ;;  %v14301_v26 = vld [vmem:[%s18085_s7 + $0xd0] sm:$0xff] }
   0xb   :  { %18098 = vst [vmem:[#allocation25_spill] sm:$0xff] %v14301_v26  ;;  %v14306_v27 = vld [vmem:[%s18085_s7 + $0xd8] sm:$0xff]  ;;  %v14311_v28 = vld [vmem:[%s18085_s7 + $0xe0] sm:$0xff]  ;;  %v14316_v29 = vld [vmem:[%s18085_s7 + $0xe8] sm:$0xff] }
   0xc   :  { %18099 = vst [vmem:[#allocation26_spill] sm:$0xff] %v14306_v27  ;;  %18100 = vst [vmem:[#allocation27_spill] sm:$0xff] %v14311_v28  ;;  %v14321_v30 = vld [vmem:[%s18085_s7 + $0xf0] sm:$0xff]  ;;  %v14326_v31 = vld [vmem:[%s18085_s7 + $0xf8] sm:$0xff] }
   0xd   :  { %18101 = vst [vmem:[#allocation28_spill] sm:$0xff] %v14316_v29  ;;  %18102 = vst [vmem:[#allocation29_spill] sm:$0xff] %v14321_v30  ;;  %v14331_v32 = vld [vmem:[%s18085_s7 + $0x100] sm:$0xff]  ;;  %v14336_v33 = vld [vmem:[%s18085_s7 + $0x108] sm:$0xff] }
   0xe   :  { %18103 = vst [vmem:[#allocation30_spill] sm:$0xff] %v14326_v31  ;;  %18104 = vst [vmem:[#allocation31_spill] sm:$0xff] %v14331_v32  ;;  %v14341_v34 = vld [vmem:[%s18085_s7 + $0x110] sm:$0xff]  ;;  %v14346_v35 = vld [vmem:[%s18085_s7 + $0x118] sm:$0xff] }
   0xf   :  { %18105 = vst [vmem:[#allocation32_spill] sm:$0xff] %v14336_v33  ;;  %18106 = vst [vmem:[#allocation33_spill] sm:$0xff] %v14341_v34  ;;  %v14351_v36 = vld [vmem:[%s18085_s7 + $0x120] sm:$0xff]  ;;  %v14356_v37 = vld [vmem:[%s18085_s7 + $0x128] sm:$0xff] }
  0x10   :  { %18107 = vst [vmem:[#allocation34_spill] sm:$0xff] %v14346_v35  ;;  %18108 = vst [vmem:[#allocation35_spill] sm:$0xff] %v14351_v36  ;;  %v14361_v38 = vld [vmem:[%s18085_s7 + $0x130] sm:$0xff]  ;;  %v14366_v39 = vld [vmem:[%s18085_s7 + $0x138] sm:$0xff] }
  0x11   :  { %18109 = vst [vmem:[#allocation36_spill] sm:$0xff] %v14356_v37  ;;  %18110 = vst [vmem:[#allocation37_spill] sm:$0xff] %v14361_v38  ;;  %v14371_v40 = vld [vmem:[%s18085_s7 + $0x140] sm:$0xff]  ;;  %v14376_v41 = vld [vmem:[%s18085_s7 + $0x148] sm:$0xff] }
  0x12   :  { %18111 = vst [vmem:[#allocation38_spill] sm:$0xff] %v14366_v39  ;;  %18112 = vst [vmem:[#allocation39_spill] sm:$0xff] %v14371_v40  ;;  %v14381_v42 = vld [vmem:[%s18085_s7 + $0x150] sm:$0xff]  ;;  %v14386_v43 = vld [vmem:[%s18085_s7 + $0x158] sm:$0xff] }
  0x13   :  { %18113 = vst [vmem:[#allocation40_spill] sm:$0xff] %v14376_v41  ;;  %18114 = vst [vmem:[#allocation41_spill] sm:$0xff] %v14381_v42  ;;  %v14391_v44 = vld [vmem:[%s18085_s7 + $0x160] sm:$0xff]  ;;  %v14396_v45 = vld [vmem:[%s18085_s7 + $0x168] sm:$0xff] }
  0x14   :  { %18115 = vst [vmem:[#allocation42_spill] sm:$0xff] %v14386_v43  ;;  %18116 = vst [vmem:[#allocation43_spill] sm:$0xff] %v14391_v44  ;;  %v14401_v46 = vld [vmem:[%s18085_s7 + $0x170] sm:$0xff]  ;;  %v14406_v47 = vld [vmem:[%s18085_s7 + $0x178] sm:$0xff] }
  0x15   :  { %18117 = vst [vmem:[#allocation44_spill] sm:$0xff] %v14396_v45  ;;  %18118 = vst [vmem:[#allocation45_spill] sm:$0xff] %v14401_v46  ;;  %v14411_v48 = vld [vmem:[%s18085_s7 + $0x180] sm:$0xff]  ;;  %v14416_v49 = vld [vmem:[%s18085_s7 + $0x188] sm:$0xff] }
  0x16   :  { %18119 = vst [vmem:[#allocation46_spill] sm:$0xff] %v14406_v47  ;;  %v14421_v50 = vld [vmem:[%s18085_s7 + $0x190] sm:$0xff]  ;;  %v14426_v51 = vld [vmem:[%s18085_s7 + $0x198] sm:$0xff]  ;;  %v14431_v52 = vld [vmem:[%s18085_s7 + $0x1a0] sm:$0xff] }
  0x17   :  { %v14436_v53 = vld [vmem:[%s18085_s7 + $0x1a8] sm:$0xff]  ;;  %v14441_v54 = vld [vmem:[%s18085_s7 + $0x1b0] sm:$0xff]  ;;  %v14446_v55 = vld [vmem:[%s18085_s7 + $0x1b8] sm:$0xff] }
  0x18   :  { %v14451_v56 = vld [vmem:[%s18085_s7 + $0x1c0] sm:$0xff]  ;;  %v14456_v57 = vld [vmem:[%s18085_s7 + $0x1c8] sm:$0xff]  ;;  %v14461_v58 = vld [vmem:[%s18085_s7 + $0x1d0] sm:$0xff] }
  0x19   :  { %v14466_v59 = vld [vmem:[%s18085_s7 + $0x1d8] sm:$0xff]  ;;  %v14471_v60 = vld [vmem:[%s18085_s7 + $0x1e0] sm:$0xff]  ;;  %v14476_v61 = vld [vmem:[%s18085_s7 + $0x1e8] sm:$0xff] }
  0x1a   :  { %v14481_v62 = vld [vmem:[%s18085_s7 + $0x1f0] sm:$0xff]  ;;  %v14486_v63 = vld [vmem:[%s18085_s7 + $0x1f8] sm:$0xff]  ;;  %v14491_v39 = vld [vmem:[%s18085_s7 + $0x200] sm:$0xff] }
  0x1b   :  { %18120 = vst [vmem:[#allocation47_spill] sm:$0xff] %v14491_v39  ;;  %v14496_v47 = vld [vmem:[%s18085_s7 + $0x208] sm:$0xff]  ;;  %v14501_v38 = vld [vmem:[%s18085_s7 + $0x210] sm:$0xff]  ;;  %v14506_v46 = vld [vmem:[%s18085_s7 + $0x218] sm:$0xff] }
  0x1c   :  { %18121 = vst [vmem:[#allocation48_spill] sm:$0xff] %v14496_v47  ;;  %18122 = vst [vmem:[#allocation49_spill] sm:$0xff] %v14501_v38  ;;  %v14511_v37 = vld [vmem:[%s18085_s7 + $0x220] sm:$0xff]  ;;  %v14516_v39 = vld [vmem:[%s18085_s7 + $0x228] sm:$0xff] }
  0x1d   :  { %18123 = vst [vmem:[#allocation50_spill] sm:$0xff] %v14506_v46  ;;  %18124 = vst [vmem:[#allocation51_spill] sm:$0xff] %v14511_v37  ;;  %v14521_v47 = vld [vmem:[%s18085_s7 + $0x230] sm:$0xff]  ;;  %v14526_v38 = vld [vmem:[%s18085_s7 + $0x238] sm:$0xff] }
  0x1e   :  { %18125 = vst [vmem:[#allocation52_spill] sm:$0xff] %v14516_v39  ;;  %18126 = vst [vmem:[#allocation53_spill] sm:$0xff] %v14521_v47  ;;  %v14531_v46 = vld [vmem:[%s18085_s7 + $0x240] sm:$0xff]  ;;  %v14536_v37 = vld [vmem:[%s18085_s7 + $0x248] sm:$0xff] }
  0x1f   :  { %18127 = vst [vmem:[#allocation54_spill] sm:$0xff] %v14526_v38  ;;  %18128 = vst [vmem:[#allocation55_spill] sm:$0xff] %v14531_v46  ;;  %v14541_v39 = vld [vmem:[%s18085_s7 + $0x250] sm:$0xff]  ;;  %v14546_v47 = vld [vmem:[%s18085_s7 + $0x258] sm:$0xff] }
  0x20   :  { %18129 = vst [vmem:[#allocation56_spill] sm:$0xff] %v14536_v37  ;;  %18130 = vst [vmem:[#allocation57_spill] sm:$0xff] %v14541_v39  ;;  %v14551_v38 = vld [vmem:[%s18085_s7 + $0x260] sm:$0xff]  ;;  %v14556_v46 = vld [vmem:[%s18085_s7 + $0x268] sm:$0xff] }
  0x21   :  { %18131 = vst [vmem:[#allocation58_spill] sm:$0xff] %v14546_v47  ;;  %18132 = vst [vmem:[#allocation59_spill] sm:$0xff] %v14551_v38  ;;  %v14561_v37 = vld [vmem:[%s18085_s7 + $0x270] sm:$0xff]  ;;  %v14566_v39 = vld [vmem:[%s18085_s7 + $0x278] sm:$0xff] }
  0x22   :  { %18133 = vst [vmem:[#allocation60_spill] sm:$0xff] %v14556_v46  ;;  %18134 = vst [vmem:[#allocation61_spill] sm:$0xff] %v14561_v37  ;;  %v14571_v47 = vld [vmem:[%s18085_s7 + $0x280] sm:$0xff]  ;;  %v14576_v38 = vld [vmem:[%s18085_s7 + $0x288] sm:$0xff] }
  0x23   :  { %18135 = vst [vmem:[#allocation62_spill] sm:$0xff] %v14566_v39  ;;  %18136 = vst [vmem:[#allocation63_spill] sm:$0xff] %v14571_v47  ;;  %v14581_v46 = vld [vmem:[%s18085_s7 + $0x290] sm:$0xff]  ;;  %v14586_v37 = vld [vmem:[%s18085_s7 + $0x298] sm:$0xff] }
  0x24   :  { %18137 = vst [vmem:[#allocation64_spill] sm:$0xff] %v14576_v38  ;;  %18138 = vst [vmem:[#allocation65_spill] sm:$0xff] %v14581_v46  ;;  %v14591_v39 = vld [vmem:[%s18085_s7 + $0x2a0] sm:$0xff]  ;;  %v14596_v45 = vld [vmem:[%s18085_s7 + $0x2a8] sm:$0xff] }
  0x25   :  { %18139 = vst [vmem:[#allocation66_spill] sm:$0xff] %v14586_v37  ;;  %18140 = vst [vmem:[#allocation67_spill] sm:$0xff] %v14591_v39  ;;  %v14601_v36 = vld [vmem:[%s18085_s7 + $0x2b0] sm:$0xff]  ;;  %v14606_v44 = vld [vmem:[%s18085_s7 + $0x2b8] sm:$0xff] }
  0x26   :  { %18141 = vst [vmem:[#allocation68_spill] sm:$0xff] %v14596_v45  ;;  %18142 = vst [vmem:[#allocation69_spill] sm:$0xff] %v14601_v36  ;;  %v14611_v35 = vld [vmem:[%s18085_s7 + $0x2c0] sm:$0xff]  ;;  %v14616_v39 = vld [vmem:[%s18085_s7 + $0x2c8] sm:$0xff] }
  0x27   :  { %18143 = vst [vmem:[#allocation70_spill] sm:$0xff] %v14606_v44  ;;  %18144 = vst [vmem:[#allocation71_spill] sm:$0xff] %v14616_v39  ;;  %v14621_v45 = vld [vmem:[%s18085_s7 + $0x2d0] sm:$0xff]  ;;  %v14626_v36 = vld [vmem:[%s18085_s7 + $0x2d8] sm:$0xff] }
  0x28   :  { %18145 = vst [vmem:[#allocation72_spill] sm:$0xff] %v14621_v45  ;;  %18146 = vst [vmem:[#allocation73_spill] sm:$0xff] %v14626_v36  ;;  %v14631_v44 = vld [vmem:[%s18085_s7 + $0x2e0] sm:$0xff]  ;;  %v14636_v43 = vld [vmem:[%s18085_s7 + $0x2e8] sm:$0xff] }
  0x29   :  { %18147 = vst [vmem:[#allocation74_spill] sm:$0xff] %v14631_v44  ;;  %18148 = vst [vmem:[#allocation75_spill] sm:$0xff] %v14636_v43  ;;  %v14641_v34 = vld [vmem:[%s18085_s7 + $0x2f0] sm:$0xff]  ;;  %v14646_v37 = vld [vmem:[%s18085_s7 + $0x2f8] sm:$0xff] }
  0x2a   :  { %18149 = vst [vmem:[#allocation76_spill] sm:$0xff] %v14641_v34  ;;  %18150 = vst [vmem:[#allocation77_spill] sm:$0xff] %v14646_v37  ;;  %v14651_v42 = vld [vmem:[%s18085_s7 + $0x300] sm:$0xff]  ;;  %v14656_v44 = vld [vmem:[%s18085_s7 + $0x308] sm:$0xff] }
  0x2b   :  { %18151 = vst [vmem:[#allocation78_spill] sm:$0xff] %v14651_v42  ;;  %18152 = vst [vmem:[#allocation79_spill] sm:$0xff] %v14656_v44  ;;  %v14661_v43 = vld [vmem:[%s18085_s7 + $0x310] sm:$0xff]  ;;  %v14666_v34 = vld [vmem:[%s18085_s7 + $0x318] sm:$0xff] }
  0x2c   :  { %18153 = vst [vmem:[#allocation80_spill] sm:$0xff] %v14661_v43  ;;  %18154 = vst [vmem:[#allocation81_spill] sm:$0xff] %v14666_v34  ;;  %v14671_v37 = vld [vmem:[%s18085_s7 + $0x320] sm:$0xff]  ;;  %v14676_v42 = vld [vmem:[%s18085_s7 + $0x328] sm:$0xff] }
  0x2d   :  { %18155 = vst [vmem:[#allocation82_spill] sm:$0xff] %v14671_v37  ;;  %18156 = vst [vmem:[#allocation83_spill] sm:$0xff] %v14676_v42  ;;  %v14681_v44 = vld [vmem:[%s18085_s7 + $0x330] sm:$0xff]  ;;  %v14686_v43 = vld [vmem:[%s18085_s7 + $0x338] sm:$0xff] }
  0x2e   :  { %18157 = vst [vmem:[#allocation84_spill] sm:$0xff] %v14681_v44  ;;  %18158 = vst [vmem:[#allocation85_spill] sm:$0xff] %v14686_v43  ;;  %v14691_v34 = vld [vmem:[%s18085_s7 + $0x340] sm:$0xff]  ;;  %v14696_v37 = vld [vmem:[%s18085_s7 + $0x348] sm:$0xff] }
  0x2f   :  { %18159 = vst [vmem:[#allocation86_spill] sm:$0xff] %v14691_v34  ;;  %18160 = vst [vmem:[#allocation87_spill] sm:$0xff] %v14696_v37  ;;  %v14701_v42 = vld [vmem:[%s18085_s7 + $0x350] sm:$0xff]  ;;  %v14706_v44 = vld [vmem:[%s18085_s7 + $0x358] sm:$0xff] }
  0x30   :  { %18161 = vst [vmem:[#allocation88_spill] sm:$0xff] %v14701_v42  ;;  %18162 = vst [vmem:[#allocation89_spill] sm:$0xff] %v14706_v44  ;;  %v14711_v43 = vld [vmem:[%s18085_s7 + $0x360] sm:$0xff]  ;;  %v14716_v34 = vld [vmem:[%s18085_s7 + $0x368] sm:$0xff] }
  0x31   :  { %18163 = vst [vmem:[#allocation90_spill] sm:$0xff] %v14711_v43  ;;  %18164 = vst [vmem:[#allocation91_spill] sm:$0xff] %v14716_v34  ;;  %v14721_v37 = vld [vmem:[%s18085_s7 + $0x370] sm:$0xff]  ;;  %v14726_v42 = vld [vmem:[%s18085_s7 + $0x378] sm:$0xff] }
  0x32   :  { %18165 = vst [vmem:[#allocation92_spill] sm:$0xff] %v14721_v37  ;;  %18166 = vst [vmem:[#allocation93_spill] sm:$0xff] %v14726_v42  ;;  %v14731_v44 = vld [vmem:[%s18085_s7 + $0x380] sm:$0xff]  ;;  %v14736_v43 = vld [vmem:[%s18085_s7 + $0x388] sm:$0xff] }
  0x33   :  { %18167 = vst [vmem:[#allocation94_spill] sm:$0xff] %v14731_v44  ;;  %18168 = vst [vmem:[#allocation95_spill] sm:$0xff] %v14736_v43  ;;  %v14741_v34 = vld [vmem:[%s18085_s7 + $0x390] sm:$0xff]  ;;  %v14746_v37 = vld [vmem:[%s18085_s7 + $0x398] sm:$0xff] }
  0x34   :  { %18169 = vst [vmem:[#allocation96_spill] sm:$0xff] %v14741_v34  ;;  %18170 = vst [vmem:[#allocation97_spill] sm:$0xff] %v14746_v37  ;;  %v14751_v42 = vld [vmem:[%s18085_s7 + $0x3a0] sm:$0xff]  ;;  %v14756_v44 = vld [vmem:[%s18085_s7 + $0x3a8] sm:$0xff] }
  0x35   :  { %18171 = vst [vmem:[#allocation98_spill] sm:$0xff] %v14751_v42  ;;  %18172 = vst [vmem:[#allocation99_spill] sm:$0xff] %v14756_v44  ;;  %v14761_v43 = vld [vmem:[%s18085_s7 + $0x3b0] sm:$0xff]  ;;  %v14766_v34 = vld [vmem:[%s18085_s7 + $0x3b8] sm:$0xff] }
  0x36   :  { %18173 = vst [vmem:[#allocation100_spill] sm:$0xff] %v14761_v43  ;;  %18174 = vst [vmem:[#allocation101_spill] sm:$0xff] %v14766_v34  ;;  %v14771_v37 = vld [vmem:[%s18085_s7 + $0x3c0] sm:$0xff]  ;;  %v14776_v42 = vld [vmem:[%s18085_s7 + $0x3c8] sm:$0xff] }
  0x37   :  { %18175 = vst [vmem:[#allocation102_spill] sm:$0xff] %v14771_v37  ;;  %18176 = vst [vmem:[#allocation103_spill] sm:$0xff] %v14776_v42  ;;  %v14781_v44 = vld [vmem:[%s18085_s7 + $0x3d0] sm:$0xff]  ;;  %v14786_v43 = vld [vmem:[%s18085_s7 + $0x3d8] sm:$0xff] }
  0x38   :  { %18177 = vst [vmem:[#allocation104_spill] sm:$0xff] %v14781_v44  ;;  %18178 = vst [vmem:[#allocation105_spill] sm:$0xff] %v14786_v43  ;;  %v14791_v34 = vld [vmem:[%s18085_s7 + $0x3e0] sm:$0xff]  ;;  %v14796_v37 = vld [vmem:[%s18085_s7 + $0x3e8] sm:$0xff] }
  0x39   :  { %18179 = vst [vmem:[#allocation106_spill] sm:$0xff] %v14791_v34  ;;  %18180 = vst [vmem:[#allocation107_spill] sm:$0xff] %v14796_v37  ;;  %v14801_v42 = vld [vmem:[%s18085_s7 + $0x3f0] sm:$0xff]  ;;  %v14806_v44 = vld [vmem:[%s18085_s7 + $0x3f8] sm:$0xff] }
  0x3a   :  { %18181 = vst [vmem:[#allocation108_spill] sm:$0xff] %v14801_v42  ;;  %18182 = vst [vmem:[#allocation109_spill] sm:$0xff] %v14806_v44  ;;  %v14811_v43 = vld [vmem:[%s18085_s7 + $0x400] sm:$0xff]  ;;  %v14816_v34 = vld [vmem:[%s18085_s7 + $0x408] sm:$0xff] }
  0x3b   :  { %18183 = vst [vmem:[#allocation110_spill] sm:$0xff] %v14811_v43  ;;  %18184 = vst [vmem:[#allocation111_spill] sm:$0xff] %v14816_v34  ;;  %v14821_v37 = vld [vmem:[%s18085_s7 + $0x410] sm:$0xff]  ;;  %v14826_v42 = vld [vmem:[%s18085_s7 + $0x418] sm:$0xff] }
  0x3c   :  { %18185 = vst [vmem:[#allocation112_spill] sm:$0xff] %v14821_v37  ;;  %18186 = vst [vmem:[#allocation113_spill] sm:$0xff] %v14826_v42  ;;  %v14831_v44 = vld [vmem:[%s18085_s7 + $0x420] sm:$0xff]  ;;  %v14836_v43 = vld [vmem:[%s18085_s7 + $0x428] sm:$0xff] }
  0x3d   :  { %18187 = vst [vmem:[#allocation114_spill] sm:$0xff] %v14831_v44  ;;  %18188 = vst [vmem:[#allocation115_spill] sm:$0xff] %v14836_v43  ;;  %v14841_v34 = vld [vmem:[%s18085_s7 + $0x430] sm:$0xff]  ;;  %v14846_v37 = vld [vmem:[%s18085_s7 + $0x438] sm:$0xff] }
  0x3e   :  { %18189 = vst [vmem:[#allocation116_spill] sm:$0xff] %v14841_v34  ;;  %18190 = vst [vmem:[#allocation117_spill] sm:$0xff] %v14846_v37  ;;  %v14851_v42 = vld [vmem:[%s18085_s7 + $0x440] sm:$0xff]  ;;  %v14856_v44 = vld [vmem:[%s18085_s7 + $0x448] sm:$0xff] }
  0x3f   :  { %18191 = vst [vmem:[#allocation118_spill] sm:$0xff] %v14851_v42  ;;  %18192 = vst [vmem:[#allocation119_spill] sm:$0xff] %v14856_v44  ;;  %v14861_v43 = vld [vmem:[%s18085_s7 + $0x450] sm:$0xff]  ;;  %v14866_v34 = vld [vmem:[%s18085_s7 + $0x458] sm:$0xff] }
  0x40   :  { %18193 = vst [vmem:[#allocation120_spill] sm:$0xff] %v14861_v43  ;;  %18194 = vst [vmem:[#allocation121_spill] sm:$0xff] %v14866_v34  ;;  %v14871_v37 = vld [vmem:[%s18085_s7 + $0x460] sm:$0xff]  ;;  %v14876_v42 = vld [vmem:[%s18085_s7 + $0x468] sm:$0xff] }
  0x41   :  { %18195 = vst [vmem:[#allocation122_spill] sm:$0xff] %v14871_v37  ;;  %18196 = vst [vmem:[#allocation123_spill] sm:$0xff] %v14876_v42  ;;  %v14881_v44 = vld [vmem:[%s18085_s7 + $0x470] sm:$0xff]  ;;  %v14886_v43 = vld [vmem:[%s18085_s7 + $0x478] sm:$0xff] }
  0x42   :  { %18197 = vst [vmem:[#allocation124_spill] sm:$0xff] %v14881_v44  ;;  %18198 = vst [vmem:[#allocation125_spill] sm:$0xff] %v14886_v43  ;;  %v14891_v34 = vld [vmem:[%s18085_s7 + $0x480] sm:$0xff]  ;;  %v14896_v37 = vld [vmem:[%s18085_s7 + $0x488] sm:$0xff] }
  0x43   :  { %18199 = vst [vmem:[#allocation126_spill] sm:$0xff] %v14891_v34  ;;  %18200 = vst [vmem:[#allocation127_spill] sm:$0xff] %v14896_v37  ;;  %v14901_v42 = vld [vmem:[%s18085_s7 + $0x490] sm:$0xff]  ;;  %v14906_v44 = vld [vmem:[%s18085_s7 + $0x498] sm:$0xff] }
  0x44   :  { %18201 = vst [vmem:[#allocation128_spill] sm:$0xff] %v14901_v42  ;;  %18202 = vst [vmem:[#allocation129_spill] sm:$0xff] %v14906_v44  ;;  %v14911_v43 = vld [vmem:[%s18085_s7 + $0x4a0] sm:$0xff]  ;;  %v14916_v34 = vld [vmem:[%s18085_s7 + $0x4a8] sm:$0xff] }
  0x45   :  { %18203 = vst [vmem:[#allocation130_spill] sm:$0xff] %v14911_v43  ;;  %18204 = vst [vmem:[#allocation131_spill] sm:$0xff] %v14916_v34  ;;  %v14921_v37 = vld [vmem:[%s18085_s7 + $0x4b0] sm:$0xff]  ;;  %v14926_v42 = vld [vmem:[%s18085_s7 + $0x4b8] sm:$0xff] }
  0x46   :  { %18205 = vst [vmem:[#allocation132_spill] sm:$0xff] %v14921_v37  ;;  %18206 = vst [vmem:[#allocation133_spill] sm:$0xff] %v14926_v42  ;;  %v14931_v44 = vld [vmem:[%s18085_s7 + $0x4c0] sm:$0xff]  ;;  %v14936_v43 = vld [vmem:[%s18085_s7 + $0x4c8] sm:$0xff] }
  0x47   :  { %18207 = vst [vmem:[#allocation134_spill] sm:$0xff] %v14931_v44  ;;  %18208 = vst [vmem:[#allocation135_spill] sm:$0xff] %v14936_v43  ;;  %v14941_v34 = vld [vmem:[%s18085_s7 + $0x4d0] sm:$0xff]  ;;  %v14946_v37 = vld [vmem:[%s18085_s7 + $0x4d8] sm:$0xff] }
  0x48   :  { %18209 = vst [vmem:[#allocation136_spill] sm:$0xff] %v14941_v34  ;;  %18210 = vst [vmem:[#allocation137_spill] sm:$0xff] %v14946_v37  ;;  %v14951_v42 = vld [vmem:[%s18085_s7 + $0x4e0] sm:$0xff]  ;;  %v14956_v44 = vld [vmem:[%s18085_s7 + $0x4e8] sm:$0xff] }
  0x49   :  { %18211 = vst [vmem:[#allocation138_spill] sm:$0xff] %v14951_v42  ;;  %18212 = vst [vmem:[#allocation139_spill] sm:$0xff] %v14956_v44  ;;  %v14961_v43 = vld [vmem:[%s18085_s7 + $0x4f0] sm:$0xff]  ;;  %v14966_v34 = vld [vmem:[%s18085_s7 + $0x4f8] sm:$0xff] }
  0x4a   :  { %18213 = vst [vmem:[#allocation140_spill] sm:$0xff] %v14961_v43  ;;  %18214 = vst [vmem:[#allocation141_spill] sm:$0xff] %v14966_v34  ;;  %v14971_v37 = vld [vmem:[%s18085_s7 + $0x500] sm:$0xff]  ;;  %v14976_v42 = vld [vmem:[%s18085_s7 + $0x508] sm:$0xff] }
  0x4b   :  { %18215 = vst [vmem:[#allocation142_spill] sm:$0xff] %v14971_v37  ;;  %18216 = vst [vmem:[#allocation143_spill] sm:$0xff] %v14976_v42  ;;  %v14981_v44 = vld [vmem:[%s18085_s7 + $0x510] sm:$0xff]  ;;  %v14986_v43 = vld [vmem:[%s18085_s7 + $0x518] sm:$0xff] }
  0x4c   :  { %18217 = vst [vmem:[#allocation144_spill] sm:$0xff] %v14981_v44  ;;  %18218 = vst [vmem:[#allocation145_spill] sm:$0xff] %v14986_v43  ;;  %v14991_v34 = vld [vmem:[%s18085_s7 + $0x520] sm:$0xff]  ;;  %v14996_v37 = vld [vmem:[%s18085_s7 + $0x528] sm:$0xff] }
  0x4d   :  { %18219 = vst [vmem:[#allocation146_spill] sm:$0xff] %v14991_v34  ;;  %18220 = vst [vmem:[#allocation147_spill] sm:$0xff] %v14996_v37  ;;  %v15001_v42 = vld [vmem:[%s18085_s7 + $0x530] sm:$0xff]  ;;  %v15006_v44 = vld [vmem:[%s18085_s7 + $0x538] sm:$0xff] }
  0x4e   :  { %18221 = vst [vmem:[#allocation148_spill] sm:$0xff] %v15001_v42  ;;  %18222 = vst [vmem:[#allocation149_spill] sm:$0xff] %v15006_v44  ;;  %v15011_v43 = vld [vmem:[%s18085_s7 + $0x540] sm:$0xff]  ;;  %v15016_v34 = vld [vmem:[%s18085_s7 + $0x548] sm:$0xff] }
  0x4f   :  { %18223 = vst [vmem:[#allocation150_spill] sm:$0xff] %v15011_v43  ;;  %18224 = vst [vmem:[#allocation151_spill] sm:$0xff] %v15016_v34  ;;  %v15021_v37 = vld [vmem:[%s18085_s7 + $0x550] sm:$0xff]  ;;  %v15026_v42 = vld [vmem:[%s18085_s7 + $0x558] sm:$0xff] }
  0x50   :  { %18225 = vst [vmem:[#allocation152_spill] sm:$0xff] %v15021_v37  ;;  %18226 = vst [vmem:[#allocation153_spill] sm:$0xff] %v15026_v42  ;;  %v15031_v44 = vld [vmem:[%s18085_s7 + $0x560] sm:$0xff]  ;;  %v15036_v43 = vld [vmem:[%s18085_s7 + $0x568] sm:$0xff] }
  0x51   :  { %18227 = vst [vmem:[#allocation154_spill] sm:$0xff] %v15031_v44  ;;  %18228 = vst [vmem:[#allocation155_spill] sm:$0xff] %v15036_v43  ;;  %v15041_v34 = vld [vmem:[%s18085_s7 + $0x570] sm:$0xff]  ;;  %v15046_v37 = vld [vmem:[%s18085_s7 + $0x578] sm:$0xff] }
  0x52   :  { %18229 = vst [vmem:[#allocation156_spill] sm:$0xff] %v15041_v34  ;;  %18230 = vst [vmem:[#allocation157_spill] sm:$0xff] %v15046_v37  ;;  %v15051_v42 = vld [vmem:[%s18085_s7 + $0x580] sm:$0xff]  ;;  %v15056_v44 = vld [vmem:[%s18085_s7 + $0x588] sm:$0xff] }
  0x53   :  { %18231 = vst [vmem:[#allocation158_spill] sm:$0xff] %v15051_v42  ;;  %18232 = vst [vmem:[#allocation159_spill] sm:$0xff] %v15056_v44  ;;  %v15061_v43 = vld [vmem:[%s18085_s7 + $0x590] sm:$0xff]  ;;  %v15066_v34 = vld [vmem:[%s18085_s7 + $0x598] sm:$0xff] }
  0x54   :  { %18233 = vst [vmem:[#allocation160_spill] sm:$0xff] %v15061_v43  ;;  %18234 = vst [vmem:[#allocation161_spill] sm:$0xff] %v15066_v34  ;;  %v15071_v37 = vld [vmem:[%s18085_s7 + $0x5a0] sm:$0xff]  ;;  %v15076_v42 = vld [vmem:[%s18085_s7 + $0x5a8] sm:$0xff] }
  0x55   :  { %18235 = vst [vmem:[#allocation162_spill] sm:$0xff] %v15071_v37  ;;  %18236 = vst [vmem:[#allocation163_spill] sm:$0xff] %v15076_v42  ;;  %v15081_v44 = vld [vmem:[%s18085_s7 + $0x5b0] sm:$0xff]  ;;  %v15086_v43 = vld [vmem:[%s18085_s7 + $0x5b8] sm:$0xff] }
  0x56   :  { %18237 = vst [vmem:[#allocation164_spill] sm:$0xff] %v15081_v44  ;;  %18238 = vst [vmem:[#allocation165_spill] sm:$0xff] %v15086_v43  ;;  %v15091_v34 = vld [vmem:[%s18085_s7 + $0x5c0] sm:$0xff]  ;;  %v15096_v37 = vld [vmem:[%s18085_s7 + $0x5c8] sm:$0xff] }
  0x57   :  { %18239 = vst [vmem:[#allocation166_spill] sm:$0xff] %v15091_v34  ;;  %18240 = vst [vmem:[#allocation167_spill] sm:$0xff] %v15096_v37  ;;  %v15101_v42 = vld [vmem:[%s18085_s7 + $0x5d0] sm:$0xff]  ;;  %v15106_v44 = vld [vmem:[%s18085_s7 + $0x5d8] sm:$0xff] }
  0x58   :  { %18241 = vst [vmem:[#allocation168_spill] sm:$0xff] %v15101_v42  ;;  %18242 = vst [vmem:[#allocation169_spill] sm:$0xff] %v15106_v44  ;;  %v15111_v43 = vld [vmem:[%s18085_s7 + $0x5e0] sm:$0xff]  ;;  %v15116_v34 = vld [vmem:[%s18085_s7 + $0x5e8] sm:$0xff] }
  0x59   :  { %18243 = vst [vmem:[#allocation170_spill] sm:$0xff] %v15111_v43  ;;  %18244 = vst [vmem:[#allocation171_spill] sm:$0xff] %v15116_v34  ;;  %v15121_v37 = vld [vmem:[%s18085_s7 + $0x5f0] sm:$0xff]  ;;  %v15126_v42 = vld [vmem:[%s18085_s7 + $0x5f8] sm:$0xff] }
  0x5a   :  { %18245 = vst [vmem:[#allocation172_spill] sm:$0xff] %v15121_v37  ;;  %18246 = vst [vmem:[#allocation173_spill] sm:$0xff] %v15126_v42  ;;  %v15131_v44 = vld [vmem:[%s18085_s7 + $0x600] sm:$0xff]  ;;  %v15136_v43 = vld [vmem:[%s18085_s7 + $0x608] sm:$0xff] }
  0x5b   :  { %18247 = vst [vmem:[#allocation174_spill] sm:$0xff] %v15131_v44  ;;  %18248 = vst [vmem:[#allocation175_spill] sm:$0xff] %v15136_v43  ;;  %v15141_v34 = vld [vmem:[%s18085_s7 + $0x610] sm:$0xff]  ;;  %v15146_v37 = vld [vmem:[%s18085_s7 + $0x618] sm:$0xff] }
  0x5c   :  { %18249 = vst [vmem:[#allocation176_spill] sm:$0xff] %v15141_v34  ;;  %18250 = vst [vmem:[#allocation177_spill] sm:$0xff] %v15146_v37  ;;  %v15151_v42 = vld [vmem:[%s18085_s7 + $0x620] sm:$0xff]  ;;  %v15156_v44 = vld [vmem:[%s18085_s7 + $0x628] sm:$0xff] }
  0x5d   :  { %18251 = vst [vmem:[#allocation178_spill] sm:$0xff] %v15151_v42  ;;  %18252 = vst [vmem:[#allocation179_spill] sm:$0xff] %v15156_v44  ;;  %v15161_v43 = vld [vmem:[%s18085_s7 + $0x630] sm:$0xff]  ;;  %v15166_v34 = vld [vmem:[%s18085_s7 + $0x638] sm:$0xff] }
  0x5e   :  { %18253 = vst [vmem:[#allocation180_spill] sm:$0xff] %v15161_v43  ;;  %18254 = vst [vmem:[#allocation181_spill] sm:$0xff] %v15166_v34 }
  0x5f   :  { %478 = vsyncadd [#allocation10], 25600  ;;  %v497_v42 = vld [vmem:[%s18088_s10] sm:$0xf]  ;;  %v499_v37 = vld [vmem:[%s18088_s10 + $0x8] sm:$0xf] }
  0x60   :  { %498 = vst [vmem:[#allocation9] sm:$0xf] %v497_v42  ;;  %500 = vst [vmem:[#allocation9 + $0x4] sm:$0xf] %v499_v37  ;;  %v501_v43 = vld [vmem:[%s18088_s10 + $0x4] sm:$0xf] }
  0x61   :  { %v503_v44 = vld [vmem:[%s18088_s10 + $0xc] sm:$0xff]   ;;  %v507_v34 = vld [vmem:[%s18088_s10 + $0x18] sm:$0xf]  ;;  %502 = vst [vmem:[#allocation9 + $0x8] sm:$0xf] %v501_v43  ;;  %v511_v37 = vld [vmem:[%s18088_s10 + $0x1c] sm:$0xff]  }
  0x62   :  { %504 = vst [vmem:[#allocation9 + $0xc] sm:$0xff] %v503_v44   ;;  %508 = vst [vmem:[#allocation9 + $0x14] sm:$0xf] %v507_v34  ;;  %v509_v42 = vld [vmem:[%s18088_s10 + $0x14] sm:$0xf]  ;;  %v519_v34 = vld [vmem:[%s18088_s10 + $0x2c] sm:$0xff]  }
  0x63   :  { %v515_v33 = vld [vmem:[%s18088_s10 + $0x28] sm:$0xf]  ;;  %510 = vst [vmem:[#allocation9 + $0x18] sm:$0xf] %v509_v42  ;;  %512 = vst [vmem:[#allocation9 + $0x1c] sm:$0xff] %v511_v37  }
  0x64   :  { %516 = vst [vmem:[#allocation9 + $0x24] sm:$0xf] %v515_v33  ;;  %v517_v43 = vld [vmem:[%s18088_s10 + $0x24] sm:$0xf]  ;;  %v523_v44 = vld [vmem:[%s18088_s10 + $0x38] sm:$0xf] }
  0x65   :  { %518 = vst [vmem:[#allocation9 + $0x28] sm:$0xf] %v517_v43  ;;  %520 = vst [vmem:[#allocation9 + $0x2c] sm:$0xff] %v519_v34   ;;  %v525_v42 = vld [vmem:[%s18088_s10 + $0x34] sm:$0xf]  ;;  %v527_v33 = vld [vmem:[%s18088_s10 + $0x3c] sm:$0xff]  }
  0x66   :  { %524 = vst [vmem:[#allocation9 + $0x34] sm:$0xf] %v523_v44  ;;  %v531_v37 = vld [vmem:[%s18088_s10 + $0x48] sm:$0xf]  ;;  %526 = vst [vmem:[#allocation9 + $0x38] sm:$0xf] %v525_v42 }
  0x67   :  { %528 = vst [vmem:[#allocation9 + $0x3c] sm:$0xff] %v527_v33   ;;  %532 = vst [vmem:[#allocation9 + $0x44] sm:$0xf] %v531_v37  ;;  %v533_v43 = vld [vmem:[%s18088_s10 + $0x44] sm:$0xf]  ;;  %v535_v34 = vld [vmem:[%s18088_s10 + $0x4c] sm:$0xff]  }
  0x68   :  { %v539_v44 = vld [vmem:[%s18088_s10 + $0x58] sm:$0xf]  ;;  %534 = vst [vmem:[#allocation9 + $0x48] sm:$0xf] %v533_v43  ;;  %536 = vst [vmem:[#allocation9 + $0x4c] sm:$0xff] %v535_v34   ;;  %v543_v33 = vld [vmem:[%s18088_s10 + $0x5c] sm:$0xff]  }
  0x69   :  { %540 = vst [vmem:[#allocation9 + $0x54] sm:$0xf] %v539_v44  ;;  %v541_v42 = vld [vmem:[%s18088_s10 + $0x54] sm:$0xf]  ;;  %v547_v37 = vld [vmem:[%s18088_s10 + $0x68] sm:$0xf] }
  0x6a   :  { %542 = vst [vmem:[#allocation9 + $0x58] sm:$0xf] %v541_v42  ;;  %544 = vst [vmem:[#allocation9 + $0x5c] sm:$0xff] %v543_v33   ;;  %v549_v43 = vld [vmem:[%s18088_s10 + $0x64] sm:$0xf]  ;;  %v551_v34 = vld [vmem:[%s18088_s10 + $0x6c] sm:$0xff]  }
  0x6b   :  { %548 = vst [vmem:[#allocation9 + $0x64] sm:$0xf] %v547_v37  ;;  %v555_v44 = vld [vmem:[%s18088_s10 + $0x78] sm:$0xf]  ;;  %550 = vst [vmem:[#allocation9 + $0x68] sm:$0xf] %v549_v43 }
  0x6c   :  { %552 = vst [vmem:[#allocation9 + $0x6c] sm:$0xff] %v551_v34   ;;  %556 = vst [vmem:[#allocation9 + $0x74] sm:$0xf] %v555_v44  ;;  %v557_v42 = vld [vmem:[%s18088_s10 + $0x74] sm:$0xf]  ;;  %v559_v33 = vld [vmem:[%s18088_s10 + $0x7c] sm:$0xff]  }
  0x6d   :  { %v563_v37 = vld [vmem:[%s18088_s10 + $0x88] sm:$0xf]  ;;  %558 = vst [vmem:[#allocation9 + $0x78] sm:$0xf] %v557_v42  ;;  %560 = vst [vmem:[#allocation9 + $0x7c] sm:$0xff] %v559_v33   ;;  %v567_v34 = vld [vmem:[%s18088_s10 + $0x8c] sm:$0xff]  }
  0x6e   :  { %564 = vst [vmem:[#allocation9 + $0x84] sm:$0xf] %v563_v37  ;;  %v565_v43 = vld [vmem:[%s18088_s10 + $0x84] sm:$0xf]  ;;  %v571_v44 = vld [vmem:[%s18088_s10 + $0x98] sm:$0xf] }
  0x6f   :  { %566 = vst [vmem:[#allocation9 + $0x88] sm:$0xf] %v565_v43  ;;  %568 = vst [vmem:[#allocation9 + $0x8c] sm:$0xff] %v567_v34   ;;  %v573_v42 = vld [vmem:[%s18088_s10 + $0x94] sm:$0xf]  ;;  %v575_v33 = vld [vmem:[%s18088_s10 + $0x9c] sm:$0xff]  }
  0x70   :  { %572 = vst [vmem:[#allocation9 + $0x94] sm:$0xf] %v571_v44  ;;  %v579_v37 = vld [vmem:[%s18088_s10 + $0xa8] sm:$0xf]  ;;  %574 = vst [vmem:[#allocation9 + $0x98] sm:$0xf] %v573_v42 }
  0x71   :  { %576 = vst [vmem:[#allocation9 + $0x9c] sm:$0xff] %v575_v33   ;;  %580 = vst [vmem:[#allocation9 + $0xa4] sm:$0xf] %v579_v37  ;;  %v581_v43 = vld [vmem:[%s18088_s10 + $0xa4] sm:$0xf]  ;;  %v583_v34 = vld [vmem:[%s18088_s10 + $0xac] sm:$0xff]  }
  0x72   :  { %v587_v44 = vld [vmem:[%s18088_s10 + $0xb8] sm:$0xf]  ;;  %582 = vst [vmem:[#allocation9 + $0xa8] sm:$0xf] %v581_v43  ;;  %584 = vst [vmem:[#allocation9 + $0xac] sm:$0xff] %v583_v34   ;;  %v591_v33 = vld [vmem:[%s18088_s10 + $0xbc] sm:$0xff]  }
  0x73   :  { %588 = vst [vmem:[#allocation9 + $0xb4] sm:$0xf] %v587_v44  ;;  %v589_v42 = vld [vmem:[%s18088_s10 + $0xb4] sm:$0xf]  ;;  %v595_v37 = vld [vmem:[%s18088_s10 + $0xc8] sm:$0xf] }
  0x74   :  { %590 = vst [vmem:[#allocation9 + $0xb8] sm:$0xf] %v589_v42  ;;  %592 = vst [vmem:[#allocation9 + $0xbc] sm:$0xff] %v591_v33   ;;  %v597_v43 = vld [vmem:[%s18088_s10 + $0xc4] sm:$0xf]  ;;  %v599_v34 = vld [vmem:[%s18088_s10 + $0xcc] sm:$0xff]  }
  0x75   :  { %596 = vst [vmem:[#allocation9 + $0xc4] sm:$0xf] %v595_v37  ;;  %v603_v44 = vld [vmem:[%s18088_s10 + $0xd8] sm:$0xf]  ;;  %598 = vst [vmem:[#allocation9 + $0xc8] sm:$0xf] %v597_v43 }
  0x76   :  { %600 = vst [vmem:[#allocation9 + $0xcc] sm:$0xff] %v599_v34   ;;  %604 = vst [vmem:[#allocation9 + $0xd4] sm:$0xf] %v603_v44  ;;  %v605_v42 = vld [vmem:[%s18088_s10 + $0xd4] sm:$0xf]  ;;  %v607_v33 = vld [vmem:[%s18088_s10 + $0xdc] sm:$0xff]  }
  0x77   :  { %v611_v37 = vld [vmem:[%s18088_s10 + $0xe8] sm:$0xf]  ;;  %606 = vst [vmem:[#allocation9 + $0xd8] sm:$0xf] %v605_v42  ;;  %608 = vst [vmem:[#allocation9 + $0xdc] sm:$0xff] %v607_v33   ;;  %v615_v34 = vld [vmem:[%s18088_s10 + $0xec] sm:$0xff]  }
  0x78   :  { %612 = vst [vmem:[#allocation9 + $0xe4] sm:$0xf] %v611_v37  ;;  %v613_v43 = vld [vmem:[%s18088_s10 + $0xe4] sm:$0xf]  ;;  %v619_v44 = vld [vmem:[%s18088_s10 + $0xf8] sm:$0xf] }
  0x79   :  { %614 = vst [vmem:[#allocation9 + $0xe8] sm:$0xf] %v613_v43  ;;  %616 = vst [vmem:[#allocation9 + $0xec] sm:$0xff] %v615_v34   ;;  %v621_v42 = vld [vmem:[%s18088_s10 + $0xf4] sm:$0xf]  ;;  %v623_v33 = vld [vmem:[%s18088_s10 + $0xfc] sm:$0xff]  }
  0x7a   :  { %620 = vst [vmem:[#allocation9 + $0xf4] sm:$0xf] %v619_v44  ;;  %v627_v37 = vld [vmem:[%s18088_s10 + $0x108] sm:$0xf]  ;;  %622 = vst [vmem:[#allocation9 + $0xf8] sm:$0xf] %v621_v42 }
  0x7b   :  { %624 = vst [vmem:[#allocation9 + $0xfc] sm:$0xff] %v623_v33   ;;  %628 = vst [vmem:[#allocation9 + $0x104] sm:$0xf] %v627_v37  ;;  %v629_v43 = vld [vmem:[%s18088_s10 + $0x104] sm:$0xf]  ;;  %v631_v34 = vld [vmem:[%s18088_s10 + $0x10c] sm:$0xff]  }
  0x7c   :  { %v635_v44 = vld [vmem:[%s18088_s10 + $0x118] sm:$0xf]  ;;  %630 = vst [vmem:[#allocation9 + $0x108] sm:$0xf] %v629_v43  ;;  %632 = vst [vmem:[#allocation9 + $0x10c] sm:$0xff] %v631_v34   ;;  %v639_v33 = vld [vmem:[%s18088_s10 + $0x11c] sm:$0xff]  }
  0x7d   :  { %636 = vst [vmem:[#allocation9 + $0x114] sm:$0xf] %v635_v44  ;;  %v637_v42 = vld [vmem:[%s18088_s10 + $0x114] sm:$0xf]  ;;  %v643_v37 = vld [vmem:[%s18088_s10 + $0x128] sm:$0xf] }
  0x7e   :  { %638 = vst [vmem:[#allocation9 + $0x118] sm:$0xf] %v637_v42  ;;  %640 = vst [vmem:[#allocation9 + $0x11c] sm:$0xff] %v639_v33   ;;  %v645_v43 = vld [vmem:[%s18088_s10 + $0x124] sm:$0xf]  ;;  %v647_v34 = vld [vmem:[%s18088_s10 + $0x12c] sm:$0xff]  }
  0x7f   :  { %644 = vst [vmem:[#allocation9 + $0x124] sm:$0xf] %v643_v37  ;;  %v651_v44 = vld [vmem:[%s18088_s10 + $0x138] sm:$0xf]  ;;  %646 = vst [vmem:[#allocation9 + $0x128] sm:$0xf] %v645_v43 }
  0x80   :  { %648 = vst [vmem:[#allocation9 + $0x12c] sm:$0xff] %v647_v34   ;;  %652 = vst [vmem:[#allocation9 + $0x134] sm:$0xf] %v651_v44  ;;  %v653_v42 = vld [vmem:[%s18088_s10 + $0x134] sm:$0xf]  ;;  %v655_v33 = vld [vmem:[%s18088_s10 + $0x13c] sm:$0xff]  }
  0x81   :  { %v659_v37 = vld [vmem:[%s18088_s10 + $0x148] sm:$0xf]  ;;  %654 = vst [vmem:[#allocation9 + $0x138] sm:$0xf] %v653_v42  ;;  %656 = vst [vmem:[#allocation9 + $0x13c] sm:$0xff] %v655_v33   ;;  %v663_v34 = vld [vmem:[%s18088_s10 + $0x14c] sm:$0xff]  }
  0x82   :  { %660 = vst [vmem:[#allocation9 + $0x144] sm:$0xf] %v659_v37  ;;  %v661_v43 = vld [vmem:[%s18088_s10 + $0x144] sm:$0xf]  ;;  %v667_v44 = vld [vmem:[%s18088_s10 + $0x158] sm:$0xf] }
  0x83   :  { %662 = vst [vmem:[#allocation9 + $0x148] sm:$0xf] %v661_v43  ;;  %664 = vst [vmem:[#allocation9 + $0x14c] sm:$0xff] %v663_v34   ;;  %v669_v42 = vld [vmem:[%s18088_s10 + $0x154] sm:$0xf]  ;;  %v671_v33 = vld [vmem:[%s18088_s10 + $0x15c] sm:$0xff]  }
  0x84   :  { %668 = vst [vmem:[#allocation9 + $0x154] sm:$0xf] %v667_v44  ;;  %v675_v37 = vld [vmem:[%s18088_s10 + $0x168] sm:$0xf]  ;;  %670 = vst [vmem:[#allocation9 + $0x158] sm:$0xf] %v669_v42 }
  0x85   :  { %672 = vst [vmem:[#allocation9 + $0x15c] sm:$0xff] %v671_v33   ;;  %676 = vst [vmem:[#allocation9 + $0x164] sm:$0xf] %v675_v37  ;;  %v677_v43 = vld [vmem:[%s18088_s10 + $0x164] sm:$0xf]  ;;  %v679_v34 = vld [vmem:[%s18088_s10 + $0x16c] sm:$0xff]  }
  0x86   :  { %v683_v44 = vld [vmem:[%s18088_s10 + $0x178] sm:$0xf]  ;;  %678 = vst [vmem:[#allocation9 + $0x168] sm:$0xf] %v677_v43  ;;  %680 = vst [vmem:[#allocation9 + $0x16c] sm:$0xff] %v679_v34   ;;  %v687_v33 = vld [vmem:[%s18088_s10 + $0x17c] sm:$0xff]  }
  0x87   :  { %684 = vst [vmem:[#allocation9 + $0x174] sm:$0xf] %v683_v44  ;;  %v685_v42 = vld [vmem:[%s18088_s10 + $0x174] sm:$0xf]  ;;  %v691_v37 = vld [vmem:[%s18088_s10 + $0x188] sm:$0xf] }
  0x88   :  { %686 = vst [vmem:[#allocation9 + $0x178] sm:$0xf] %v685_v42  ;;  %688 = vst [vmem:[#allocation9 + $0x17c] sm:$0xff] %v687_v33   ;;  %v693_v43 = vld [vmem:[%s18088_s10 + $0x184] sm:$0xf]  ;;  %v695_v34 = vld [vmem:[%s18088_s10 + $0x18c] sm:$0xff]  }
  0x89   :  { %692 = vst [vmem:[#allocation9 + $0x184] sm:$0xf] %v691_v37  ;;  %v699_v44 = vld [vmem:[%s18088_s10 + $0x198] sm:$0xf]  ;;  %694 = vst [vmem:[#allocation9 + $0x188] sm:$0xf] %v693_v43 }
  0x8a   :  { %696 = vst [vmem:[#allocation9 + $0x18c] sm:$0xff] %v695_v34   ;;  %700 = vst [vmem:[#allocation9 + $0x194] sm:$0xf] %v699_v44  ;;  %v701_v42 = vld [vmem:[%s18088_s10 + $0x194] sm:$0xf]  ;;  %v703_v33 = vld [vmem:[%s18088_s10 + $0x19c] sm:$0xff]  }
  0x8b   :  { %v707_v37 = vld [vmem:[%s18088_s10 + $0x1a8] sm:$0xf]  ;;  %702 = vst [vmem:[#allocation9 + $0x198] sm:$0xf] %v701_v42  ;;  %704 = vst [vmem:[#allocation9 + $0x19c] sm:$0xff] %v703_v33   ;;  %v711_v34 = vld [vmem:[%s18088_s10 + $0x1ac] sm:$0xff]  }
  0x8c   :  { %708 = vst [vmem:[#allocation9 + $0x1a4] sm:$0xf] %v707_v37  ;;  %v709_v43 = vld [vmem:[%s18088_s10 + $0x1a4] sm:$0xf]  ;;  %v715_v44 = vld [vmem:[%s18088_s10 + $0x1b8] sm:$0xf] }
  0x8d   :  { %710 = vst [vmem:[#allocation9 + $0x1a8] sm:$0xf] %v709_v43  ;;  %712 = vst [vmem:[#allocation9 + $0x1ac] sm:$0xff] %v711_v34   ;;  %v717_v42 = vld [vmem:[%s18088_s10 + $0x1b4] sm:$0xf]  ;;  %v719_v33 = vld [vmem:[%s18088_s10 + $0x1bc] sm:$0xff]  }
  0x8e   :  { %716 = vst [vmem:[#allocation9 + $0x1b4] sm:$0xf] %v715_v44  ;;  %v723_v37 = vld [vmem:[%s18088_s10 + $0x1c8] sm:$0xf]  ;;  %718 = vst [vmem:[#allocation9 + $0x1b8] sm:$0xf] %v717_v42 }
  0x8f   :  { %720 = vst [vmem:[#allocation9 + $0x1bc] sm:$0xff] %v719_v33   ;;  %724 = vst [vmem:[#allocation9 + $0x1c4] sm:$0xf] %v723_v37  ;;  %v725_v43 = vld [vmem:[%s18088_s10 + $0x1c4] sm:$0xf]  ;;  %v727_v34 = vld [vmem:[%s18088_s10 + $0x1cc] sm:$0xff]  }
  0x90   :  { %v731_v44 = vld [vmem:[%s18088_s10 + $0x1d8] sm:$0xf]  ;;  %726 = vst [vmem:[#allocation9 + $0x1c8] sm:$0xf] %v725_v43  ;;  %728 = vst [vmem:[#allocation9 + $0x1cc] sm:$0xff] %v727_v34   ;;  %v735_v33 = vld [vmem:[%s18088_s10 + $0x1dc] sm:$0xff]  }
  0x91   :  { %732 = vst [vmem:[#allocation9 + $0x1d4] sm:$0xf] %v731_v44  ;;  %v733_v42 = vld [vmem:[%s18088_s10 + $0x1d4] sm:$0xf]  ;;  %v739_v37 = vld [vmem:[%s18088_s10 + $0x1e8] sm:$0xf] }
  0x92   :  { %734 = vst [vmem:[#allocation9 + $0x1d8] sm:$0xf] %v733_v42  ;;  %736 = vst [vmem:[#allocation9 + $0x1dc] sm:$0xff] %v735_v33   ;;  %v741_v43 = vld [vmem:[%s18088_s10 + $0x1e4] sm:$0xf]  ;;  %v743_v34 = vld [vmem:[%s18088_s10 + $0x1ec] sm:$0xff]  }
  0x93   :  { %740 = vst [vmem:[#allocation9 + $0x1e4] sm:$0xf] %v739_v37  ;;  %v747_v44 = vld [vmem:[%s18088_s10 + $0x1f8] sm:$0xf]  ;;  %742 = vst [vmem:[#allocation9 + $0x1e8] sm:$0xf] %v741_v43 }
  0x94   :  { %744 = vst [vmem:[#allocation9 + $0x1ec] sm:$0xff] %v743_v34   ;;  %748 = vst [vmem:[#allocation9 + $0x1f4] sm:$0xf] %v747_v44  ;;  %v749_v42 = vld [vmem:[%s18088_s10 + $0x1f4] sm:$0xf]  ;;  %v751_v33 = vld [vmem:[%s18088_s10 + $0x1fc] sm:$0xff]  }
  0x95   :  { %v755_v37 = vld [vmem:[%s18088_s10 + $0x208] sm:$0xf]  ;;  %750 = vst [vmem:[#allocation9 + $0x1f8] sm:$0xf] %v749_v42  ;;  %752 = vst [vmem:[#allocation9 + $0x1fc] sm:$0xff] %v751_v33   ;;  %v759_v34 = vld [vmem:[%s18088_s10 + $0x20c] sm:$0xff]  }
  0x96   :  { %756 = vst [vmem:[#allocation9 + $0x204] sm:$0xf] %v755_v37  ;;  %v757_v43 = vld [vmem:[%s18088_s10 + $0x204] sm:$0xf]  ;;  %v763_v44 = vld [vmem:[%s18088_s10 + $0x218] sm:$0xf] }
  0x97   :  { %758 = vst [vmem:[#allocation9 + $0x208] sm:$0xf] %v757_v43  ;;  %760 = vst [vmem:[#allocation9 + $0x20c] sm:$0xff] %v759_v34   ;;  %v765_v42 = vld [vmem:[%s18088_s10 + $0x214] sm:$0xf]  ;;  %v767_v33 = vld [vmem:[%s18088_s10 + $0x21c] sm:$0xff]  }
  0x98   :  { %764 = vst [vmem:[#allocation9 + $0x214] sm:$0xf] %v763_v44  ;;  %v771_v37 = vld [vmem:[%s18088_s10 + $0x228] sm:$0xf]  ;;  %766 = vst [vmem:[#allocation9 + $0x218] sm:$0xf] %v765_v42 }
  0x99   :  { %768 = vst [vmem:[#allocation9 + $0x21c] sm:$0xff] %v767_v33   ;;  %772 = vst [vmem:[#allocation9 + $0x224] sm:$0xf] %v771_v37  ;;  %v773_v43 = vld [vmem:[%s18088_s10 + $0x224] sm:$0xf]  ;;  %v775_v34 = vld [vmem:[%s18088_s10 + $0x22c] sm:$0xff]  }
  0x9a   :  { %v779_v44 = vld [vmem:[%s18088_s10 + $0x238] sm:$0xf]  ;;  %774 = vst [vmem:[#allocation9 + $0x228] sm:$0xf] %v773_v43  ;;  %776 = vst [vmem:[#allocation9 + $0x22c] sm:$0xff] %v775_v34   ;;  %v783_v33 = vld [vmem:[%s18088_s10 + $0x23c] sm:$0xff]  }
  0x9b   :  { %780 = vst [vmem:[#allocation9 + $0x234] sm:$0xf] %v779_v44  ;;  %v781_v42 = vld [vmem:[%s18088_s10 + $0x234] sm:$0xf]  ;;  %v787_v37 = vld [vmem:[%s18088_s10 + $0x248] sm:$0xf] }
  0x9c   :  { %782 = vst [vmem:[#allocation9 + $0x238] sm:$0xf] %v781_v42  ;;  %784 = vst [vmem:[#allocation9 + $0x23c] sm:$0xff] %v783_v33   ;;  %v789_v43 = vld [vmem:[%s18088_s10 + $0x244] sm:$0xf]  ;;  %v791_v34 = vld [vmem:[%s18088_s10 + $0x24c] sm:$0xff]  }
  0x9d   :  { %788 = vst [vmem:[#allocation9 + $0x244] sm:$0xf] %v787_v37  ;;  %v795_v44 = vld [vmem:[%s18088_s10 + $0x258] sm:$0xf]  ;;  %790 = vst [vmem:[#allocation9 + $0x248] sm:$0xf] %v789_v43 }
  0x9e   :  { %792 = vst [vmem:[#allocation9 + $0x24c] sm:$0xff] %v791_v34   ;;  %796 = vst [vmem:[#allocation9 + $0x254] sm:$0xf] %v795_v44  ;;  %v797_v42 = vld [vmem:[%s18088_s10 + $0x254] sm:$0xf]  ;;  %v799_v33 = vld [vmem:[%s18088_s10 + $0x25c] sm:$0xff]  }
  0x9f   :  { %v803_v37 = vld [vmem:[%s18088_s10 + $0x268] sm:$0xf]  ;;  %798 = vst [vmem:[#allocation9 + $0x258] sm:$0xf] %v797_v42  ;;  %800 = vst [vmem:[#allocation9 + $0x25c] sm:$0xff] %v799_v33   ;;  %v807_v34 = vld [vmem:[%s18088_s10 + $0x26c] sm:$0xff]  }
  0xa0   :  { %804 = vst [vmem:[#allocation9 + $0x264] sm:$0xf] %v803_v37  ;;  %v805_v43 = vld [vmem:[%s18088_s10 + $0x264] sm:$0xf]  ;;  %v811_v44 = vld [vmem:[%s18088_s10 + $0x278] sm:$0xf] }
  0xa1   :  { %806 = vst [vmem:[#allocation9 + $0x268] sm:$0xf] %v805_v43  ;;  %808 = vst [vmem:[#allocation9 + $0x26c] sm:$0xff] %v807_v34   ;;  %v813_v42 = vld [vmem:[%s18088_s10 + $0x274] sm:$0xf]  ;;  %v815_v33 = vld [vmem:[%s18088_s10 + $0x27c] sm:$0xff]  }
  0xa2   :  { %812 = vst [vmem:[#allocation9 + $0x274] sm:$0xf] %v811_v44  ;;  %v819_v37 = vld [vmem:[%s18088_s10 + $0x288] sm:$0xf]  ;;  %814 = vst [vmem:[#allocation9 + $0x278] sm:$0xf] %v813_v42 }
  0xa3   :  { %816 = vst [vmem:[#allocation9 + $0x27c] sm:$0xff] %v815_v33   ;;  %820 = vst [vmem:[#allocation9 + $0x284] sm:$0xf] %v819_v37  ;;  %v821_v43 = vld [vmem:[%s18088_s10 + $0x284] sm:$0xf]  ;;  %v823_v34 = vld [vmem:[%s18088_s10 + $0x28c] sm:$0xff]  }
  0xa4   :  { %v827_v44 = vld [vmem:[%s18088_s10 + $0x298] sm:$0xf]  ;;  %822 = vst [vmem:[#allocation9 + $0x288] sm:$0xf] %v821_v43  ;;  %824 = vst [vmem:[#allocation9 + $0x28c] sm:$0xff] %v823_v34   ;;  %v831_v33 = vld [vmem:[%s18088_s10 + $0x29c] sm:$0xff]  }
  0xa5   :  { %828 = vst [vmem:[#allocation9 + $0x294] sm:$0xf] %v827_v44  ;;  %v829_v42 = vld [vmem:[%s18088_s10 + $0x294] sm:$0xf]  ;;  %v835_v37 = vld [vmem:[%s18088_s10 + $0x2a8] sm:$0xf] }
  0xa6   :  { %830 = vst [vmem:[#allocation9 + $0x298] sm:$0xf] %v829_v42  ;;  %832 = vst [vmem:[#allocation9 + $0x29c] sm:$0xff] %v831_v33   ;;  %v837_v43 = vld [vmem:[%s18088_s10 + $0x2a4] sm:$0xf]  ;;  %v839_v34 = vld [vmem:[%s18088_s10 + $0x2ac] sm:$0xff]  }
  0xa7   :  { %836 = vst [vmem:[#allocation9 + $0x2a4] sm:$0xf] %v835_v37  ;;  %v843_v44 = vld [vmem:[%s18088_s10 + $0x2b8] sm:$0xf]  ;;  %838 = vst [vmem:[#allocation9 + $0x2a8] sm:$0xf] %v837_v43 }
  0xa8   :  { %840 = vst [vmem:[#allocation9 + $0x2ac] sm:$0xff] %v839_v34   ;;  %844 = vst [vmem:[#allocation9 + $0x2b4] sm:$0xf] %v843_v44  ;;  %v845_v42 = vld [vmem:[%s18088_s10 + $0x2b4] sm:$0xf]  ;;  %v847_v33 = vld [vmem:[%s18088_s10 + $0x2bc] sm:$0xff]  }
  0xa9   :  { %v851_v37 = vld [vmem:[%s18088_s10 + $0x2c8] sm:$0xf]  ;;  %846 = vst [vmem:[#allocation9 + $0x2b8] sm:$0xf] %v845_v42  ;;  %848 = vst [vmem:[#allocation9 + $0x2bc] sm:$0xff] %v847_v33   ;;  %v855_v34 = vld [vmem:[%s18088_s10 + $0x2cc] sm:$0xff]  }
  0xaa   :  { %852 = vst [vmem:[#allocation9 + $0x2c4] sm:$0xf] %v851_v37  ;;  %v853_v43 = vld [vmem:[%s18088_s10 + $0x2c4] sm:$0xf]  ;;  %v859_v44 = vld [vmem:[%s18088_s10 + $0x2d8] sm:$0xf] }
  0xab   :  { %854 = vst [vmem:[#allocation9 + $0x2c8] sm:$0xf] %v853_v43  ;;  %856 = vst [vmem:[#allocation9 + $0x2cc] sm:$0xff] %v855_v34   ;;  %v861_v42 = vld [vmem:[%s18088_s10 + $0x2d4] sm:$0xf]  ;;  %v863_v33 = vld [vmem:[%s18088_s10 + $0x2dc] sm:$0xff]  }
  0xac   :  { %860 = vst [vmem:[#allocation9 + $0x2d4] sm:$0xf] %v859_v44  ;;  %v867_v37 = vld [vmem:[%s18088_s10 + $0x2e8] sm:$0xf]  ;;  %862 = vst [vmem:[#allocation9 + $0x2d8] sm:$0xf] %v861_v42 }
  0xad   :  { %864 = vst [vmem:[#allocation9 + $0x2dc] sm:$0xff] %v863_v33   ;;  %868 = vst [vmem:[#allocation9 + $0x2e4] sm:$0xf] %v867_v37  ;;  %v869_v43 = vld [vmem:[%s18088_s10 + $0x2e4] sm:$0xf]  ;;  %v871_v34 = vld [vmem:[%s18088_s10 + $0x2ec] sm:$0xff]  }
  0xae   :  { %v875_v44 = vld [vmem:[%s18088_s10 + $0x2f8] sm:$0xf]  ;;  %870 = vst [vmem:[#allocation9 + $0x2e8] sm:$0xf] %v869_v43  ;;  %872 = vst [vmem:[#allocation9 + $0x2ec] sm:$0xff] %v871_v34   ;;  %v879_v33 = vld [vmem:[%s18088_s10 + $0x2fc] sm:$0xff]  }
  0xaf   :  { %876 = vst [vmem:[#allocation9 + $0x2f4] sm:$0xf] %v875_v44  ;;  %v877_v42 = vld [vmem:[%s18088_s10 + $0x2f4] sm:$0xf]  ;;  %v883_v37 = vld [vmem:[%s18088_s10 + $0x308] sm:$0xf] }
  0xb0   :  { %878 = vst [vmem:[#allocation9 + $0x2f8] sm:$0xf] %v877_v42  ;;  %880 = vst [vmem:[#allocation9 + $0x2fc] sm:$0xff] %v879_v33   ;;  %v885_v43 = vld [vmem:[%s18088_s10 + $0x304] sm:$0xf]  ;;  %v887_v34 = vld [vmem:[%s18088_s10 + $0x30c] sm:$0xff]  }
  0xb1   :  { %884 = vst [vmem:[#allocation9 + $0x304] sm:$0xf] %v883_v37  ;;  %v891_v44 = vld [vmem:[%s18088_s10 + $0x318] sm:$0xf]  ;;  %886 = vst [vmem:[#allocation9 + $0x308] sm:$0xf] %v885_v43 }
  0xb2   :  { %888 = vst [vmem:[#allocation9 + $0x30c] sm:$0xff] %v887_v34   ;;  %892 = vst [vmem:[#allocation9 + $0x314] sm:$0xf] %v891_v44  ;;  %v893_v42 = vld [vmem:[%s18088_s10 + $0x314] sm:$0xf]  ;;  %v895_v33 = vld [vmem:[%s18088_s10 + $0x31c] sm:$0xff]  }
  0xb3   :  { %v899_v37 = vld [vmem:[%s18088_s10 + $0x328] sm:$0xf]  ;;  %894 = vst [vmem:[#allocation9 + $0x318] sm:$0xf] %v893_v42  ;;  %896 = vst [vmem:[#allocation9 + $0x31c] sm:$0xff] %v895_v33   ;;  %v903_v34 = vld [vmem:[%s18088_s10 + $0x32c] sm:$0xff]  }
  0xb4   :  { %900 = vst [vmem:[#allocation9 + $0x324] sm:$0xf] %v899_v37  ;;  %v901_v43 = vld [vmem:[%s18088_s10 + $0x324] sm:$0xf]  ;;  %v907_v44 = vld [vmem:[%s18088_s10 + $0x338] sm:$0xf] }
  0xb5   :  { %902 = vst [vmem:[#allocation9 + $0x328] sm:$0xf] %v901_v43  ;;  %904 = vst [vmem:[#allocation9 + $0x32c] sm:$0xff] %v903_v34   ;;  %v909_v42 = vld [vmem:[%s18088_s10 + $0x334] sm:$0xf]  ;;  %v911_v33 = vld [vmem:[%s18088_s10 + $0x33c] sm:$0xff]  }
  0xb6   :  { %908 = vst [vmem:[#allocation9 + $0x334] sm:$0xf] %v907_v44  ;;  %v915_v37 = vld [vmem:[%s18088_s10 + $0x348] sm:$0xf]  ;;  %910 = vst [vmem:[#allocation9 + $0x338] sm:$0xf] %v909_v42 }
  0xb7   :  { %912 = vst [vmem:[#allocation9 + $0x33c] sm:$0xff] %v911_v33   ;;  %916 = vst [vmem:[#allocation9 + $0x344] sm:$0xf] %v915_v37  ;;  %v917_v43 = vld [vmem:[%s18088_s10 + $0x344] sm:$0xf]  ;;  %v919_v34 = vld [vmem:[%s18088_s10 + $0x34c] sm:$0xff]  }
  0xb8   :  { %v923_v44 = vld [vmem:[%s18088_s10 + $0x358] sm:$0xf]  ;;  %918 = vst [vmem:[#allocation9 + $0x348] sm:$0xf] %v917_v43  ;;  %920 = vst [vmem:[#allocation9 + $0x34c] sm:$0xff] %v919_v34   ;;  %v927_v33 = vld [vmem:[%s18088_s10 + $0x35c] sm:$0xff]  }
  0xb9   :  { %924 = vst [vmem:[#allocation9 + $0x354] sm:$0xf] %v923_v44  ;;  %v925_v42 = vld [vmem:[%s18088_s10 + $0x354] sm:$0xf]  ;;  %v931_v37 = vld [vmem:[%s18088_s10 + $0x368] sm:$0xf] }
  0xba   :  { %926 = vst [vmem:[#allocation9 + $0x358] sm:$0xf] %v925_v42  ;;  %928 = vst [vmem:[#allocation9 + $0x35c] sm:$0xff] %v927_v33   ;;  %v933_v43 = vld [vmem:[%s18088_s10 + $0x364] sm:$0xf]  ;;  %v935_v34 = vld [vmem:[%s18088_s10 + $0x36c] sm:$0xff]  }
  0xbb   :  { %932 = vst [vmem:[#allocation9 + $0x364] sm:$0xf] %v931_v37  ;;  %v939_v44 = vld [vmem:[%s18088_s10 + $0x378] sm:$0xf]  ;;  %934 = vst [vmem:[#allocation9 + $0x368] sm:$0xf] %v933_v43 }
  0xbc   :  { %936 = vst [vmem:[#allocation9 + $0x36c] sm:$0xff] %v935_v34   ;;  %940 = vst [vmem:[#allocation9 + $0x374] sm:$0xf] %v939_v44  ;;  %v941_v42 = vld [vmem:[%s18088_s10 + $0x374] sm:$0xf]  ;;  %v943_v33 = vld [vmem:[%s18088_s10 + $0x37c] sm:$0xff]  }
  0xbd   :  { %v947_v37 = vld [vmem:[%s18088_s10 + $0x388] sm:$0xf]  ;;  %942 = vst [vmem:[#allocation9 + $0x378] sm:$0xf] %v941_v42  ;;  %944 = vst [vmem:[#allocation9 + $0x37c] sm:$0xff] %v943_v33   ;;  %v951_v34 = vld [vmem:[%s18088_s10 + $0x38c] sm:$0xff]  }
  0xbe   :  { %948 = vst [vmem:[#allocation9 + $0x384] sm:$0xf] %v947_v37  ;;  %v949_v43 = vld [vmem:[%s18088_s10 + $0x384] sm:$0xf]  ;;  %v955_v44 = vld [vmem:[%s18088_s10 + $0x398] sm:$0xf] }
  0xbf   :  { %950 = vst [vmem:[#allocation9 + $0x388] sm:$0xf] %v949_v43  ;;  %952 = vst [vmem:[#allocation9 + $0x38c] sm:$0xff] %v951_v34   ;;  %v957_v42 = vld [vmem:[%s18088_s10 + $0x394] sm:$0xf]  ;;  %v959_v33 = vld [vmem:[%s18088_s10 + $0x39c] sm:$0xff]  }
  0xc0   :  { %956 = vst [vmem:[#allocation9 + $0x394] sm:$0xf] %v955_v44  ;;  %v963_v37 = vld [vmem:[%s18088_s10 + $0x3a8] sm:$0xf]  ;;  %958 = vst [vmem:[#allocation9 + $0x398] sm:$0xf] %v957_v42 }
  0xc1   :  { %960 = vst [vmem:[#allocation9 + $0x39c] sm:$0xff] %v959_v33   ;;  %964 = vst [vmem:[#allocation9 + $0x3a4] sm:$0xf] %v963_v37  ;;  %v965_v43 = vld [vmem:[%s18088_s10 + $0x3a4] sm:$0xf]  ;;  %v967_v34 = vld [vmem:[%s18088_s10 + $0x3ac] sm:$0xff]  }
  0xc2   :  { %v971_v44 = vld [vmem:[%s18088_s10 + $0x3b8] sm:$0xf]  ;;  %966 = vst [vmem:[#allocation9 + $0x3a8] sm:$0xf] %v965_v43  ;;  %968 = vst [vmem:[#allocation9 + $0x3ac] sm:$0xff] %v967_v34   ;;  %v975_v33 = vld [vmem:[%s18088_s10 + $0x3bc] sm:$0xff]  }
  0xc3   :  { %972 = vst [vmem:[#allocation9 + $0x3b4] sm:$0xf] %v971_v44  ;;  %v973_v42 = vld [vmem:[%s18088_s10 + $0x3b4] sm:$0xf]  ;;  %v979_v37 = vld [vmem:[%s18088_s10 + $0x3c8] sm:$0xf] }
  0xc4   :  { %974 = vst [vmem:[#allocation9 + $0x3b8] sm:$0xf] %v973_v42  ;;  %976 = vst [vmem:[#allocation9 + $0x3bc] sm:$0xff] %v975_v33   ;;  %v981_v43 = vld [vmem:[%s18088_s10 + $0x3c4] sm:$0xf]  ;;  %v983_v34 = vld [vmem:[%s18088_s10 + $0x3cc] sm:$0xff]  }
  0xc5   :  { %980 = vst [vmem:[#allocation9 + $0x3c4] sm:$0xf] %v979_v37  ;;  %v987_v44 = vld [vmem:[%s18088_s10 + $0x3d8] sm:$0xf]  ;;  %982 = vst [vmem:[#allocation9 + $0x3c8] sm:$0xf] %v981_v43 }
  0xc6   :  { %984 = vst [vmem:[#allocation9 + $0x3cc] sm:$0xff] %v983_v34   ;;  %988 = vst [vmem:[#allocation9 + $0x3d4] sm:$0xf] %v987_v44  ;;  %v989_v42 = vld [vmem:[%s18088_s10 + $0x3d4] sm:$0xf]  ;;  %v991_v33 = vld [vmem:[%s18088_s10 + $0x3dc] sm:$0xff]  }
  0xc7   :  { %v995_v37 = vld [vmem:[%s18088_s10 + $0x3e8] sm:$0xf]  ;;  %990 = vst [vmem:[#allocation9 + $0x3d8] sm:$0xf] %v989_v42  ;;  %992 = vst [vmem:[#allocation9 + $0x3dc] sm:$0xff] %v991_v33   ;;  %v999_v34 = vld [vmem:[%s18088_s10 + $0x3ec] sm:$0xff]  }
  0xc8   :  { %996 = vst [vmem:[#allocation9 + $0x3e4] sm:$0xf] %v995_v37  ;;  %v997_v43 = vld [vmem:[%s18088_s10 + $0x3e4] sm:$0xf]  ;;  %v1003_v44 = vld [vmem:[%s18088_s10 + $0x3f8] sm:$0xf] }
  0xc9   :  { %998 = vst [vmem:[#allocation9 + $0x3e8] sm:$0xf] %v997_v43  ;;  %1000 = vst [vmem:[#allocation9 + $0x3ec] sm:$0xff] %v999_v34   ;;  %v1005_v42 = vld [vmem:[%s18088_s10 + $0x3f4] sm:$0xf]  ;;  %v1007_v33 = vld [vmem:[%s18088_s10 + $0x3fc] sm:$0xff]  }
  0xca   :  { %1004 = vst [vmem:[#allocation9 + $0x3f4] sm:$0xf] %v1003_v44  ;;  %v1011_v37 = vld [vmem:[%s18088_s10 + $0x408] sm:$0xf]  ;;  %1006 = vst [vmem:[#allocation9 + $0x3f8] sm:$0xf] %v1005_v42 }
  0xcb   :  { %1008 = vst [vmem:[#allocation9 + $0x3fc] sm:$0xff] %v1007_v33   ;;  %1012 = vst [vmem:[#allocation9 + $0x404] sm:$0xf] %v1011_v37  ;;  %v1013_v43 = vld [vmem:[%s18088_s10 + $0x404] sm:$0xf]  ;;  %v1015_v34 = vld [vmem:[%s18088_s10 + $0x40c] sm:$0xff]  }
  0xcc   :  { %v1019_v44 = vld [vmem:[%s18088_s10 + $0x418] sm:$0xf]  ;;  %1014 = vst [vmem:[#allocation9 + $0x408] sm:$0xf] %v1013_v43  ;;  %1016 = vst [vmem:[#allocation9 + $0x40c] sm:$0xff] %v1015_v34   ;;  %v1023_v33 = vld [vmem:[%s18088_s10 + $0x41c] sm:$0xff]  }
  0xcd   :  { %1020 = vst [vmem:[#allocation9 + $0x414] sm:$0xf] %v1019_v44  ;;  %v1021_v42 = vld [vmem:[%s18088_s10 + $0x414] sm:$0xf]  ;;  %v1027_v37 = vld [vmem:[%s18088_s10 + $0x428] sm:$0xf] }
  0xce   :  { %1022 = vst [vmem:[#allocation9 + $0x418] sm:$0xf] %v1021_v42  ;;  %1024 = vst [vmem:[#allocation9 + $0x41c] sm:$0xff] %v1023_v33   ;;  %v1029_v43 = vld [vmem:[%s18088_s10 + $0x424] sm:$0xf]  ;;  %v1031_v34 = vld [vmem:[%s18088_s10 + $0x42c] sm:$0xff]  }
  0xcf   :  { %1028 = vst [vmem:[#allocation9 + $0x424] sm:$0xf] %v1027_v37  ;;  %v1035_v44 = vld [vmem:[%s18088_s10 + $0x438] sm:$0xf]  ;;  %1030 = vst [vmem:[#allocation9 + $0x428] sm:$0xf] %v1029_v43 }
  0xd0   :  { %1032 = vst [vmem:[#allocation9 + $0x42c] sm:$0xff] %v1031_v34   ;;  %1036 = vst [vmem:[#allocation9 + $0x434] sm:$0xf] %v1035_v44  ;;  %v1037_v42 = vld [vmem:[%s18088_s10 + $0x434] sm:$0xf]  ;;  %v1039_v33 = vld [vmem:[%s18088_s10 + $0x43c] sm:$0xff]  }
  0xd1   :  { %v1043_v37 = vld [vmem:[%s18088_s10 + $0x448] sm:$0xf]  ;;  %1038 = vst [vmem:[#allocation9 + $0x438] sm:$0xf] %v1037_v42  ;;  %1040 = vst [vmem:[#allocation9 + $0x43c] sm:$0xff] %v1039_v33   ;;  %v1047_v34 = vld [vmem:[%s18088_s10 + $0x44c] sm:$0xff]  }
  0xd2   :  { %1044 = vst [vmem:[#allocation9 + $0x444] sm:$0xf] %v1043_v37  ;;  %v1045_v43 = vld [vmem:[%s18088_s10 + $0x444] sm:$0xf]  ;;  %v1051_v44 = vld [vmem:[%s18088_s10 + $0x458] sm:$0xf] }
  0xd3   :  { %1046 = vst [vmem:[#allocation9 + $0x448] sm:$0xf] %v1045_v43  ;;  %1048 = vst [vmem:[#allocation9 + $0x44c] sm:$0xff] %v1047_v34   ;;  %v1053_v42 = vld [vmem:[%s18088_s10 + $0x454] sm:$0xf]  ;;  %v1055_v33 = vld [vmem:[%s18088_s10 + $0x45c] sm:$0xff]  }
  0xd4   :  { %1052 = vst [vmem:[#allocation9 + $0x454] sm:$0xf] %v1051_v44  ;;  %v1059_v37 = vld [vmem:[%s18088_s10 + $0x468] sm:$0xf]  ;;  %1054 = vst [vmem:[#allocation9 + $0x458] sm:$0xf] %v1053_v42 }
  0xd5   :  { %1056 = vst [vmem:[#allocation9 + $0x45c] sm:$0xff] %v1055_v33   ;;  %1060 = vst [vmem:[#allocation9 + $0x464] sm:$0xf] %v1059_v37  ;;  %v1061_v43 = vld [vmem:[%s18088_s10 + $0x464] sm:$0xf]  ;;  %v1063_v34 = vld [vmem:[%s18088_s10 + $0x46c] sm:$0xff]  }
  0xd6   :  { %v1067_v44 = vld [vmem:[%s18088_s10 + $0x478] sm:$0xf]  ;;  %1062 = vst [vmem:[#allocation9 + $0x468] sm:$0xf] %v1061_v43  ;;  %1064 = vst [vmem:[#allocation9 + $0x46c] sm:$0xff] %v1063_v34   ;;  %v1071_v33 = vld [vmem:[%s18088_s10 + $0x47c] sm:$0xff]  }
  0xd7   :  { %1068 = vst [vmem:[#allocation9 + $0x474] sm:$0xf] %v1067_v44  ;;  %v1069_v42 = vld [vmem:[%s18088_s10 + $0x474] sm:$0xf]  ;;  %v1075_v37 = vld [vmem:[%s18088_s10 + $0x488] sm:$0xf] }
  0xd8   :  { %1070 = vst [vmem:[#allocation9 + $0x478] sm:$0xf] %v1069_v42  ;;  %1072 = vst [vmem:[#allocation9 + $0x47c] sm:$0xff] %v1071_v33   ;;  %v1077_v43 = vld [vmem:[%s18088_s10 + $0x484] sm:$0xf]  ;;  %v1079_v34 = vld [vmem:[%s18088_s10 + $0x48c] sm:$0xff]  }
  0xd9   :  { %1076 = vst [vmem:[#allocation9 + $0x484] sm:$0xf] %v1075_v37  ;;  %v1083_v44 = vld [vmem:[%s18088_s10 + $0x498] sm:$0xf]  ;;  %1078 = vst [vmem:[#allocation9 + $0x488] sm:$0xf] %v1077_v43 }
  0xda   :  { %1080 = vst [vmem:[#allocation9 + $0x48c] sm:$0xff] %v1079_v34   ;;  %1084 = vst [vmem:[#allocation9 + $0x494] sm:$0xf] %v1083_v44  ;;  %v1085_v42 = vld [vmem:[%s18088_s10 + $0x494] sm:$0xf]  ;;  %v1087_v33 = vld [vmem:[%s18088_s10 + $0x49c] sm:$0xff]  }
  0xdb   :  { %v1091_v37 = vld [vmem:[%s18088_s10 + $0x4a8] sm:$0xf]  ;;  %1086 = vst [vmem:[#allocation9 + $0x498] sm:$0xf] %v1085_v42  ;;  %1088 = vst [vmem:[#allocation9 + $0x49c] sm:$0xff] %v1087_v33   ;;  %v1095_v34 = vld [vmem:[%s18088_s10 + $0x4ac] sm:$0xff]  }
  0xdc   :  { %1092 = vst [vmem:[#allocation9 + $0x4a4] sm:$0xf] %v1091_v37  ;;  %v1093_v43 = vld [vmem:[%s18088_s10 + $0x4a4] sm:$0xf]  ;;  %v1099_v44 = vld [vmem:[%s18088_s10 + $0x4b8] sm:$0xf] }
  0xdd   :  { %1094 = vst [vmem:[#allocation9 + $0x4a8] sm:$0xf] %v1093_v43  ;;  %1096 = vst [vmem:[#allocation9 + $0x4ac] sm:$0xff] %v1095_v34   ;;  %v1101_v42 = vld [vmem:[%s18088_s10 + $0x4b4] sm:$0xf]  ;;  %v1103_v33 = vld [vmem:[%s18088_s10 + $0x4bc] sm:$0xff]  }
  0xde   :  { %1100 = vst [vmem:[#allocation9 + $0x4b4] sm:$0xf] %v1099_v44  ;;  %v1107_v37 = vld [vmem:[%s18088_s10 + $0x4c8] sm:$0xf]  ;;  %1102 = vst [vmem:[#allocation9 + $0x4b8] sm:$0xf] %v1101_v42 }
  0xdf   :  { %1104 = vst [vmem:[#allocation9 + $0x4bc] sm:$0xff] %v1103_v33   ;;  %1108 = vst [vmem:[#allocation9 + $0x4c4] sm:$0xf] %v1107_v37  ;;  %v1109_v43 = vld [vmem:[%s18088_s10 + $0x4c4] sm:$0xf]  ;;  %v1111_v34 = vld [vmem:[%s18088_s10 + $0x4cc] sm:$0xff]  }
  0xe0   :  { %v1115_v44 = vld [vmem:[%s18088_s10 + $0x4d8] sm:$0xf]  ;;  %1110 = vst [vmem:[#allocation9 + $0x4c8] sm:$0xf] %v1109_v43  ;;  %1112 = vst [vmem:[#allocation9 + $0x4cc] sm:$0xff] %v1111_v34   ;;  %v1119_v33 = vld [vmem:[%s18088_s10 + $0x4dc] sm:$0xff]  }
  0xe1   :  { %1116 = vst [vmem:[#allocation9 + $0x4d4] sm:$0xf] %v1115_v44  ;;  %v1117_v42 = vld [vmem:[%s18088_s10 + $0x4d4] sm:$0xf]  ;;  %v1123_v37 = vld [vmem:[%s18088_s10 + $0x4e8] sm:$0xf] }
  0xe2   :  { %1118 = vst [vmem:[#allocation9 + $0x4d8] sm:$0xf] %v1117_v42  ;;  %1120 = vst [vmem:[#allocation9 + $0x4dc] sm:$0xff] %v1119_v33   ;;  %v1125_v43 = vld [vmem:[%s18088_s10 + $0x4e4] sm:$0xf]  ;;  %v1127_v34 = vld [vmem:[%s18088_s10 + $0x4ec] sm:$0xff]  }
  0xe3   :  { %1124 = vst [vmem:[#allocation9 + $0x4e4] sm:$0xf] %v1123_v37  ;;  %v1131_v44 = vld [vmem:[%s18088_s10 + $0x4f8] sm:$0xf]  ;;  %1126 = vst [vmem:[#allocation9 + $0x4e8] sm:$0xf] %v1125_v43 }
  0xe4   :  { %1128 = vst [vmem:[#allocation9 + $0x4ec] sm:$0xff] %v1127_v34   ;;  %1132 = vst [vmem:[#allocation9 + $0x4f4] sm:$0xf] %v1131_v44  ;;  %v1133_v42 = vld [vmem:[%s18088_s10 + $0x4f4] sm:$0xf]  ;;  %v1135_v33 = vld [vmem:[%s18088_s10 + $0x4fc] sm:$0xff]  }
  0xe5   :  { %v1139_v37 = vld [vmem:[%s18088_s10 + $0x508] sm:$0xf]  ;;  %1134 = vst [vmem:[#allocation9 + $0x4f8] sm:$0xf] %v1133_v42  ;;  %1136 = vst [vmem:[#allocation9 + $0x4fc] sm:$0xff] %v1135_v33   ;;  %v1143_v34 = vld [vmem:[%s18088_s10 + $0x50c] sm:$0xff]  }
  0xe6   :  { %1140 = vst [vmem:[#allocation9 + $0x504] sm:$0xf] %v1139_v37  ;;  %v1141_v43 = vld [vmem:[%s18088_s10 + $0x504] sm:$0xf]  ;;  %v1147_v44 = vld [vmem:[%s18088_s10 + $0x518] sm:$0xf] }
  0xe7   :  { %1142 = vst [vmem:[#allocation9 + $0x508] sm:$0xf] %v1141_v43  ;;  %1144 = vst [vmem:[#allocation9 + $0x50c] sm:$0xff] %v1143_v34   ;;  %v1149_v42 = vld [vmem:[%s18088_s10 + $0x514] sm:$0xf]  ;;  %v1151_v33 = vld [vmem:[%s18088_s10 + $0x51c] sm:$0xff]  }
  0xe8   :  { %1148 = vst [vmem:[#allocation9 + $0x514] sm:$0xf] %v1147_v44  ;;  %v1155_v37 = vld [vmem:[%s18088_s10 + $0x528] sm:$0xf]  ;;  %1150 = vst [vmem:[#allocation9 + $0x518] sm:$0xf] %v1149_v42 }
  0xe9   :  { %1152 = vst [vmem:[#allocation9 + $0x51c] sm:$0xff] %v1151_v33   ;;  %1156 = vst [vmem:[#allocation9 + $0x524] sm:$0xf] %v1155_v37  ;;  %v1157_v43 = vld [vmem:[%s18088_s10 + $0x524] sm:$0xf]  ;;  %v1159_v34 = vld [vmem:[%s18088_s10 + $0x52c] sm:$0xff]  }
  0xea   :  { %v1163_v44 = vld [vmem:[%s18088_s10 + $0x538] sm:$0xf]  ;;  %1158 = vst [vmem:[#allocation9 + $0x528] sm:$0xf] %v1157_v43  ;;  %1160 = vst [vmem:[#allocation9 + $0x52c] sm:$0xff] %v1159_v34   ;;  %v1167_v33 = vld [vmem:[%s18088_s10 + $0x53c] sm:$0xff]  }
  0xeb   :  { %1164 = vst [vmem:[#allocation9 + $0x534] sm:$0xf] %v1163_v44  ;;  %v1165_v42 = vld [vmem:[%s18088_s10 + $0x534] sm:$0xf]  ;;  %v1171_v37 = vld [vmem:[%s18088_s10 + $0x548] sm:$0xf] }
  0xec   :  { %1166 = vst [vmem:[#allocation9 + $0x538] sm:$0xf] %v1165_v42  ;;  %1168 = vst [vmem:[#allocation9 + $0x53c] sm:$0xff] %v1167_v33   ;;  %v1173_v43 = vld [vmem:[%s18088_s10 + $0x544] sm:$0xf]  ;;  %v1175_v34 = vld [vmem:[%s18088_s10 + $0x54c] sm:$0xff]  }
  0xed   :  { %1172 = vst [vmem:[#allocation9 + $0x544] sm:$0xf] %v1171_v37  ;;  %v1179_v44 = vld [vmem:[%s18088_s10 + $0x558] sm:$0xf]  ;;  %1174 = vst [vmem:[#allocation9 + $0x548] sm:$0xf] %v1173_v43 }
  0xee   :  { %1176 = vst [vmem:[#allocation9 + $0x54c] sm:$0xff] %v1175_v34   ;;  %1180 = vst [vmem:[#allocation9 + $0x554] sm:$0xf] %v1179_v44  ;;  %v1181_v42 = vld [vmem:[%s18088_s10 + $0x554] sm:$0xf]  ;;  %v1183_v33 = vld [vmem:[%s18088_s10 + $0x55c] sm:$0xff]  }
  0xef   :  { %v1187_v37 = vld [vmem:[%s18088_s10 + $0x568] sm:$0xf]  ;;  %1182 = vst [vmem:[#allocation9 + $0x558] sm:$0xf] %v1181_v42  ;;  %1184 = vst [vmem:[#allocation9 + $0x55c] sm:$0xff] %v1183_v33   ;;  %v1191_v34 = vld [vmem:[%s18088_s10 + $0x56c] sm:$0xff]  }
  0xf0   :  { %1188 = vst [vmem:[#allocation9 + $0x564] sm:$0xf] %v1187_v37  ;;  %v1189_v43 = vld [vmem:[%s18088_s10 + $0x564] sm:$0xf]  ;;  %v1195_v44 = vld [vmem:[%s18088_s10 + $0x578] sm:$0xf] }
  0xf1   :  { %1190 = vst [vmem:[#allocation9 + $0x568] sm:$0xf] %v1189_v43  ;;  %1192 = vst [vmem:[#allocation9 + $0x56c] sm:$0xff] %v1191_v34   ;;  %v1197_v42 = vld [vmem:[%s18088_s10 + $0x574] sm:$0xf]  ;;  %v1199_v33 = vld [vmem:[%s18088_s10 + $0x57c] sm:$0xff]  }
  0xf2   :  { %1196 = vst [vmem:[#allocation9 + $0x574] sm:$0xf] %v1195_v44  ;;  %v1203_v37 = vld [vmem:[%s18088_s10 + $0x588] sm:$0xf]  ;;  %1198 = vst [vmem:[#allocation9 + $0x578] sm:$0xf] %v1197_v42 }
  0xf3   :  { %1200 = vst [vmem:[#allocation9 + $0x57c] sm:$0xff] %v1199_v33   ;;  %1204 = vst [vmem:[#allocation9 + $0x584] sm:$0xf] %v1203_v37  ;;  %v1205_v43 = vld [vmem:[%s18088_s10 + $0x584] sm:$0xf]  ;;  %v1207_v34 = vld [vmem:[%s18088_s10 + $0x58c] sm:$0xff]  }
  0xf4   :  { %v1211_v44 = vld [vmem:[%s18088_s10 + $0x598] sm:$0xf]  ;;  %1206 = vst [vmem:[#allocation9 + $0x588] sm:$0xf] %v1205_v43  ;;  %1208 = vst [vmem:[#allocation9 + $0x58c] sm:$0xff] %v1207_v34   ;;  %v1215_v33 = vld [vmem:[%s18088_s10 + $0x59c] sm:$0xff]  }
  0xf5   :  { %1212 = vst [vmem:[#allocation9 + $0x594] sm:$0xf] %v1211_v44  ;;  %v1213_v42 = vld [vmem:[%s18088_s10 + $0x594] sm:$0xf]  ;;  %v1219_v37 = vld [vmem:[%s18088_s10 + $0x5a8] sm:$0xf] }
  0xf6   :  { %1214 = vst [vmem:[#allocation9 + $0x598] sm:$0xf] %v1213_v42  ;;  %1216 = vst [vmem:[#allocation9 + $0x59c] sm:$0xff] %v1215_v33   ;;  %v1221_v43 = vld [vmem:[%s18088_s10 + $0x5a4] sm:$0xf]  ;;  %v1223_v34 = vld [vmem:[%s18088_s10 + $0x5ac] sm:$0xff]  }
  0xf7   :  { %1220 = vst [vmem:[#allocation9 + $0x5a4] sm:$0xf] %v1219_v37  ;;  %v1227_v44 = vld [vmem:[%s18088_s10 + $0x5b8] sm:$0xf]  ;;  %1222 = vst [vmem:[#allocation9 + $0x5a8] sm:$0xf] %v1221_v43 }
  0xf8   :  { %1224 = vst [vmem:[#allocation9 + $0x5ac] sm:$0xff] %v1223_v34   ;;  %1228 = vst [vmem:[#allocation9 + $0x5b4] sm:$0xf] %v1227_v44  ;;  %v1229_v42 = vld [vmem:[%s18088_s10 + $0x5b4] sm:$0xf]  ;;  %v1231_v33 = vld [vmem:[%s18088_s10 + $0x5bc] sm:$0xff]  }
  0xf9   :  { %v1235_v37 = vld [vmem:[%s18088_s10 + $0x5c8] sm:$0xf]  ;;  %1230 = vst [vmem:[#allocation9 + $0x5b8] sm:$0xf] %v1229_v42  ;;  %1232 = vst [vmem:[#allocation9 + $0x5bc] sm:$0xff] %v1231_v33   ;;  %v1239_v34 = vld [vmem:[%s18088_s10 + $0x5cc] sm:$0xff]  }
  0xfa   :  { %1236 = vst [vmem:[#allocation9 + $0x5c4] sm:$0xf] %v1235_v37  ;;  %v1237_v43 = vld [vmem:[%s18088_s10 + $0x5c4] sm:$0xf]  ;;  %v1243_v44 = vld [vmem:[%s18088_s10 + $0x5d8] sm:$0xf] }
  0xfb   :  { %1238 = vst [vmem:[#allocation9 + $0x5c8] sm:$0xf] %v1237_v43  ;;  %1240 = vst [vmem:[#allocation9 + $0x5cc] sm:$0xff] %v1239_v34   ;;  %v1245_v42 = vld [vmem:[%s18088_s10 + $0x5d4] sm:$0xf]  ;;  %v1247_v33 = vld [vmem:[%s18088_s10 + $0x5dc] sm:$0xff]  }
  0xfc   :  { %1244 = vst [vmem:[#allocation9 + $0x5d4] sm:$0xf] %v1243_v44  ;;  %v1251_v37 = vld [vmem:[%s18088_s10 + $0x5e8] sm:$0xf]  ;;  %1246 = vst [vmem:[#allocation9 + $0x5d8] sm:$0xf] %v1245_v42 }
  0xfd   :  { %1248 = vst [vmem:[#allocation9 + $0x5dc] sm:$0xff] %v1247_v33   ;;  %1252 = vst [vmem:[#allocation9 + $0x5e4] sm:$0xf] %v1251_v37  ;;  %v1253_v43 = vld [vmem:[%s18088_s10 + $0x5e4] sm:$0xf]  ;;  %v1255_v34 = vld [vmem:[%s18088_s10 + $0x5ec] sm:$0xff]  }
  0xfe   :  { %v1259_v44 = vld [vmem:[%s18088_s10 + $0x5f8] sm:$0xf]  ;;  %1254 = vst [vmem:[#allocation9 + $0x5e8] sm:$0xf] %v1253_v43  ;;  %1256 = vst [vmem:[#allocation9 + $0x5ec] sm:$0xff] %v1255_v34   ;;  %v1263_v33 = vld [vmem:[%s18088_s10 + $0x5fc] sm:$0xff]  }
  0xff   :  { %1260 = vst [vmem:[#allocation9 + $0x5f4] sm:$0xf] %v1259_v44  ;;  %v1261_v42 = vld [vmem:[%s18088_s10 + $0x5f4] sm:$0xf]  ;;  %v1267_v37 = vld [vmem:[%s18088_s10 + $0x608] sm:$0xf] }
 0x100   :  { %1262 = vst [vmem:[#allocation9 + $0x5f8] sm:$0xf] %v1261_v42  ;;  %1264 = vst [vmem:[#allocation9 + $0x5fc] sm:$0xff] %v1263_v33   ;;  %v1269_v43 = vld [vmem:[%s18088_s10 + $0x604] sm:$0xf]  ;;  %v1271_v34 = vld [vmem:[%s18088_s10 + $0x60c] sm:$0xff]  }
 0x101   :  { %1268 = vst [vmem:[#allocation9 + $0x604] sm:$0xf] %v1267_v37  ;;  %v1275_v44 = vld [vmem:[%s18088_s10 + $0x618] sm:$0xf]  ;;  %1270 = vst [vmem:[#allocation9 + $0x608] sm:$0xf] %v1269_v43 }
 0x102   :  { %1272 = vst [vmem:[#allocation9 + $0x60c] sm:$0xff] %v1271_v34   ;;  %1276 = vst [vmem:[#allocation9 + $0x614] sm:$0xf] %v1275_v44  ;;  %v1277_v42 = vld [vmem:[%s18088_s10 + $0x614] sm:$0xf]  ;;  %v1279_v33 = vld [vmem:[%s18088_s10 + $0x61c] sm:$0xff]  }
 0x103   :  { %v1283_v37 = vld [vmem:[%s18088_s10 + $0x628] sm:$0xf]  ;;  %1278 = vst [vmem:[#allocation9 + $0x618] sm:$0xf] %v1277_v42  ;;  %1280 = vst [vmem:[#allocation9 + $0x61c] sm:$0xff] %v1279_v33   ;;  %v1287_v34 = vld [vmem:[%s18088_s10 + $0x62c] sm:$0xff]  }
 0x104   :  { %1284 = vst [vmem:[#allocation9 + $0x624] sm:$0xf] %v1283_v37  ;;  %v1285_v43 = vld [vmem:[%s18088_s10 + $0x624] sm:$0xf]  ;;  %v1291_v44 = vld [vmem:[%s18088_s10 + $0x638] sm:$0xf] }
 0x105   :  { %1286 = vst [vmem:[#allocation9 + $0x628] sm:$0xf] %v1285_v43  ;;  %1288 = vst [vmem:[#allocation9 + $0x62c] sm:$0xff] %v1287_v34   ;;  %v1293_v42 = vld [vmem:[%s18088_s10 + $0x634] sm:$0xf]  ;;  %v1295_v33 = vld [vmem:[%s18088_s10 + $0x63c] sm:$0xff]  }
 0x106   :  { %1292 = vst [vmem:[#allocation9 + $0x634] sm:$0xf] %v1291_v44  ;;  %v1299_v37 = vld [vmem:[%s18088_s10 + $0x648] sm:$0xf]  ;;  %1294 = vst [vmem:[#allocation9 + $0x638] sm:$0xf] %v1293_v42 }
 0x107   :  { %1296 = vst [vmem:[#allocation9 + $0x63c] sm:$0xff] %v1295_v33   ;;  %1300 = vst [vmem:[#allocation9 + $0x644] sm:$0xf] %v1299_v37  ;;  %v1301_v43 = vld [vmem:[%s18088_s10 + $0x644] sm:$0xf]  ;;  %v1303_v34 = vld [vmem:[%s18088_s10 + $0x64c] sm:$0xff]  }
 0x108   :  { %v1307_v44 = vld [vmem:[%s18088_s10 + $0x658] sm:$0xf]  ;;  %1302 = vst [vmem:[#allocation9 + $0x648] sm:$0xf] %v1301_v43  ;;  %1304 = vst [vmem:[#allocation9 + $0x64c] sm:$0xff] %v1303_v34   ;;  %v1311_v33 = vld [vmem:[%s18088_s10 + $0x65c] sm:$0xff]  }
 0x109   :  { %1308 = vst [vmem:[#allocation9 + $0x654] sm:$0xf] %v1307_v44  ;;  %v1309_v42 = vld [vmem:[%s18088_s10 + $0x654] sm:$0xf]  ;;  %v1315_v37 = vld [vmem:[%s18088_s10 + $0x668] sm:$0xf] }
 0x10a   :  { %1310 = vst [vmem:[#allocation9 + $0x658] sm:$0xf] %v1309_v42  ;;  %1312 = vst [vmem:[#allocation9 + $0x65c] sm:$0xff] %v1311_v33   ;;  %v1317_v43 = vld [vmem:[%s18088_s10 + $0x664] sm:$0xf]  ;;  %v1319_v34 = vld [vmem:[%s18088_s10 + $0x66c] sm:$0xff]  }
 0x10b   :  { %1316 = vst [vmem:[#allocation9 + $0x664] sm:$0xf] %v1315_v37  ;;  %v1323_v44 = vld [vmem:[%s18088_s10 + $0x678] sm:$0xf]  ;;  %1318 = vst [vmem:[#allocation9 + $0x668] sm:$0xf] %v1317_v43 }
 0x10c   :  { %1320 = vst [vmem:[#allocation9 + $0x66c] sm:$0xff] %v1319_v34   ;;  %1324 = vst [vmem:[#allocation9 + $0x674] sm:$0xf] %v1323_v44  ;;  %v1325_v42 = vld [vmem:[%s18088_s10 + $0x674] sm:$0xf]  ;;  %v1327_v33 = vld [vmem:[%s18088_s10 + $0x67c] sm:$0xff]  }
 0x10d   :  { %v1331_v37 = vld [vmem:[%s18088_s10 + $0x688] sm:$0xf]  ;;  %1326 = vst [vmem:[#allocation9 + $0x678] sm:$0xf] %v1325_v42  ;;  %1328 = vst [vmem:[#allocation9 + $0x67c] sm:$0xff] %v1327_v33   ;;  %v1335_v34 = vld [vmem:[%s18088_s10 + $0x68c] sm:$0xff]  }
 0x10e   :  { %1332 = vst [vmem:[#allocation9 + $0x684] sm:$0xf] %v1331_v37  ;;  %v1333_v43 = vld [vmem:[%s18088_s10 + $0x684] sm:$0xf]  ;;  %v1339_v44 = vld [vmem:[%s18088_s10 + $0x698] sm:$0xf] }
 0x10f   :  { %1334 = vst [vmem:[#allocation9 + $0x688] sm:$0xf] %v1333_v43  ;;  %1336 = vst [vmem:[#allocation9 + $0x68c] sm:$0xff] %v1335_v34   ;;  %v1341_v42 = vld [vmem:[%s18088_s10 + $0x694] sm:$0xf]  ;;  %v1343_v33 = vld [vmem:[%s18088_s10 + $0x69c] sm:$0xff]  }
 0x110   :  { %1340 = vst [vmem:[#allocation9 + $0x694] sm:$0xf] %v1339_v44  ;;  %v1347_v37 = vld [vmem:[%s18088_s10 + $0x6a8] sm:$0xf]  ;;  %1342 = vst [vmem:[#allocation9 + $0x698] sm:$0xf] %v1341_v42 }
 0x111   :  { %1344 = vst [vmem:[#allocation9 + $0x69c] sm:$0xff] %v1343_v33   ;;  %1348 = vst [vmem:[#allocation9 + $0x6a4] sm:$0xf] %v1347_v37  ;;  %v1349_v43 = vld [vmem:[%s18088_s10 + $0x6a4] sm:$0xf]  ;;  %v1351_v34 = vld [vmem:[%s18088_s10 + $0x6ac] sm:$0xff]  }
 0x112   :  { %v1355_v44 = vld [vmem:[%s18088_s10 + $0x6b8] sm:$0xf]  ;;  %1350 = vst [vmem:[#allocation9 + $0x6a8] sm:$0xf] %v1349_v43  ;;  %1352 = vst [vmem:[#allocation9 + $0x6ac] sm:$0xff] %v1351_v34   ;;  %v1359_v33 = vld [vmem:[%s18088_s10 + $0x6bc] sm:$0xff]  }
 0x113   :  { %1356 = vst [vmem:[#allocation9 + $0x6b4] sm:$0xf] %v1355_v44  ;;  %v1357_v42 = vld [vmem:[%s18088_s10 + $0x6b4] sm:$0xf]  ;;  %v1363_v37 = vld [vmem:[%s18088_s10 + $0x6c8] sm:$0xf] }
 0x114   :  { %1358 = vst [vmem:[#allocation9 + $0x6b8] sm:$0xf] %v1357_v42  ;;  %1360 = vst [vmem:[#allocation9 + $0x6bc] sm:$0xff] %v1359_v33   ;;  %v1365_v43 = vld [vmem:[%s18088_s10 + $0x6c4] sm:$0xf]  ;;  %v1367_v34 = vld [vmem:[%s18088_s10 + $0x6cc] sm:$0xff]  }
 0x115   :  { %1364 = vst [vmem:[#allocation9 + $0x6c4] sm:$0xf] %v1363_v37  ;;  %v1371_v44 = vld [vmem:[%s18088_s10 + $0x6d8] sm:$0xf]  ;;  %1366 = vst [vmem:[#allocation9 + $0x6c8] sm:$0xf] %v1365_v43 }
 0x116   :  { %1368 = vst [vmem:[#allocation9 + $0x6cc] sm:$0xff] %v1367_v34   ;;  %1372 = vst [vmem:[#allocation9 + $0x6d4] sm:$0xf] %v1371_v44  ;;  %v1373_v42 = vld [vmem:[%s18088_s10 + $0x6d4] sm:$0xf]  ;;  %v1375_v33 = vld [vmem:[%s18088_s10 + $0x6dc] sm:$0xff]  }
 0x117   :  { %v1379_v37 = vld [vmem:[%s18088_s10 + $0x6e8] sm:$0xf]  ;;  %1374 = vst [vmem:[#allocation9 + $0x6d8] sm:$0xf] %v1373_v42  ;;  %1376 = vst [vmem:[#allocation9 + $0x6dc] sm:$0xff] %v1375_v33   ;;  %v1383_v34 = vld [vmem:[%s18088_s10 + $0x6ec] sm:$0xff]  }
 0x118   :  { %1380 = vst [vmem:[#allocation9 + $0x6e4] sm:$0xf] %v1379_v37  ;;  %v1381_v43 = vld [vmem:[%s18088_s10 + $0x6e4] sm:$0xf]  ;;  %v1387_v44 = vld [vmem:[%s18088_s10 + $0x6f8] sm:$0xf] }
 0x119   :  { %1382 = vst [vmem:[#allocation9 + $0x6e8] sm:$0xf] %v1381_v43  ;;  %1384 = vst [vmem:[#allocation9 + $0x6ec] sm:$0xff] %v1383_v34   ;;  %v1389_v42 = vld [vmem:[%s18088_s10 + $0x6f4] sm:$0xf]  ;;  %v1391_v33 = vld [vmem:[%s18088_s10 + $0x6fc] sm:$0xff]  }
 0x11a   :  { %1388 = vst [vmem:[#allocation9 + $0x6f4] sm:$0xf] %v1387_v44  ;;  %v1395_v37 = vld [vmem:[%s18088_s10 + $0x708] sm:$0xf]  ;;  %1390 = vst [vmem:[#allocation9 + $0x6f8] sm:$0xf] %v1389_v42 }
 0x11b   :  { %1392 = vst [vmem:[#allocation9 + $0x6fc] sm:$0xff] %v1391_v33   ;;  %1396 = vst [vmem:[#allocation9 + $0x704] sm:$0xf] %v1395_v37  ;;  %v1397_v43 = vld [vmem:[%s18088_s10 + $0x704] sm:$0xf]  ;;  %v1399_v34 = vld [vmem:[%s18088_s10 + $0x70c] sm:$0xff]  }
 0x11c   :  { %v1403_v44 = vld [vmem:[%s18088_s10 + $0x718] sm:$0xf]  ;;  %1398 = vst [vmem:[#allocation9 + $0x708] sm:$0xf] %v1397_v43  ;;  %1400 = vst [vmem:[#allocation9 + $0x70c] sm:$0xff] %v1399_v34   ;;  %v1407_v33 = vld [vmem:[%s18088_s10 + $0x71c] sm:$0xff]  }
 0x11d   :  { %1404 = vst [vmem:[#allocation9 + $0x714] sm:$0xf] %v1403_v44  ;;  %v1405_v42 = vld [vmem:[%s18088_s10 + $0x714] sm:$0xf]  ;;  %v1411_v37 = vld [vmem:[%s18088_s10 + $0x728] sm:$0xf] }
 0x11e   :  { %1406 = vst [vmem:[#allocation9 + $0x718] sm:$0xf] %v1405_v42  ;;  %1408 = vst [vmem:[#allocation9 + $0x71c] sm:$0xff] %v1407_v33   ;;  %v1413_v43 = vld [vmem:[%s18088_s10 + $0x724] sm:$0xf]  ;;  %v1415_v34 = vld [vmem:[%s18088_s10 + $0x72c] sm:$0xff]  }
 0x11f   :  { %1412 = vst [vmem:[#allocation9 + $0x724] sm:$0xf] %v1411_v37  ;;  %v1419_v44 = vld [vmem:[%s18088_s10 + $0x738] sm:$0xf]  ;;  %1414 = vst [vmem:[#allocation9 + $0x728] sm:$0xf] %v1413_v43 }
 0x120   :  { %1416 = vst [vmem:[#allocation9 + $0x72c] sm:$0xff] %v1415_v34   ;;  %1420 = vst [vmem:[#allocation9 + $0x734] sm:$0xf] %v1419_v44  ;;  %v1421_v42 = vld [vmem:[%s18088_s10 + $0x734] sm:$0xf]  ;;  %v1423_v33 = vld [vmem:[%s18088_s10 + $0x73c] sm:$0xff]  }
 0x121   :  { %v1427_v37 = vld [vmem:[%s18088_s10 + $0x748] sm:$0xf]  ;;  %1422 = vst [vmem:[#allocation9 + $0x738] sm:$0xf] %v1421_v42  ;;  %1424 = vst [vmem:[#allocation9 + $0x73c] sm:$0xff] %v1423_v33   ;;  %v1431_v34 = vld [vmem:[%s18088_s10 + $0x74c] sm:$0xff]  }
 0x122   :  { %1428 = vst [vmem:[#allocation9 + $0x744] sm:$0xf] %v1427_v37  ;;  %v1429_v43 = vld [vmem:[%s18088_s10 + $0x744] sm:$0xf]  ;;  %v1435_v44 = vld [vmem:[%s18088_s10 + $0x758] sm:$0xf] }
 0x123   :  { %1430 = vst [vmem:[#allocation9 + $0x748] sm:$0xf] %v1429_v43  ;;  %1432 = vst [vmem:[#allocation9 + $0x74c] sm:$0xff] %v1431_v34   ;;  %v1437_v42 = vld [vmem:[%s18088_s10 + $0x754] sm:$0xf]  ;;  %v1439_v33 = vld [vmem:[%s18088_s10 + $0x75c] sm:$0xff]  }
 0x124   :  { %1436 = vst [vmem:[#allocation9 + $0x754] sm:$0xf] %v1435_v44  ;;  %v1443_v37 = vld [vmem:[%s18088_s10 + $0x768] sm:$0xf]  ;;  %1438 = vst [vmem:[#allocation9 + $0x758] sm:$0xf] %v1437_v42 }
 0x125   :  { %1440 = vst [vmem:[#allocation9 + $0x75c] sm:$0xff] %v1439_v33   ;;  %1444 = vst [vmem:[#allocation9 + $0x764] sm:$0xf] %v1443_v37  ;;  %v1445_v43 = vld [vmem:[%s18088_s10 + $0x764] sm:$0xf]  ;;  %v1447_v34 = vld [vmem:[%s18088_s10 + $0x76c] sm:$0xff]  }
 0x126   :  { %v1451_v44 = vld [vmem:[%s18088_s10 + $0x778] sm:$0xf]  ;;  %1446 = vst [vmem:[#allocation9 + $0x768] sm:$0xf] %v1445_v43  ;;  %1448 = vst [vmem:[#allocation9 + $0x76c] sm:$0xff] %v1447_v34   ;;  %v1455_v33 = vld [vmem:[%s18088_s10 + $0x77c] sm:$0xff]  }
 0x127   :  { %1452 = vst [vmem:[#allocation9 + $0x774] sm:$0xf] %v1451_v44  ;;  %v1453_v42 = vld [vmem:[%s18088_s10 + $0x774] sm:$0xf]  ;;  %v1459_v37 = vld [vmem:[%s18088_s10 + $0x788] sm:$0xf] }
 0x128   :  { %1454 = vst [vmem:[#allocation9 + $0x778] sm:$0xf] %v1453_v42  ;;  %1456 = vst [vmem:[#allocation9 + $0x77c] sm:$0xff] %v1455_v33   ;;  %v1461_v43 = vld [vmem:[%s18088_s10 + $0x784] sm:$0xf]  ;;  %v1463_v34 = vld [vmem:[%s18088_s10 + $0x78c] sm:$0xff]  }
 0x129   :  { %1460 = vst [vmem:[#allocation9 + $0x784] sm:$0xf] %v1459_v37  ;;  %v1467_v44 = vld [vmem:[%s18088_s10 + $0x798] sm:$0xf]  ;;  %1462 = vst [vmem:[#allocation9 + $0x788] sm:$0xf] %v1461_v43 }
 0x12a   :  { %1464 = vst [vmem:[#allocation9 + $0x78c] sm:$0xff] %v1463_v34   ;;  %1468 = vst [vmem:[#allocation9 + $0x794] sm:$0xf] %v1467_v44  ;;  %v1469_v42 = vld [vmem:[%s18088_s10 + $0x794] sm:$0xf]  ;;  %v1471_v33 = vld [vmem:[%s18088_s10 + $0x79c] sm:$0xff]  }
 0x12b   :  { %v1475_v37 = vld [vmem:[%s18088_s10 + $0x7a8] sm:$0xf]  ;;  %1470 = vst [vmem:[#allocation9 + $0x798] sm:$0xf] %v1469_v42  ;;  %1472 = vst [vmem:[#allocation9 + $0x79c] sm:$0xff] %v1471_v33   ;;  %v1479_v34 = vld [vmem:[%s18088_s10 + $0x7ac] sm:$0xff]  }
 0x12c   :  { %1476 = vst [vmem:[#allocation9 + $0x7a4] sm:$0xf] %v1475_v37  ;;  %v1477_v43 = vld [vmem:[%s18088_s10 + $0x7a4] sm:$0xf]  ;;  %v1483_v44 = vld [vmem:[%s18088_s10 + $0x7b8] sm:$0xf] }
 0x12d   :  { %1478 = vst [vmem:[#allocation9 + $0x7a8] sm:$0xf] %v1477_v43  ;;  %1480 = vst [vmem:[#allocation9 + $0x7ac] sm:$0xff] %v1479_v34   ;;  %v1485_v42 = vld [vmem:[%s18088_s10 + $0x7b4] sm:$0xf]  ;;  %v1487_v33 = vld [vmem:[%s18088_s10 + $0x7bc] sm:$0xff]  }
 0x12e   :  { %1484 = vst [vmem:[#allocation9 + $0x7b4] sm:$0xf] %v1483_v44  ;;  %v1491_v37 = vld [vmem:[%s18088_s10 + $0x7c8] sm:$0xf]  ;;  %1486 = vst [vmem:[#allocation9 + $0x7b8] sm:$0xf] %v1485_v42 }
 0x12f   :  { %1488 = vst [vmem:[#allocation9 + $0x7bc] sm:$0xff] %v1487_v33   ;;  %1492 = vst [vmem:[#allocation9 + $0x7c4] sm:$0xf] %v1491_v37  ;;  %v1493_v43 = vld [vmem:[%s18088_s10 + $0x7c4] sm:$0xf]  ;;  %v1495_v34 = vld [vmem:[%s18088_s10 + $0x7cc] sm:$0xff]  }
 0x130   :  { %v1499_v44 = vld [vmem:[%s18088_s10 + $0x7d8] sm:$0xf]  ;;  %1494 = vst [vmem:[#allocation9 + $0x7c8] sm:$0xf] %v1493_v43  ;;  %1496 = vst [vmem:[#allocation9 + $0x7cc] sm:$0xff] %v1495_v34   ;;  %v1503_v33 = vld [vmem:[%s18088_s10 + $0x7dc] sm:$0xff]  }
 0x131   :  { %1500 = vst [vmem:[#allocation9 + $0x7d4] sm:$0xf] %v1499_v44  ;;  %v1501_v42 = vld [vmem:[%s18088_s10 + $0x7d4] sm:$0xf]  ;;  %v1507_v37 = vld [vmem:[%s18088_s10 + $0x7e8] sm:$0xf] }
 0x132   :  { %1502 = vst [vmem:[#allocation9 + $0x7d8] sm:$0xf] %v1501_v42  ;;  %1504 = vst [vmem:[#allocation9 + $0x7dc] sm:$0xff] %v1503_v33   ;;  %v1509_v43 = vld [vmem:[%s18088_s10 + $0x7e4] sm:$0xf]  ;;  %v1511_v34 = vld [vmem:[%s18088_s10 + $0x7ec] sm:$0xff]  }
 0x133   :  { %1508 = vst [vmem:[#allocation9 + $0x7e4] sm:$0xf] %v1507_v37  ;;  %v1515_v44 = vld [vmem:[%s18088_s10 + $0x7f8] sm:$0xf]  ;;  %1510 = vst [vmem:[#allocation9 + $0x7e8] sm:$0xf] %v1509_v43 }
 0x134   :  { %1512 = vst [vmem:[#allocation9 + $0x7ec] sm:$0xff] %v1511_v34   ;;  %1516 = vst [vmem:[#allocation9 + $0x7f4] sm:$0xf] %v1515_v44  ;;  %v1517_v42 = vld [vmem:[%s18088_s10 + $0x7f4] sm:$0xf]  ;;  %v1519_v33 = vld [vmem:[%s18088_s10 + $0x7fc] sm:$0xff]  }
 0x135   :  { %v1523_v37 = vld [vmem:[%s18088_s10 + $0x808] sm:$0xf]  ;;  %1518 = vst [vmem:[#allocation9 + $0x7f8] sm:$0xf] %v1517_v42  ;;  %1520 = vst [vmem:[#allocation9 + $0x7fc] sm:$0xff] %v1519_v33   ;;  %v1527_v34 = vld [vmem:[%s18088_s10 + $0x80c] sm:$0xff]  }
 0x136   :  { %1524 = vst [vmem:[#allocation9 + $0x804] sm:$0xf] %v1523_v37  ;;  %v1525_v43 = vld [vmem:[%s18088_s10 + $0x804] sm:$0xf]  ;;  %v1531_v44 = vld [vmem:[%s18088_s10 + $0x818] sm:$0xf] }
 0x137   :  { %1526 = vst [vmem:[#allocation9 + $0x808] sm:$0xf] %v1525_v43  ;;  %1528 = vst [vmem:[#allocation9 + $0x80c] sm:$0xff] %v1527_v34   ;;  %v1533_v42 = vld [vmem:[%s18088_s10 + $0x814] sm:$0xf]  ;;  %v1535_v33 = vld [vmem:[%s18088_s10 + $0x81c] sm:$0xff]  }
 0x138   :  { %1532 = vst [vmem:[#allocation9 + $0x814] sm:$0xf] %v1531_v44  ;;  %v1539_v37 = vld [vmem:[%s18088_s10 + $0x828] sm:$0xf]  ;;  %1534 = vst [vmem:[#allocation9 + $0x818] sm:$0xf] %v1533_v42 }
 0x139   :  { %1536 = vst [vmem:[#allocation9 + $0x81c] sm:$0xff] %v1535_v33   ;;  %1540 = vst [vmem:[#allocation9 + $0x824] sm:$0xf] %v1539_v37  ;;  %v1541_v43 = vld [vmem:[%s18088_s10 + $0x824] sm:$0xf]  ;;  %v1543_v34 = vld [vmem:[%s18088_s10 + $0x82c] sm:$0xff]  }
 0x13a   :  { %v1547_v44 = vld [vmem:[%s18088_s10 + $0x838] sm:$0xf]  ;;  %1542 = vst [vmem:[#allocation9 + $0x828] sm:$0xf] %v1541_v43  ;;  %1544 = vst [vmem:[#allocation9 + $0x82c] sm:$0xff] %v1543_v34   ;;  %v1551_v33 = vld [vmem:[%s18088_s10 + $0x83c] sm:$0xff]  }
 0x13b   :  { %1548 = vst [vmem:[#allocation9 + $0x834] sm:$0xf] %v1547_v44  ;;  %v1549_v42 = vld [vmem:[%s18088_s10 + $0x834] sm:$0xf]  ;;  %v1555_v37 = vld [vmem:[%s18088_s10 + $0x848] sm:$0xf] }
 0x13c   :  { %1550 = vst [vmem:[#allocation9 + $0x838] sm:$0xf] %v1549_v42  ;;  %1552 = vst [vmem:[#allocation9 + $0x83c] sm:$0xff] %v1551_v33   ;;  %v1557_v43 = vld [vmem:[%s18088_s10 + $0x844] sm:$0xf]  ;;  %v1559_v34 = vld [vmem:[%s18088_s10 + $0x84c] sm:$0xff]  }
 0x13d   :  { %1556 = vst [vmem:[#allocation9 + $0x844] sm:$0xf] %v1555_v37  ;;  %v1563_v44 = vld [vmem:[%s18088_s10 + $0x858] sm:$0xf]  ;;  %1558 = vst [vmem:[#allocation9 + $0x848] sm:$0xf] %v1557_v43 }
 0x13e   :  { %1560 = vst [vmem:[#allocation9 + $0x84c] sm:$0xff] %v1559_v34   ;;  %1564 = vst [vmem:[#allocation9 + $0x854] sm:$0xf] %v1563_v44  ;;  %v1565_v42 = vld [vmem:[%s18088_s10 + $0x854] sm:$0xf]  ;;  %v1567_v33 = vld [vmem:[%s18088_s10 + $0x85c] sm:$0xff]  }
 0x13f   :  { %v1571_v37 = vld [vmem:[%s18088_s10 + $0x868] sm:$0xf]  ;;  %1566 = vst [vmem:[#allocation9 + $0x858] sm:$0xf] %v1565_v42  ;;  %1568 = vst [vmem:[#allocation9 + $0x85c] sm:$0xff] %v1567_v33   ;;  %v1575_v34 = vld [vmem:[%s18088_s10 + $0x86c] sm:$0xff]  }
 0x140   :  { %1572 = vst [vmem:[#allocation9 + $0x864] sm:$0xf] %v1571_v37  ;;  %v1573_v43 = vld [vmem:[%s18088_s10 + $0x864] sm:$0xf]  ;;  %v1579_v44 = vld [vmem:[%s18088_s10 + $0x878] sm:$0xf] }
 0x141   :  { %1574 = vst [vmem:[#allocation9 + $0x868] sm:$0xf] %v1573_v43  ;;  %1576 = vst [vmem:[#allocation9 + $0x86c] sm:$0xff] %v1575_v34   ;;  %v1581_v42 = vld [vmem:[%s18088_s10 + $0x874] sm:$0xf]  ;;  %v1583_v33 = vld [vmem:[%s18088_s10 + $0x87c] sm:$0xff]  }
 0x142   :  { %1580 = vst [vmem:[#allocation9 + $0x874] sm:$0xf] %v1579_v44  ;;  %v1587_v37 = vld [vmem:[%s18088_s10 + $0x888] sm:$0xf]  ;;  %1582 = vst [vmem:[#allocation9 + $0x878] sm:$0xf] %v1581_v42 }
 0x143   :  { %1584 = vst [vmem:[#allocation9 + $0x87c] sm:$0xff] %v1583_v33   ;;  %1588 = vst [vmem:[#allocation9 + $0x884] sm:$0xf] %v1587_v37  ;;  %v1589_v43 = vld [vmem:[%s18088_s10 + $0x884] sm:$0xf]  ;;  %v1591_v34 = vld [vmem:[%s18088_s10 + $0x88c] sm:$0xff]  }
 0x144   :  { %v1595_v44 = vld [vmem:[%s18088_s10 + $0x898] sm:$0xf]  ;;  %1590 = vst [vmem:[#allocation9 + $0x888] sm:$0xf] %v1589_v43  ;;  %1592 = vst [vmem:[#allocation9 + $0x88c] sm:$0xff] %v1591_v34   ;;  %v1599_v33 = vld [vmem:[%s18088_s10 + $0x89c] sm:$0xff]  }
 0x145   :  { %1596 = vst [vmem:[#allocation9 + $0x894] sm:$0xf] %v1595_v44  ;;  %v1597_v42 = vld [vmem:[%s18088_s10 + $0x894] sm:$0xf]  ;;  %v1603_v37 = vld [vmem:[%s18088_s10 + $0x8a8] sm:$0xf] }
 0x146   :  { %1598 = vst [vmem:[#allocation9 + $0x898] sm:$0xf] %v1597_v42  ;;  %1600 = vst [vmem:[#allocation9 + $0x89c] sm:$0xff] %v1599_v33   ;;  %v1605_v43 = vld [vmem:[%s18088_s10 + $0x8a4] sm:$0xf]  ;;  %v1607_v34 = vld [vmem:[%s18088_s10 + $0x8ac] sm:$0xff]  }
 0x147   :  { %1604 = vst [vmem:[#allocation9 + $0x8a4] sm:$0xf] %v1603_v37  ;;  %v1611_v44 = vld [vmem:[%s18088_s10 + $0x8b8] sm:$0xf]  ;;  %1606 = vst [vmem:[#allocation9 + $0x8a8] sm:$0xf] %v1605_v43 }
 0x148   :  { %1608 = vst [vmem:[#allocation9 + $0x8ac] sm:$0xff] %v1607_v34   ;;  %1612 = vst [vmem:[#allocation9 + $0x8b4] sm:$0xf] %v1611_v44  ;;  %v1613_v42 = vld [vmem:[%s18088_s10 + $0x8b4] sm:$0xf]  ;;  %v1615_v33 = vld [vmem:[%s18088_s10 + $0x8bc] sm:$0xff]  }
 0x149   :  { %v1619_v37 = vld [vmem:[%s18088_s10 + $0x8c8] sm:$0xf]  ;;  %1614 = vst [vmem:[#allocation9 + $0x8b8] sm:$0xf] %v1613_v42  ;;  %1616 = vst [vmem:[#allocation9 + $0x8bc] sm:$0xff] %v1615_v33   ;;  %v1623_v34 = vld [vmem:[%s18088_s10 + $0x8cc] sm:$0xff]  }
 0x14a   :  { %1620 = vst [vmem:[#allocation9 + $0x8c4] sm:$0xf] %v1619_v37  ;;  %v1621_v43 = vld [vmem:[%s18088_s10 + $0x8c4] sm:$0xf]  ;;  %v1627_v44 = vld [vmem:[%s18088_s10 + $0x8d8] sm:$0xf] }
 0x14b   :  { %1622 = vst [vmem:[#allocation9 + $0x8c8] sm:$0xf] %v1621_v43  ;;  %1624 = vst [vmem:[#allocation9 + $0x8cc] sm:$0xff] %v1623_v34   ;;  %v1629_v42 = vld [vmem:[%s18088_s10 + $0x8d4] sm:$0xf]  ;;  %v1631_v33 = vld [vmem:[%s18088_s10 + $0x8dc] sm:$0xff]  }
 0x14c   :  { %1628 = vst [vmem:[#allocation9 + $0x8d4] sm:$0xf] %v1627_v44  ;;  %v1635_v37 = vld [vmem:[%s18088_s10 + $0x8e8] sm:$0xf]  ;;  %1630 = vst [vmem:[#allocation9 + $0x8d8] sm:$0xf] %v1629_v42 }
 0x14d   :  { %1632 = vst [vmem:[#allocation9 + $0x8dc] sm:$0xff] %v1631_v33   ;;  %1636 = vst [vmem:[#allocation9 + $0x8e4] sm:$0xf] %v1635_v37  ;;  %v1637_v43 = vld [vmem:[%s18088_s10 + $0x8e4] sm:$0xf]  ;;  %v1639_v34 = vld [vmem:[%s18088_s10 + $0x8ec] sm:$0xff]  }
 0x14e   :  { %v1643_v44 = vld [vmem:[%s18088_s10 + $0x8f8] sm:$0xf]  ;;  %1638 = vst [vmem:[#allocation9 + $0x8e8] sm:$0xf] %v1637_v43  ;;  %1640 = vst [vmem:[#allocation9 + $0x8ec] sm:$0xff] %v1639_v34   ;;  %v1647_v33 = vld [vmem:[%s18088_s10 + $0x8fc] sm:$0xff]  }
 0x14f   :  { %1644 = vst [vmem:[#allocation9 + $0x8f4] sm:$0xf] %v1643_v44  ;;  %v1645_v42 = vld [vmem:[%s18088_s10 + $0x8f4] sm:$0xf]  ;;  %v1651_v37 = vld [vmem:[%s18088_s10 + $0x908] sm:$0xf] }
 0x150   :  { %1646 = vst [vmem:[#allocation9 + $0x8f8] sm:$0xf] %v1645_v42  ;;  %1648 = vst [vmem:[#allocation9 + $0x8fc] sm:$0xff] %v1647_v33   ;;  %v1653_v43 = vld [vmem:[%s18088_s10 + $0x904] sm:$0xf]  ;;  %v1655_v34 = vld [vmem:[%s18088_s10 + $0x90c] sm:$0xff]  }
 0x151   :  { %1652 = vst [vmem:[#allocation9 + $0x904] sm:$0xf] %v1651_v37  ;;  %v1659_v44 = vld [vmem:[%s18088_s10 + $0x918] sm:$0xf]  ;;  %1654 = vst [vmem:[#allocation9 + $0x908] sm:$0xf] %v1653_v43 }
 0x152   :  { %1656 = vst [vmem:[#allocation9 + $0x90c] sm:$0xff] %v1655_v34   ;;  %1660 = vst [vmem:[#allocation9 + $0x914] sm:$0xf] %v1659_v44  ;;  %v1661_v42 = vld [vmem:[%s18088_s10 + $0x914] sm:$0xf]  ;;  %v1663_v33 = vld [vmem:[%s18088_s10 + $0x91c] sm:$0xff]  }
 0x153   :  { %v1667_v37 = vld [vmem:[%s18088_s10 + $0x928] sm:$0xf]  ;;  %1662 = vst [vmem:[#allocation9 + $0x918] sm:$0xf] %v1661_v42  ;;  %1664 = vst [vmem:[#allocation9 + $0x91c] sm:$0xff] %v1663_v33   ;;  %v1671_v34 = vld [vmem:[%s18088_s10 + $0x92c] sm:$0xff]  }
 0x154   :  { %1668 = vst [vmem:[#allocation9 + $0x924] sm:$0xf] %v1667_v37  ;;  %v1669_v43 = vld [vmem:[%s18088_s10 + $0x924] sm:$0xf]  ;;  %v1675_v44 = vld [vmem:[%s18088_s10 + $0x938] sm:$0xf] }
 0x155   :  { %1670 = vst [vmem:[#allocation9 + $0x928] sm:$0xf] %v1669_v43  ;;  %1672 = vst [vmem:[#allocation9 + $0x92c] sm:$0xff] %v1671_v34   ;;  %v1677_v42 = vld [vmem:[%s18088_s10 + $0x934] sm:$0xf]  ;;  %v1679_v33 = vld [vmem:[%s18088_s10 + $0x93c] sm:$0xff]  }
 0x156   :  { %1676 = vst [vmem:[#allocation9 + $0x934] sm:$0xf] %v1675_v44  ;;  %v1683_v37 = vld [vmem:[%s18088_s10 + $0x948] sm:$0xf]  ;;  %1678 = vst [vmem:[#allocation9 + $0x938] sm:$0xf] %v1677_v42 }
 0x157   :  { %1680 = vst [vmem:[#allocation9 + $0x93c] sm:$0xff] %v1679_v33   ;;  %1684 = vst [vmem:[#allocation9 + $0x944] sm:$0xf] %v1683_v37  ;;  %v1685_v43 = vld [vmem:[%s18088_s10 + $0x944] sm:$0xf]  ;;  %v1687_v34 = vld [vmem:[%s18088_s10 + $0x94c] sm:$0xff]  }
 0x158   :  { %v1691_v44 = vld [vmem:[%s18088_s10 + $0x958] sm:$0xf]  ;;  %1686 = vst [vmem:[#allocation9 + $0x948] sm:$0xf] %v1685_v43  ;;  %1688 = vst [vmem:[#allocation9 + $0x94c] sm:$0xff] %v1687_v34   ;;  %v1695_v33 = vld [vmem:[%s18088_s10 + $0x95c] sm:$0xff]  }
 0x159   :  { %1692 = vst [vmem:[#allocation9 + $0x954] sm:$0xf] %v1691_v44  ;;  %v1693_v42 = vld [vmem:[%s18088_s10 + $0x954] sm:$0xf]  ;;  %v1699_v37 = vld [vmem:[%s18088_s10 + $0x968] sm:$0xf] }
 0x15a   :  { %1694 = vst [vmem:[#allocation9 + $0x958] sm:$0xf] %v1693_v42  ;;  %1696 = vst [vmem:[#allocation9 + $0x95c] sm:$0xff] %v1695_v33   ;;  %v1701_v43 = vld [vmem:[%s18088_s10 + $0x964] sm:$0xf]  ;;  %v1703_v34 = vld [vmem:[%s18088_s10 + $0x96c] sm:$0xff]  }
 0x15b   :  { %1700 = vst [vmem:[#allocation9 + $0x964] sm:$0xf] %v1699_v37  ;;  %v1707_v44 = vld [vmem:[%s18088_s10 + $0x978] sm:$0xf]  ;;  %1702 = vst [vmem:[#allocation9 + $0x968] sm:$0xf] %v1701_v43 }
 0x15c   :  { %1704 = vst [vmem:[#allocation9 + $0x96c] sm:$0xff] %v1703_v34   ;;  %1708 = vst [vmem:[#allocation9 + $0x974] sm:$0xf] %v1707_v44  ;;  %v1709_v42 = vld [vmem:[%s18088_s10 + $0x974] sm:$0xf]  ;;  %v1711_v33 = vld [vmem:[%s18088_s10 + $0x97c] sm:$0xff]  }
 0x15d   :  { %v1715_v37 = vld [vmem:[%s18088_s10 + $0x988] sm:$0xf]  ;;  %1710 = vst [vmem:[#allocation9 + $0x978] sm:$0xf] %v1709_v42  ;;  %1712 = vst [vmem:[#allocation9 + $0x97c] sm:$0xff] %v1711_v33   ;;  %v1719_v34 = vld [vmem:[%s18088_s10 + $0x98c] sm:$0xff]  }
 0x15e   :  { %1716 = vst [vmem:[#allocation9 + $0x984] sm:$0xf] %v1715_v37  ;;  %v1717_v43 = vld [vmem:[%s18088_s10 + $0x984] sm:$0xf]  ;;  %v1723_v44 = vld [vmem:[%s18088_s10 + $0x998] sm:$0xf] }
 0x15f   :  { %1718 = vst [vmem:[#allocation9 + $0x988] sm:$0xf] %v1717_v43  ;;  %1720 = vst [vmem:[#allocation9 + $0x98c] sm:$0xff] %v1719_v34   ;;  %v1725_v42 = vld [vmem:[%s18088_s10 + $0x994] sm:$0xf]  ;;  %v1727_v33 = vld [vmem:[%s18088_s10 + $0x99c] sm:$0xff]  }
 0x160   :  { %1724 = vst [vmem:[#allocation9 + $0x994] sm:$0xf] %v1723_v44  ;;  %v1731_v37 = vld [vmem:[%s18088_s10 + $0x9a8] sm:$0xf]  ;;  %1726 = vst [vmem:[#allocation9 + $0x998] sm:$0xf] %v1725_v42 }
 0x161   :  { %1728 = vst [vmem:[#allocation9 + $0x99c] sm:$0xff] %v1727_v33   ;;  %1732 = vst [vmem:[#allocation9 + $0x9a4] sm:$0xf] %v1731_v37  ;;  %v1733_v43 = vld [vmem:[%s18088_s10 + $0x9a4] sm:$0xf]  ;;  %v1735_v34 = vld [vmem:[%s18088_s10 + $0x9ac] sm:$0xff]  }
 0x162   :  { %v1739_v44 = vld [vmem:[%s18088_s10 + $0x9b8] sm:$0xf]  ;;  %1734 = vst [vmem:[#allocation9 + $0x9a8] sm:$0xf] %v1733_v43  ;;  %1736 = vst [vmem:[#allocation9 + $0x9ac] sm:$0xff] %v1735_v34   ;;  %v1743_v33 = vld [vmem:[%s18088_s10 + $0x9bc] sm:$0xff]  }
 0x163   :  { %1740 = vst [vmem:[#allocation9 + $0x9b4] sm:$0xf] %v1739_v44  ;;  %v1741_v42 = vld [vmem:[%s18088_s10 + $0x9b4] sm:$0xf]  ;;  %v1747_v37 = vld [vmem:[%s18088_s10 + $0x9c8] sm:$0xf] }
 0x164   :  { %1742 = vst [vmem:[#allocation9 + $0x9b8] sm:$0xf] %v1741_v42  ;;  %1744 = vst [vmem:[#allocation9 + $0x9bc] sm:$0xff] %v1743_v33   ;;  %v1749_v43 = vld [vmem:[%s18088_s10 + $0x9c4] sm:$0xf]  ;;  %v1751_v34 = vld [vmem:[%s18088_s10 + $0x9cc] sm:$0xff]  }
 0x165   :  { %1748 = vst [vmem:[#allocation9 + $0x9c4] sm:$0xf] %v1747_v37  ;;  %v1755_v44 = vld [vmem:[%s18088_s10 + $0x9d8] sm:$0xf]  ;;  %1750 = vst [vmem:[#allocation9 + $0x9c8] sm:$0xf] %v1749_v43 }
 0x166   :  { %1752 = vst [vmem:[#allocation9 + $0x9cc] sm:$0xff] %v1751_v34   ;;  %1756 = vst [vmem:[#allocation9 + $0x9d4] sm:$0xf] %v1755_v44  ;;  %v1757_v42 = vld [vmem:[%s18088_s10 + $0x9d4] sm:$0xf]  ;;  %v1759_v33 = vld [vmem:[%s18088_s10 + $0x9dc] sm:$0xff]  }
 0x167   :  { %v1763_v37 = vld [vmem:[%s18088_s10 + $0x9e8] sm:$0xf]  ;;  %1758 = vst [vmem:[#allocation9 + $0x9d8] sm:$0xf] %v1757_v42  ;;  %1760 = vst [vmem:[#allocation9 + $0x9dc] sm:$0xff] %v1759_v33   ;;  %v1767_v34 = vld [vmem:[%s18088_s10 + $0x9ec] sm:$0xff]  }
 0x168   :  { %1764 = vst [vmem:[#allocation9 + $0x9e4] sm:$0xf] %v1763_v37  ;;  %v1765_v43 = vld [vmem:[%s18088_s10 + $0x9e4] sm:$0xf]  ;;  %v1771_v44 = vld [vmem:[%s18088_s10 + $0x9f8] sm:$0xf] }
 0x169   :  { %1766 = vst [vmem:[#allocation9 + $0x9e8] sm:$0xf] %v1765_v43  ;;  %1768 = vst [vmem:[#allocation9 + $0x9ec] sm:$0xff] %v1767_v34   ;;  %v1773_v42 = vld [vmem:[%s18088_s10 + $0x9f4] sm:$0xf]  ;;  %v1775_v33 = vld [vmem:[%s18088_s10 + $0x9fc] sm:$0xff]  }
 0x16a   :  { %1772 = vst [vmem:[#allocation9 + $0x9f4] sm:$0xf] %v1771_v44  ;;  %v1779_v37 = vld [vmem:[%s18088_s10 + $0xa08] sm:$0xf]  ;;  %1774 = vst [vmem:[#allocation9 + $0x9f8] sm:$0xf] %v1773_v42 }
 0x16b   :  { %1776 = vst [vmem:[#allocation9 + $0x9fc] sm:$0xff] %v1775_v33   ;;  %1780 = vst [vmem:[#allocation9 + $0xa04] sm:$0xf] %v1779_v37  ;;  %v1781_v43 = vld [vmem:[%s18088_s10 + $0xa04] sm:$0xf]  ;;  %v1783_v34 = vld [vmem:[%s18088_s10 + $0xa0c] sm:$0xff]  }
 0x16c   :  { %v1787_v44 = vld [vmem:[%s18088_s10 + $0xa18] sm:$0xf]  ;;  %1782 = vst [vmem:[#allocation9 + $0xa08] sm:$0xf] %v1781_v43  ;;  %1784 = vst [vmem:[#allocation9 + $0xa0c] sm:$0xff] %v1783_v34   ;;  %v1791_v33 = vld [vmem:[%s18088_s10 + $0xa1c] sm:$0xff]  }
 0x16d   :  { %1788 = vst [vmem:[#allocation9 + $0xa14] sm:$0xf] %v1787_v44  ;;  %v1789_v42 = vld [vmem:[%s18088_s10 + $0xa14] sm:$0xf]  ;;  %v1795_v37 = vld [vmem:[%s18088_s10 + $0xa28] sm:$0xf] }
 0x16e   :  { %1790 = vst [vmem:[#allocation9 + $0xa18] sm:$0xf] %v1789_v42  ;;  %1792 = vst [vmem:[#allocation9 + $0xa1c] sm:$0xff] %v1791_v33   ;;  %v1797_v43 = vld [vmem:[%s18088_s10 + $0xa24] sm:$0xf]  ;;  %v1799_v34 = vld [vmem:[%s18088_s10 + $0xa2c] sm:$0xff]  }
 0x16f   :  { %1796 = vst [vmem:[#allocation9 + $0xa24] sm:$0xf] %v1795_v37  ;;  %v1803_v44 = vld [vmem:[%s18088_s10 + $0xa38] sm:$0xf]  ;;  %1798 = vst [vmem:[#allocation9 + $0xa28] sm:$0xf] %v1797_v43 }
 0x170   :  { %1800 = vst [vmem:[#allocation9 + $0xa2c] sm:$0xff] %v1799_v34   ;;  %1804 = vst [vmem:[#allocation9 + $0xa34] sm:$0xf] %v1803_v44  ;;  %v1805_v42 = vld [vmem:[%s18088_s10 + $0xa34] sm:$0xf]  ;;  %v1807_v33 = vld [vmem:[%s18088_s10 + $0xa3c] sm:$0xff]  }
 0x171   :  { %v1811_v37 = vld [vmem:[%s18088_s10 + $0xa48] sm:$0xf]  ;;  %1806 = vst [vmem:[#allocation9 + $0xa38] sm:$0xf] %v1805_v42  ;;  %1808 = vst [vmem:[#allocation9 + $0xa3c] sm:$0xff] %v1807_v33   ;;  %v1815_v34 = vld [vmem:[%s18088_s10 + $0xa4c] sm:$0xff]  }
 0x172   :  { %1812 = vst [vmem:[#allocation9 + $0xa44] sm:$0xf] %v1811_v37  ;;  %v1813_v43 = vld [vmem:[%s18088_s10 + $0xa44] sm:$0xf]  ;;  %v1819_v44 = vld [vmem:[%s18088_s10 + $0xa58] sm:$0xf] }
 0x173   :  { %1814 = vst [vmem:[#allocation9 + $0xa48] sm:$0xf] %v1813_v43  ;;  %1816 = vst [vmem:[#allocation9 + $0xa4c] sm:$0xff] %v1815_v34   ;;  %v1821_v42 = vld [vmem:[%s18088_s10 + $0xa54] sm:$0xf]  ;;  %v1823_v33 = vld [vmem:[%s18088_s10 + $0xa5c] sm:$0xff]  }
 0x174   :  { %1820 = vst [vmem:[#allocation9 + $0xa54] sm:$0xf] %v1819_v44  ;;  %v1827_v37 = vld [vmem:[%s18088_s10 + $0xa68] sm:$0xf]  ;;  %1822 = vst [vmem:[#allocation9 + $0xa58] sm:$0xf] %v1821_v42 }
 0x175   :  { %1824 = vst [vmem:[#allocation9 + $0xa5c] sm:$0xff] %v1823_v33   ;;  %1828 = vst [vmem:[#allocation9 + $0xa64] sm:$0xf] %v1827_v37  ;;  %v1829_v43 = vld [vmem:[%s18088_s10 + $0xa64] sm:$0xf]  ;;  %v1831_v34 = vld [vmem:[%s18088_s10 + $0xa6c] sm:$0xff]  }
 0x176   :  { %v1835_v44 = vld [vmem:[%s18088_s10 + $0xa78] sm:$0xf]  ;;  %1830 = vst [vmem:[#allocation9 + $0xa68] sm:$0xf] %v1829_v43  ;;  %1832 = vst [vmem:[#allocation9 + $0xa6c] sm:$0xff] %v1831_v34   ;;  %v1839_v33 = vld [vmem:[%s18088_s10 + $0xa7c] sm:$0xff]  }
 0x177   :  { %1836 = vst [vmem:[#allocation9 + $0xa74] sm:$0xf] %v1835_v44  ;;  %v1837_v42 = vld [vmem:[%s18088_s10 + $0xa74] sm:$0xf]  ;;  %v1843_v37 = vld [vmem:[%s18088_s10 + $0xa88] sm:$0xf] }
 0x178   :  { %1838 = vst [vmem:[#allocation9 + $0xa78] sm:$0xf] %v1837_v42  ;;  %1840 = vst [vmem:[#allocation9 + $0xa7c] sm:$0xff] %v1839_v33   ;;  %v1845_v43 = vld [vmem:[%s18088_s10 + $0xa84] sm:$0xf]  ;;  %v1847_v34 = vld [vmem:[%s18088_s10 + $0xa8c] sm:$0xff]  }
 0x179   :  { %1844 = vst [vmem:[#allocation9 + $0xa84] sm:$0xf] %v1843_v37  ;;  %v1851_v44 = vld [vmem:[%s18088_s10 + $0xa98] sm:$0xf]  ;;  %1846 = vst [vmem:[#allocation9 + $0xa88] sm:$0xf] %v1845_v43 }
 0x17a   :  { %1848 = vst [vmem:[#allocation9 + $0xa8c] sm:$0xff] %v1847_v34   ;;  %1852 = vst [vmem:[#allocation9 + $0xa94] sm:$0xf] %v1851_v44  ;;  %v1853_v42 = vld [vmem:[%s18088_s10 + $0xa94] sm:$0xf]  ;;  %v1855_v33 = vld [vmem:[%s18088_s10 + $0xa9c] sm:$0xff]  }
 0x17b   :  { %v1859_v37 = vld [vmem:[%s18088_s10 + $0xaa8] sm:$0xf]  ;;  %1854 = vst [vmem:[#allocation9 + $0xa98] sm:$0xf] %v1853_v42  ;;  %1856 = vst [vmem:[#allocation9 + $0xa9c] sm:$0xff] %v1855_v33   ;;  %v1863_v34 = vld [vmem:[%s18088_s10 + $0xaac] sm:$0xff]  }
 0x17c   :  { %1860 = vst [vmem:[#allocation9 + $0xaa4] sm:$0xf] %v1859_v37  ;;  %v1861_v43 = vld [vmem:[%s18088_s10 + $0xaa4] sm:$0xf]  ;;  %v1867_v44 = vld [vmem:[%s18088_s10 + $0xab8] sm:$0xf] }
 0x17d   :  { %1862 = vst [vmem:[#allocation9 + $0xaa8] sm:$0xf] %v1861_v43  ;;  %1864 = vst [vmem:[#allocation9 + $0xaac] sm:$0xff] %v1863_v34   ;;  %v1869_v42 = vld [vmem:[%s18088_s10 + $0xab4] sm:$0xf]  ;;  %v1871_v33 = vld [vmem:[%s18088_s10 + $0xabc] sm:$0xff]  }
 0x17e   :  { %1868 = vst [vmem:[#allocation9 + $0xab4] sm:$0xf] %v1867_v44  ;;  %v1875_v37 = vld [vmem:[%s18088_s10 + $0xac8] sm:$0xf]  ;;  %1870 = vst [vmem:[#allocation9 + $0xab8] sm:$0xf] %v1869_v42 }
 0x17f   :  { %1872 = vst [vmem:[#allocation9 + $0xabc] sm:$0xff] %v1871_v33   ;;  %1876 = vst [vmem:[#allocation9 + $0xac4] sm:$0xf] %v1875_v37  ;;  %v1877_v43 = vld [vmem:[%s18088_s10 + $0xac4] sm:$0xf]  ;;  %v1879_v34 = vld [vmem:[%s18088_s10 + $0xacc] sm:$0xff]  }
 0x180   :  { %v1883_v44 = vld [vmem:[%s18088_s10 + $0xad8] sm:$0xf]  ;;  %1878 = vst [vmem:[#allocation9 + $0xac8] sm:$0xf] %v1877_v43  ;;  %1880 = vst [vmem:[#allocation9 + $0xacc] sm:$0xff] %v1879_v34   ;;  %v1887_v33 = vld [vmem:[%s18088_s10 + $0xadc] sm:$0xff]  }
 0x181   :  { %1884 = vst [vmem:[#allocation9 + $0xad4] sm:$0xf] %v1883_v44  ;;  %v1885_v42 = vld [vmem:[%s18088_s10 + $0xad4] sm:$0xf]  ;;  %v1891_v37 = vld [vmem:[%s18088_s10 + $0xae8] sm:$0xf] }
 0x182   :  { %1886 = vst [vmem:[#allocation9 + $0xad8] sm:$0xf] %v1885_v42  ;;  %1888 = vst [vmem:[#allocation9 + $0xadc] sm:$0xff] %v1887_v33   ;;  %v1893_v43 = vld [vmem:[%s18088_s10 + $0xae4] sm:$0xf]  ;;  %v1895_v34 = vld [vmem:[%s18088_s10 + $0xaec] sm:$0xff]  }
 0x183   :  { %1892 = vst [vmem:[#allocation9 + $0xae4] sm:$0xf] %v1891_v37  ;;  %v1899_v44 = vld [vmem:[%s18088_s10 + $0xaf8] sm:$0xf]  ;;  %1894 = vst [vmem:[#allocation9 + $0xae8] sm:$0xf] %v1893_v43 }
 0x184   :  { %1896 = vst [vmem:[#allocation9 + $0xaec] sm:$0xff] %v1895_v34   ;;  %1900 = vst [vmem:[#allocation9 + $0xaf4] sm:$0xf] %v1899_v44  ;;  %v1901_v42 = vld [vmem:[%s18088_s10 + $0xaf4] sm:$0xf]  ;;  %v1903_v33 = vld [vmem:[%s18088_s10 + $0xafc] sm:$0xff]  }
 0x185   :  { %v1907_v37 = vld [vmem:[%s18088_s10 + $0xb08] sm:$0xf]  ;;  %1902 = vst [vmem:[#allocation9 + $0xaf8] sm:$0xf] %v1901_v42  ;;  %1904 = vst [vmem:[#allocation9 + $0xafc] sm:$0xff] %v1903_v33   ;;  %v1911_v34 = vld [vmem:[%s18088_s10 + $0xb0c] sm:$0xff]  }
 0x186   :  { %1908 = vst [vmem:[#allocation9 + $0xb04] sm:$0xf] %v1907_v37  ;;  %v1909_v43 = vld [vmem:[%s18088_s10 + $0xb04] sm:$0xf]  ;;  %v1915_v44 = vld [vmem:[%s18088_s10 + $0xb18] sm:$0xf] }
 0x187   :  { %1910 = vst [vmem:[#allocation9 + $0xb08] sm:$0xf] %v1909_v43  ;;  %1912 = vst [vmem:[#allocation9 + $0xb0c] sm:$0xff] %v1911_v34   ;;  %v1917_v42 = vld [vmem:[%s18088_s10 + $0xb14] sm:$0xf]  ;;  %v1919_v33 = vld [vmem:[%s18088_s10 + $0xb1c] sm:$0xff]  }
 0x188   :  { %1916 = vst [vmem:[#allocation9 + $0xb14] sm:$0xf] %v1915_v44  ;;  %v1923_v37 = vld [vmem:[%s18088_s10 + $0xb28] sm:$0xf]  ;;  %1918 = vst [vmem:[#allocation9 + $0xb18] sm:$0xf] %v1917_v42 }
 0x189   :  { %1920 = vst [vmem:[#allocation9 + $0xb1c] sm:$0xff] %v1919_v33   ;;  %1924 = vst [vmem:[#allocation9 + $0xb24] sm:$0xf] %v1923_v37  ;;  %v1925_v43 = vld [vmem:[%s18088_s10 + $0xb24] sm:$0xf]  ;;  %v1927_v34 = vld [vmem:[%s18088_s10 + $0xb2c] sm:$0xff]  }
 0x18a   :  { %v1931_v44 = vld [vmem:[%s18088_s10 + $0xb38] sm:$0xf]  ;;  %1926 = vst [vmem:[#allocation9 + $0xb28] sm:$0xf] %v1925_v43  ;;  %1928 = vst [vmem:[#allocation9 + $0xb2c] sm:$0xff] %v1927_v34   ;;  %v1935_v33 = vld [vmem:[%s18088_s10 + $0xb3c] sm:$0xff]  }
 0x18b   :  { %1932 = vst [vmem:[#allocation9 + $0xb34] sm:$0xf] %v1931_v44  ;;  %v1933_v42 = vld [vmem:[%s18088_s10 + $0xb34] sm:$0xf]  ;;  %v1939_v37 = vld [vmem:[%s18088_s10 + $0xb48] sm:$0xf] }
 0x18c   :  { %1934 = vst [vmem:[#allocation9 + $0xb38] sm:$0xf] %v1933_v42  ;;  %1936 = vst [vmem:[#allocation9 + $0xb3c] sm:$0xff] %v1935_v33   ;;  %v1941_v43 = vld [vmem:[%s18088_s10 + $0xb44] sm:$0xf]  ;;  %v1943_v34 = vld [vmem:[%s18088_s10 + $0xb4c] sm:$0xff]  }
 0x18d   :  { %1940 = vst [vmem:[#allocation9 + $0xb44] sm:$0xf] %v1939_v37  ;;  %v1947_v44 = vld [vmem:[%s18088_s10 + $0xb58] sm:$0xf]  ;;  %1942 = vst [vmem:[#allocation9 + $0xb48] sm:$0xf] %v1941_v43 }
 0x18e   :  { %1944 = vst [vmem:[#allocation9 + $0xb4c] sm:$0xff] %v1943_v34   ;;  %1948 = vst [vmem:[#allocation9 + $0xb54] sm:$0xf] %v1947_v44  ;;  %v1949_v42 = vld [vmem:[%s18088_s10 + $0xb54] sm:$0xf]  ;;  %v1951_v33 = vld [vmem:[%s18088_s10 + $0xb5c] sm:$0xff]  }
 0x18f   :  { %v1955_v37 = vld [vmem:[%s18088_s10 + $0xb68] sm:$0xf]  ;;  %1950 = vst [vmem:[#allocation9 + $0xb58] sm:$0xf] %v1949_v42  ;;  %1952 = vst [vmem:[#allocation9 + $0xb5c] sm:$0xff] %v1951_v33   ;;  %v1959_v34 = vld [vmem:[%s18088_s10 + $0xb6c] sm:$0xff]  }
 0x190   :  { %1956 = vst [vmem:[#allocation9 + $0xb64] sm:$0xf] %v1955_v37  ;;  %v1957_v43 = vld [vmem:[%s18088_s10 + $0xb64] sm:$0xf]  ;;  %v1963_v44 = vld [vmem:[%s18088_s10 + $0xb78] sm:$0xf] }
 0x191   :  { %1958 = vst [vmem:[#allocation9 + $0xb68] sm:$0xf] %v1957_v43  ;;  %1960 = vst [vmem:[#allocation9 + $0xb6c] sm:$0xff] %v1959_v34   ;;  %v1965_v42 = vld [vmem:[%s18088_s10 + $0xb74] sm:$0xf]  ;;  %v1967_v33 = vld [vmem:[%s18088_s10 + $0xb7c] sm:$0xff]  }
 0x192   :  { %1964 = vst [vmem:[#allocation9 + $0xb74] sm:$0xf] %v1963_v44  ;;  %v1971_v37 = vld [vmem:[%s18088_s10 + $0xb88] sm:$0xf]  ;;  %1966 = vst [vmem:[#allocation9 + $0xb78] sm:$0xf] %v1965_v42 }
 0x193   :  { %1968 = vst [vmem:[#allocation9 + $0xb7c] sm:$0xff] %v1967_v33   ;;  %1972 = vst [vmem:[#allocation9 + $0xb84] sm:$0xf] %v1971_v37  ;;  %v1973_v43 = vld [vmem:[%s18088_s10 + $0xb84] sm:$0xf]  ;;  %v1975_v34 = vld [vmem:[%s18088_s10 + $0xb8c] sm:$0xff]  }
 0x194   :  { %v1979_v44 = vld [vmem:[%s18088_s10 + $0xb98] sm:$0xf]  ;;  %1974 = vst [vmem:[#allocation9 + $0xb88] sm:$0xf] %v1973_v43  ;;  %1976 = vst [vmem:[#allocation9 + $0xb8c] sm:$0xff] %v1975_v34   ;;  %v1983_v33 = vld [vmem:[%s18088_s10 + $0xb9c] sm:$0xff]  }
 0x195   :  { %1980 = vst [vmem:[#allocation9 + $0xb94] sm:$0xf] %v1979_v44  ;;  %v1981_v42 = vld [vmem:[%s18088_s10 + $0xb94] sm:$0xf]  ;;  %v1987_v37 = vld [vmem:[%s18088_s10 + $0xba8] sm:$0xf] }
 0x196   :  { %1982 = vst [vmem:[#allocation9 + $0xb98] sm:$0xf] %v1981_v42  ;;  %1984 = vst [vmem:[#allocation9 + $0xb9c] sm:$0xff] %v1983_v33   ;;  %v1989_v43 = vld [vmem:[%s18088_s10 + $0xba4] sm:$0xf]  ;;  %v1991_v34 = vld [vmem:[%s18088_s10 + $0xbac] sm:$0xff]  }
 0x197   :  { %1988 = vst [vmem:[#allocation9 + $0xba4] sm:$0xf] %v1987_v37  ;;  %v1995_v44 = vld [vmem:[%s18088_s10 + $0xbb8] sm:$0xf]  ;;  %1990 = vst [vmem:[#allocation9 + $0xba8] sm:$0xf] %v1989_v43 }
 0x198   :  { %1992 = vst [vmem:[#allocation9 + $0xbac] sm:$0xff] %v1991_v34   ;;  %1996 = vst [vmem:[#allocation9 + $0xbb4] sm:$0xf] %v1995_v44  ;;  %v1997_v42 = vld [vmem:[%s18088_s10 + $0xbb4] sm:$0xf]  ;;  %v1999_v33 = vld [vmem:[%s18088_s10 + $0xbbc] sm:$0xff]  }
 0x199   :  { %v2003_v37 = vld [vmem:[%s18088_s10 + $0xbc8] sm:$0xf]  ;;  %1998 = vst [vmem:[#allocation9 + $0xbb8] sm:$0xf] %v1997_v42  ;;  %2000 = vst [vmem:[#allocation9 + $0xbbc] sm:$0xff] %v1999_v33   ;;  %v2007_v34 = vld [vmem:[%s18088_s10 + $0xbcc] sm:$0xff]  }
 0x19a   :  { %2004 = vst [vmem:[#allocation9 + $0xbc4] sm:$0xf] %v2003_v37  ;;  %v2005_v43 = vld [vmem:[%s18088_s10 + $0xbc4] sm:$0xf]  ;;  %v2011_v44 = vld [vmem:[%s18088_s10 + $0xbd8] sm:$0xf] }
 0x19b   :  { %2006 = vst [vmem:[#allocation9 + $0xbc8] sm:$0xf] %v2005_v43  ;;  %2008 = vst [vmem:[#allocation9 + $0xbcc] sm:$0xff] %v2007_v34   ;;  %v2013_v42 = vld [vmem:[%s18088_s10 + $0xbd4] sm:$0xf]  ;;  %v2015_v33 = vld [vmem:[%s18088_s10 + $0xbdc] sm:$0xff]  }
 0x19c   :  { %2012 = vst [vmem:[#allocation9 + $0xbd4] sm:$0xf] %v2011_v44  ;;  %v2019_v37 = vld [vmem:[%s18088_s10 + $0xbe8] sm:$0xf]  ;;  %2014 = vst [vmem:[#allocation9 + $0xbd8] sm:$0xf] %v2013_v42 }
 0x19d   :  { %2016 = vst [vmem:[#allocation9 + $0xbdc] sm:$0xff] %v2015_v33   ;;  %2020 = vst [vmem:[#allocation9 + $0xbe4] sm:$0xf] %v2019_v37  ;;  %v2021_v43 = vld [vmem:[%s18088_s10 + $0xbe4] sm:$0xf]  ;;  %v2023_v34 = vld [vmem:[%s18088_s10 + $0xbec] sm:$0xff]  }
 0x19e   :  { %v2027_v44 = vld [vmem:[%s18088_s10 + $0xbf8] sm:$0xf]  ;;  %2022 = vst [vmem:[#allocation9 + $0xbe8] sm:$0xf] %v2021_v43  ;;  %2024 = vst [vmem:[#allocation9 + $0xbec] sm:$0xff] %v2023_v34   ;;  %v2031_v33 = vld [vmem:[%s18088_s10 + $0xbfc] sm:$0xff]  }
 0x19f   :  { %2028 = vst [vmem:[#allocation9 + $0xbf4] sm:$0xf] %v2027_v44  ;;  %v2029_v42 = vld [vmem:[%s18088_s10 + $0xbf4] sm:$0xf]  ;;  %v2035_v37 = vld [vmem:[%s18088_s10 + $0xc08] sm:$0xf] }
 0x1a0   :  { %2030 = vst [vmem:[#allocation9 + $0xbf8] sm:$0xf] %v2029_v42  ;;  %2032 = vst [vmem:[#allocation9 + $0xbfc] sm:$0xff] %v2031_v33   ;;  %v2037_v43 = vld [vmem:[%s18088_s10 + $0xc04] sm:$0xf]  ;;  %v2039_v34 = vld [vmem:[%s18088_s10 + $0xc0c] sm:$0xff]  }
 0x1a1   :  { %2036 = vst [vmem:[#allocation9 + $0xc04] sm:$0xf] %v2035_v37  ;;  %v2043_v44 = vld [vmem:[%s18088_s10 + $0xc18] sm:$0xf]  ;;  %2038 = vst [vmem:[#allocation9 + $0xc08] sm:$0xf] %v2037_v43 }
 0x1a2   :  { %2040 = vst [vmem:[#allocation9 + $0xc0c] sm:$0xff] %v2039_v34   ;;  %2044 = vst [vmem:[#allocation9 + $0xc14] sm:$0xf] %v2043_v44  ;;  %v2045_v42 = vld [vmem:[%s18088_s10 + $0xc14] sm:$0xf]  ;;  %v2047_v33 = vld [vmem:[%s18088_s10 + $0xc1c] sm:$0xff]  }
 0x1a3   :  { %v2051_v37 = vld [vmem:[%s18088_s10 + $0xc28] sm:$0xf]  ;;  %2046 = vst [vmem:[#allocation9 + $0xc18] sm:$0xf] %v2045_v42  ;;  %2048 = vst [vmem:[#allocation9 + $0xc1c] sm:$0xff] %v2047_v33   ;;  %v2055_v34 = vld [vmem:[%s18088_s10 + $0xc2c] sm:$0xff]  }
 0x1a4   :  { %2052 = vst [vmem:[#allocation9 + $0xc24] sm:$0xf] %v2051_v37  ;;  %v2053_v43 = vld [vmem:[%s18088_s10 + $0xc24] sm:$0xf]  ;;  %v2059_v44 = vld [vmem:[%s18088_s10 + $0xc38] sm:$0xf] }
 0x1a5   :  { %2054 = vst [vmem:[#allocation9 + $0xc28] sm:$0xf] %v2053_v43  ;;  %2056 = vst [vmem:[#allocation9 + $0xc2c] sm:$0xff] %v2055_v34   ;;  %v2061_v42 = vld [vmem:[%s18088_s10 + $0xc34] sm:$0xf]  ;;  %v2063_v33 = vld [vmem:[%s18088_s10 + $0xc3c] sm:$0xff]  }
 0x1a6   :  { %2060 = vst [vmem:[#allocation9 + $0xc34] sm:$0xf] %v2059_v44  ;;  %v2067_v37 = vld [vmem:[%s18088_s10 + $0xc48] sm:$0xf]  ;;  %2062 = vst [vmem:[#allocation9 + $0xc38] sm:$0xf] %v2061_v42 }
 0x1a7   :  { %2064 = vst [vmem:[#allocation9 + $0xc3c] sm:$0xff] %v2063_v33   ;;  %2068 = vst [vmem:[#allocation9 + $0xc44] sm:$0xf] %v2067_v37  ;;  %v2069_v43 = vld [vmem:[%s18088_s10 + $0xc44] sm:$0xf]  ;;  %v2071_v34 = vld [vmem:[%s18088_s10 + $0xc4c] sm:$0xff]  }
 0x1a8   :  { %v2075_v44 = vld [vmem:[%s18088_s10 + $0xc58] sm:$0xf]  ;;  %2070 = vst [vmem:[#allocation9 + $0xc48] sm:$0xf] %v2069_v43  ;;  %2072 = vst [vmem:[#allocation9 + $0xc4c] sm:$0xff] %v2071_v34   ;;  %v2079_v33 = vld [vmem:[%s18088_s10 + $0xc5c] sm:$0xff]  }
 0x1a9   :  { %2076 = vst [vmem:[#allocation9 + $0xc54] sm:$0xf] %v2075_v44  ;;  %v2077_v42 = vld [vmem:[%s18088_s10 + $0xc54] sm:$0xf]  ;;  %v2083_v37 = vld [vmem:[%s18088_s10 + $0xc68] sm:$0xf] }
 0x1aa   :  { %2078 = vst [vmem:[#allocation9 + $0xc58] sm:$0xf] %v2077_v42  ;;  %2080 = vst [vmem:[#allocation9 + $0xc5c] sm:$0xff] %v2079_v33   ;;  %v2085_v43 = vld [vmem:[%s18088_s10 + $0xc64] sm:$0xf]  ;;  %v2087_v34 = vld [vmem:[%s18088_s10 + $0xc6c] sm:$0xff]  }
 0x1ab   :  { %2084 = vst [vmem:[#allocation9 + $0xc64] sm:$0xf] %v2083_v37  ;;  %v2091_v44 = vld [vmem:[%s18088_s10 + $0xc78] sm:$0xf]  ;;  %2086 = vst [vmem:[#allocation9 + $0xc68] sm:$0xf] %v2085_v43 }
 0x1ac   :  { %2088 = vst [vmem:[#allocation9 + $0xc6c] sm:$0xff] %v2087_v34   ;;  %2092 = vst [vmem:[#allocation9 + $0xc74] sm:$0xf] %v2091_v44  ;;  %v2093_v42 = vld [vmem:[%s18088_s10 + $0xc74] sm:$0xf] }
 0x1ad   :  { %v2095_v33 = vld [vmem:[%s18088_s10 + $0xc7c] sm:$0xf]  ;;  %2094 = vst [vmem:[#allocation9 + $0xc78] sm:$0xf] %v2093_v42 }
 0x1ae   :  { %2096 = vst [vmem:[#allocation9 + $0xc7c] sm:$0xf] %v2095_v33 }
 0x1af   :  { %6960 = vsyncadd [#allocation10 + $0x1], 51200  ;;  %v13829_v37 = vld [vmem:[%s18079_s1] sm:$0xff]   ;;  %v13830_v43 = vld [vmem:[%s18079_s1 + $0x8] sm:$0xff]   ;;  %vm7076_vm0 = vcmask 818176   ;;  %vm7101_vm1 = vcmask 1041408  }
 0x1b0   :  { %13485 = vmatprep.subr.bf16.mxu0 %v13829_v37  ;;  %v13831_v34 = vld [vmem:[%s18079_s1 + $0x10] sm:$0xff]   ;;  %v13836_v44 = vld [vmem:[%s18078_s0] sm:$0xff]   ;;  %v13832_v33 = vld [vmem:[%s18079_s1 + $0x18] sm:$0xff]   ;;  %vm8309_vm2 = vcmask 523264   ;;  %s14098_s10 = smov 64   ;;  %vm8374_vm3 = vcmask 1048064  }
 0x1b1   :  { %13486 = vmatpush3.bf16.msra.mxu0 %v13829_v37  ;;  %v13835_v42 = vld [vmem:[%s18079_s1 + $0x30] ss:$0 sps:$4 sm:$0x33]   ;;  %13499 = vmatprep.mubr.msk.bf16.mxu0 %vm7076_vm0, %v13836_v44  ;;  %v13833_v37 = vld [vmem:[%s18079_s1 + $0x20] sm:$0xff]  }
 0x1b2   :  { %13487 = vmatprep.subr.bf16.mxu0 %v13830_v43  ;;  %v7103_v36 = vsel %vm7101_vm1, %v13835_v42, 0  ;;  %v13838_v44 = vld [vmem:[%s18078_s0 + $0x10] sm:$0xff]  }
 0x1b5   :  { %13488 = vmatpush3.bf16.msra.mxu0 %v13830_v43  ;;  %v13834_v43 = vld [vmem:[%s18079_s1 + $0x28] sm:$0xff]  }
 0x1b6   :  { %13489 = vmatprep.subr.bf16.mxu0 %v13831_v34 }
 0x1b9   :  { %13490 = vmatpush3.bf16.msra.mxu0 %v13831_v34  ;;  %v13837_v34 = vld [vmem:[%s18078_s0 + $0x8] sm:$0xff]  }
 0x1ba   :  { %13491 = vmatprep.subr.bf16.mxu0 %v13832_v33 }
 0x1bd   :  { %13492 = vmatpush3.bf16.msra.mxu0 %v13832_v33  ;;  %v13839_v33 = vld [vmem:[%s18078_s0 + $0x18] sm:$0xff]  }
 0x1be   :  { %13493 = vmatprep.subr.bf16.mxu0 %v13833_v37 }
 0x1c1   :  { %13494 = vmatpush3.bf16.msra.mxu0 %v13833_v37  ;;  %v13842_v37 = vld [vmem:[%s18078_s0 + $0x30] sm:$0xff]  }
 0x1c2   :  { %13495 = vmatprep.subr.bf16.mxu0 %v13834_v43 }
 0x1c5   :  { %13496 = vmatpush3.bf16.msra.mxu0 %v13834_v43  ;;  %v13843_v43 = vld [vmem:[%s18078_s0 + $0x38] sm:$0xff]  }
 0x1c6   :  { %13823 = vmatprep.subr.msk.bf16.mxu0 %vm7101_vm1, %v13835_v42  ;;  %v13840_v42 = vld [vmem:[%s18078_s0 + $0x20] sm:$0xff]  }
 0x1c9   :  { %13498 = vmatpush3.bf16.msra.mxu0 %v7103_v36  ;;  %v13841_v36 = vld [vmem:[%s18078_s0 + $0x28] sm:$0xff]  }
 0x1cc   :  { %13500 = vmatmul.mubr.msk.bf16.vlgmr.msra.gmra.mrb[0].mxu0 %vm7076_vm0, %v13837_v34  ;;  %v13844_v34 = vld [vmem:[%s18081_s3] sm:$0xff]  }
 0x1cd   :  { %13503 = vmatprep.mubr.msk.bf16.mxu0 %vm7076_vm0, %v13838_v44  ;;  %v12411_v44 = vld [vmem:[%s18080_s2] ss:$0 sm:$0xff] }
 0x1d4   :  { %13504 = vmatmul.mubr.msk.bf16.gmra.mrb[4].mxu0 %vm7076_vm0, %v13839_v33 }
 0x1d5   :  { %13507 = vmatprep.mubr.msk.bf16.mxu0 %vm7076_vm0, %v13840_v42 }
 0x1dc   :  { %13508 = vmatmul.mubr.msk.bf16.gmra.mrb[8].mxu0 %vm7076_vm0, %v13841_v36 }
 0x1dd   :  { %13511 = vmatprep.mubr.msk.bf16.mxu0 %vm7076_vm0, %v13842_v37 }
 0x1e4   :  { %13512 = vmatmul.mubr.msk.bf16.gmra.mrb[12].mxu0 %vm7076_vm0, %v13843_v43 }
 0x1e5   :  { %13531 = vmatprep.mubr.bf16.mxu0 %v13844_v34 }
 0x29f   :  { %v13501_v33 = vpop.f32.mrb[0].mxu0 }
 0x2a0   :  { %v7148_v42 = vadd.f32 %v13501_v33, %v12411_v44  ;;  %v7139_v36 = vpop.f32.mrb[1].mxu0 }
 0x2a1   :  { %v7140_v46 = vadd.f32 %v12411_v44, %v7139_v36  ;;  %v13502_v37 = vpop.f32.mrb[2].mxu0 }
 0x2a2   :  { %v7151_v41 = vadd.f32 %v13502_v37, %v12411_v44  ;;  %v7142_v32 = vpop.f32.mrb[3].mxu0  ;;  %v7204_v40 = vmax.f32 %v7148_v42, 0.0 }
 0x2a3   :  { %v7143_v45 = vadd.f32 %v12411_v44, %v7142_v32  ;;  %v7202_v43 = vmax.f32 %v7140_v46, 0.0 }
 0x2a4   :  { %v7205_v38 = vmax.f32 %v7151_v41, 0.0 }
 0x2a5   :  { %v7203_v23 = vmax.f32 %v7143_v45, 0.0 }
 0x2a6   :  { %v7219_v39 = vpack.c.bf16 %v7205_v38, %v7204_v40 }
 0x2a7   :  { %v7218_v31 = vpack.c.bf16 %v7203_v23, %v7202_v43  ;;  %v13505_v47 = vpop.f32.mrb[4].mxu0 }
 0x2a8   :  { %v7164_v34 = vadd.f32 %v13505_v47, %v12411_v44  ;;  %v7155_v22 = vpop.f32.mrb[5].mxu0 }
 0x2a9   :  { %v7156_v30 = vadd.f32 %v12411_v44, %v7155_v22  ;;  %v13506_v21 = vpop.f32.mrb[6].mxu0  ;;  %13515 = vmatprep.subr.bf16.mxu0 %v7218_v31 }
 0x2aa   :  { %v7167_v29 = vadd.f32 %v13506_v21, %v12411_v44  ;;  %v7158_v33 = vpop.f32.mrb[7].mxu0  ;;  %13516 = vmatpush3.bf16.msra.mxu0 %v7218_v31  ;;  %v7208_v37 = vmax.f32 %v7164_v34, 0.0 }
 0x2ab   :  { %v7159_v36 = vadd.f32 %v12411_v44, %v7158_v33  ;;  %13517 = vmatprep.subr.bf16.mxu0 %v7219_v39  ;;  %v7206_v32 = vmax.f32 %v7156_v30, 0.0 }
 0x2ac   :  { %v7209_v20 = vmax.f32 %v7167_v29, 0.0 }
 0x2ad   :  { %v7207_v42 = vmax.f32 %v7159_v36, 0.0 }
 0x2ae   :  { %v7221_v41 = vpack.c.bf16 %v7209_v20, %v7208_v37  ;;  %13518 = vmatpush3.bf16.msra.mxu0 %v7219_v39 }
 0x2af   :  { %v7220_v45 = vpack.c.bf16 %v7207_v42, %v7206_v32  ;;  %v13509_v38 = vpop.f32.mrb[8].mxu0 }
 0x2b0   :  { %v7180_v23 = vadd.f32 %v13509_v38, %v12411_v44  ;;  %v7171_v40 = vpop.f32.mrb[9].mxu0 }
 0x2b1   :  { %v7172_v46 = vadd.f32 %v12411_v44, %v7171_v40  ;;  %v13510_v47 = vpop.f32.mrb[10].mxu0  ;;  %13519 = vmatprep.subr.bf16.mxu0 %v7220_v45 }
 0x2b2   :  { %v7183_v22 = vadd.f32 %v13510_v47, %v12411_v44  ;;  %v7174_v43 = vpop.f32.mrb[11].mxu0  ;;  %13520 = vmatpush3.bf16.msra.mxu0 %v7220_v45  ;;  %v7212_v31 = vmax.f32 %v7180_v23, 0.0 }
 0x2b3   :  { %v7175_v21 = vadd.f32 %v12411_v44, %v7174_v43  ;;  %13521 = vmatprep.subr.bf16.mxu0 %v7221_v41  ;;  %v7210_v34 = vmax.f32 %v7172_v46, 0.0 }
 0x2b4   :  { %v7213_v33 = vmax.f32 %v7183_v22, 0.0 }
 0x2b5   :  { %v7211_v29 = vmax.f32 %v7175_v21, 0.0 }
 0x2b6   :  { %v7223_v30 = vpack.c.bf16 %v7213_v33, %v7212_v31  ;;  %13522 = vmatpush3.bf16.msra.mxu0 %v7221_v41  ;;  %v13845_v41 = vld [vmem:[%s18081_s3 + $0x8] sm:$0xff]   ;;  %v13847_v31 = vld [vmem:[%s18081_s3 + $0x18] sm:$0xff]   ;;  %v13848_v33 = vld [vmem:[%s18081_s3 + $0x20] sm:$0xff]  }
 0x2b7   :  { %v7222_v20 = vpack.c.bf16 %v7211_v29, %v7210_v34  ;;  %v13513_v39 = vpop.f32.mrb[12].mxu0  ;;  %v13849_v34 = vld [vmem:[%s18081_s3 + $0x28] sm:$0xff]   ;;  %v13850_v29 = vld [vmem:[%s18081_s3 + $0x30] sm:$0xff]  }
 0x2b8   :  { %v7196_v36 = vadd.f32 %v13513_v39, %v12411_v44  ;;  %v7187_v37 = vpop.f32.mrb[13].mxu0  ;;  %v13853_v39 = vld [vmem:[%s18081_s3 + $0x48] sm:$0xff]  }
 0x2b9   :  { %v7188_v32 = vadd.f32 %v12411_v44, %v7187_v37  ;;  %v13514_v42 = vpop.f32.mrb[14].mxu0  ;;  %13523 = vmatprep.subr.bf16.mxu0 %v7222_v20  ;;  %v13855_v37 = vld [vmem:[%s18081_s3 + $0x58] sm:$0xff]  }
 0x2ba   :  { %v7199_v38 = vadd.f32 %v13514_v42, %v12411_v44  ;;  %v7190_v40 = vpop.f32.mrb[15].mxu0  ;;  %13524 = vmatpush3.bf16.msra.mxu0 %v7222_v20  ;;  %v7216_v45 = vmax.f32 %v7196_v36, 0.0  ;;  %v13852_v20 = vld [vmem:[%s18081_s3 + $0x40] sm:$0xff]   ;;  %v13854_v36 = vld [vmem:[%s18081_s3 + $0x50] sm:$0xff]   ;;  %v13857_v42 = vld [vmem:[%s18081_s3 + $0x68] sm:$0xff]  }
 0x2bb   :  { %v7191_v47 = vadd.f32 %v12411_v44, %v7190_v40  ;;  %13525 = vmatprep.subr.bf16.mxu0 %v7223_v30  ;;  %v7214_v23 = vmax.f32 %v7188_v32, 0.0  ;;  %v13846_v44 = vld [vmem:[%s18081_s3 + $0x10] sm:$0xff]   ;;  %v13856_v32 = vld [vmem:[%s18081_s3 + $0x60] sm:$0xff]  }
 0x2bc   :  { %v7217_v43 = vmax.f32 %v7199_v38, 0.0  ;;  %v13858_v38 = vld [vmem:[%s18081_s3 + $0x70] sm:$0xff]   ;;  %v13890_v40 = vld [vmem:[%s18082_s4 + $0x40] sm:$0xff]  }
 0x2bd   :  { %v7215_v22 = vmax.f32 %v7191_v47, 0.0  ;;  %v13891_v47 = vld [vmem:[%s18082_s4] sm:$0xff]  }
 0x2be   :  { %v7225_v46 = vpack.c.bf16 %v7217_v43, %v7216_v45  ;;  %13526 = vmatpush3.bf16.msra.mxu0 %v7223_v30  ;;  %v13851_v30 = vld [vmem:[%s18081_s3 + $0x38] sm:$0xff]   ;;  %v13860_v43 = vld [vmem:[%s18081_s3 + $0x80] sm:$0xff]  }
 0x2bf   :  { %v7224_v21 = vpack.c.bf16 %v7215_v22, %v7214_v23  ;;  %v13859_v45 = vld [vmem:[%s18081_s3 + $0x78] sm:$0xff]   ;;  %v13894_v23 = vld [vmem:[%s18082_s4 + $0x48] sm:$0xff]  }
 0x2c0   :  { %v13895_v22 = vld [vmem:[%s18082_s4 + $0x8] sm:$0xff]  }
 0x2c1   :  { %13527 = vmatprep.subr.bf16.mxu0 %v7224_v21 }
 0x2c2   :  { %13528 = vmatpush3.bf16.msra.mxu0 %v7224_v21  ;;  %v13862_v21 = vld [vmem:[%s18081_s3 + $0x90] sm:$0xff]  }
 0x2c3   :  { %13529 = vmatprep.subr.bf16.mxu0 %v7225_v46 }
 0x2c6   :  { %13530 = vmatpush3.bf16.msra.mxu0 %v7225_v46  ;;  %v13861_v46 = vld [vmem:[%s18081_s3 + $0x88] sm:$0xff]  }
 0x2c7   :  { %13009 = vmatprep.subr.bf16.mxu0 %v13890_v40  ;;  %v13875_v40 = vld [vmem:[%s18081_s3 + $0xf8] sm:$0xff]  }
 0x2c9   :  { %13532 = vmatmul.mubr.bf16.vlgmr.msra.gmra.mrb[16].mxu0 %v13845_v41  ;;  %v13863_v41 = vld [vmem:[%s18081_s3 + $0x98] sm:$0xff]  }
 0x2ca   :  { %13535 = vmatprep.mubr.bf16.mxu0 %v13846_v44  ;;  %13010 = vmatpush3.bf16.msra.mxu0 %v13891_v47  ;;  %v13864_v44 = vld [vmem:[%s18081_s3 + $0xa0] sm:$0xff]  }
 0x2cb   :  { %13011 = vmatprep.subr.bf16.mxu0 %v13894_v23  ;;  %v13876_v47 = vld [vmem:[%s18081_s3 + $0x100] sm:$0xff]   ;;  %v13877_v23 = vld [vmem:[%s18081_s3 + $0x108] sm:$0xff]  }
 0x2ce   :  { %13012 = vmatpush3.bf16.msra.mxu0 %v13895_v22  ;;  %v13878_v22 = vld [vmem:[%s18081_s3 + $0x110] sm:$0xff]  }
 0x2d1   :  { %13536 = vmatmul.mubr.bf16.gmra.mrb[20].mxu0 %v13847_v31  ;;  %v13865_v31 = vld [vmem:[%s18081_s3 + $0xa8] sm:$0xff]  }
 0x2d2   :  { %13539 = vmatprep.mubr.bf16.mxu0 %v13848_v33  ;;  %v13866_v33 = vld [vmem:[%s18081_s3 + $0xb0] sm:$0xff]  }
 0x2d9   :  { %13540 = vmatmul.mubr.bf16.gmra.mrb[24].mxu0 %v13849_v34  ;;  %v13867_v34 = vld [vmem:[%s18081_s3 + $0xb8] sm:$0xff]  }
 0x2da   :  { %13543 = vmatprep.mubr.bf16.mxu0 %v13850_v29  ;;  %v13868_v29 = vld [vmem:[%s18081_s3 + $0xc0] sm:$0xff]  }
 0x2e1   :  { %13544 = vmatmul.mubr.bf16.gmra.mrb[28].mxu0 %v13851_v30  ;;  %v13869_v30 = vld [vmem:[%s18081_s3 + $0xc8] sm:$0xff]  }
 0x2e2   :  { %13547 = vmatprep.mubr.bf16.mxu0 %v13852_v20  ;;  %v13870_v20 = vld [vmem:[%s18081_s3 + $0xd0] sm:$0xff]  }
 0x2e9   :  { %13548 = vmatmul.mubr.bf16.gmra.mrb[32].mxu0 %v13853_v39  ;;  %v13896_v39 = vld [vmem:[%s18082_s4 + $0x50] sm:$0xff]  }
 0x2ea   :  { %13551 = vmatprep.mubr.bf16.mxu0 %v13854_v36  ;;  %13013 = vmatprep.subr.bf16.mxu0 %v13896_v39  ;;  %v13897_v36 = vld [vmem:[%s18082_s4 + $0x10] sm:$0xff]   ;;  %v13887_v39 = vld [vmem:[%s18081_s3 + $0x158] sm:$0xff]  }
 0x2eb   :  { %13014 = vmatpush3.bf16.msra.mxu0 %v13897_v36  ;;  %v13888_v36 = vld [vmem:[%s18081_s3 + $0x160] sm:$0xff]  }
 0x2f1   :  { %13552 = vmatmul.mubr.bf16.gmra.mrb[36].mxu0 %v13855_v37  ;;  %v13871_v37 = vld [vmem:[%s18081_s3 + $0xd8] sm:$0xff]  }
 0x2f2   :  { %13555 = vmatprep.mubr.bf16.mxu0 %v13856_v32  ;;  %v13872_v32 = vld [vmem:[%s18081_s3 + $0xe0] sm:$0xff]  }
 0x2f9   :  { %13556 = vmatmul.mubr.bf16.gmra.mrb[40].mxu0 %v13857_v42  ;;  %v13873_v42 = vld [vmem:[%s18081_s3 + $0xe8] sm:$0xff]  }
 0x2fa   :  { %13559 = vmatprep.mubr.bf16.mxu0 %v13858_v38  ;;  %v13874_v38 = vld [vmem:[%s18081_s3 + $0xf0] sm:$0xff]  }
 0x301   :  { %13560 = vmatmul.mubr.bf16.gmra.mrb[44].mxu0 %v13859_v45  ;;  %v13898_v45 = vld [vmem:[%s18082_s4 + $0x58] sm:$0xff]  }
 0x302   :  { %13563 = vmatprep.mubr.bf16.mxu0 %v13860_v43  ;;  %v13899_v43 = vld [vmem:[%s18082_s4 + $0x18] sm:$0xff]   ;;  %13015 = vmatprep.subr.bf16.mxu0 %v13898_v45  ;;  %v13905_v45 = vld [vmem:[%s18081_s3 + $0x188] sm:$0xff]  }
 0x303   :  { %13016 = vmatpush3.bf16.msra.mxu0 %v13899_v43  ;;  %v13906_v43 = vld [vmem:[%s18082_s4 + $0x70] sm:$0xff]  }
 0x309   :  { %13564 = vmatmul.mubr.bf16.gmra.mrb[48].mxu0 %v13861_v46  ;;  %v13879_v46 = vld [vmem:[%s18081_s3 + $0x118] sm:$0xff]  }
 0x30a   :  { %13567 = vmatprep.mubr.bf16.mxu0 %v13862_v21  ;;  %v13880_v21 = vld [vmem:[%s18081_s3 + $0x120] sm:$0xff]  }
 0x311   :  { %13568 = vmatmul.mubr.bf16.gmra.mrb[52].mxu0 %v13863_v41  ;;  %v13881_v41 = vld [vmem:[%s18081_s3 + $0x128] sm:$0xff]  }
 0x312   :  { %13571 = vmatprep.mubr.bf16.mxu0 %v13864_v44  ;;  %v13882_v44 = vld [vmem:[%s18081_s3 + $0x130] sm:$0xff]  }
 0x319   :  { %13572 = vmatmul.mubr.bf16.gmra.mrb[56].mxu0 %v13865_v31  ;;  %v13883_v31 = vld [vmem:[%s18081_s3 + $0x138] sm:$0xff]  }
 0x31a   :  { %13575 = vmatprep.mubr.bf16.mxu0 %v13866_v33  ;;  %v13900_v33 = vld [vmem:[%s18082_s4 + $0x60] sm:$0xff]  }
 0x31b   :  { %13017 = vmatprep.subr.bf16.mxu0 %v13900_v33 }
 0x321   :  { %13576 = vmatmul.mubr.bf16.gmra.mrb[60].mxu0 %v13867_v34  ;;  %v13884_v34 = vld [vmem:[%s18081_s3 + $0x140] sm:$0xff]  }
 0x322   :  { %13579 = vmatprep.mubr.bf16.mxu0 %v13868_v29  ;;  %v13901_v29 = vld [vmem:[%s18082_s4 + $0x20] sm:$0xff]  }
 0x323   :  { %13018 = vmatpush3.bf16.msra.mxu0 %v13901_v29 }
 0x329   :  { %13580 = vmatmul.mubr.bf16.gmra.mrb[64].mxu0 %v13869_v30  ;;  %v13885_v30 = vld [vmem:[%s18081_s3 + $0x148] sm:$0xff]  }
 0x32a   :  { %13583 = vmatprep.mubr.bf16.mxu0 %v13870_v20  ;;  %v13886_v20 = vld [vmem:[%s18081_s3 + $0x150] sm:$0xff]  }
 0x331   :  { %13584 = vmatmul.mubr.bf16.gmra.mrb[68].mxu0 %v13871_v37  ;;  %v13889_v37 = vld [vmem:[%s18081_s3 + $0x168] sm:$0xff]  }
 0x332   :  { %13587 = vmatprep.mubr.bf16.mxu0 %v13872_v32  ;;  %v13902_v32 = vld [vmem:[%s18082_s4 + $0x68] sm:$0xff]  }
 0x333   :  { %13019 = vmatprep.subr.bf16.mxu0 %v13902_v32  ;;  %v13908_v32 = vld [vmem:[%s18082_s4 + $0x78] sm:$0xff]  }
 0x339   :  { %13588 = vmatmul.mubr.bf16.gmra.mrb[72].mxu0 %v13873_v42  ;;  %v13892_v42 = vld [vmem:[%s18081_s3 + $0x170] sm:$0xff]  }
 0x33a   :  { %13591 = vmatprep.mubr.bf16.mxu0 %v13874_v38  ;;  %v13903_v38 = vld [vmem:[%s18082_s4 + $0x28] sm:$0xff]  }
 0x33b   :  { %13020 = vmatpush3.bf16.msra.mxu0 %v13903_v38 }
 0x33c   :  { %13021 = vmatprep.subr.bf16.mxu0 %v13906_v43 }
 0x341   :  { %13592 = vmatmul.mubr.bf16.gmra.mrb[76].mxu0 %v13875_v40  ;;  %v13893_v40 = vld [vmem:[%s18081_s3 + $0x178] sm:$0xff]  }
 0x342   :  { %13595 = vmatprep.mubr.bf16.mxu0 %v13876_v47  ;;  %v13904_v47 = vld [vmem:[%s18081_s3 + $0x180] sm:$0xff]  }
 0x349   :  { %13596 = vmatmul.mubr.bf16.gmra.mrb[80].mxu0 %v13877_v23  ;;  %v13907_v23 = vld [vmem:[%s18082_s4 + $0x30] sm:$0xff]  }
 0x34a   :  { %13599 = vmatprep.mubr.bf16.mxu0 %v13878_v22  ;;  %13022 = vmatpush3.bf16.msra.mxu0 %v13907_v23 }
 0x34b   :  { %13023 = vmatprep.subr.bf16.mxu0 %v13908_v32 }
 0x351   :  { %13600 = vmatmul.mubr.bf16.gmra.mrb[84].mxu0 %v13879_v46 }
 0x352   :  { %13603 = vmatprep.mubr.bf16.mxu0 %v13880_v21 }
 0x359   :  { %13604 = vmatmul.mubr.bf16.gmra.mrb[88].mxu0 %v13881_v41 }
 0x35a   :  { %13607 = vmatprep.mubr.bf16.mxu0 %v13882_v44 }
 0x361   :  { %13608 = vmatmul.mubr.bf16.gmra.mrb[92].mxu0 %v13883_v31 }
 0x362   :  { %13611 = vmatprep.mubr.bf16.mxu0 %v13884_v34 }
 0x369   :  { %13612 = vmatmul.mubr.bf16.gmra.mrb[96].mxu0 %v13885_v30 }
 0x36a   :  { %13615 = vmatprep.mubr.bf16.mxu0 %v13886_v20 }
 0x371   :  { %13616 = vmatmul.mubr.bf16.gmra.mrb[100].mxu0 %v13887_v39 }
 0x372   :  { %13619 = vmatprep.mubr.bf16.mxu0 %v13888_v36 }
 0x379   :  { %13620 = vmatmul.mubr.bf16.gmra.mrb[104].mxu0 %v13889_v37 }
 0x37a   :  { %13623 = vmatprep.mubr.bf16.mxu0 %v13892_v42  ;;  %v13909_v42 = vld [vmem:[%s18082_s4 + $0x38] sm:$0xff]  }
 0x37b   :  { %13024 = vmatpush3.bf16.msra.mxu0 %v13909_v42 }
 0x381   :  { %13624 = vmatmul.mubr.bf16.gmra.mrb[108].mxu0 %v13893_v40 }
 0x382   :  { %13627 = vmatprep.mubr.bf16.mxu0 %v13904_v47 }
 0x389   :  { %13628 = vmatmul.mubr.bf16.gmra.mrb[112].mxu0 %v13905_v45 }
 0x39c   :  { %v13533_v22 = vpop.f32.mrb[16].mxu0 }
 0x39d   :  { %v7860_v46 = vpop.f32.mrb[17].mxu0 }
 0x39e   :  { %v13534_v21 = vpop.f32.mrb[18].mxu0 }
 0x39f   :  { %v8260_v41 = vpack.c.bf16 %v13534_v21, %v13533_v22  ;;  %v7863_v44 = vpop.f32.mrb[19].mxu0 }
 0x3a0   :  { %v8259_v31 = vpack.c.bf16 %v7863_v44, %v7860_v46 }
 0x3a1   :  { %8311 = vst.msk [vmem:[#allocation2 + $0x8] sm:$0xff] %vm8309_vm2, %v8260_v41 }
 0x3a2   :  { %8310 = vst.msk [vmem:[#allocation2] sm:$0xff] %vm8309_vm2, %v8259_v31 }
 0x3a4   :  { %v13537_v33 = vpop.f32.mrb[20].mxu0 }
 0x3a5   :  { %v7876_v34 = vpop.f32.mrb[21].mxu0 }
 0x3a6   :  { %v13538_v29 = vpop.f32.mrb[22].mxu0 }
 0x3a7   :  { %v8262_v30 = vpack.c.bf16 %v13538_v29, %v13537_v33  ;;  %v7879_v20 = vpop.f32.mrb[23].mxu0 }
 0x3a8   :  { %v8261_v39 = vpack.c.bf16 %v7879_v20, %v7876_v34  ;;  %v8361_v36 = vld [vmem:[#allocation2 + $0x8] sm:$0xff] }
 0x3a9   :  { %8313 = vst.msk [vmem:[#allocation2 + $0x18] sm:$0xff] %vm8309_vm2, %v8262_v30  ;;  %8363 = vst.msk [vmem:[#allocation3 + $0x68] sm:$0xff] %vm8309_vm2, %v8361_v36  ;;  %v8360_v37 = vld [vmem:[#allocation2] sm:$0xff] }
 0x3aa   :  { %8312 = vst.msk [vmem:[#allocation2 + $0x10] sm:$0xff] %vm8309_vm2, %v8261_v39  ;;  %8362 = vst.msk [vmem:[#allocation3] sm:$0xff] %vm8309_vm2, %v8360_v37  ;;  %v13910_v39 = vld [vmem:[%s18082_s4 + $0xc0] sm:$0xff]  }
 0x3ab   :  { %13037 = vmatprep.subr.bf16.mxu0 %v13910_v39 }
 0x3ac   :  { %v13541_v38 = vpop.f32.mrb[24].mxu0 }
 0x3ad   :  { %v7892_v40 = vpop.f32.mrb[25].mxu0 }
 0x3ae   :  { %v13542_v47 = vpop.f32.mrb[26].mxu0 }
 0x3af   :  { %v8264_v45 = vpack.c.bf16 %v13542_v47, %v13541_v38  ;;  %v7895_v43 = vpop.f32.mrb[27].mxu0 }
 0x3b0   :  { %v8263_v23 = vpack.c.bf16 %v7895_v43, %v7892_v40  ;;  %v8365_v47 = vld [vmem:[#allocation2 + $0x18] sm:$0xff] }
 0x3b1   :  { %8315 = vst.msk [vmem:[#allocation2 + $0x28] sm:$0xff] %vm8309_vm2, %v8264_v45  ;;  %v8364_v43 = vld [vmem:[#allocation2 + $0x10] sm:$0xff] }
 0x3b2   :  { %8314 = vst.msk [vmem:[#allocation2 + $0x20] sm:$0xff] %vm8309_vm2, %v8263_v23 }
 0x3b4   :  { %v13545_v22 = vpop.f32.mrb[28].mxu0 }
 0x3b5   :  { %v7908_v46 = vpop.f32.mrb[29].mxu0 }
 0x3b6   :  { %v13546_v21 = vpop.f32.mrb[30].mxu0 }
 0x3b7   :  { %v8266_v41 = vpack.c.bf16 %v13546_v21, %v13545_v22  ;;  %v7911_v44 = vpop.f32.mrb[31].mxu0 }
 0x3b8   :  { %v8265_v31 = vpack.c.bf16 %v7911_v44, %v7908_v46  ;;  %v8378_v33 = vld [vmem:[#allocation2 + $0x28] sm:$0xff] }
 0x3b9   :  { %8317 = vst.msk [vmem:[#allocation2 + $0x38] sm:$0xff] %vm8309_vm2, %v8266_v41  ;;  %8380 = vst.msk [vmem:[#allocation3 + $0x70] sm:$0xff] %vm8309_vm2, %v8378_v33  ;;  %v8377_v34 = vld [vmem:[#allocation2 + $0x20] sm:$0xff] }
 0x3ba   :  { %8316 = vst.msk [vmem:[#allocation2 + $0x30] sm:$0xff] %vm8309_vm2, %v8265_v31  ;;  %8379 = vst.msk [vmem:[#allocation3 + $0x8] sm:$0xff] %vm8309_vm2, %v8377_v34 }
 0x3bc   :  { %v13549_v29 = vpop.f32.mrb[32].mxu0 }
 0x3bd   :  { %v7924_v30 = vpop.f32.mrb[33].mxu0 }
 0x3be   :  { %v13550_v20 = vpop.f32.mrb[34].mxu0 }
 0x3bf   :  { %v8268_v36 = vpack.c.bf16 %v13550_v20, %v13549_v29  ;;  %v7927_v37 = vpop.f32.mrb[35].mxu0 }
 0x3c0   :  { %v8267_v32 = vpack.c.bf16 %v7927_v37, %v7924_v30  ;;  %v8382_v42 = vld [vmem:[#allocation2 + $0x38] sm:$0xff] }
 0x3c1   :  { %8319 = vst.msk [vmem:[#allocation2 + $0x48] sm:$0xff] %vm8309_vm2, %v8268_v36  ;;  %8387 = vrot.lane.b32.xlu1 %v8382_v42, %s14098_s10  ;;  %v8381_v38 = vld [vmem:[#allocation2 + $0x30] sm:$0xff] }
 0x3c2   :  { %8318 = vst.msk [vmem:[#allocation2 + $0x40] sm:$0xff] %vm8309_vm2, %v8267_v32  ;;  %8385 = vrot.lane.b32.xlu0 %v8381_v38, %s14098_s10 }
 0x3c4   :  { %v13553_v40 = vpop.f32.mrb[36].mxu0 }
 0x3c5   :  { %8370 = vrot.lane.b32.xlu1 %v8365_v47, %s14098_s10  ;;  %v7940_v45 = vpop.f32.mrb[37].mxu0 }
 0x3c6   :  { %8368 = vrot.lane.b32.xlu0 %v8364_v43, %s14098_s10  ;;  %v13554_v23 = vpop.f32.mrb[38].mxu0 }
 0x3c7   :  { %v8270_v22 = vpack.c.bf16 %v13554_v23, %v13553_v40  ;;  %v7943_v46 = vpop.f32.mrb[39].mxu0 }
 0x3c8   :  { %v8269_v21 = vpack.c.bf16 %v7943_v46, %v7940_v45  ;;  %v8394_v41 = vld [vmem:[#allocation2 + $0x48] sm:$0xff] }
 0x3c9   :  { %8321 = vst.msk [vmem:[#allocation2 + $0x58] sm:$0xff] %vm8309_vm2, %v8270_v22  ;;  %v8393_v44 = vld [vmem:[#allocation2 + $0x40] sm:$0xff]  ;;  %8396 = vst.msk [vmem:[#allocation3 + $0x78] sm:$0xff] %vm8309_vm2, %v8394_v41 }
 0x3ca   :  { %8320 = vst.msk [vmem:[#allocation2 + $0x50] sm:$0xff] %vm8309_vm2, %v8269_v21  ;;  %8395 = vst.msk [vmem:[#allocation3 + $0x10] sm:$0xff] %vm8309_vm2, %v8393_v44 }
 0x3cc   :  { %v13557_v31 = vpop.f32.mrb[40].mxu0 }
 0x3cd   :  { %v7956_v33 = vpop.f32.mrb[41].mxu0 }
 0x3ce   :  { %v13558_v34 = vpop.f32.mrb[42].mxu0 }
 0x3cf   :  { %v8272_v29 = vpack.c.bf16 %v13558_v34, %v13557_v31  ;;  %v7959_v30 = vpop.f32.mrb[43].mxu0 }
 0x3d0   :  { %v8271_v20 = vpack.c.bf16 %v7959_v30, %v7956_v33  ;;  %v8398_v32 = vld [vmem:[#allocation2 + $0x58] sm:$0xff] }
 0x3d1   :  { %8323 = vst.msk [vmem:[#allocation2 + $0x68] sm:$0xff] %vm8309_vm2, %v8272_v29  ;;  %v8397_v39 = vld [vmem:[#allocation2 + $0x50] sm:$0xff] }
 0x3d2   :  { %8322 = vst.msk [vmem:[#allocation2 + $0x60] sm:$0xff] %vm8309_vm2, %v8271_v20  ;;  %8401 = vrot.lane.b32.xlu1 %v8397_v39, %s14098_s10 }
 0x3d4   :  { %v13561_v36 = vpop.f32.mrb[44].mxu0 }
 0x3d5   :  { %v7972_v37 = vpop.f32.mrb[45].mxu0 }
 0x3d6   :  { %8403 = vrot.lane.b32.xlu1 %v8398_v32, %s14098_s10  ;;  %v13562_v42 = vpop.f32.mrb[46].mxu0 }
 0x3d7   :  { %v8274_v38 = vpack.c.bf16 %v13562_v42, %v13561_v36  ;;  %v7975_v40 = vpop.f32.mrb[47].mxu0 }
 0x3d8   :  { %v8273_v47 = vpack.c.bf16 %v7975_v40, %v7972_v37  ;;  %v8410_v45 = vld [vmem:[#allocation2 + $0x68] sm:$0xff] }
 0x3d9   :  { %8325 = vst.msk [vmem:[#allocation2 + $0x78] sm:$0xff] %vm8309_vm2, %v8274_v38  ;;  %v8409_v43 = vld [vmem:[#allocation2 + $0x60] sm:$0xff]  ;;  %8412 = vst.msk [vmem:[#allocation3 + $0x80] sm:$0xff] %vm8309_vm2, %v8410_v45 }
 0x3da   :  { %8324 = vst.msk [vmem:[#allocation2 + $0x70] sm:$0xff] %vm8309_vm2, %v8273_v47  ;;  %8411 = vst.msk [vmem:[#allocation3 + $0x18] sm:$0xff] %vm8309_vm2, %v8409_v43 }
 0x3dc   :  { %v13565_v23 = vpop.f32.mrb[48].mxu0 }
 0x3dd   :  { %v7988_v22 = vpop.f32.mrb[49].mxu0 }
 0x3de   :  { %v13566_v46 = vpop.f32.mrb[50].mxu0 }
 0x3df   :  { %v8276_v21 = vpack.c.bf16 %v13566_v46, %v13565_v23  ;;  %v7991_v41 = vpop.f32.mrb[51].mxu0 }
 0x3e0   :  { %v8275_v44 = vpack.c.bf16 %v7991_v41, %v7988_v22  ;;  %v8414_v29 = vld [vmem:[#allocation2 + $0x78] sm:$0xff] }
 0x3e1   :  { %8327 = vst.msk [vmem:[#allocation2 + $0x88] sm:$0xff] %vm8309_vm2, %v8276_v21  ;;  %v8413_v31 = vld [vmem:[#allocation2 + $0x70] sm:$0xff] }
 0x3e2   :  { %8326 = vst.msk [vmem:[#allocation2 + $0x80] sm:$0xff] %vm8309_vm2, %v8275_v44  ;;  %8417 = vrot.lane.b32.xlu0 %v8413_v31, %s14098_s10 }
 0x3e4   :  { %v13569_v33 = vpop.f32.mrb[52].mxu0 }
 0x3e5   :  { %v8004_v34 = vpop.f32.mrb[53].mxu0 }
 0x3e6   :  { %8419 = vrot.lane.b32.xlu0 %v8414_v29, %s14098_s10  ;;  %v13570_v30 = vpop.f32.mrb[54].mxu0 }
 0x3e7   :  { %v8278_v20 = vpack.c.bf16 %v13570_v30, %v13569_v33  ;;  %v8007_v39 = vpop.f32.mrb[55].mxu0 }
 0x3e8   :  { %v8277_v36 = vpack.c.bf16 %v8007_v39, %v8004_v34  ;;  %v8426_v37 = vld [vmem:[#allocation2 + $0x88] sm:$0xff] }
 0x3e9   :  { %8329 = vst.msk [vmem:[#allocation2 + $0x98] sm:$0xff] %vm8309_vm2, %v8278_v20  ;;  %v8425_v32 = vld [vmem:[#allocation2 + $0x80] sm:$0xff]  ;;  %8428 = vst.msk [vmem:[#allocation3 + $0x88] sm:$0xff] %vm8309_vm2, %v8426_v37 }
 0x3ea   :  { %8328 = vst.msk [vmem:[#allocation2 + $0x90] sm:$0xff] %vm8309_vm2, %v8277_v36  ;;  %8427 = vst.msk [vmem:[#allocation3 + $0x20] sm:$0xff] %vm8309_vm2, %v8425_v32 }
 0x3ec   :  { %v13573_v42 = vpop.f32.mrb[56].mxu0 }
 0x3ed   :  { %v8020_v38 = vpop.f32.mrb[57].mxu0 }
 0x3ee   :  { %v13574_v40 = vpop.f32.mrb[58].mxu0 }
 0x3ef   :  { %v8280_v47 = vpack.c.bf16 %v13574_v40, %v13573_v42  ;;  %v8023_v45 = vpop.f32.mrb[59].mxu0 }
 0x3f0   :  { %v8279_v43 = vpack.c.bf16 %v8023_v45, %v8020_v38  ;;  %v8430_v21 = vld [vmem:[#allocation2 + $0x98] sm:$0xff] }
 0x3f1   :  { %8331 = vst.msk [vmem:[#allocation2 + $0xa8] sm:$0xff] %vm8309_vm2, %v8280_v47  ;;  %v8429_v23 = vld [vmem:[#allocation2 + $0x90] sm:$0xff] }
 0x3f2   :  { %8330 = vst.msk [vmem:[#allocation2 + $0xa0] sm:$0xff] %vm8309_vm2, %v8279_v43  ;;  %8433 = vrot.lane.b32.xlu1 %v8429_v23, %s14098_s10 }
 0x3f4   :  { %v13577_v22 = vpop.f32.mrb[60].mxu0 }
 0x3f5   :  { %v8036_v46 = vpop.f32.mrb[61].mxu0 }
 0x3f6   :  { %8435 = vrot.lane.b32.xlu1 %v8430_v21, %s14098_s10  ;;  %v13578_v41 = vpop.f32.mrb[62].mxu0 }
 0x3f7   :  { %v8282_v44 = vpack.c.bf16 %v13578_v41, %v13577_v22  ;;  %v8039_v31 = vpop.f32.mrb[63].mxu0 }
 0x3f8   :  { %v8281_v33 = vpack.c.bf16 %v8039_v31, %v8036_v46  ;;  %v8442_v34 = vld [vmem:[#allocation2 + $0xa8] sm:$0xff] }
 0x3f9   :  { %8333 = vst.msk [vmem:[#allocation2 + $0xb8] sm:$0xff] %vm8309_vm2, %v8282_v44  ;;  %v8441_v29 = vld [vmem:[#allocation2 + $0xa0] sm:$0xff]  ;;  %8444 = vst.msk [vmem:[#allocation3 + $0x90] sm:$0xff] %vm8309_vm2, %v8442_v34 }
 0x3fa   :  { %8332 = vst.msk [vmem:[#allocation2 + $0xb0] sm:$0xff] %vm8309_vm2, %v8281_v33  ;;  %8443 = vst.msk [vmem:[#allocation3 + $0x28] sm:$0xff] %vm8309_vm2, %v8441_v29 }
 0x3fc   :  { %v13581_v30 = vpop.f32.mrb[64].mxu0 }
 0x3fd   :  { %v8052_v20 = vpop.f32.mrb[65].mxu0 }
 0x3fe   :  { %v13582_v39 = vpop.f32.mrb[66].mxu0 }
 0x3ff   :  { %v8284_v36 = vpack.c.bf16 %v13582_v39, %v13581_v30  ;;  %v8055_v37 = vpop.f32.mrb[67].mxu0 }
 0x400   :  { %v8283_v32 = vpack.c.bf16 %v8055_v37, %v8052_v20  ;;  %v8446_v47 = vld [vmem:[#allocation2 + $0xb8] sm:$0xff] }
 0x401   :  { %8335 = vst.msk [vmem:[#allocation2 + $0xc8] sm:$0xff] %vm8309_vm2, %v8284_v36  ;;  %v8445_v42 = vld [vmem:[#allocation2 + $0xb0] sm:$0xff] }
 0x402   :  { %8334 = vst.msk [vmem:[#allocation2 + $0xc0] sm:$0xff] %vm8309_vm2, %v8283_v32  ;;  %8449 = vrot.lane.b32.xlu0 %v8445_v42, %s14098_s10 }
 0x404   :  { %v13585_v38 = vpop.f32.mrb[68].mxu0 }
 0x405   :  { %v8068_v40 = vpop.f32.mrb[69].mxu0 }
 0x406   :  { %8451 = vrot.lane.b32.xlu0 %v8446_v47, %s14098_s10  ;;  %v13586_v45 = vpop.f32.mrb[70].mxu0 }
 0x407   :  { %v8286_v43 = vpack.c.bf16 %v13586_v45, %v13585_v38  ;;  %v8071_v23 = vpop.f32.mrb[71].mxu0 }
 0x408   :  { %v8285_v22 = vpack.c.bf16 %v8071_v23, %v8068_v40  ;;  %v8458_v46 = vld [vmem:[#allocation2 + $0xc8] sm:$0xff] }
 0x409   :  { %8337 = vst.msk [vmem:[#allocation2 + $0xd8] sm:$0xff] %vm8309_vm2, %v8286_v43  ;;  %v8457_v21 = vld [vmem:[#allocation2 + $0xc0] sm:$0xff]  ;;  %8460 = vst.msk [vmem:[#allocation3 + $0x98] sm:$0xff] %vm8309_vm2, %v8458_v46 }
 0x40a   :  { %8336 = vst.msk [vmem:[#allocation2 + $0xd0] sm:$0xff] %vm8309_vm2, %v8285_v22  ;;  %8459 = vst.msk [vmem:[#allocation3 + $0x30] sm:$0xff] %vm8309_vm2, %v8457_v21 }
 0x40c   :  { %v13589_v41 = vpop.f32.mrb[72].mxu0 }
 0x40d   :  { %v8084_v44 = vpop.f32.mrb[73].mxu0 }
 0x40e   :  { %v13590_v31 = vpop.f32.mrb[74].mxu0 }
 0x40f   :  { %v8288_v33 = vpack.c.bf16 %v13590_v31, %v13589_v41  ;;  %v8087_v34 = vpop.f32.mrb[75].mxu0 }
 0x410   :  { %v8287_v29 = vpack.c.bf16 %v8087_v34, %v8084_v44  ;;  %v8462_v36 = vld [vmem:[#allocation2 + $0xd8] sm:$0xff] }
 0x411   :  { %8339 = vst.msk [vmem:[#allocation2 + $0xe8] sm:$0xff] %vm8309_vm2, %v8288_v33  ;;  %v8461_v30 = vld [vmem:[#allocation2 + $0xd0] sm:$0xff] }
 0x412   :  { %8338 = vst.msk [vmem:[#allocation2 + $0xe0] sm:$0xff] %vm8309_vm2, %v8287_v29  ;;  %8465 = vrot.lane.b32.xlu1 %v8461_v30, %s14098_s10 }
 0x414   :  { %v13593_v20 = vpop.f32.mrb[76].mxu0 }
 0x415   :  { %v8100_v39 = vpop.f32.mrb[77].mxu0 }
 0x416   :  { %8467 = vrot.lane.b32.xlu1 %v8462_v36, %s14098_s10  ;;  %v13594_v37 = vpop.f32.mrb[78].mxu0 }
 0x417   :  { %v8290_v32 = vpack.c.bf16 %v13594_v37, %v13593_v20  ;;  %v8103_v42 = vpop.f32.mrb[79].mxu0 }
 0x418   :  { %v8289_v38 = vpack.c.bf16 %v8103_v42, %v8100_v39  ;;  %v8474_v40 = vld [vmem:[#allocation2 + $0xe8] sm:$0xff] }
 0x419   :  { %8341 = vst.msk [vmem:[#allocation2 + $0xf8] sm:$0xff] %vm8309_vm2, %v8290_v32  ;;  %v8473_v47 = vld [vmem:[#allocation2 + $0xe0] sm:$0xff]  ;;  %8476 = vst.msk [vmem:[#allocation3 + $0xa0] sm:$0xff] %vm8309_vm2, %v8474_v40 }
 0x41a   :  { %8340 = vst.msk [vmem:[#allocation2 + $0xf0] sm:$0xff] %vm8309_vm2, %v8289_v38  ;;  %8475 = vst.msk [vmem:[#allocation3 + $0x38] sm:$0xff] %vm8309_vm2, %v8473_v47 }
 0x41c   :  { %v13597_v45 = vpop.f32.mrb[80].mxu0 }
 0x41d   :  { %v8116_v43 = vpop.f32.mrb[81].mxu0 }
 0x41e   :  { %v13598_v23 = vpop.f32.mrb[82].mxu0 }
 0x41f   :  { %v8292_v22 = vpack.c.bf16 %v13598_v23, %v13597_v45  ;;  %v8119_v46 = vpop.f32.mrb[83].mxu0 }
 0x420   :  { %v8291_v21 = vpack.c.bf16 %v8119_v46, %v8116_v43  ;;  %v8478_v33 = vld [vmem:[#allocation2 + $0xf8] sm:$0xff] }
 0x421   :  { %8343 = vst.msk [vmem:[#allocation2 + $0x108] sm:$0xff] %vm8309_vm2, %v8292_v22  ;;  %v8477_v41 = vld [vmem:[#allocation2 + $0xf0] sm:$0xff] }
 0x422   :  { %8342 = vst.msk [vmem:[#allocation2 + $0x100] sm:$0xff] %vm8309_vm2, %v8291_v21  ;;  %8481 = vrot.lane.b32.xlu0 %v8477_v41, %s14098_s10 }
 0x424   :  { %v13601_v44 = vpop.f32.mrb[84].mxu0 }
 0x425   :  { %v8132_v31 = vpop.f32.mrb[85].mxu0 }
 0x426   :  { %8483 = vrot.lane.b32.xlu0 %v8478_v33, %s14098_s10  ;;  %v13602_v34 = vpop.f32.mrb[86].mxu0 }
 0x427   :  { %v8294_v29 = vpack.c.bf16 %v13602_v34, %v13601_v44  ;;  %v8135_v30 = vpop.f32.mrb[87].mxu0 }
 0x428   :  { %v8293_v20 = vpack.c.bf16 %v8135_v30, %v8132_v31  ;;  %v8490_v39 = vld [vmem:[#allocation2 + $0x108] sm:$0xff] }
 0x429   :  { %8345 = vst.msk [vmem:[#allocation2 + $0x118] sm:$0xff] %vm8309_vm2, %v8294_v29  ;;  %v8489_v36 = vld [vmem:[#allocation2 + $0x100] sm:$0xff]  ;;  %8492 = vst.msk [vmem:[#allocation3 + $0xa8] sm:$0xff] %vm8309_vm2, %v8490_v39 }
 0x42a   :  { %8344 = vst.msk [vmem:[#allocation2 + $0x110] sm:$0xff] %vm8309_vm2, %v8293_v20  ;;  %8491 = vst.msk [vmem:[#allocation3 + $0x40] sm:$0xff] %vm8309_vm2, %v8489_v36 }
 0x42c   :  { %v13605_v37 = vpop.f32.mrb[88].mxu0 }
 0x42d   :  { %v8148_v32 = vpop.f32.mrb[89].mxu0 }
 0x42e   :  { %v13606_v42 = vpop.f32.mrb[90].mxu0 }
 0x42f   :  { %v8296_v38 = vpack.c.bf16 %v13606_v42, %v13605_v37  ;;  %v8151_v40 = vpop.f32.mrb[91].mxu0  ;;  %v13911_v42 = vld [vmem:[%s18082_s4 + $0x80] sm:$0xff]  }
 0x430   :  { %v8295_v47 = vpack.c.bf16 %v8151_v40, %v8148_v32  ;;  %v8494_v21 = vld [vmem:[#allocation2 + $0x118] sm:$0xff] }
 0x431   :  { %8347 = vst.msk [vmem:[#allocation2 + $0x128] sm:$0xff] %vm8309_vm2, %v8296_v38  ;;  %v8493_v45 = vld [vmem:[#allocation2 + $0x110] sm:$0xff] }
 0x432   :  { %8346 = vst.msk [vmem:[#allocation2 + $0x120] sm:$0xff] %vm8309_vm2, %v8295_v47  ;;  %8497 = vrot.lane.b32.xlu1 %v8493_v45, %s14098_s10  ;;  %v13912_v47 = vld [vmem:[%s18082_s4 + $0xc8] sm:$0xff]  }
 0x433   :  { %v8388_v43 = vpop.permute.xlu1 %8387 }
 0x434   :  { %8392 = vst.msk [vmem:[#allocation3 + $0x70] sm:$0xff] %vm8374_vm3, %v8388_v43  ;;  %v8386_v23 = vpop.permute.xlu0 %8385  ;;  %v13609_v22 = vpop.f32.mrb[92].mxu0 }
 0x435   :  { %8391 = vst.msk [vmem:[#allocation3 + $0x8] sm:$0xff] %vm8374_vm3, %v8386_v23  ;;  %v8164_v46 = vpop.f32.mrb[93].mxu0 }
 0x436   :  { %8499 = vrot.lane.b32.xlu1 %v8494_v21, %s14098_s10  ;;  %v13610_v41 = vpop.f32.mrb[94].mxu0  ;;  %v13914_v21 = vld [vmem:[%s18082_s4 + $0xd0] sm:$0xff]  }
 0x437   :  { %v8298_v44 = vpack.c.bf16 %v13610_v41, %v13609_v22  ;;  %v8371_v31 = vpop.permute.xlu1 %8370  ;;  %v8167_v33 = vpop.f32.mrb[95].mxu0 }
 0x438   :  { %8376 = vst.msk [vmem:[#allocation3 + $0x68] sm:$0xff] %vm8374_vm3, %v8371_v31  ;;  %v8297_v34 = vpack.c.bf16 %v8167_v33, %v8164_v46  ;;  %v8369_v29 = vpop.permute.xlu0 %8368  ;;  %v8506_v30 = vld [vmem:[#allocation2 + $0x128] sm:$0xff] }
 0x439   :  { %8349 = vst.msk [vmem:[#allocation2 + $0x138] sm:$0xff] %vm8309_vm2, %v8298_v44  ;;  %v8505_v20 = vld [vmem:[#allocation2 + $0x120] sm:$0xff]  ;;  %8508 = vst.msk [vmem:[#allocation3 + $0xb0] sm:$0xff] %vm8309_vm2, %v8506_v30  ;;  %v13913_v46 = vld [vmem:[%s18082_s4 + $0x88] sm:$0xff]  }
 0x43a   :  { %8375 = vst.msk [vmem:[#allocation3] sm:$0xff] %vm8374_vm3, %v8369_v29  ;;  %v13915_v29 = vld [vmem:[%s18082_s4 + $0x90] sm:$0xff]  }
 0x43b   :  { %8348 = vst.msk [vmem:[#allocation2 + $0x130] sm:$0xff] %vm8309_vm2, %v8297_v34  ;;  %8507 = vst.msk [vmem:[#allocation3 + $0x48] sm:$0xff] %vm8309_vm2, %v8505_v20  ;;  %v8571_v23 = vld [vmem:[#allocation3 + $0x70] sm:$0xff] }
 0x43c   :  { %v13613_v39 = vpop.f32.mrb[96].mxu0  ;;  %v8558_v36 = vld [vmem:[#allocation3 + $0x8] sm:$0xff] }
 0x43d   :  { %v8180_v37 = vpop.f32.mrb[97].mxu0  ;;  %9228 = vmatprep.mubr.bf16.mxu0 %v8558_v36 }
 0x43e   :  { %v13614_v32 = vpop.f32.mrb[98].mxu0 }
 0x43f   :  { %v8300_v38 = vpack.c.bf16 %v13614_v32, %v13613_v39  ;;  %v8183_v40 = vpop.f32.mrb[99].mxu0  ;;  %v13916_v39 = vld [vmem:[%s18082_s4 + $0xd8] sm:$0xff]  }
 0x440   :  { %v8299_v45 = vpack.c.bf16 %v8183_v40, %v8180_v37  ;;  %v8510_v33 = vld [vmem:[#allocation2 + $0x138] sm:$0xff] }
 0x441   :  { %v8557_v43 = vld [vmem:[#allocation3] sm:$0xff]  ;;  %8351 = vst.msk [vmem:[#allocation2 + $0x148] sm:$0xff] %vm8309_vm2, %v8300_v38  ;;  %v8570_v32 = vld [vmem:[#allocation3 + $0x68] sm:$0xff] }
 0x442   :  { %9229 = vmatmul.mubr.bf16.vlgmr.msra.gmra.mrb[116].mxu0 %v8557_v43  ;;  %v8509_v22 = vld [vmem:[#allocation2 + $0x130] sm:$0xff]  ;;  %8350 = vst.msk [vmem:[#allocation2 + $0x140] sm:$0xff] %vm8309_vm2, %v8299_v45  ;;  %v13917_v40 = vld [vmem:[%s18082_s4 + $0x98] sm:$0xff]  }
 0x443   :  { %13038 = vmatpush3.bf16.msra.mxu0 %v13911_v42  ;;  %9236 = vmatprep.mubr.bf16.mxu0 %v8571_v23 }
 0x444   :  { %8513 = vrot.lane.b32.xlu0 %v8509_v22, %s14098_s10  ;;  %13039 = vmatprep.subr.bf16.mxu0 %v13912_v47  ;;  %v8402_v41 = vpop.permute.xlu1 %8401  ;;  %v13617_v44 = vpop.f32.mrb[100].mxu0  ;;  %v13918_v47 = vld [vmem:[%s18082_s4 + $0xe0] sm:$0xff]  }
 0x445   :  { %8407 = vst.msk [vmem:[#allocation3 + $0x10] sm:$0xff] %vm8374_vm3, %v8402_v41  ;;  %v8196_v31 = vpop.f32.mrb[101].mxu0  ;;  %v13919_v22 = vld [vmem:[%s18082_s4 + $0xa0] sm:$0xff]   ;;  %v13920_v41 = vld [vmem:[%s18082_s4 + $0xe8] sm:$0xff]  }
 0x446   :  { %v13618_v34 = vpop.f32.mrb[102].mxu0 }
 0x447   :  { %13040 = vmatpush3.bf16.msra.mxu0 %v13913_v46  ;;  %v8302_v30 = vpack.c.bf16 %v13618_v34, %v13617_v44  ;;  %v8199_v20 = vpop.f32.mrb[103].mxu0  ;;  %v13922_v34 = vld [vmem:[%s18082_s4 + $0xf0] sm:$0xff]  }
 0x448   :  { %8515 = vrot.lane.b32.xlu0 %v8510_v33, %s14098_s10  ;;  %13041 = vmatprep.subr.bf16.mxu0 %v13914_v21  ;;  %v8301_v36 = vpack.c.bf16 %v8199_v20, %v8196_v31  ;;  %v8404_v37 = vpop.permute.xlu1 %8403  ;;  %v8522_v42 = vld [vmem:[#allocation2 + $0x148] sm:$0xff] }
 0x449   :  { %8353 = vst.msk [vmem:[#allocation2 + $0x158] sm:$0xff] %vm8309_vm2, %v8302_v30  ;;  %v8521_v38 = vld [vmem:[#allocation2 + $0x140] sm:$0xff]  ;;  %8524 = vst.msk [vmem:[#allocation3 + $0xb8] sm:$0xff] %vm8309_vm2, %v8522_v42  ;;  %v13921_v33 = vld [vmem:[%s18082_s4 + $0xa8] sm:$0xff]  }
 0x44a   :  { %8408 = vst.msk [vmem:[#allocation3 + $0x78] sm:$0xff] %vm8374_vm3, %v8404_v37  ;;  %9237 = vmatmul.mubr.bf16.gmra.mrb[120].mxu0 %v8570_v32  ;;  %v13923_v37 = vld [vmem:[%s18082_s4 + $0xb0] sm:$0xff]  }
 0x44b   :  { %8352 = vst.msk [vmem:[#allocation2 + $0x150] sm:$0xff] %vm8309_vm2, %v8301_v36  ;;  %13042 = vmatpush3.bf16.msra.mxu0 %v13915_v29  ;;  %8523 = vst.msk [vmem:[#allocation3 + $0x50] sm:$0xff] %vm8309_vm2, %v8521_v38  ;;  %v13924_v38 = vld [vmem:[%s18082_s4 + $0xf8] sm:$0xff]  }
 0x44c   :  { %13043 = vmatprep.subr.bf16.mxu0 %v13916_v39  ;;  %v13621_v45 = vpop.f32.mrb[104].mxu0 }
 0x44d   :  { %v8212_v43 = vpop.f32.mrb[105].mxu0 }
 0x44e   :  { %v13622_v23 = vpop.f32.mrb[106].mxu0 }
 0x44f   :  { %13044 = vmatpush3.bf16.msra.mxu0 %v13917_v40  ;;  %v8304_v46 = vpack.c.bf16 %v13622_v23, %v13621_v45  ;;  %v8215_v21 = vpop.f32.mrb[107].mxu0  ;;  %v13925_v23 = vld [vmem:[%s18082_s4 + $0xb8] sm:$0xff]  }
 0x450   :  { %13045 = vmatprep.subr.bf16.mxu0 %v13918_v47  ;;  %v8303_v44 = vpack.c.bf16 %v8215_v21, %v8212_v43  ;;  %v8526_v39 = vld [vmem:[#allocation2 + $0x158] sm:$0xff] }
 0x451   :  { %8355 = vst.msk [vmem:[#allocation2 + $0x168] sm:$0xff] %vm8309_vm2, %v8304_v46 }
 0x452   :  { %v8525_v31 = vld [vmem:[#allocation2 + $0x150] sm:$0xff]  ;;  %8354 = vst.msk [vmem:[#allocation2 + $0x160] sm:$0xff] %vm8309_vm2, %v8303_v44  ;;  %v13927_v44 = vld [vmem:[%s18082_s4 + $0x100] sm:$0xff]  }
 0x453   :  { %13046 = vmatpush3.bf16.msra.mxu0 %v13919_v22  ;;  %8529 = vrot.lane.b32.xlu1 %v8525_v31, %s14098_s10  ;;  %v13926_v22 = vld [vmem:[%s18082_s4 + $0x140] sm:$0xff]  }
 0x454   :  { %13047 = vmatprep.subr.bf16.mxu0 %v13920_v41  ;;  %v8418_v29 = vpop.permute.xlu0 %8417  ;;  %v13625_v30 = vpop.f32.mrb[108].mxu0 }
 0x455   :  { %8423 = vst.msk [vmem:[#allocation3 + $0x18] sm:$0xff] %vm8374_vm3, %v8418_v29  ;;  %v8228_v20 = vpop.f32.mrb[109].mxu0 }
 0x456   :  { %v13626_v36 = vpop.f32.mrb[110].mxu0 }
 0x457   :  { %13048 = vmatpush3.bf16.msra.mxu0 %v13921_v33  ;;  %8531 = vrot.lane.b32.xlu1 %v8526_v39, %s14098_s10  ;;  %v8306_v32 = vpack.c.bf16 %v13626_v36, %v13625_v30  ;;  %v8231_v42 = vpop.f32.mrb[111].mxu0  ;;  %v13928_v33 = vld [vmem:[%s18082_s4 + $0x148] sm:$0xff]   ;;  %v8559_v30 = vld [vmem:[#allocation3 + $0x10] sm:$0xff] }
 0x458   :  { %13049 = vmatprep.subr.bf16.mxu0 %v13922_v34  ;;  %v8305_v40 = vpack.c.bf16 %v8231_v42, %v8228_v20  ;;  %v8420_v47 = vpop.permute.xlu0 %8419  ;;  %v8538_v45 = vld [vmem:[#allocation2 + $0x168] sm:$0xff] }
 0x459   :  { %8357 = vst.msk [vmem:[#allocation2 + $0x178] sm:$0xff] %vm8309_vm2, %v8306_v32  ;;  %v8537_v43 = vld [vmem:[#allocation2 + $0x160] sm:$0xff]  ;;  %8540 = vst.msk [vmem:[#allocation3 + $0xc0] sm:$0xff] %vm8309_vm2, %v8538_v45  ;;  %v13930_v32 = vld [vmem:[%s18082_s4 + $0x150] sm:$0xff]  }
 0x45a   :  { %8424 = vst.msk [vmem:[#allocation3 + $0x80] sm:$0xff] %vm8374_vm3, %v8420_v47  ;;  %v13932_v47 = vld [vmem:[%s18082_s4 + $0x158] sm:$0xff]   ;;  %v8572_v45 = vld [vmem:[#allocation3 + $0x78] sm:$0xff] }
 0x45b   :  { %8356 = vst.msk [vmem:[#allocation2 + $0x170] sm:$0xff] %vm8309_vm2, %v8305_v40  ;;  %13050 = vmatpush3.bf16.msra.mxu0 %v13923_v37  ;;  %8539 = vst.msk [vmem:[#allocation3 + $0x58] sm:$0xff] %vm8309_vm2, %v8537_v43  ;;  %v13929_v37 = vld [vmem:[%s18082_s4 + $0x108] sm:$0xff]   ;;  %v13931_v40 = vld [vmem:[%s18082_s4 + $0x110] sm:$0xff]  }
 0x45c   :  { %13051 = vmatprep.subr.bf16.mxu0 %v13924_v38  ;;  %v8560_v46 = vld [vmem:[#allocation3 + $0x18] sm:$0xff]  ;;  %v13629_v21 = vpop.f32.mrb[112].mxu0 }
 0x45d   :  { %9277 = vmatprep.mubr.bf16.mxu0 %v8560_v46  ;;  %v8244_v41 = vpop.f32.mrb[113].mxu0  ;;  %v13933_v46 = vld [vmem:[%s18082_s4 + $0x118] sm:$0xff]  }
 0x45e   :  { %v13630_v31 = vpop.f32.mrb[114].mxu0 }
 0x45f   :  { %13052 = vmatpush3.bf16.msra.mxu0 %v13925_v23  ;;  %v8308_v34 = vpack.c.bf16 %v13630_v31, %v13629_v21  ;;  %v8247_v29 = vpop.f32.mrb[115].mxu0  ;;  %v13934_v21 = vld [vmem:[%s18082_s4 + $0x160] sm:$0xff]   ;;  %v13937_v31 = vld [vmem:[%s18082_s4 + $0x128] sm:$0xff]  }
 0x460   :  { %13065 = vmatprep.subr.bf16.mxu0 %v13926_v22  ;;  %v8307_v39 = vpack.c.bf16 %v8247_v29, %v8244_v41  ;;  %v8542_v38 = vld [vmem:[#allocation2 + $0x178] sm:$0xff]  ;;  %v13935_v41 = vld [vmem:[%s18082_s4 + $0x120] sm:$0xff]   ;;  %v13939_v29 = vld [vmem:[%s18082_s4 + $0x130] sm:$0xff]  }
 0x461   :  { %v8573_v20 = vld [vmem:[#allocation3 + $0x80] sm:$0xff]  ;;  %8359 = vst.msk [vmem:[#allocation2 + $0x188] sm:$0xff] %vm8309_vm2, %v8308_v34 }
 0x462   :  { %9278 = vmatmul.mubr.bf16.vlgmr.msra.gmra.mrb[124].mxu0 %v8559_v30  ;;  %v8541_v36 = vld [vmem:[#allocation2 + $0x170] sm:$0xff]  ;;  %8358 = vst.msk [vmem:[#allocation2 + $0x180] sm:$0xff] %vm8309_vm2, %v8307_v39  ;;  %v13940_v30 = vld [vmem:[%s18082_s4 + $0x178] sm:$0xff]  }
 0x463   :  { %9285 = vmatprep.mubr.bf16.mxu0 %v8573_v20  ;;  %13066 = vmatpush3.bf16.msra.mxu0 %v13927_v44  ;;  %v13936_v44 = vld [vmem:[%s18082_s4 + $0x168] sm:$0xff]   ;;  %v13941_v39 = vld [vmem:[%s18082_s4 + $0x138] sm:$0xff]  }
 0x464   :  { %8545 = vrot.lane.b32.xlu0 %v8541_v36, %s14098_s10  ;;  %13067 = vmatprep.subr.bf16.mxu0 %v13928_v33  ;;  %v8434_v42 = vpop.permute.xlu1 %8433  ;;  %v13938_v33 = vld [vmem:[%s18082_s4 + $0x170] sm:$0xff]   ;;  %v13942_v36 = vld [vmem:[%s18082_s4 + $0x1c0] sm:$0xff]  }
 0x465   :  { %8439 = vst.msk [vmem:[#allocation3 + $0x20] sm:$0xff] %vm8374_vm3, %v8434_v42  ;;  %v13944_v42 = vld [vmem:[%s18082_s4 + $0x1c8] sm:$0xff]  }
 0x467   :  { %13068 = vmatpush3.bf16.msra.mxu0 %v13929_v37 }
 0x468   :  { %8547 = vrot.lane.b32.xlu0 %v8542_v38, %s14098_s10  ;;  %13069 = vmatprep.subr.bf16.mxu0 %v13930_v32  ;;  %v8436_v43 = vpop.permute.xlu1 %8435  ;;  %v8554_v23 = vld [vmem:[#allocation2 + $0x188] sm:$0xff]  ;;  %v13943_v32 = vld [vmem:[%s18082_s4 + $0x180] sm:$0xff]  }
 0x469   :  { %8440 = vst.msk [vmem:[#allocation3 + $0x88] sm:$0xff] %vm8374_vm3, %v8436_v43  ;;  %v8553_v22 = vld [vmem:[#allocation2 + $0x180] sm:$0xff] }
 0x46a   :  { %9286 = vmatmul.mubr.bf16.gmra.mrb[128].mxu0 %v8572_v45  ;;  %8556 = vst.msk [vmem:[#allocation3 + $0xc8] sm:$0xff] %vm8309_vm2, %v8554_v23  ;;  %8555 = vst.msk [vmem:[#allocation3 + $0x60] sm:$0xff] %vm8309_vm2, %v8553_v22  ;;  %v13946_v45 = vld [vmem:[%s18082_s4 + $0x1d0] sm:$0xff]   ;;  %v13948_v22 = vld [vmem:[%s18082_s4 + $0x1d8] sm:$0xff]  }
 0x46b   :  { %13070 = vmatpush3.bf16.msra.mxu0 %v13931_v40  ;;  %v13947_v23 = vld [vmem:[%s18082_s4 + $0x190] sm:$0xff]  }
 0x46c   :  { %13071 = vmatprep.subr.bf16.mxu0 %v13932_v47  ;;  %v8561_v38 = vld [vmem:[#allocation3 + $0x20] sm:$0xff]  ;;  %v13945_v47 = vld [vmem:[%s18082_s4 + $0x188] sm:$0xff]  }
 0x46f   :  { %13072 = vmatpush3.bf16.msra.mxu0 %v13933_v46 }
 0x470   :  { %13073 = vmatprep.subr.bf16.mxu0 %v13934_v21  ;;  %v8574_v46 = vld [vmem:[#allocation3 + $0x88] sm:$0xff] }
 0x473   :  { %13074 = vmatpush3.bf16.msra.mxu0 %v13935_v41  ;;  %v13949_v41 = vld [vmem:[%s18082_s4 + $0x198] sm:$0xff]  }
 0x474   :  { %13075 = vmatprep.subr.bf16.mxu0 %v13936_v44  ;;  %v8450_v34 = vpop.permute.xlu0 %8449  ;;  %v13950_v44 = vld [vmem:[%s18082_s4 + $0x1e0] sm:$0xff]  }
 0x475   :  { %8455 = vst.msk [vmem:[#allocation3 + $0x28] sm:$0xff] %vm8374_vm3, %v8450_v34  ;;  %v13953_v34 = vld [vmem:[%s18082_s4 + $0x1a8] sm:$0xff]  }
 0x477   :  { %13076 = vmatpush3.bf16.msra.mxu0 %v13937_v31  ;;  %v13951_v31 = vld [vmem:[%s18082_s4 + $0x1a0] sm:$0xff]  }
 0x478   :  { %13077 = vmatprep.subr.bf16.mxu0 %v13938_v33  ;;  %v8452_v20 = vpop.permute.xlu0 %8451  ;;  %v13952_v33 = vld [vmem:[%s18082_s4 + $0x1e8] sm:$0xff]  }
 0x479   :  { %8456 = vst.msk [vmem:[#allocation3 + $0x90] sm:$0xff] %vm8374_vm3, %v8452_v20  ;;  %v13955_v20 = vld [vmem:[%s18082_s4 + $0x1b0] sm:$0xff]  }
 0x47b   :  { %13078 = vmatpush3.bf16.msra.mxu0 %v13939_v29  ;;  %v13954_v29 = vld [vmem:[%s18082_s4 + $0x1f0] sm:$0xff]  }
 0x47c   :  { %13079 = vmatprep.subr.bf16.mxu0 %v13940_v30  ;;  %v8562_v37 = vld [vmem:[#allocation3 + $0x28] sm:$0xff] }
 0x47d   :  { %9326 = vmatprep.mubr.bf16.mxu0 %v8562_v37  ;;  %v13957_v37 = vld [vmem:[%s18082_s4 + $0x1b8] sm:$0xff]  }
 0x47f   :  { %13080 = vmatpush3.bf16.msra.mxu0 %v13941_v39  ;;  %v13956_v39 = vld [vmem:[%s18082_s4 + $0x1f8] sm:$0xff]  }
 0x480   :  { %13093 = vmatprep.subr.bf16.mxu0 %v13942_v36  ;;  %v8575_v40 = vld [vmem:[#allocation3 + $0x90] sm:$0xff] }
 0x482   :  { %9327 = vmatmul.mubr.bf16.vlgmr.msra.gmra.mrb[132].mxu0 %v8561_v38  ;;  %v13959_v38 = vld [vmem:[%s18082_s4 + $0x200] sm:$0xff]  }
 0x483   :  { %9334 = vmatprep.mubr.bf16.mxu0 %v8575_v40  ;;  %13094 = vmatpush3.bf16.msra.mxu0 %v13943_v32  ;;  %v13958_v32 = vld [vmem:[%s18082_s4 + $0x240] sm:$0xff]   ;;  %v13960_v40 = vld [vmem:[%s18082_s4 + $0x248] sm:$0xff]  }
 0x484   :  { %13095 = vmatprep.subr.bf16.mxu0 %v13944_v42  ;;  %v8466_v43 = vpop.permute.xlu1 %8465 }
 0x485   :  { %8471 = vst.msk [vmem:[#allocation3 + $0x30] sm:$0xff] %vm8374_vm3, %v8466_v43  ;;  %v13961_v43 = vld [vmem:[%s18082_s4 + $0x208] sm:$0xff]  }
 0x487   :  { %13096 = vmatpush3.bf16.msra.mxu0 %v13945_v47 }
 0x488   :  { %13097 = vmatprep.subr.bf16.mxu0 %v13946_v45  ;;  %v8468_v21 = vpop.permute.xlu1 %8467 }
 0x489   :  { %8472 = vst.msk [vmem:[#allocation3 + $0x98] sm:$0xff] %vm8374_vm3, %v8468_v21  ;;  %v13964_v21 = vld [vmem:[%s18082_s4 + $0x258] sm:$0xff]  }
 0x48a   :  { %9335 = vmatmul.mubr.bf16.gmra.mrb[136].mxu0 %v8574_v46  ;;  %v13963_v46 = vld [vmem:[%s18082_s4 + $0x210] sm:$0xff]  }
 0x48b   :  { %13098 = vmatpush3.bf16.msra.mxu0 %v13947_v23  ;;  %v13962_v23 = vld [vmem:[%s18082_s4 + $0x250] sm:$0xff]  }
 0x48c   :  { %13099 = vmatprep.subr.bf16.mxu0 %v13948_v22  ;;  %v8563_v47 = vld [vmem:[#allocation3 + $0x30] sm:$0xff] }
 0x48f   :  { %13100 = vmatpush3.bf16.msra.mxu0 %v13949_v41 }
 0x490   :  { %13101 = vmatprep.subr.bf16.mxu0 %v13950_v44  ;;  %v8576_v41 = vld [vmem:[#allocation3 + $0x98] sm:$0xff] }
 0x493   :  { %13102 = vmatpush3.bf16.msra.mxu0 %v13951_v31  ;;  %v13965_v31 = vld [vmem:[%s18082_s4 + $0x218] sm:$0xff]  }
 0x494   :  { %13103 = vmatprep.subr.bf16.mxu0 %v13952_v33  ;;  %v8482_v30 = vpop.permute.xlu0 %8481  ;;  %v13966_v33 = vld [vmem:[%s18082_s4 + $0x260] sm:$0xff]  }
 0x495   :  { %8487 = vst.msk [vmem:[#allocation3 + $0x38] sm:$0xff] %vm8374_vm3, %v8482_v30  ;;  %v13969_v30 = vld [vmem:[%s18082_s4 + $0x228] sm:$0xff]  }
 0x497   :  { %13104 = vmatpush3.bf16.msra.mxu0 %v13953_v34  ;;  %v13967_v34 = vld [vmem:[%s18082_s4 + $0x220] sm:$0xff]  }
 0x498   :  { %13105 = vmatprep.subr.bf16.mxu0 %v13954_v29  ;;  %v8484_v36 = vpop.permute.xlu0 %8483  ;;  %v13968_v29 = vld [vmem:[%s18082_s4 + $0x268] sm:$0xff]  }
 0x499   :  { %8488 = vst.msk [vmem:[#allocation3 + $0xa0] sm:$0xff] %vm8374_vm3, %v8484_v36  ;;  %v13971_v36 = vld [vmem:[%s18082_s4 + $0x230] sm:$0xff]  }
 0x49b   :  { %13106 = vmatpush3.bf16.msra.mxu0 %v13955_v20  ;;  %v13970_v20 = vld [vmem:[%s18082_s4 + $0x270] sm:$0xff]  }
 0x49c   :  { %13107 = vmatprep.subr.bf16.mxu0 %v13956_v39  ;;  %v8564_v42 = vld [vmem:[#allocation3 + $0x38] sm:$0xff] }
 0x49d   :  { %9375 = vmatprep.mubr.bf16.mxu0 %v8564_v42  ;;  %v13973_v42 = vld [vmem:[%s18082_s4 + $0x238] sm:$0xff]  }
 0x49f   :  { %13108 = vmatpush3.bf16.msra.mxu0 %v13957_v37  ;;  %v13972_v37 = vld [vmem:[%s18082_s4 + $0x278] sm:$0xff]  }
 0x4a0   :  { %13121 = vmatprep.subr.bf16.mxu0 %v13958_v32  ;;  %v8577_v45 = vld [vmem:[#allocation3 + $0xa0] sm:$0xff] }
 0x4a2   :  { %9376 = vmatmul.mubr.bf16.vlgmr.msra.gmra.mrb[140].mxu0 %v8563_v47  ;;  %v13975_v47 = vld [vmem:[%s18082_s4 + $0x280] sm:$0xff]  }
 0x4a3   :  { %9383 = vmatprep.mubr.bf16.mxu0 %v8577_v45  ;;  %13122 = vmatpush3.bf16.msra.mxu0 %v13959_v38  ;;  %v13974_v38 = vld [vmem:[%s18082_s4 + $0x2c0] sm:$0xff]   ;;  %v13976_v45 = vld [vmem:[%s18082_s4 + $0x2c8] sm:$0xff]  }
 0x4a4   :  { %13123 = vmatprep.subr.bf16.mxu0 %v13960_v40  ;;  %v8498_v22 = vpop.permute.xlu1 %8497 }
 0x4a5   :  { %8503 = vst.msk [vmem:[#allocation3 + $0x40] sm:$0xff] %vm8374_vm3, %v8498_v22  ;;  %v13977_v22 = vld [vmem:[%s18082_s4 + $0x288] sm:$0xff]  }
 0x4a7   :  { %13124 = vmatpush3.bf16.msra.mxu0 %v13961_v43 }
 0x4a8   :  { %13125 = vmatprep.subr.bf16.mxu0 %v13962_v23  ;;  %v8500_v44 = vpop.permute.xlu1 %8499 }
 0x4a9   :  { %8504 = vst.msk [vmem:[#allocation3 + $0xa8] sm:$0xff] %vm8374_vm3, %v8500_v44  ;;  %v13980_v44 = vld [vmem:[%s18082_s4 + $0x2d8] sm:$0xff]  }
 0x4aa   :  { %9384 = vmatmul.mubr.bf16.gmra.mrb[144].mxu0 %v8576_v41  ;;  %v13979_v41 = vld [vmem:[%s18082_s4 + $0x290] sm:$0xff]  }
 0x4ab   :  { %13126 = vmatpush3.bf16.msra.mxu0 %v13963_v46  ;;  %v13978_v46 = vld [vmem:[%s18082_s4 + $0x2d0] sm:$0xff]  }
 0x4ac   :  { %13127 = vmatprep.subr.bf16.mxu0 %v13964_v21  ;;  %v8565_v43 = vld [vmem:[#allocation3 + $0x40] sm:$0xff] }
 0x4af   :  { %13128 = vmatpush3.bf16.msra.mxu0 %v13965_v31 }
 0x4b0   :  { %13129 = vmatprep.subr.bf16.mxu0 %v13966_v33  ;;  %v8578_v31 = vld [vmem:[#allocation3 + $0xa8] sm:$0xff] }
 0x4b3   :  { %13130 = vmatpush3.bf16.msra.mxu0 %v13967_v34  ;;  %v13981_v34 = vld [vmem:[%s18082_s4 + $0x298] sm:$0xff]  }
 0x4b4   :  { %13131 = vmatprep.subr.bf16.mxu0 %v13968_v29  ;;  %v13982_v29 = vld [vmem:[%s18082_s4 + $0x2e0] sm:$0xff]  }
 0x4b6   :  { %v8514_v39 = vpop.permute.xlu0 %8513 }
 0x4b7   :  { %8519 = vst.msk [vmem:[#allocation3 + $0x48] sm:$0xff] %vm8374_vm3, %v8514_v39  ;;  %13132 = vmatpush3.bf16.msra.mxu0 %v13969_v30  ;;  %v13983_v30 = vld [vmem:[%s18082_s4 + $0x2a0] sm:$0xff]   ;;  %v13985_v39 = vld [vmem:[%s18082_s4 + $0x2a8] sm:$0xff]  }
 0x4b8   :  { %13133 = vmatprep.subr.bf16.mxu0 %v13970_v20  ;;  %v13984_v20 = vld [vmem:[%s18082_s4 + $0x2e8] sm:$0xff]  }
 0x4ba   :  { %v8516_v32 = vpop.permute.xlu0 %8515 }
 0x4bb   :  { %8520 = vst.msk [vmem:[#allocation3 + $0xb0] sm:$0xff] %vm8374_vm3, %v8516_v32  ;;  %13134 = vmatpush3.bf16.msra.mxu0 %v13971_v36  ;;  %v13986_v36 = vld [vmem:[%s18082_s4 + $0x2f0] sm:$0xff]  }
 0x4bc   :  { %13135 = vmatprep.subr.bf16.mxu0 %v13972_v37  ;;  %v13987_v32 = vld [vmem:[%s18082_s4 + $0x2b0] sm:$0xff]  }
 0x4be   :  { %v8566_v40 = vld [vmem:[#allocation3 + $0x48] sm:$0xff] }
 0x4bf   :  { %13136 = vmatpush3.bf16.msra.mxu0 %v13973_v42  ;;  %9424 = vmatprep.mubr.bf16.mxu0 %v8566_v40  ;;  %v13988_v42 = vld [vmem:[%s18082_s4 + $0x2f8] sm:$0xff]  }
 0x4c0   :  { %13149 = vmatprep.subr.bf16.mxu0 %v13974_v38  ;;  %v13989_v40 = vld [vmem:[%s18082_s4 + $0x2b8] sm:$0xff]  }
 0x4c2   :  { %9425 = vmatmul.mubr.bf16.vlgmr.msra.gmra.mrb[148].mxu0 %v8565_v43  ;;  %v8579_v23 = vld [vmem:[#allocation3 + $0xb0] sm:$0xff]  ;;  %v13991_v43 = vld [vmem:[%s18082_s4 + $0x308] sm:$0xff]  }
 0x4c3   :  { %9432 = vmatprep.mubr.bf16.mxu0 %v8579_v23  ;;  %13150 = vmatpush3.bf16.msra.mxu0 %v13975_v47  ;;  %v13990_v47 = vld [vmem:[%s18082_s4 + $0x300] sm:$0xff]  }
 0x4c4   :  { %13151 = vmatprep.subr.bf16.mxu0 %v13976_v45 }
 0x4c5   :  { %v8530_v21 = vpop.permute.xlu1 %8529 }
 0x4c6   :  { %8535 = vst.msk [vmem:[#allocation3 + $0x50] sm:$0xff] %vm8374_vm3, %v8530_v21  ;;  %v13993_v21 = vld [vmem:[%s18082_s4 + $0x318] sm:$0xff]  }
 0x4c7   :  { %13152 = vmatpush3.bf16.msra.mxu0 %v13977_v22 }
 0x4c8   :  { %13153 = vmatprep.subr.bf16.mxu0 %v13978_v46  ;;  %v13992_v46 = vld [vmem:[%s18082_s4 + $0x310] sm:$0xff]  }
 0x4c9   :  { %v8532_v33 = vpop.permute.xlu1 %8531 }
 0x4ca   :  { %9433 = vmatmul.mubr.bf16.gmra.mrb[152].mxu0 %v8578_v31  ;;  %8536 = vst.msk [vmem:[#allocation3 + $0xb8] sm:$0xff] %vm8374_vm3, %v8532_v33  ;;  %v8582_v31 = vld [vmem:[#allocation3 + $0xc8] sm:$0xff] }
 0x4cb   :  { %13154 = vmatpush3.bf16.msra.mxu0 %v13979_v41  ;;  %v8569_v41 = vld [vmem:[#allocation3 + $0x60] sm:$0xff] }
 0x4cc   :  { %13155 = vmatprep.subr.bf16.mxu0 %v13980_v44 }
 0x4cd   :  { %v8567_v23 = vld [vmem:[#allocation3 + $0x50] sm:$0xff] }
 0x4cf   :  { %13156 = vmatpush3.bf16.msra.mxu0 %v13981_v34 }
 0x4d0   :  { %13157 = vmatprep.subr.bf16.mxu0 %v13982_v29 }
 0x4d1   :  { %v8580_v44 = vld [vmem:[#allocation3 + $0xb8] sm:$0xff] }
 0x4d3   :  { %13158 = vmatpush3.bf16.msra.mxu0 %v13983_v30 }
 0x4d4   :  { %13159 = vmatprep.subr.bf16.mxu0 %v13984_v20 }
 0x4d6   :  { %v8546_v37 = vpop.permute.xlu0 %8545 }
 0x4d7   :  { %8551 = vst.msk [vmem:[#allocation3 + $0x58] sm:$0xff] %vm8374_vm3, %v8546_v37  ;;  %13160 = vmatpush3.bf16.msra.mxu0 %v13985_v39 }
 0x4d8   :  { %13161 = vmatprep.subr.bf16.mxu0 %v13986_v36 }
 0x4da   :  { %v8548_v38 = vpop.permute.xlu0 %8547 }
 0x4db   :  { %8552 = vst.msk [vmem:[#allocation3 + $0xc0] sm:$0xff] %vm8374_vm3, %v8548_v38  ;;  %13162 = vmatpush3.bf16.msra.mxu0 %v13987_v32 }
 0x4dc   :  { %13163 = vmatprep.subr.bf16.mxu0 %v13988_v42 }
 0x4de   :  { %v8568_v45 = vld [vmem:[#allocation3 + $0x58] sm:$0xff] }
 0x4df   :  { %13164 = vmatpush3.bf16.msra.mxu0 %v13989_v40  ;;  %9473 = vmatprep.mubr.bf16.mxu0 %v8568_v45 }
 0x4e0   :  { %13631 = vmatprep.subr.bf16.mxu0 %v13990_v47 }
 0x4e2   :  { %9474 = vmatmul.mubr.bf16.vlgmr.msra.gmra.mrb[156].mxu0 %v8567_v23  ;;  %v8581_v22 = vld [vmem:[#allocation3 + $0xc0] sm:$0xff] }
 0x4e3   :  { %9481 = vmatprep.mubr.bf16.mxu0 %v8581_v22  ;;  %13632 = vmatpush3.bf16.msra.mxu0 %v13990_v47  ;;  %v12485_v47 = vld [vmem:[%s18083_s5] ss:$0 sm:$0xff] }
 0x4e4   :  { %13633 = vmatprep.subr.bf16.mxu0 %v13991_v43 }
 0x4e7   :  { %13634 = vmatpush3.bf16.msra.mxu0 %v13991_v43 }
 0x4e8   :  { %13635 = vmatprep.subr.bf16.mxu0 %v13992_v46 }
 0x4ea   :  { %9482 = vmatmul.mubr.bf16.gmra.mrb[160].mxu0 %v8580_v44 }
 0x4eb   :  { %13636 = vmatpush3.bf16.msra.mxu0 %v13992_v46  ;;  %13639 = vmatprep.mubr.msk.bf16.mxu0 %vm8309_vm2, %v8569_v41 }
 0x4ec   :  { %13637 = vmatprep.subr.bf16.mxu0 %v13993_v21 }
 0x4ef   :  { %13638 = vmatpush3.bf16.msra.mxu0 %v13993_v21 }
 0x4f2   :  { %13640 = vmatmul.mubr.msk.bf16.vlgmr.msra.gmra.mrb[164].mxu0 %vm8309_vm2, %v8582_v31 }
 0x515   :  { %v13025_v33 = vpop.f32.mrb[116].mxu0 }
 0x516   :  { %v13026_v34 = vpop.f32.mrb[117].mxu0 }
 0x517   :  { %v13027_v29 = vadd.f32 %v13026_v34, %v13025_v33  ;;  %v13028_v30 = vpop.f32.mrb[118].mxu0 }
 0x518   :  { %v13029_v20 = vpop.f32.mrb[119].mxu0 }
 0x519   :  { %v13030_v39 = vadd.f32 %v13029_v20, %v13028_v30  ;;  %v9231_v23 = vadd.f32 %v13027_v29, %v12485_v47 }
 0x51b   :  { %v9234_v41 = vadd.f32 %v13030_v39, %v12485_v47 }
 0x51d   :  { %v13031_v36 = vpop.f32.mrb[120].mxu0 }
 0x51e   :  { %v13032_v37 = vpop.f32.mrb[121].mxu0 }
 0x51f   :  { %v13033_v32 = vadd.f32 %v13032_v37, %v13031_v36  ;;  %v13034_v42 = vpop.f32.mrb[122].mxu0 }
 0x520   :  { %v13035_v38 = vpop.f32.mrb[123].mxu0 }
 0x521   :  { %v13036_v40 = vadd.f32 %v13035_v38, %v13034_v42  ;;  %v9239_v20 = vadd.f32 %v13033_v32, %v12485_v47 }
 0x523   :  { %v9242_v38 = vadd.f32 %v13036_v40, %v12485_v47 }
 0x535   :  { %v13053_v45 = vpop.f32.mrb[124].mxu0 }
 0x536   :  { %v13054_v43 = vpop.f32.mrb[125].mxu0 }
 0x537   :  { %v13055_v22 = vadd.f32 %v13054_v43, %v13053_v45  ;;  %v13056_v46 = vpop.f32.mrb[126].mxu0 }
 0x538   :  { %v13057_v21 = vpop.f32.mrb[127].mxu0 }
 0x539   :  { %v9280_v44 = vadd.f32 %v13055_v22, %v9231_v23  ;;  %v13058_v31 = vadd.f32 %v13057_v21, %v13056_v46 }
 0x53b   :  { %v9283_v33 = vadd.f32 %v13058_v31, %v9234_v41 }
 0x53d   :  { %v13059_v34 = vpop.f32.mrb[128].mxu0 }
 0x53e   :  { %v13060_v30 = vpop.f32.mrb[129].mxu0 }
 0x53f   :  { %v13061_v36 = vadd.f32 %v13060_v30, %v13059_v34  ;;  %v13062_v37 = vpop.f32.mrb[130].mxu0 }
 0x540   :  { %v13063_v42 = vpop.f32.mrb[131].mxu0 }
 0x541   :  { %v9288_v28 = vadd.f32 %v13061_v36, %v9239_v20  ;;  %v13064_v19 = vadd.f32 %v13063_v42, %v13062_v37 }
 0x543   :  { %v9291_v27 = vadd.f32 %v13064_v19, %v9242_v38 }
 0x555   :  { %v13081_v18 = vpop.f32.mrb[132].mxu0 }
 0x556   :  { %v13082_v26 = vpop.f32.mrb[133].mxu0 }
 0x557   :  { %v13083_v29 = vadd.f32 %v13082_v26, %v13081_v18  ;;  %v13084_v45 = vpop.f32.mrb[134].mxu0 }
 0x558   :  { %v13085_v43 = vpop.f32.mrb[135].mxu0 }
 0x559   :  { %v9329_v17 = vadd.f32 %v13083_v29, %v9280_v44  ;;  %v13086_v39 = vadd.f32 %v13085_v43, %v13084_v45 }
 0x55b   :  { %v9332_v23 = vadd.f32 %v13086_v39, %v9283_v33 }
 0x55d   :  { %v13087_v22 = vpop.f32.mrb[136].mxu0 }
 0x55e   :  { %v13088_v46 = vpop.f32.mrb[137].mxu0 }
 0x55f   :  { %v13089_v21 = vadd.f32 %v13088_v46, %v13087_v22  ;;  %v13090_v41 = vpop.f32.mrb[138].mxu0 }
 0x560   :  { %v13091_v32 = vpop.f32.mrb[139].mxu0 }
 0x561   :  { %v9337_v31 = vadd.f32 %v13089_v21, %v9288_v28  ;;  %v13092_v34 = vadd.f32 %v13091_v32, %v13090_v41 }
 0x563   :  { %v9340_v30 = vadd.f32 %v13092_v34, %v9291_v27 }
 0x575   :  { %v13109_v40 = vpop.f32.mrb[140].mxu0 }
 0x576   :  { %v13110_v47 = vpop.f32.mrb[141].mxu0 }
 0x577   :  { %v13111_v20 = vadd.f32 %v13110_v47, %v13109_v40  ;;  %v13112_v19 = vpop.f32.mrb[142].mxu0 }
 0x578   :  { %v13113_v36 = vpop.f32.mrb[143].mxu0 }
 0x579   :  { %v9378_v37 = vadd.f32 %v13111_v20, %v9329_v17  ;;  %v13114_v18 = vadd.f32 %v13113_v36, %v13112_v19 }
 0x57b   :  { %v9381_v26 = vadd.f32 %v13114_v18, %v9332_v23 }
 0x57d   :  { %v13115_v42 = vpop.f32.mrb[144].mxu0 }
 0x57e   :  { %v13116_v44 = vpop.f32.mrb[145].mxu0 }
 0x57f   :  { %v13117_v38 = vadd.f32 %v13116_v44, %v13115_v42  ;;  %v13118_v33 = vpop.f32.mrb[146].mxu0 }
 0x580   :  { %v13119_v29 = vpop.f32.mrb[147].mxu0 }
 0x581   :  { %v9386_v45 = vadd.f32 %v13117_v38, %v9337_v31  ;;  %v13120_v43 = vadd.f32 %v13119_v29, %v13118_v33 }
 0x583   :  { %v9389_v39 = vadd.f32 %v13120_v43, %v9340_v30 }
 0x595   :  { %v13137_v22 = vpop.f32.mrb[148].mxu0 }
 0x596   :  { %v13138_v28 = vpop.f32.mrb[149].mxu0 }
 0x597   :  { %v13139_v46 = vadd.f32 %v13138_v28, %v13137_v22  ;;  %v13140_v27 = vpop.f32.mrb[150].mxu0 }
 0x598   :  { %v13141_v21 = vpop.f32.mrb[151].mxu0 }
 0x599   :  { %v9427_v41 = vadd.f32 %v13139_v46, %v9378_v37  ;;  %v13142_v32 = vadd.f32 %v13141_v21, %v13140_v27 }
 0x59b   :  { %v9430_v34 = vadd.f32 %v13142_v32, %v9381_v26 }
 0x59d   :  { %v13143_v40 = vpop.f32.mrb[152].mxu0 }
 0x59e   :  { %v13144_v17 = vpop.f32.mrb[153].mxu0 }
 0x59f   :  { %v13145_v47 = vadd.f32 %v13144_v17, %v13143_v40  ;;  %v13146_v23 = vpop.f32.mrb[154].mxu0 }
 0x5a0   :  { %v13147_v20 = vpop.f32.mrb[155].mxu0 }
 0x5a1   :  { %v9435_v19 = vadd.f32 %v13145_v47, %v9386_v45  ;;  %v13148_v36 = vadd.f32 %v13147_v20, %v13146_v23 }
 0x5a3   :  { %v9438_v18 = vadd.f32 %v13148_v36, %v9389_v39 }
 0x5b5   :  { %v13165_v42 = vpop.f32.mrb[156].mxu0 }
 0x5b6   :  { %v13166_v31 = vpop.f32.mrb[157].mxu0 }
 0x5b7   :  { %v13167_v44 = vadd.f32 %v13166_v31, %v13165_v42  ;;  %v13168_v30 = vpop.f32.mrb[158].mxu0 }
 0x5b8   :  { %v13169_v38 = vpop.f32.mrb[159].mxu0 }
 0x5b9   :  { %v13170_v33 = vadd.f32 %v13169_v38, %v13168_v30  ;;  %v9476_v29 = vadd.f32 %v13167_v44, %v9427_v41 }
 0x5bb   :  { %v9479_v43 = vadd.f32 %v13170_v33, %v9430_v34 }
 0x5bd   :  { %v13171_v22 = vpop.f32.mrb[160].mxu0 }
 0x5be   :  { %v13172_v37 = vpop.f32.mrb[161].mxu0 }
 0x5bf   :  { %v13173_v28 = vadd.f32 %v13172_v37, %v13171_v22  ;;  %v13174_v26 = vpop.f32.mrb[162].mxu0 }
 0x5c0   :  { %v13175_v46 = vpop.f32.mrb[163].mxu0 }
 0x5c1   :  { %v13176_v27 = vadd.f32 %v13175_v46, %v13174_v26  ;;  %v9484_v21 = vadd.f32 %v13173_v28, %v9435_v19 }
 0x5c3   :  { %v9487_v32 = vadd.f32 %v13176_v27, %v9438_v18 }
 0x5c5   :  { %v13641_v40 = vpop.f32.mrb[164].mxu0 }
 0x5c6   :  { %v9533_v45 = vadd.f32 %v13641_v40, %v9484_v21  ;;  %v9524_v17 = vpop.f32.mrb[165].mxu0 }
 0x5c7   :  { %v9525_v39 = vadd.f32 %v9524_v17, %v9476_v29  ;;  %v13642_v47 = vpop.f32.mrb[166].mxu0 }
 0x5c8   :  { %v9536_v23 = vadd.f32 %v13642_v47, %v9487_v32  ;;  %v9527_v20 = vpop.f32.mrb[167].mxu0  ;;  %v9541_v42 = vmax.f32 %v9533_v45, 0.0 }
 0x5c9   :  { %v9528_v36 = vadd.f32 %v9527_v20, %v9479_v43  ;;  %v9539_v41 = vmax.f32 %v9525_v39, 0.0 }
 0x5ca   :  { %v9542_v31 = vmax.f32 %v9536_v23, 0.0 }
 0x5cb   :  { %v9540_v34 = vmax.f32 %v9528_v36, 0.0 }
 0x5cc   :  { %v9544_v44 = vpack.c.bf16 %v9542_v31, %v9541_v42 }
 0x5cd   :  { %v9543_v30 = vpack.c.bf16 %v9540_v34, %v9539_v41 }
 0x5ce   :  { %14092 = dma.done.wait [#allocation10], 25600 }
 0x5cf   :  { %14093 = vsyncadd [#allocation10], 4294941696  ;;  %13198 = vmatprep.subr.bf16.mxu1 %v14211_v8  ;;  %v14099_v19 = vmov 0.0   ;;  %vm14100_vm4 = vmmov 0   ;;  %vm9837_vm5 = vcmask 261120   ;;  %v13994_v8 = vld [vmem:[%s18084_s6] sm:$0xff]  }
 0x5d0   :  { %13643 = vmatprep.subr.bf16.mxu0 %v14099_v19  ;;  %13647 = vmatprep.mubr.msk.bf16.mxu0 %vm14100_vm4, %v14099_v19  ;;  %v18255_v37 = vld [vmem:[#allocation18_spill] sm:$0xff]  ;;  %v18256_v26 = vld [vmem:[#allocation25_spill] sm:$0xff]  ;;  %v18257_v27 = vld [vmem:[#allocation19_spill] sm:$0xff] }
 0x5d1   :  { %13644 = vmatpush3.bf16.msra.mxu0 %v9543_v30  ;;  %13199 = vmatpush3.bf16.msra.mxu1 %v14171_v0  ;;  %v13995_v0 = vld [vmem:[%s18084_s6 + $0x8] sm:$0xff]   ;;  %v18258_v21 = vld [vmem:[#allocation26_spill] sm:$0xff]  ;;  %v18260_v39 = vld [vmem:[#allocation27_spill] sm:$0xff] }
 0x5d2   :  { %13645 = vmatprep.subr.bf16.mxu0 %v14099_v19  ;;  %13200 = vmatprep.subr.bf16.mxu1 %v14216_v9  ;;  %v14003_v9 = vld [vmem:[%s18084_s6 + $0x48] sm:$0xff]   ;;  %v18263_v30 = vld [vmem:[#allocation22_spill] sm:$0xff] }
 0x5d3   :  { %v18259_v17 = vld [vmem:[#allocation20_spill] sm:$0xff]  ;;  %v18261_v23 = vld [vmem:[#allocation21_spill] sm:$0xff] }
 0x5d4   :  { %v18262_v36 = vld [vmem:[#allocation28_spill] sm:$0xff] }
 0x5d5   :  { %13646 = vmatpush3.bf16.msra.mxu0 %v9544_v44  ;;  %13201 = vmatpush3.bf16.msra.mxu1 %v14176_v1  ;;  %v13996_v1 = vld [vmem:[%s18084_s6 + $0x10] sm:$0xff]  }
 0x5d6   :  { %13202 = vmatprep.subr.bf16.mxu1 %v14221_v10  ;;  %13264 = vmatprep.subr.bf16.mxu0 %v14451_v56  ;;  %v14004_v10 = vld [vmem:[%s18084_s6 + $0x50] sm:$0xff]  }
 0x5d8   :  { %13648 = vmatmul.mubr.msk.bf16.vlgmr.msra.gmra.mrb[168].mxu0 %vm9837_vm5, %v13994_v8 }
 0x5d9   :  { %13651 = vmatprep.mubr.msk.bf16.mxu0 %vm14100_vm4, %v14099_v19  ;;  %13203 = vmatpush3.bf16.msra.mxu1 %v14181_v2  ;;  %v13997_v2 = vld [vmem:[%s18084_s6 + $0x18] sm:$0xff]  }
 0x5da   :  { %13204 = vmatprep.subr.bf16.mxu1 %v14226_v11  ;;  %13265 = vmatpush3.bf16.msra.mxu0 %v14411_v48  ;;  %v14005_v11 = vld [vmem:[%s18084_s6 + $0x58] sm:$0xff]  }
 0x5db   :  { %13266 = vmatprep.subr.bf16.mxu0 %v14456_v57 }
 0x5dd   :  { %13205 = vmatpush3.bf16.msra.mxu1 %v14186_v3  ;;  %v13998_v3 = vld [vmem:[%s18084_s6 + $0x20] sm:$0xff]  }
 0x5de   :  { %13206 = vmatprep.subr.bf16.mxu1 %v14231_v12  ;;  %13267 = vmatpush3.bf16.msra.mxu0 %v14416_v49  ;;  %v14006_v12 = vld [vmem:[%s18084_s6 + $0x60] ss:$0 sps:$4 sm:$0xff]  }
 0x5df   :  { %13268 = vmatprep.subr.bf16.mxu0 %v14461_v58 }
 0x5e0   :  { %13652 = vmatmul.mubr.msk.bf16.gmra.mrb[172].mxu0 %vm9837_vm5, %v13995_v0 }
 0x5e1   :  { %13655 = vmatprep.mubr.msk.bf16.mxu0 %vm14100_vm4, %v14099_v19  ;;  %13207 = vmatpush3.bf16.msra.mxu1 %v14191_v4  ;;  %v13999_v4 = vld [vmem:[%s18084_s6 + $0x28] sm:$0xff]  }
 0x5e2   :  { %13208 = vmatprep.subr.bf16.mxu1 %v14236_v13  ;;  %13269 = vmatpush3.bf16.msra.mxu0 %v14421_v50 }
 0x5e3   :  { %13270 = vmatprep.subr.bf16.mxu0 %v14466_v59 }
 0x5e5   :  { %13209 = vmatpush3.bf16.msra.mxu1 %v14196_v5  ;;  %v14000_v5 = vld [vmem:[%s18084_s6 + $0x30] sm:$0xff]  }
 0x5e6   :  { %13210 = vmatprep.subr.bf16.mxu1 %v14241_v14  ;;  %13271 = vmatpush3.bf16.msra.mxu0 %v14426_v51 }
 0x5e7   :  { %13272 = vmatprep.subr.bf16.mxu0 %v14471_v60 }
 0x5e8   :  { %13656 = vmatmul.mubr.msk.bf16.gmra.mrb[176].mxu0 %vm9837_vm5, %v13996_v1  ;;  %v18264_v1 = vld [vmem:[#allocation29_spill] sm:$0xff] }
 0x5e9   :  { %13659 = vmatprep.mubr.msk.bf16.mxu0 %vm14100_vm4, %v14099_v19  ;;  %13211 = vmatpush3.bf16.msra.mxu1 %v14201_v6  ;;  %v14001_v6 = vld [vmem:[%s18084_s6 + $0x38] sm:$0xff]  }
 0x5ea   :  { %13212 = vmatprep.subr.bf16.mxu1 %v14246_v15  ;;  %13273 = vmatpush3.bf16.msra.mxu0 %v14431_v52 }
 0x5eb   :  { %13274 = vmatprep.subr.bf16.mxu0 %v14476_v61 }
 0x5ed   :  { %13213 = vmatpush3.bf16.msra.mxu1 %v14206_v7  ;;  %v14002_v7 = vld [vmem:[%s18084_s6 + $0x40] sm:$0xff]  }
 0x5ee   :  { %13220 = vmatprep.subr.bf16.mxu1 %v14291_v24  ;;  %13275 = vmatpush3.bf16.msra.mxu0 %v14436_v53 }
 0x5ef   :  { %13276 = vmatprep.subr.bf16.mxu0 %v14481_v62 }
 0x5f0   :  { %13660 = vmatmul.mubr.msk.bf16.gmra.mrb[180].mxu0 %vm9837_vm5, %v13997_v2 }
 0x5f1   :  { %13663 = vmatprep.mubr.msk.bf16.mxu0 %vm14100_vm4, %v14099_v19 }
 0x5f2   :  { %13277 = vmatpush3.bf16.msra.mxu0 %v14441_v54 }
 0x5f3   :  { %13278 = vmatprep.subr.bf16.mxu0 %v14486_v63 }
 0x5f6   :  { %13279 = vmatpush3.bf16.msra.mxu0 %v14446_v55 }
 0x5f7   :  { %13308 = vmatprep.subr.bf16.mxu0 %v14611_v35 }
 0x5f8   :  { %13664 = vmatmul.mubr.msk.bf16.gmra.mrb[184].mxu0 %vm9837_vm5, %v13998_v3  ;;  %v18265_v3 = vld [vmem:[#allocation23_spill] sm:$0xff] }
 0x5f9   :  { %13667 = vmatprep.mubr.msk.bf16.mxu0 %vm14100_vm4, %v14099_v19 }
 0x600   :  { %13668 = vmatmul.mubr.msk.bf16.gmra.mrb[188].mxu0 %vm9837_vm5, %v13999_v4  ;;  %v18266_v4 = vld [vmem:[#allocation63_spill] sm:$0xff] }
 0x601   :  { %13671 = vmatprep.mubr.msk.bf16.mxu0 %vm14100_vm4, %v14099_v19 }
 0x608   :  { %13672 = vmatmul.mubr.msk.bf16.gmra.mrb[192].mxu0 %vm9837_vm5, %v14000_v5 }
 0x609   :  { %13675 = vmatprep.mubr.msk.bf16.mxu0 %vm14100_vm4, %v14099_v19 }
 0x610   :  { %13676 = vmatmul.mubr.msk.bf16.gmra.mrb[196].mxu0 %vm9837_vm5, %v14001_v6  ;;  %v18267_v6 = vld [vmem:[#allocation30_spill] sm:$0xff] }
 0x611   :  { %13679 = vmatprep.mubr.msk.bf16.mxu0 %vm14100_vm4, %v14099_v19 }
 0x618   :  { %13680 = vmatmul.mubr.msk.bf16.gmra.mrb[200].mxu0 %vm9837_vm5, %v14002_v7 }
 0x619   :  { %13683 = vmatprep.mubr.msk.bf16.mxu0 %vm14100_vm4, %v14099_v19 }
 0x620   :  { %13684 = vmatmul.mubr.msk.bf16.gmra.mrb[204].mxu0 %vm9837_vm5, %v14003_v9  ;;  %v18268_v9 = vld [vmem:[#allocation71_spill] sm:$0xff] }
 0x621   :  { %13687 = vmatprep.mubr.msk.bf16.mxu0 %vm14100_vm4, %v14099_v19 }
 0x628   :  { %13688 = vmatmul.mubr.msk.bf16.gmra.mrb[208].mxu0 %vm9837_vm5, %v14004_v10 }
 0x629   :  { %13691 = vmatprep.mubr.msk.bf16.mxu0 %vm14100_vm4, %v14099_v19 }
 0x630   :  { %13692 = vmatmul.mubr.msk.bf16.gmra.mrb[212].mxu0 %vm9837_vm5, %v14005_v11 }
 0x631   :  { %13695 = vmatprep.mubr.msk.bf16.mxu0 %vm14100_vm4, %v14099_v19 }
 0x638   :  { %13696 = vmatmul.mubr.msk.bf16.gmra.mrb[216].mxu0 %vm9837_vm5, %v14006_v12 }
 0x6ab   :  { %v9911_v13 = vpop.f32.mrb[168].mxu0 }
 0x6ac   :  { %v13649_v14 = vpop.f32.mrb[169].mxu0 }
 0x6ad   :  { %v9914_v15 = vpop.f32.mrb[170].mxu0  ;;  %v18269_v14 = vld [vmem:[#allocation24_spill] sm:$0xff] }
 0x6ae   :  { %v12797_v24 = vpack.c.bf16 %v9914_v15, %v9911_v13  ;;  %v13650_v35 = vpop.f32.mrb[171].mxu0 }
 0x6b0   :  { %12798 = vst [vmem:[#allocation4] sm:$0xff] %v12797_v24   ;;  %v18270_v24 = vld [vmem:[#allocation64_spill] sm:$0xff] }
 0x6b3   :  { %v9919_v48 = vpop.f32.mrb[172].mxu0 }
 0x6b4   :  { %v13653_v49 = vpop.f32.mrb[173].mxu0 }
 0x6b5   :  { %v9922_v50 = vpop.f32.mrb[174].mxu0  ;;  %v18272_v49 = vld [vmem:[#allocation72_spill] sm:$0xff] }
 0x6b6   :  { %v12802_v51 = vpack.c.bf16 %v9922_v50, %v9919_v48  ;;  %v13654_v52 = vpop.f32.mrb[175].mxu0  ;;  %v18271_v48 = vld [vmem:[#allocation39_spill] sm:$0xff] }
 0x6b7   :  { %v10139_v53 = vld [vmem:[#allocation4] sm:$0xff]  }
 0x6b8   :  { %10140 = vst [vmem:[#allocation5] sm:$0xff] %v10139_v53   ;;  %12914 = vst [vmem:[#allocation4 + $0x8] sm:$0xff] %v12802_v51   ;;  %v18273_v51 = vld [vmem:[#allocation31_spill] sm:$0xff]  ;;  %v18274_v53 = vld [vmem:[#allocation40_spill] sm:$0xff] }
 0x6bb   :  { %v9927_v54 = vpop.f32.mrb[176].mxu0 }
 0x6bc   :  { %v13657_v55 = vpop.f32.mrb[177].mxu0 }
 0x6bd   :  { %v9930_v56 = vpop.f32.mrb[178].mxu0 }
 0x6be   :  { %v12807_v57 = vpack.c.bf16 %v9930_v56, %v9927_v54  ;;  %v13658_v58 = vpop.f32.mrb[179].mxu0  ;;  %v18275_v54 = vld [vmem:[#allocation65_spill] sm:$0xff] }
 0x6bf   :  { %v10189_v59 = vld [vmem:[#allocation5] sm:$0xff]  ;;  %v18276_v56 = vld [vmem:[#allocation73_spill] sm:$0xff] }
 0x6c0   :  { %v10143_v60 = vld [vmem:[#allocation4 + $0x8] sm:$0xff]   ;;  %v12640_v61 = vcombine.low %v10189_v59, %v10189_v59  ;;  %v12641_v62 = vcombine.high %v10189_v59, %v10189_v59  ;;  %12915 = vst [vmem:[#allocation4 + $0x10] sm:$0xff] %v12807_v57  }
 0x6c1   :  { %10144 = vst [vmem:[#allocation5 + $0x8] sm:$0xff] %v10143_v60  }
 0x6c2   :  { %10329 = vmatprep.mubr.bf16.mxu1 %v12641_v62 }
 0x6c3   :  { %10330 = vmatmul.mubr.bf16.vlgmr.msra.gmra.mrb[0].mxu1 %v12640_v61  ;;  %v9935_v63 = vpop.f32.mrb[180].mxu0  ;;  %v18277_v61 = vld [vmem:[#allocation32_spill] sm:$0xff] }
 0x6c4   :  { %13221 = vmatpush3.bf16.msra.mxu1 %v14251_v16  ;;  %v13661_v18 = vpop.f32.mrb[181].mxu0 }
 0x6c5   :  { %13222 = vmatprep.subr.bf16.mxu1 %v14296_v25  ;;  %v9938_v38 = vpop.f32.mrb[182].mxu0  ;;  %v18279_v18 = vld [vmem:[#allocation66_spill] sm:$0xff] }
 0x6c6   :  { %v12812_v33 = vpack.c.bf16 %v9938_v38, %v9935_v63  ;;  %v13662_v29 = vpop.f32.mrb[183].mxu0  ;;  %v18278_v63 = vld [vmem:[#allocation41_spill] sm:$0xff]  ;;  %v18280_v38 = vld [vmem:[#allocation74_spill] sm:$0xff] }
 0x6c7   :  { %v10147_v22 = vld [vmem:[#allocation4 + $0x10] sm:$0xff]  }
 0x6c8   :  { %v10190_v43 = vld [vmem:[#allocation5 + $0x8] sm:$0xff]  ;;  %13223 = vmatpush3.bf16.msra.mxu1 %v18255_v37  ;;  %10148 = vst [vmem:[#allocation5 + $0x10] sm:$0xff] %v10147_v22   ;;  %12916 = vst [vmem:[#allocation4 + $0x18] sm:$0xff] %v12812_v33   ;;  %v18282_v22 = vld [vmem:[#allocation42_spill] sm:$0xff] }
 0x6c9   :  { %v12643_v28 = vcombine.high %v10190_v43, %v10190_v43  ;;  %13224 = vmatprep.subr.bf16.mxu1 %v18256_v26  ;;  %v12642_v35 = vcombine.low %v10190_v43, %v10190_v43  ;;  %v18281_v29 = vld [vmem:[#allocation33_spill] sm:$0xff]  ;;  %v18283_v37 = vld [vmem:[#allocation67_spill] sm:$0xff] }
 0x6ca   :  { %v18284_v26 = vld [vmem:[#allocation75_spill] sm:$0xff] }
 0x6cb   :  { %10369 = vmatprep.mubr.bf16.mxu1 %v12643_v28  ;;  %v9943_v46 = vpop.f32.mrb[184].mxu0 }
 0x6cc   :  { %13225 = vmatpush3.bf16.msra.mxu1 %v18257_v27  ;;  %v13665_v16 = vpop.f32.mrb[185].mxu0 }
 0x6cd   :  { %13226 = vmatprep.subr.bf16.mxu1 %v18258_v21  ;;  %v9946_v25 = vpop.f32.mrb[186].mxu0  ;;  %v18285_v21 = vld [vmem:[#allocation34_spill] sm:$0xff] }
 0x6ce   :  { %v12817_v32 = vpack.c.bf16 %v9946_v25, %v9943_v46  ;;  %v13666_v40 = vpop.f32.mrb[187].mxu0  ;;  %v18286_v25 = vld [vmem:[#allocation43_spill] sm:$0xff] }
 0x6cf   :  { %v10151_v45 = vld [vmem:[#allocation4 + $0x18] sm:$0xff]   ;;  %v18288_v40 = vld [vmem:[#allocation76_spill] sm:$0xff] }
 0x6d0   :  { %13227 = vmatpush3.bf16.msra.mxu1 %v18259_v17  ;;  %10152 = vst [vmem:[#allocation5 + $0x18] sm:$0xff] %v10151_v45   ;;  %12917 = vst [vmem:[#allocation4 + $0x20] sm:$0xff] %v12817_v32   ;;  %v17735_v7 = vld [vmem:[#allocation5 + $0x10] sm:$0xff]  ;;  %v18287_v32 = vld [vmem:[#allocation68_spill] sm:$0xff] }
 0x6d1   :  { %13228 = vmatprep.subr.bf16.mxu1 %v18260_v39  ;;  %v12645_v15 = vcombine.high %v17735_v7, %v17735_v7  ;;  %v18289_v17 = vld [vmem:[#allocation35_spill] sm:$0xff] }
 0x6d3   :  { %v9951_v47 = vpop.f32.mrb[188].mxu0 }
 0x6d4   :  { %13229 = vmatpush3.bf16.msra.mxu1 %v18261_v23  ;;  %v13669_v20 = vpop.f32.mrb[189].mxu0  ;;  %v18291_v23 = vld [vmem:[#allocation69_spill] sm:$0xff] }
 0x6d5   :  { %13230 = vmatprep.subr.bf16.mxu1 %v18262_v36  ;;  %v9954_v42 = vpop.f32.mrb[190].mxu0  ;;  %v18292_v36 = vld [vmem:[#allocation77_spill] sm:$0xff] }
 0x6d6   :  { %v12822_v31 = vpack.c.bf16 %v9954_v42, %v9951_v47  ;;  %v13670_v41 = vpop.f32.mrb[191].mxu0  ;;  %v18290_v47 = vld [vmem:[#allocation44_spill] sm:$0xff] }
 0x6d7   :  { %v10192_v34 = vld [vmem:[#allocation5 + $0x18] sm:$0xff] }
 0x6d8   :  { %v10155_v44 = vld [vmem:[#allocation4 + $0x20] sm:$0xff]   ;;  %13231 = vmatpush3.bf16.msra.mxu1 %v18263_v30  ;;  %v12646_v8 = vcombine.low %v10192_v34, %v10192_v34  ;;  %v12647_v0 = vcombine.high %v10192_v34, %v10192_v34  ;;  %12918 = vst [vmem:[#allocation4 + $0x28] sm:$0xff] %v12822_v31  }
 0x6d9   :  { %10156 = vst [vmem:[#allocation5 + $0x20] sm:$0xff] %v10155_v44   ;;  %13232 = vmatprep.subr.bf16.mxu1 %v18264_v1  ;;  %v18293_v44 = vld [vmem:[#allocation36_spill] sm:$0xff]  ;;  %v18296_v1 = vld [vmem:[#allocation102_spill] sm:$0xff] }
 0x6da   :  { %10449 = vmatprep.mubr.bf16.mxu0 %v12647_v0  ;;  %v18295_v0 = vld [vmem:[#allocation70_spill] sm:$0xff] }
 0x6db   :  { %10450 = vmatmul.mubr.bf16.vlgmr.msra.gmra.mrb[220].mxu0 %v12646_v8  ;;  %v9959_v2 = vpop.f32.mrb[192].mxu0  ;;  %v18294_v8 = vld [vmem:[#allocation45_spill] sm:$0xff] }
 0x6dc   :  { %13233 = vmatpush3.bf16.msra.mxu1 %v18265_v3  ;;  %13309 = vmatpush3.bf16.msra.mxu0 %v18266_v4  ;;  %v13673_v5 = vpop.f32.mrb[193].mxu0  ;;  %v18297_v4 = vld [vmem:[#allocation37_spill] sm:$0xff] }
 0x6dd   :  { %13234 = vmatprep.subr.bf16.mxu1 %v18267_v6  ;;  %13310 = vmatprep.subr.bf16.mxu0 %v18268_v9  ;;  %v9962_v10 = vpop.f32.mrb[194].mxu0  ;;  %v18298_v6 = vld [vmem:[#allocation46_spill] sm:$0xff] }
 0x6de   :  { %v12827_v11 = vpack.c.bf16 %v9962_v10, %v9959_v2  ;;  %v13674_v12 = vpop.f32.mrb[195].mxu0  ;;  %v18299_v10 = vld [vmem:[#allocation94_spill] sm:$0xff] }
 0x6df   :  { %v10159_v13 = vld [vmem:[#allocation4 + $0x28] sm:$0xff]   ;;  %v18300_v12 = vld [vmem:[#allocation103_spill] sm:$0xff] }
 0x6e0   :  { %13235 = vmatpush3.bf16.msra.mxu1 %v18269_v14  ;;  %13311 = vmatpush3.bf16.msra.mxu0 %v18270_v24  ;;  %10160 = vst [vmem:[#allocation5 + $0x28] sm:$0xff] %v10159_v13   ;;  %12919 = vst [vmem:[#allocation4 + $0x30] sm:$0xff] %v12827_v11   ;;  %v17774_v9 = vld [vmem:[#allocation5 + $0x20] sm:$0xff]  ;;  %v18301_v24 = vld [vmem:[#allocation38_spill] sm:$0xff] }
 0x6e1   :  { %13242 = vmatprep.subr.bf16.mxu1 %v18271_v48  ;;  %13312 = vmatprep.subr.bf16.mxu0 %v18272_v49  ;;  %v12644_v48 = vcombine.low %v17735_v7, %v17735_v7  ;;  %v18302_v49 = vld [vmem:[#allocation55_spill] sm:$0xff] }
 0x6e3   :  { %10370 = vmatmul.mubr.bf16.vlgmr.msra.gmra.mrb[4].mxu1 %v12642_v35  ;;  %v9967_v50 = vpop.f32.mrb[196].mxu0  ;;  %v12649_v35 = vcombine.high %v17774_v9, %v17774_v9 }
 0x6e4   :  { %13243 = vmatpush3.bf16.msra.mxu1 %v18273_v51  ;;  %10409 = vmatprep.mubr.bf16.mxu1 %v12645_v15  ;;  %v13677_v52 = vpop.f32.mrb[197].mxu0  ;;  %v18304_v51 = vld [vmem:[#allocation104_spill] sm:$0xff] }
 0x6e5   :  { %13244 = vmatprep.subr.bf16.mxu1 %v18274_v53  ;;  %13313 = vmatpush3.bf16.msra.mxu0 %v18275_v54  ;;  %v9970_v55 = vpop.f32.mrb[198].mxu0  ;;  %v18305_v53 = vld [vmem:[#allocation47_spill] sm:$0xff] }
 0x6e6   :  { %13314 = vmatprep.subr.bf16.mxu0 %v18276_v56  ;;  %v12832_v57 = vpack.c.bf16 %v9970_v55, %v9967_v50  ;;  %v13678_v58 = vpop.f32.mrb[199].mxu0  ;;  %v18303_v50 = vld [vmem:[#allocation95_spill] sm:$0xff]  ;;  %v18306_v55 = vld [vmem:[#allocation56_spill] sm:$0xff] }
 0x6e7   :  { %v10194_v59 = vld [vmem:[#allocation5 + $0x28] sm:$0xff]  ;;  %v18307_v56 = vld [vmem:[#allocation96_spill] sm:$0xff] }
 0x6e8   :  { %v10163_v60 = vld [vmem:[#allocation4 + $0x30] sm:$0xff]   ;;  %13245 = vmatpush3.bf16.msra.mxu1 %v18277_v61  ;;  %v12651_v62 = vcombine.high %v10194_v59, %v10194_v59  ;;  %12920 = vst [vmem:[#allocation4 + $0x38] sm:$0xff] %v12832_v57   ;;  %v12650_v30 = vcombine.low %v10194_v59, %v10194_v59  ;;  %v18309_v61 = vld [vmem:[#allocation48_spill] sm:$0xff] }
 0x6e9   :  { %10164 = vst [vmem:[#allocation5 + $0x30] sm:$0xff] %v10163_v60   ;;  %13246 = vmatprep.subr.bf16.mxu1 %v18278_v63  ;;  %13315 = vmatpush3.bf16.msra.mxu0 %v18279_v18  ;;  %v18308_v58 = vld [vmem:[#allocation105_spill] sm:$0xff]  ;;  %v18312_v18 = vld [vmem:[#allocation106_spill] sm:$0xff] }
 0x6ea   :  { %13316 = vmatprep.subr.bf16.mxu0 %v18280_v38  ;;  %10529 = vmatprep.mubr.bf16.mxu0 %v12651_v62  ;;  %v18310_v62 = vld [vmem:[#allocation57_spill] sm:$0xff] }
 0x6eb   :  { %v9975_v33 = vpop.f32.mrb[200].mxu0  ;;  %v18311_v63 = vld [vmem:[#allocation97_spill] sm:$0xff] }
 0x6ec   :  { %13247 = vmatpush3.bf16.msra.mxu1 %v18281_v29  ;;  %v13681_v43 = vpop.f32.mrb[201].mxu0 }
 0x6ed   :  { %13248 = vmatprep.subr.bf16.mxu1 %v18282_v22  ;;  %13317 = vmatpush3.bf16.msra.mxu0 %v18283_v37  ;;  %v9978_v28 = vpop.f32.mrb[202].mxu0  ;;  %v18314_v22 = vld [vmem:[#allocation58_spill] sm:$0xff] }
 0x6ee   :  { %13318 = vmatprep.subr.bf16.mxu0 %v18284_v26  ;;  %v12837_v46 = vpack.c.bf16 %v9978_v28, %v9975_v33  ;;  %v13682_v27 = vpop.f32.mrb[203].mxu0  ;;  %v18313_v33 = vld [vmem:[#allocation49_spill] sm:$0xff]  ;;  %v18315_v37 = vld [vmem:[#allocation98_spill] sm:$0xff]  ;;  %v18316_v26 = vld [vmem:[#allocation107_spill] sm:$0xff] }
 0x6ef   :  { %v10167_v16 = vld [vmem:[#allocation4 + $0x38] sm:$0xff]  }
 0x6f0   :  { %13249 = vmatpush3.bf16.msra.mxu1 %v18285_v21  ;;  %10168 = vst [vmem:[#allocation5 + $0x38] sm:$0xff] %v10167_v16   ;;  %12921 = vst [vmem:[#allocation4 + $0x40] sm:$0xff] %v12837_v46   ;;  %v18317_v16 = vld [vmem:[#allocation50_spill] sm:$0xff]  ;;  %v18318_v21 = vld [vmem:[#allocation59_spill] sm:$0xff] }
 0x6f1   :  { %13250 = vmatprep.subr.bf16.mxu1 %v18286_v25  ;;  %13319 = vmatpush3.bf16.msra.mxu0 %v18287_v32  ;;  %v18319_v25 = vld [vmem:[#allocation99_spill] sm:$0xff]  ;;  %v18320_v32 = vld [vmem:[#allocation108_spill] sm:$0xff] }
 0x6f2   :  { %13320 = vmatprep.subr.bf16.mxu0 %v18288_v40  ;;  %v18321_v40 = vld [vmem:[#allocation51_spill] sm:$0xff] }
 0x6f3   :  { %v9983_v45 = vpop.f32.mrb[204].mxu0 }
 0x6f4   :  { %13251 = vmatpush3.bf16.msra.mxu1 %v18289_v17  ;;  %v13685_v39 = vpop.f32.mrb[205].mxu0  ;;  %v18323_v17 = vld [vmem:[#allocation100_spill] sm:$0xff] }
 0x6f5   :  { %13252 = vmatprep.subr.bf16.mxu1 %v18290_v47  ;;  %13321 = vmatpush3.bf16.msra.mxu0 %v18291_v23  ;;  %v9986_v20 = vpop.f32.mrb[206].mxu0  ;;  %v18324_v47 = vld [vmem:[#allocation109_spill] sm:$0xff] }
 0x6f6   :  { %13322 = vmatprep.subr.bf16.mxu0 %v18292_v36  ;;  %v12842_v42 = vpack.c.bf16 %v9986_v20, %v9983_v45  ;;  %v13686_v31 = vpop.f32.mrb[207].mxu0  ;;  %v18322_v45 = vld [vmem:[#allocation60_spill] sm:$0xff] }
 0x6f7   :  { %v17764_v41 = vld [vmem:[#allocation5 + $0x38] sm:$0xff]  ;;  %v18325_v20 = vld [vmem:[#allocation52_spill] sm:$0xff]  ;;  %v18327_v31 = vld [vmem:[#allocation101_spill] sm:$0xff] }
 0x6f8   :  { %v10171_v34 = vld [vmem:[#allocation4 + $0x40] sm:$0xff]   ;;  %13253 = vmatpush3.bf16.msra.mxu1 %v18293_v44  ;;  %12922 = vst [vmem:[#allocation4 + $0x48] sm:$0xff] %v12842_v42   ;;  %v12655_v2 = vcombine.high %v17764_v41, %v17764_v41  ;;  %v12654_v36 = vcombine.low %v17764_v41, %v17764_v41  ;;  %v18326_v42 = vld [vmem:[#allocation61_spill] sm:$0xff] }
 0x6f9   :  { %10172 = vst [vmem:[#allocation5 + $0x40] sm:$0xff] %v10171_v34   ;;  %13254 = vmatprep.subr.bf16.mxu1 %v18294_v8  ;;  %13323 = vmatpush3.bf16.msra.mxu0 %v18295_v0  ;;  %v18328_v34 = vld [vmem:[#allocation134_spill] sm:$0xff] }
 0x6fa   :  { %13352 = vmatprep.subr.bf16.mxu0 %v18296_v1  ;;  %v18330_v8 = vld [vmem:[#allocation62_spill] sm:$0xff] }
 0x6fb   :  { %v9991_v3 = vpop.f32.mrb[208].mxu0  ;;  %v10195_v0 = vld [vmem:[#allocation5 + $0x30] sm:$0xff] }
 0x6fc   :  { %13255 = vmatpush3.bf16.msra.mxu1 %v18297_v4  ;;  %10530 = vmatmul.mubr.bf16.vlgmr.msra.gmra.mrb[224].mxu0 %v12650_v30  ;;  %v13689_v5 = vpop.f32.mrb[209].mxu0  ;;  %v18329_v30 = vld [vmem:[#allocation53_spill] sm:$0xff]  ;;  %v18331_v1 = vld [vmem:[#allocation126_spill] sm:$0xff]  ;;  %v12653_v41 = vcombine.high %v10195_v0, %v10195_v0  ;;  %v12648_v4 = vcombine.low %v17774_v9, %v17774_v9 }
 0x6fd   :  { %13256 = vmatprep.subr.bf16.mxu1 %v18298_v6  ;;  %13353 = vmatpush3.bf16.msra.mxu0 %v18299_v10  ;;  %v9994_v11 = vpop.f32.mrb[210].mxu0  ;;  %v18334_v5 = vld [vmem:[#allocation86_spill] sm:$0xff]  ;;  %v18335_v6 = vld [vmem:[#allocation127_spill] sm:$0xff]  ;;  %v18336_v10 = vld [vmem:[#allocation136_spill] sm:$0xff] }
 0x6fe   :  { %13354 = vmatprep.subr.bf16.mxu0 %v18300_v12  ;;  %10609 = vmatprep.mubr.bf16.mxu0 %v12655_v2  ;;  %v12847_v13 = vpack.c.bf16 %v9994_v11, %v9991_v3  ;;  %v13690_v14 = vpop.f32.mrb[211].mxu0  ;;  %v18332_v2 = vld [vmem:[#allocation135_spill] sm:$0xff]  ;;  %v18333_v3 = vld [vmem:[#allocation54_spill] sm:$0xff]  ;;  %v18343_v9 = vld [vmem:[#allocation129_spill] sm:$0xff] }
 0x6ff   :  { %v10175_v15 = vld [vmem:[#allocation4 + $0x48] sm:$0xff]   ;;  %v18337_v11 = vld [vmem:[#allocation78_spill] sm:$0xff]  ;;  %v18338_v12 = vld [vmem:[#allocation87_spill] sm:$0xff] }
 0x700   :  { %13257 = vmatpush3.bf16.msra.mxu1 %v18301_v24  ;;  %10176 = vst [vmem:[#allocation5 + $0x48] sm:$0xff] %v10175_v15   ;;  %12923 = vst [vmem:[#allocation4 + $0x50] sm:$0xff] %v12847_v13   ;;  %v18339_v13 = vld [vmem:[#allocation128_spill] sm:$0xff]  ;;  %v18340_v14 = vld [vmem:[#allocation137_spill] sm:$0xff] }
 0x701   :  { %13286 = vmatprep.subr.bf16.mxu1 %v18302_v49  ;;  %13355 = vmatpush3.bf16.msra.mxu0 %v18303_v50  ;;  %v18341_v15 = vld [vmem:[#allocation79_spill] sm:$0xff]  ;;  %v18342_v24 = vld [vmem:[#allocation88_spill] sm:$0xff]  ;;  %v18346_v49 = vld [vmem:[#allocation89_spill] sm:$0xff] }
 0x702   :  { %13356 = vmatprep.subr.bf16.mxu0 %v18304_v51  ;;  %v18347_v50 = vld [vmem:[#allocation130_spill] sm:$0xff]  ;;  %v18348_v51 = vld [vmem:[#allocation139_spill] sm:$0xff] }
 0x703   :  { %10410 = vmatmul.mubr.bf16.vlgmr.msra.gmra.mrb[8].mxu1 %v12644_v48  ;;  %v9999_v52 = vpop.f32.mrb[212].mxu0  ;;  %v18345_v48 = vld [vmem:[#allocation80_spill] sm:$0xff] }
 0x704   :  { %13287 = vmatpush3.bf16.msra.mxu1 %v18305_v53  ;;  %10489 = vmatprep.mubr.bf16.mxu1 %v12649_v35  ;;  %v13693_v54 = vpop.f32.mrb[213].mxu0  ;;  %v18344_v35 = vld [vmem:[#allocation138_spill] sm:$0xff] }
 0x705   :  { %13288 = vmatprep.subr.bf16.mxu1 %v18306_v55  ;;  %13357 = vmatpush3.bf16.msra.mxu0 %v18307_v56  ;;  %v10002_v57 = vpop.f32.mrb[214].mxu0  ;;  %v18350_v53 = vld [vmem:[#allocation90_spill] sm:$0xff]  ;;  %v18351_v54 = vld [vmem:[#allocation131_spill] sm:$0xff]  ;;  %v18352_v55 = vld [vmem:[#allocation140_spill] sm:$0xff] }
 0x706   :  { %13358 = vmatprep.subr.bf16.mxu0 %v18308_v58  ;;  %v12852_v7 = vpack.c.bf16 %v10002_v57, %v9999_v52  ;;  %v13694_v59 = vpop.f32.mrb[215].mxu0  ;;  %v18349_v52 = vld [vmem:[#allocation81_spill] sm:$0xff]  ;;  %v18353_v56 = vld [vmem:[#allocation82_spill] sm:$0xff]  ;;  %v18354_v57 = vld [vmem:[#allocation91_spill] sm:$0xff] }
 0x707   :  { %v10179_v60 = vld [vmem:[#allocation4 + $0x50] sm:$0xff]   ;;  %v18355_v58 = vld [vmem:[#allocation132_spill] sm:$0xff] }
 0x708   :  { %13289 = vmatpush3.bf16.msra.mxu1 %v18309_v61  ;;  %10180 = vst [vmem:[#allocation5 + $0x50] sm:$0xff] %v10179_v60   ;;  %12924 = vst [vmem:[#allocation4 + $0x58] sm:$0xff] %v12852_v7   ;;  %v10198_v23 = vld [vmem:[#allocation5 + $0x48] sm:$0xff]  ;;  %v18357_v60 = vld [vmem:[#allocation83_spill] sm:$0xff] }
 0x709   :  { %13290 = vmatprep.subr.bf16.mxu1 %v18310_v62  ;;  %13359 = vmatpush3.bf16.msra.mxu0 %v18311_v63  ;;  %v12659_v44 = vcombine.high %v10198_v23, %v10198_v23  ;;  %v18356_v7 = vld [vmem:[#allocation141_spill] sm:$0xff]  ;;  %v12658_v61 = vcombine.low %v10198_v23, %v10198_v23  ;;  %v18358_v62 = vld [vmem:[#allocation92_spill] sm:$0xff]  ;;  %v18376_v23 = vld [vmem:[#allocation170_spill] sm:$0xff] }
 0x70a   :  { %13360 = vmatprep.subr.bf16.mxu0 %v18312_v18  ;;  %v18359_v63 = vld [vmem:[#allocation133_spill] sm:$0xff]  ;;  %v18360_v18 = vld [vmem:[#allocation166_spill] sm:$0xff] }
 0x70b   :  { %v10007_v38 = vpop.f32.mrb[216].mxu0 }
 0x70c   :  { %13291 = vmatpush3.bf16.msra.mxu1 %v18313_v33  ;;  %v12768_v29 = vpack.c.bf16 %v10007_v38, %v10007_v38  ;;  %v13697_v43 = vpop.f32.mrb[217].mxu0  ;;  %v18361_v33 = vld [vmem:[#allocation84_spill] sm:$0xff] }
 0x70d   :  { %13292 = vmatprep.subr.bf16.mxu1 %v18314_v22  ;;  %13361 = vmatpush3.bf16.msra.mxu0 %v18315_v37  ;;  %v10010_v28 = vpop.f32.mrb[218].mxu0  ;;  %v10197_v43 = vld [vmem:[#allocation5 + $0x40] sm:$0xff]  ;;  %v18363_v22 = vld [vmem:[#allocation158_spill] sm:$0xff]  ;;  %v18364_v37 = vld [vmem:[#allocation167_spill] sm:$0xff] }
 0x70e   :  { %13362 = vmatprep.subr.bf16.mxu0 %v18316_v26  ;;  %10138 = vst [vmem:[#allocation4 + $0x60] sm:$0xf] %v12768_v29  ;;  %v13698_v46 = vpop.f32.mrb[219].mxu0  ;;  %v18362_v29 = vld [vmem:[#allocation93_spill] sm:$0xff]  ;;  %v12657_v26 = vcombine.high %v10197_v43, %v10197_v43 }
 0x70f   :  { %v10183_v27 = vld [vmem:[#allocation4 + $0x58] sm:$0xff]   ;;  %v18365_v28 = vld [vmem:[#allocation85_spill] sm:$0xff]  ;;  %v12652_v46 = vcombine.low %v10195_v0, %v10195_v0 }
 0x710   :  { %13293 = vmatpush3.bf16.msra.mxu1 %v18317_v16  ;;  %10184 = vst [vmem:[#allocation5 + $0x58] sm:$0xff] %v10183_v27   ;;  %v18366_v27 = vld [vmem:[#allocation118_spill] sm:$0xff]  ;;  %v18367_v16 = vld [vmem:[#allocation159_spill] sm:$0xff] }
 0x711   :  { %13294 = vmatprep.subr.bf16.mxu1 %v18318_v21  ;;  %13363 = vmatpush3.bf16.msra.mxu0 %v18319_v25  ;;  %v18368_v21 = vld [vmem:[#allocation168_spill] sm:$0xff]  ;;  %v18369_v25 = vld [vmem:[#allocation110_spill] sm:$0xff] }
 0x712   :  { %13364 = vmatprep.subr.bf16.mxu0 %v18320_v32  ;;  %v18370_v32 = vld [vmem:[#allocation119_spill] sm:$0xff]  ;;  %v18385_v0 = vld [vmem:[#allocation114_spill] sm:$0xff] }
 0x714   :  { %13295 = vmatpush3.bf16.msra.mxu1 %v18321_v40  ;;  %v18371_v40 = vld [vmem:[#allocation160_spill] sm:$0xff] }
 0x715   :  { %13296 = vmatprep.subr.bf16.mxu1 %v18322_v45  ;;  %13365 = vmatpush3.bf16.msra.mxu0 %v18323_v17  ;;  %v10187_v39 = vld [vmem:[#allocation4 + $0x60] sm:$0xf]  ;;  %v18372_v45 = vld [vmem:[#allocation169_spill] sm:$0xff] }
 0x716   :  { %13366 = vmatprep.subr.bf16.mxu0 %v18324_v47  ;;  %10188 = vst [vmem:[#allocation5 + $0x60] sm:$0xf] %v10187_v39  ;;  %v18373_v17 = vld [vmem:[#allocation111_spill] sm:$0xff]  ;;  %v18374_v39 = vld [vmem:[#allocation120_spill] sm:$0xff]  ;;  %v18375_v47 = vld [vmem:[#allocation161_spill] sm:$0xff] }
 0x717   :  { %v10200_v59 = vld [vmem:[#allocation5 + $0x58] sm:$0xff] }
 0x718   :  { %13297 = vmatpush3.bf16.msra.mxu1 %v18325_v20  ;;  %v12663_v38 = vcombine.high %v10200_v59, %v10200_v59  ;;  %v18377_v20 = vld [vmem:[#allocation112_spill] sm:$0xff] }
 0x719   :  { %13298 = vmatprep.subr.bf16.mxu1 %v18326_v42  ;;  %13367 = vmatpush3.bf16.msra.mxu0 %v18327_v31  ;;  %v18379_v42 = vld [vmem:[#allocation162_spill] sm:$0xff]  ;;  %v18380_v31 = vld [vmem:[#allocation171_spill] sm:$0xff] }
 0x71a   :  { %13396 = vmatprep.subr.bf16.mxu0 %v18328_v34  ;;  %v18381_v34 = vld [vmem:[#allocation113_spill] sm:$0xff] }
 0x71c   :  { %13299 = vmatpush3.bf16.msra.mxu1 %v18329_v30  ;;  %10610 = vmatmul.mubr.bf16.vlgmr.msra.gmra.mrb[228].mxu0 %v12654_v36  ;;  %v18378_v36 = vld [vmem:[#allocation121_spill] sm:$0xff]  ;;  %v18383_v30 = vld [vmem:[#allocation163_spill] sm:$0xff] }
 0x71d   :  { %13300 = vmatprep.subr.bf16.mxu1 %v18330_v8  ;;  %13397 = vmatpush3.bf16.msra.mxu0 %v18331_v1  ;;  %v18384_v8 = vld [vmem:[#allocation172_spill] sm:$0xff]  ;;  %v18386_v1 = vld [vmem:[#allocation123_spill] sm:$0xff] }
 0x71e   :  { %13398 = vmatprep.subr.bf16.mxu0 %v18332_v2  ;;  %10689 = vmatprep.mubr.bf16.mxu0 %v12659_v44  ;;  %v18382_v44 = vld [vmem:[#allocation122_spill] sm:$0xff]  ;;  %v18387_v2 = vld [vmem:[#allocation164_spill] sm:$0xff] }
 0x720   :  { %13301 = vmatpush3.bf16.msra.mxu1 %v18333_v3  ;;  %v18388_v3 = vld [vmem:[#allocation173_spill] sm:$0xff] }
 0x721   :  { %13330 = vmatprep.subr.bf16.mxu1 %v18334_v5  ;;  %13399 = vmatpush3.bf16.msra.mxu0 %v18335_v6  ;;  %v18390_v5 = vld [vmem:[#allocation124_spill] sm:$0xff]  ;;  %v18391_v6 = vld [vmem:[#allocation165_spill] sm:$0xff] }
 0x722   :  { %13400 = vmatprep.subr.bf16.mxu0 %v18336_v10  ;;  %v18392_v10 = vld [vmem:[#allocation116_spill] sm:$0xff] }
 0x723   :  { %10490 = vmatmul.mubr.bf16.vlgmr.msra.gmra.mrb[12].mxu1 %v12648_v4  ;;  %v12662_v4 = vcombine.low %v10200_v59, %v10200_v59  ;;  %v18410_v59 = vld [vmem:[#allocation149_spill] sm:$0xff] }
 0x724   :  { %13331 = vmatpush3.bf16.msra.mxu1 %v18337_v11  ;;  %10569 = vmatprep.mubr.bf16.mxu1 %v12653_v41  ;;  %v18389_v41 = vld [vmem:[#allocation115_spill] sm:$0xff]  ;;  %v18393_v11 = vld [vmem:[#allocation125_spill] sm:$0xff] }
 0x725   :  { %13332 = vmatprep.subr.bf16.mxu1 %v18338_v12  ;;  %13401 = vmatpush3.bf16.msra.mxu0 %v18339_v13  ;;  %v10199_v12 = vld [vmem:[#allocation5 + $0x50] sm:$0xff]  ;;  %v18394_v13 = vld [vmem:[#allocation117_spill] sm:$0xff] }
 0x726   :  { %13402 = vmatprep.subr.bf16.mxu0 %v18340_v14  ;;  %v12661_v14 = vcombine.high %v10199_v12, %v10199_v12 }
 0x728   :  { %13333 = vmatpush3.bf16.msra.mxu1 %v18341_v15  ;;  %v12656_v15 = vcombine.low %v10197_v43, %v10197_v43 }
 0x729   :  { %13334 = vmatprep.subr.bf16.mxu1 %v18342_v24  ;;  %13403 = vmatpush3.bf16.msra.mxu0 %v18343_v9  ;;  %v18395_v24 = vld [vmem:[#allocation150_spill] sm:$0xff] }
 0x72a   :  { %13404 = vmatprep.subr.bf16.mxu0 %v18344_v35  ;;  %v18396_v9 = vld [vmem:[#allocation142_spill] sm:$0xff]  ;;  %v18397_v35 = vld [vmem:[#allocation151_spill] sm:$0xff] }
 0x72c   :  { %13335 = vmatpush3.bf16.msra.mxu1 %v18345_v48  ;;  %v18398_v48 = vld [vmem:[#allocation143_spill] sm:$0xff] }
 0x72d   :  { %13336 = vmatprep.subr.bf16.mxu1 %v18346_v49  ;;  %13405 = vmatpush3.bf16.msra.mxu0 %v18347_v50  ;;  %v18399_v49 = vld [vmem:[#allocation152_spill] sm:$0xff] }
 0x72e   :  { %13406 = vmatprep.subr.bf16.mxu0 %v18348_v51  ;;  %v18400_v50 = vld [vmem:[#allocation144_spill] sm:$0xff]  ;;  %v18401_v51 = vld [vmem:[#allocation153_spill] sm:$0xff] }
 0x730   :  { %13337 = vmatpush3.bf16.msra.mxu1 %v18349_v52  ;;  %v18402_v52 = vld [vmem:[#allocation145_spill] sm:$0xff] }
 0x731   :  { %13338 = vmatprep.subr.bf16.mxu1 %v18350_v53  ;;  %13407 = vmatpush3.bf16.msra.mxu0 %v18351_v54  ;;  %v18403_v53 = vld [vmem:[#allocation154_spill] sm:$0xff] }
 0x732   :  { %13408 = vmatprep.subr.bf16.mxu0 %v18352_v55  ;;  %v18404_v54 = vld [vmem:[#allocation146_spill] sm:$0xff]  ;;  %v18405_v55 = vld [vmem:[#allocation155_spill] sm:$0xff] }
 0x734   :  { %13339 = vmatpush3.bf16.msra.mxu1 %v18353_v56  ;;  %v18406_v56 = vld [vmem:[#allocation147_spill] sm:$0xff] }
 0x735   :  { %13340 = vmatprep.subr.bf16.mxu1 %v18354_v57  ;;  %13409 = vmatpush3.bf16.msra.mxu0 %v18355_v58  ;;  %v18407_v57 = vld [vmem:[#allocation156_spill] sm:$0xff] }
 0x736   :  { %13410 = vmatprep.subr.bf16.mxu0 %v18356_v7  ;;  %v18408_v58 = vld [vmem:[#allocation148_spill] sm:$0xff]  ;;  %v18409_v7 = vld [vmem:[#allocation157_spill] sm:$0xff] }
 0x738   :  { %13341 = vmatpush3.bf16.msra.mxu1 %v18357_v60  ;;  %v12660_v60 = vcombine.low %v10199_v12, %v10199_v12 }
 0x739   :  { %13342 = vmatprep.subr.bf16.mxu1 %v18358_v62  ;;  %13411 = vmatpush3.bf16.msra.mxu0 %v18359_v63  ;;  %v18412_v62 = vld [vmem:[#allocation175_spill] sm:$0xff]  ;;  %v18413_v63 = vld [vmem:[#allocation176_spill] sm:$0xff] }
 0x73a   :  { %13440 = vmatprep.subr.bf16.mxu0 %v18360_v18  ;;  %v18414_v18 = vld [vmem:[#allocation177_spill] sm:$0xff] }
 0x73c   :  { %13343 = vmatpush3.bf16.msra.mxu1 %v18361_v33  ;;  %10690 = vmatmul.mubr.bf16.vlgmr.msra.gmra.mrb[232].mxu0 %v12658_v61  ;;  %v18411_v61 = vld [vmem:[#allocation174_spill] sm:$0xff] }
 0x73d   :  { %13344 = vmatprep.subr.bf16.mxu1 %v18362_v29  ;;  %13441 = vmatpush3.bf16.msra.mxu0 %v18363_v22  ;;  %v18416_v22 = vld [vmem:[#allocation179_spill] sm:$0xff] }
 0x73e   :  { %13442 = vmatprep.subr.bf16.mxu0 %v18364_v37  ;;  %10769 = vmatprep.mubr.bf16.mxu0 %v12663_v38  ;;  %v18415_v38 = vld [vmem:[#allocation178_spill] sm:$0xff] }
 0x740   :  { %13345 = vmatpush3.bf16.msra.mxu1 %v18365_v28 }
 0x741   :  { %13374 = vmatprep.subr.bf16.mxu1 %v18366_v27  ;;  %13443 = vmatpush3.bf16.msra.mxu0 %v18367_v16  ;;  %v18418_v27 = vld [vmem:[#allocation181_spill] sm:$0xff] }
 0x742   :  { %13444 = vmatprep.subr.bf16.mxu0 %v18368_v21 }
 0x743   :  { %10570 = vmatmul.mubr.bf16.vlgmr.msra.gmra.mrb[16].mxu1 %v12652_v46  ;;  %v14031_v46 = vld [vmem:[#allocation5 + $0x60] ss:$0 sps:$4 sm:$0xff]  }
 0x744   :  { %13375 = vmatpush3.bf16.msra.mxu1 %v18369_v25  ;;  %10649 = vmatprep.mubr.bf16.mxu1 %v12657_v26  ;;  %v18417_v26 = vld [vmem:[#allocation180_spill] sm:$0xff] }
 0x745   :  { %13376 = vmatprep.subr.bf16.mxu1 %v18370_v32  ;;  %13445 = vmatpush3.bf16.msra.mxu0 %v18371_v40 }
 0x746   :  { %13446 = vmatprep.subr.bf16.mxu0 %v18372_v45  ;;  %v12639_v45 = vld [vmem:[%s18086_s8] ss:$0 sm:$0xff] }
 0x748   :  { %13377 = vmatpush3.bf16.msra.mxu1 %v18373_v17 }
 0x749   :  { %13378 = vmatprep.subr.bf16.mxu1 %v18374_v39  ;;  %13447 = vmatpush3.bf16.msra.mxu0 %v18375_v47 }
 0x74a   :  { %13448 = vmatprep.subr.bf16.mxu0 %v18376_v23 }
 0x74c   :  { %13379 = vmatpush3.bf16.msra.mxu1 %v18377_v20 }
 0x74d   :  { %13380 = vmatprep.subr.bf16.mxu1 %v18378_v36  ;;  %13449 = vmatpush3.bf16.msra.mxu0 %v18379_v42 }
 0x74e   :  { %13450 = vmatprep.subr.bf16.mxu0 %v18380_v31 }
 0x750   :  { %13381 = vmatpush3.bf16.msra.mxu1 %v18381_v34 }
 0x751   :  { %13382 = vmatprep.subr.bf16.mxu1 %v18382_v44  ;;  %13451 = vmatpush3.bf16.msra.mxu0 %v18383_v30 }
 0x752   :  { %13452 = vmatprep.subr.bf16.mxu0 %v18384_v8 }
 0x754   :  { %13383 = vmatpush3.bf16.msra.mxu1 %v18385_v0 }
 0x755   :  { %13384 = vmatprep.subr.bf16.mxu1 %v18386_v1  ;;  %13453 = vmatpush3.bf16.msra.mxu0 %v18387_v2 }
 0x756   :  { %13454 = vmatprep.subr.bf16.mxu0 %v18388_v3 }
 0x758   :  { %13385 = vmatpush3.bf16.msra.mxu1 %v18389_v41 }
 0x759   :  { %13386 = vmatprep.subr.bf16.mxu1 %v18390_v5  ;;  %13455 = vmatpush3.bf16.msra.mxu0 %v18391_v6 }
 0x75c   :  { %13387 = vmatpush3.bf16.msra.mxu1 %v18392_v10  ;;  %10770 = vmatmul.mubr.bf16.vlgmr.msra.gmra.mrb[236].mxu0 %v12662_v4 }
 0x75d   :  { %13388 = vmatprep.subr.bf16.mxu1 %v18393_v11 }
 0x760   :  { %13389 = vmatpush3.bf16.msra.mxu1 %v18394_v13 }
 0x761   :  { %13418 = vmatprep.subr.bf16.mxu1 %v18395_v24 }
 0x763   :  { %10650 = vmatmul.mubr.bf16.vlgmr.msra.gmra.mrb[20].mxu1 %v12656_v15 }
 0x764   :  { %13419 = vmatpush3.bf16.msra.mxu1 %v18396_v9  ;;  %10729 = vmatprep.mubr.bf16.mxu1 %v12661_v14 }
 0x765   :  { %13420 = vmatprep.subr.bf16.mxu1 %v18397_v35 }
 0x768   :  { %13421 = vmatpush3.bf16.msra.mxu1 %v18398_v48 }
 0x769   :  { %13422 = vmatprep.subr.bf16.mxu1 %v18399_v49 }
 0x76c   :  { %13423 = vmatpush3.bf16.msra.mxu1 %v18400_v50 }
 0x76d   :  { %13424 = vmatprep.subr.bf16.mxu1 %v18401_v51 }
 0x770   :  { %13425 = vmatpush3.bf16.msra.mxu1 %v18402_v52 }
 0x771   :  { %13426 = vmatprep.subr.bf16.mxu1 %v18403_v53 }
 0x774   :  { %13427 = vmatpush3.bf16.msra.mxu1 %v18404_v54 }
 0x775   :  { %13428 = vmatprep.subr.bf16.mxu1 %v18405_v55 }
 0x778   :  { %13429 = vmatpush3.bf16.msra.mxu1 %v18406_v56 }
 0x779   :  { %13430 = vmatprep.subr.bf16.mxu1 %v18407_v57 }
 0x77c   :  { %13431 = vmatpush3.bf16.msra.mxu1 %v18408_v58 }
 0x77d   :  { %13432 = vmatprep.subr.bf16.mxu1 %v18409_v7 }
 0x780   :  { %13433 = vmatpush3.bf16.msra.mxu1 %v18410_v59 }
 0x781   :  { %13699 = vmatprep.subr.bf16.mxu1 %v14099_v19 }
 0x783   :  { %10730 = vmatmul.mubr.bf16.vlgmr.msra.gmra.mrb[24].mxu1 %v12660_v60 }
 0x784   :  { %13700 = vmatpush3.bf16.msra.mxu1 %v18411_v61  ;;  %13715 = vmatprep.mubr.msk.bf16.mxu1 %vm14100_vm4, %v14099_v19 }
 0x785   :  { %13701 = vmatprep.subr.bf16.mxu1 %v14099_v19 }
 0x788   :  { %13702 = vmatpush3.bf16.msra.mxu1 %v18412_v62 }
 0x789   :  { %13703 = vmatprep.subr.bf16.mxu1 %v14099_v19 }
 0x78c   :  { %13704 = vmatpush3.bf16.msra.mxu1 %v18413_v63 }
 0x78d   :  { %13705 = vmatprep.subr.bf16.mxu1 %v14099_v19 }
 0x790   :  { %13706 = vmatpush3.bf16.msra.mxu1 %v18414_v18 }
 0x791   :  { %13707 = vmatprep.subr.bf16.mxu1 %v14099_v19 }
 0x794   :  { %13708 = vmatpush3.bf16.msra.mxu1 %v18415_v38 }
 0x795   :  { %13709 = vmatprep.subr.bf16.mxu1 %v14099_v19 }
 0x796   :  { %v13214_v33 = vpop.f32.mrb[0].mxu1 }
 0x797   :  { %v13215_v29 = vpop.f32.mrb[1].mxu1 }
 0x798   :  { %v13216_v43 = vadd.f32 %v13215_v29, %v13214_v33  ;;  %13710 = vmatpush3.bf16.msra.mxu1 %v18416_v22  ;;  %v13217_v37 = vpop.f32.mrb[2].mxu1 }
 0x799   :  { %v13218_v28 = vpop.f32.mrb[3].mxu1  ;;  %13711 = vmatprep.subr.bf16.mxu1 %v14099_v19 }
 0x79a   :  { %v10332_v47 = vadd.f32 %v13216_v43, %v12639_v45 }
 0x79c   :  { %13712 = vmatpush3.bf16.msra.mxu1 %v18417_v26 }
 0x79d   :  { %13713 = vmatprep.subr.bf16.mxu1 %v14099_v19 }
 0x7a0   :  { %13714 = vmatpush3.bf16.msra.mxu1 %v18418_v27 }
 0x7a3   :  { %13716 = vmatmul.mubr.bf16.vlgmr.msra.gmra.mrb[28].mxu1 %v14031_v46 }
 0x7ae   :  { %v13280_v16 = vpop.f32.mrb[220].mxu0 }
 0x7af   :  { %v13281_v21 = vpop.f32.mrb[221].mxu0 }
 0x7b0   :  { %v13282_v25 = vadd.f32 %v13281_v21, %v13280_v16  ;;  %v13283_v32 = vpop.f32.mrb[222].mxu0 }
 0x7b1   :  { %v13284_v40 = vpop.f32.mrb[223].mxu0 }
 0x7b6   :  { %v13236_v17 = vpop.f32.mrb[4].mxu1 }
 0x7b7   :  { %v13237_v39 = vpop.f32.mrb[5].mxu1 }
 0x7b8   :  { %v13238_v23 = vadd.f32 %v13237_v39, %v13236_v17  ;;  %v13239_v20 = vpop.f32.mrb[6].mxu1 }
 0x7b9   :  { %v13240_v36 = vpop.f32.mrb[7].mxu1 }
 0x7ba   :  { %v10372_v42 = vadd.f32 %v13238_v23, %v10332_v47 }
 0x7cf   :  { %v13324_v31 = vpop.f32.mrb[224].mxu0 }
 0x7d0   :  { %v13325_v34 = vpop.f32.mrb[225].mxu0 }
 0x7d1   :  { %v13326_v44 = vadd.f32 %v13325_v34, %v13324_v31  ;;  %v13327_v30 = vpop.f32.mrb[226].mxu0 }
 0x7d2   :  { %v13328_v8 = vpop.f32.mrb[227].mxu0 }
 0x7d6   :  { %v13258_v0 = vpop.f32.mrb[8].mxu1 }
 0x7d7   :  { %v13259_v1 = vpop.f32.mrb[9].mxu1 }
 0x7d8   :  { %v13260_v2 = vadd.f32 %v13259_v1, %v13258_v0  ;;  %v13261_v3 = vpop.f32.mrb[10].mxu1 }
 0x7d9   :  { %v13262_v41 = vpop.f32.mrb[11].mxu1 }
 0x7da   :  { %v10412_v4 = vadd.f32 %v13260_v2, %v10372_v42 }
 0x7dc   :  { %v10452_v5 = vadd.f32 %v13282_v25, %v10412_v4 }
 0x7ef   :  { %v13368_v6 = vpop.f32.mrb[228].mxu0 }
 0x7f0   :  { %v13369_v10 = vpop.f32.mrb[229].mxu0 }
 0x7f1   :  { %v13370_v11 = vadd.f32 %v13369_v10, %v13368_v6  ;;  %v13371_v12 = vpop.f32.mrb[230].mxu0 }
 0x7f2   :  { %v13372_v13 = vpop.f32.mrb[231].mxu0 }
 0x7f6   :  { %v13302_v14 = vpop.f32.mrb[12].mxu1 }
 0x7f7   :  { %v13303_v15 = vpop.f32.mrb[13].mxu1 }
 0x7f8   :  { %v13304_v24 = vadd.f32 %v13303_v15, %v13302_v14  ;;  %v13305_v9 = vpop.f32.mrb[14].mxu1 }
 0x7f9   :  { %v13306_v35 = vpop.f32.mrb[15].mxu1 }
 0x7fa   :  { %v10492_v48 = vadd.f32 %v13304_v24, %v10452_v5 }
 0x7fc   :  { %v10532_v49 = vadd.f32 %v13326_v44, %v10492_v48 }
 0x80f   :  { %v13412_v50 = vpop.f32.mrb[232].mxu0 }
 0x810   :  { %v13413_v51 = vpop.f32.mrb[233].mxu0 }
 0x811   :  { %v13414_v52 = vadd.f32 %v13413_v51, %v13412_v50  ;;  %v13415_v53 = vpop.f32.mrb[234].mxu0 }
 0x812   :  { %v13416_v54 = vpop.f32.mrb[235].mxu0 }
 0x816   :  { %v13346_v55 = vpop.f32.mrb[16].mxu1 }
 0x817   :  { %v13347_v56 = vpop.f32.mrb[17].mxu1 }
 0x818   :  { %v13348_v57 = vadd.f32 %v13347_v56, %v13346_v55  ;;  %v13349_v58 = vpop.f32.mrb[18].mxu1 }
 0x819   :  { %v13350_v7 = vpop.f32.mrb[19].mxu1 }
 0x81a   :  { %v10572_v59 = vadd.f32 %v13348_v57, %v10532_v49 }
 0x81c   :  { %v10612_v60 = vadd.f32 %v13370_v11, %v10572_v59 }
 0x82f   :  { %v13456_v61 = vpop.f32.mrb[236].mxu0 }
 0x830   :  { %v13457_v62 = vpop.f32.mrb[237].mxu0 }
 0x831   :  { %v13458_v63 = vadd.f32 %v13457_v62, %v13456_v61  ;;  %v13459_v18 = vpop.f32.mrb[238].mxu0 }
 0x832   :  { %v13460_v38 = vpop.f32.mrb[239].mxu0 }
 0x836   :  { %v13390_v33 = vpop.f32.mrb[20].mxu1 }
 0x837   :  { %v13391_v29 = vpop.f32.mrb[21].mxu1 }
 0x838   :  { %v13392_v43 = vadd.f32 %v13391_v29, %v13390_v33  ;;  %v13393_v22 = vpop.f32.mrb[22].mxu1 }
 0x839   :  { %v13394_v37 = vpop.f32.mrb[23].mxu1 }
 0x83a   :  { %v10652_v28 = vadd.f32 %v13392_v43, %v10612_v60 }
 0x83c   :  { %v10692_v26 = vadd.f32 %v13414_v52, %v10652_v28 }
 0x856   :  { %v13434_v46 = vpop.f32.mrb[24].mxu1 }
 0x857   :  { %v13435_v27 = vpop.f32.mrb[25].mxu1 }
 0x858   :  { %v13436_v16 = vadd.f32 %v13435_v27, %v13434_v46  ;;  %v13437_v21 = vpop.f32.mrb[26].mxu1 }
 0x859   :  { %v13438_v25 = vpop.f32.mrb[27].mxu1 }
 0x85a   :  { %v10732_v32 = vadd.f32 %v13436_v16, %v10692_v26 }
 0x85c   :  { %v10772_v40 = vadd.f32 %v13458_v63, %v10732_v32 }
 0x876   :  { %v10811_v45 = vpop.f32.mrb[28].mxu1 }
 0x877   :  { %v10812_v17 = vadd.f32 %v10811_v45, %v10772_v40  ;;  %v13717_v39 = vpop.f32.mrb[29].mxu1 }
 0x878   :  { %v10814_v47 = vpop.f32.mrb[30].mxu1 }
 0x879   :  { %v10817_v23 = vmax.f32 %v10812_v17, 0.0  ;;  %v13718_v20 = vpop.f32.mrb[31].mxu1 }
 0x87b   :  { %v10818_v36 = vpack.c.bf16 %v10817_v23, %v10817_v23 }
 0x87c   :  { %14094 = dma.done.wait [#allocation10 + $0x1], 51200 }
 0x87d   :  { %14095 = vsyncadd [#allocation10 + $0x1], 4294916096  ;;  %13719 = vmatprep.subr.bf16.mxu0 %v14099_v19  ;;  %vm11350_vm6 = vcmask 1043456   ;;  %13721 = vmatprep.mubr.msk.bf16.mxu0 %vm14100_vm4, %v14099_v19  ;;  %vm11310_vm7 = vcmask 64512   ;;  %v14032_v31 = vld [vmem:[%s18087_s9] sm:$0xff]   ;;  %v14033_v34 = vld [vmem:[%s18087_s9 + $0x8] sm:$0xff]  }
 0x87e   :  { %v11352_v42 = vsel %vm11350_vm6, %v10818_v36, 0  ;;  %13773 = vmatprep.subr.bf16.mxu1 %v14099_v19  ;;  %13753 = vmatprep.mubr.msk.bf16.mxu1 %vm14100_vm4, %v14099_v19  ;;  %v10823_v44 = vld [vmem:[#allocation9 + $0x8] sm:$0xff]  ;;  %v10822_v30 = vld [vmem:[#allocation9] sm:$0xff]  ;;  %v10825_v8 = vld [vmem:[#allocation9 + $0x18] sm:$0xff]  ;;  %s14102_s5 = smov [#allocation11]  }
 0x87f   :  { %13720 = vmatpush3.bf16.msra.mxu0 %v11352_v42  ;;  %13774 = vmatpush3.bf16.msra.mxu1 %v11352_v42  ;;  %v10824_v0 = vld [vmem:[#allocation9 + $0x10] sm:$0xff]  ;;  %v10827_v1 = vld [vmem:[#allocation9 + $0x28] sm:$0xff]  ;;  %v10918_v41 = vld [vmem:[#allocation9 + $0x300] sm:$0xff]  ;;  %s12332_s8 = sshll.u32 %s14102_s5, 4  ;;  %s12333_s8 = int_to_ptr.vmem [resolvable:$true] %s12332_s8 }
 0x880   :  { %11779 = vmatprep.subr.bf16.mxu0 %v10823_v44  ;;  %v14038_v2 = vld [vmem:[%s18087_s9 + $0x40] sm:$0xff]   ;;  %v10919_v3 = vld [vmem:[#allocation9 + $0x308] sm:$0xff]  ;;  %v10921_v4 = vld [vmem:[#allocation9 + $0x318] sm:$0xff]  ;;  %p14075_p1 = scmp.lt.s32.totalorder %s12333_s8, %s12333_s8 }
 0x881   :  { %v10826_v5 = vld [vmem:[#allocation9 + $0x20] sm:$0xff]  ;;  %11902 = vmatprep.subr.bf16.mxu1 %v10919_v3  ;;  %v10829_v10 = vld [vmem:[#allocation9 + $0x38] sm:$0xff]  ;;  %v10920_v11 = vld [vmem:[#allocation9 + $0x310] sm:$0xff] }
 0x882   :  { %13722 = vmatmul.mubr.msk.bf16.vlgmr.msra.gmra.mrb[240].mxu0 %vm11310_vm7, %v14032_v31  ;;  %13754 = vmatmul.mubr.msk.bf16.vlgmr.msra.gmra.mrb[32].mxu1 %vm11310_vm7, %v14038_v2  ;;  %v14034_v6 = vld [vmem:[%s18087_s9 + $0x10] sm:$0xff]   ;;  %v10828_v12 = vld [vmem:[#allocation9 + $0x30] sm:$0xff]  ;;  %v10831_v13 = vld [vmem:[#allocation9 + $0x48] sm:$0xff] }
 0x883   :  { %13725 = vmatprep.mubr.msk.bf16.mxu0 %vm14100_vm4, %v14099_v19  ;;  %11780 = vmatpush1.bf16.msra.mxu0 %v10822_v30  ;;  %v10923_v14 = vld [vmem:[#allocation9 + $0x328] sm:$0xff]  ;;  %v10922_v15 = vld [vmem:[#allocation9 + $0x320] sm:$0xff]  ;;  %v10925_v24 = vld [vmem:[#allocation9 + $0x338] sm:$0xff] }
 0x884   :  { %11781 = vmatprep.subr.bf16.mxu0 %v10825_v8  ;;  %11903 = vmatpush1.bf16.msra.mxu1 %v10918_v41  ;;  %v10830_v9 = vld [vmem:[#allocation9 + $0x40] sm:$0xff]  ;;  %v14035_v35 = vld [vmem:[%s18087_s9 + $0x18] sm:$0xff]   ;;  %v10833_v48 = vld [vmem:[#allocation9 + $0x58] sm:$0xff] }
 0x885   :  { %13757 = vmatprep.mubr.msk.bf16.mxu1 %vm14100_vm4, %v14099_v19  ;;  %11904 = vmatprep.subr.bf16.mxu1 %v10921_v4  ;;  %v10924_v49 = vld [vmem:[#allocation9 + $0x330] sm:$0xff]  ;;  %v10927_v50 = vld [vmem:[#allocation9 + $0x348] sm:$0xff]  ;;  %v10834_v53 = vld [vmem:[#allocation9 + $0x60] sm:$0xff] }
 0x886   :  { %v10832_v51 = vld [vmem:[#allocation9 + $0x50] sm:$0xff]  ;;  %v10835_v52 = vld [vmem:[#allocation9 + $0x68] sm:$0xff]  ;;  %v10837_v55 = vld [vmem:[#allocation9 + $0x78] sm:$0xff] }
 0x887   :  { %11782 = vmatpush1.bf16.msra.mxu0 %v10824_v0  ;;  %v14036_v54 = vld [vmem:[%s18087_s9 + $0x20] sm:$0xff]   ;;  %v10839_v57 = vld [vmem:[#allocation9 + $0x88] sm:$0xff]  ;;  %v10838_v58 = vld [vmem:[#allocation9 + $0x80] sm:$0xff] }
 0x888   :  { %11783 = vmatprep.subr.bf16.mxu0 %v10827_v1  ;;  %11905 = vmatpush1.bf16.msra.mxu1 %v10920_v11  ;;  %v10836_v56 = vld [vmem:[#allocation9 + $0x70] sm:$0xff]  ;;  %v14037_v7 = vld [vmem:[%s18087_s9 + $0x28] sm:$0xff]   ;;  %v10843_v61 = vld [vmem:[#allocation9 + $0xa8] sm:$0xff] }
 0x889   :  { %11906 = vmatprep.subr.bf16.mxu1 %v10923_v14  ;;  %v10841_v59 = vld [vmem:[#allocation9 + $0x98] sm:$0xff]  ;;  %v10840_v60 = vld [vmem:[#allocation9 + $0x90] sm:$0xff]  ;;  %v10842_v62 = vld [vmem:[#allocation9 + $0xa0] sm:$0xff] }
 0x88a   :  { %13726 = vmatmul.mubr.msk.bf16.gmra.mrb[244].mxu0 %vm11310_vm7, %v14033_v34  ;;  %v10926_v63 = vld [vmem:[#allocation9 + $0x340] sm:$0xff]  ;;  %v10845_v38 = vld [vmem:[#allocation9 + $0xb8] sm:$0xff]  ;;  %v10844_v29 = vld [vmem:[#allocation9 + $0xb0] sm:$0xff] }
 0x88b   :  { %13729 = vmatprep.mubr.msk.bf16.mxu0 %vm14100_vm4, %v14099_v19  ;;  %11784 = vmatpush1.bf16.msra.mxu0 %v10826_v5  ;;  %v14039_v18 = vld [vmem:[%s18087_s9 + $0x30] sm:$0xff]   ;;  %v10929_v33 = vld [vmem:[#allocation9 + $0x358] sm:$0xff]  ;;  %v10928_v43 = vld [vmem:[#allocation9 + $0x350] sm:$0xff] }
 0x88c   :  { %11785 = vmatprep.subr.bf16.mxu0 %v10829_v10  ;;  %11907 = vmatpush1.bf16.msra.mxu1 %v10922_v15  ;;  %v10847_v22 = vld [vmem:[#allocation9 + $0xc8] sm:$0xff]  ;;  %v10846_v28 = vld [vmem:[#allocation9 + $0xc0] sm:$0xff]  ;;  %v10849_v46 = vld [vmem:[#allocation9 + $0xd8] sm:$0xff] }
 0x88d   :  { %11908 = vmatprep.subr.bf16.mxu1 %v10925_v24  ;;  %v10931_v37 = vld [vmem:[#allocation9 + $0x368] sm:$0xff]  ;;  %v10930_v26 = vld [vmem:[#allocation9 + $0x360] sm:$0xff]  ;;  %v10933_v27 = vld [vmem:[#allocation9 + $0x378] sm:$0xff] }
 0x88e   :  { %v10848_v16 = vld [vmem:[#allocation9 + $0xd0] sm:$0xff]  ;;  %v14040_v25 = vld [vmem:[%s18087_s9 + $0x48] sm:$0xff]   ;;  %v10851_v32 = vld [vmem:[#allocation9 + $0xe8] sm:$0xff] }
 0x88f   :  { %11786 = vmatpush1.bf16.msra.mxu0 %v10828_v12  ;;  %v10932_v21 = vld [vmem:[#allocation9 + $0x370] sm:$0xff]  ;;  %13758 = vmatmul.mubr.msk.bf16.gmra.mrb[36].mxu1 %vm11310_vm7, %v14040_v25  ;;  %v10935_v40 = vld [vmem:[#allocation9 + $0x388] sm:$0xff]  ;;  %v10850_v17 = vld [vmem:[#allocation9 + $0xe0] sm:$0xff] }
 0x890   :  { %11787 = vmatprep.subr.bf16.mxu0 %v10831_v13  ;;  %11909 = vmatpush1.bf16.msra.mxu1 %v10924_v49  ;;  %v14041_v45 = vld [vmem:[%s18087_s9 + $0x38] sm:$0xff]   ;;  %v10934_v39 = vld [vmem:[#allocation9 + $0x380] sm:$0xff]  ;;  %v10853_v47 = vld [vmem:[#allocation9 + $0xf8] sm:$0xff] }
 0x891   :  { %11910 = vmatprep.subr.bf16.mxu1 %v10927_v50  ;;  %13761 = vmatprep.mubr.msk.bf16.mxu1 %vm14100_vm4, %v14099_v19  ;;  %v10937_v23 = vld [vmem:[#allocation9 + $0x398] sm:$0xff]  ;;  %v10852_v20 = vld [vmem:[#allocation9 + $0xf0] sm:$0xff]  ;;  %v14042_v42 = vld [vmem:[%s18087_s9 + $0x50] sm:$0xff]  }
 0x892   :  { %13730 = vmatmul.mubr.msk.bf16.gmra.mrb[248].mxu0 %vm11310_vm7, %v14034_v6  ;;  %v10936_v36 = vld [vmem:[#allocation9 + $0x390] sm:$0xff]  ;;  %v10855_v31 = vld [vmem:[#allocation9 + $0x108] sm:$0xff]  ;;  %v10938_v44 = vld [vmem:[#allocation9 + $0x3a0] sm:$0xff] }
 0x893   :  { %13733 = vmatprep.mubr.msk.bf16.mxu0 %vm14100_vm4, %v14099_v19  ;;  %11788 = vmatpush1.bf16.msra.mxu0 %v10830_v9  ;;  %v10939_v34 = vld [vmem:[#allocation9 + $0x3a8] sm:$0xff]  ;;  %v10941_v30 = vld [vmem:[#allocation9 + $0x3b8] sm:$0xff]  ;;  %v10940_v8 = vld [vmem:[#allocation9 + $0x3b0] sm:$0xff] }
 0x894   :  { %11789 = vmatprep.subr.bf16.mxu0 %v10833_v48  ;;  %11911 = vmatpush1.bf16.msra.mxu1 %v10926_v63  ;;  %v14045_v0 = vld [vmem:[%s18087_s9 + $0x58] sm:$0xff]   ;;  %v10942_v2 = vld [vmem:[#allocation9 + $0x3c0] sm:$0xff]  ;;  %v10945_v3 = vld [vmem:[#allocation9 + $0x3d8] sm:$0xff] }
 0x895   :  { %11912 = vmatprep.subr.bf16.mxu1 %v10929_v33  ;;  %v10943_v1 = vld [vmem:[#allocation9 + $0x3c8] sm:$0xff]  ;;  %v10944_v41 = vld [vmem:[#allocation9 + $0x3d0] sm:$0xff]  ;;  %v10946_v6 = vld [vmem:[#allocation9 + $0x3e0] sm:$0xff] }
 0x896   :  { %v14048_v4 = vld [vmem:[%s18087_s9 + $0x60] ss:$0 sps:$4 sm:$0xff]   ;;  %v10947_v5 = vld [vmem:[#allocation9 + $0x3e8] sm:$0xff]  ;;  %v10949_v10 = vld [vmem:[#allocation9 + $0x3f8] sm:$0xff] }
 0x897   :  { %11790 = vmatpush1.bf16.msra.mxu0 %v10832_v51  ;;  %13762 = vmatmul.mubr.msk.bf16.gmra.mrb[40].mxu1 %vm11310_vm7, %v14042_v42  ;;  %v10951_v11 = vld [vmem:[#allocation9 + $0x408] sm:$0xff] }
 0x898   :  { %11791 = vmatprep.subr.bf16.mxu0 %v10835_v52  ;;  %11913 = vmatpush1.bf16.msra.mxu1 %v10928_v43  ;;  %v10859_v43 = vld [vmem:[#allocation9 + $0x128] sm:$0xff] }
 0x899   :  { %11914 = vmatprep.subr.bf16.mxu1 %v10931_v37  ;;  %13765 = vmatprep.mubr.msk.bf16.mxu1 %vm14100_vm4, %v14099_v19 }
 0x89a   :  { %13734 = vmatmul.mubr.msk.bf16.gmra.mrb[252].mxu0 %vm11310_vm7, %v14035_v35 }
 0x89b   :  { %13737 = vmatprep.mubr.msk.bf16.mxu0 %vm14100_vm4, %v14099_v19  ;;  %11792 = vmatpush1.bf16.msra.mxu0 %v10834_v53 }
 0x89c   :  { %11793 = vmatprep.subr.bf16.mxu0 %v10837_v55  ;;  %11915 = vmatpush1.bf16.msra.mxu1 %v10930_v26  ;;  %v10858_v26 = vld [vmem:[#allocation9 + $0x120] sm:$0xff] }
 0x89d   :  { %11916 = vmatprep.subr.bf16.mxu1 %v10933_v27 }
 0x89f   :  { %11794 = vmatpush1.bf16.msra.mxu0 %v10836_v56  ;;  %13766 = vmatmul.mubr.msk.bf16.gmra.mrb[44].mxu1 %vm11310_vm7, %v14045_v0 }
 0x8a0   :  { %11795 = vmatprep.subr.bf16.mxu0 %v10839_v57  ;;  %11917 = vmatpush1.bf16.msra.mxu1 %v10932_v21  ;;  %v10860_v21 = vld [vmem:[#allocation9 + $0x130] sm:$0xff] }
 0x8a1   :  { %11918 = vmatprep.subr.bf16.mxu1 %v10935_v40  ;;  %13769 = vmatprep.mubr.msk.bf16.mxu1 %vm14100_vm4, %v14099_v19 }
 0x8a2   :  { %13738 = vmatmul.mubr.msk.bf16.gmra.mrb[0].mxu0 %vm11310_vm7, %v14036_v54 }
 0x8a3   :  { %13741 = vmatprep.mubr.msk.bf16.mxu0 %vm14100_vm4, %v14099_v19  ;;  %11796 = vmatpush1.bf16.msra.mxu0 %v10838_v58 }
 0x8a4   :  { %11797 = vmatprep.subr.bf16.mxu0 %v10841_v59  ;;  %11919 = vmatpush1.bf16.msra.mxu1 %v10934_v39  ;;  %v10862_v39 = vld [vmem:[#allocation9 + $0x140] sm:$0xff] }
 0x8a5   :  { %11920 = vmatprep.subr.bf16.mxu1 %v10937_v23 }
 0x8a7   :  { %11798 = vmatpush1.bf16.msra.mxu0 %v10840_v60  ;;  %13770 = vmatmul.mubr.msk.bf16.gmra.mrb[48].mxu1 %vm11310_vm7, %v14048_v4  ;;  %v10854_v60 = vld [vmem:[#allocation9 + $0x100] sm:$0xff]  ;;  %v10953_v4 = vld [vmem:[#allocation9 + $0x418] sm:$0xff] }
 0x8a8   :  { %11799 = vmatprep.subr.bf16.mxu0 %v10843_v61  ;;  %11921 = vmatpush1.bf16.msra.mxu1 %v10936_v36  ;;  %v10857_v61 = vld [vmem:[#allocation9 + $0x118] sm:$0xff]  ;;  %v10864_v36 = vld [vmem:[#allocation9 + $0x150] sm:$0xff] }
 0x8a9   :  { %11922 = vmatprep.subr.bf16.mxu1 %v10939_v34 }
 0x8aa   :  { %13742 = vmatmul.mubr.msk.bf16.gmra.mrb[4].mxu0 %vm11310_vm7, %v14037_v7 }
 0x8ab   :  { %13745 = vmatprep.mubr.msk.bf16.mxu0 %vm14100_vm4, %v14099_v19  ;;  %11800 = vmatpush1.bf16.msra.mxu0 %v10842_v62 }
 0x8ac   :  { %11801 = vmatprep.subr.bf16.mxu0 %v10845_v38  ;;  %11923 = vmatpush1.bf16.msra.mxu1 %v10938_v44  ;;  %v10856_v38 = vld [vmem:[#allocation9 + $0x110] sm:$0xff] }
 0x8ad   :  { %11924 = vmatprep.subr.bf16.mxu1 %v10941_v30 }
 0x8af   :  { %11802 = vmatpush1.bf16.msra.mxu0 %v10844_v29 }
 0x8b0   :  { %11803 = vmatprep.subr.bf16.mxu0 %v10847_v22  ;;  %11925 = vmatpush1.bf16.msra.mxu1 %v10940_v8 }
 0x8b1   :  { %11926 = vmatprep.subr.bf16.mxu1 %v10943_v1 }
 0x8b2   :  { %13746 = vmatmul.mubr.msk.bf16.gmra.mrb[8].mxu0 %vm11310_vm7, %v14039_v18 }
 0x8b3   :  { %13749 = vmatprep.mubr.msk.bf16.mxu0 %vm14100_vm4, %v14099_v19  ;;  %11804 = vmatpush1.bf16.msra.mxu0 %v10846_v28  ;;  %v10948_v19 = vld [vmem:[#allocation9 + $0x3f0] sm:$0xff] }
 0x8b4   :  { %11805 = vmatprep.subr.bf16.mxu0 %v10849_v46  ;;  %11927 = vmatpush1.bf16.msra.mxu1 %v10942_v2  ;;  %v10861_v46 = vld [vmem:[#allocation9 + $0x138] sm:$0xff]  ;;  %v10866_v2 = vld [vmem:[#allocation9 + $0x160] sm:$0xff] }
 0x8b5   :  { %11928 = vmatprep.subr.bf16.mxu1 %v10945_v3  ;;  %v10950_v3 = vld [vmem:[#allocation9 + $0x400] sm:$0xff] }
 0x8b7   :  { %11806 = vmatpush1.bf16.msra.mxu0 %v10848_v16 }
 0x8b8   :  { %11807 = vmatprep.subr.bf16.mxu0 %v10851_v32  ;;  %11929 = vmatpush1.bf16.msra.mxu1 %v10944_v41  ;;  %v10863_v32 = vld [vmem:[#allocation9 + $0x148] sm:$0xff]  ;;  %v10869_v41 = vld [vmem:[#allocation9 + $0x178] sm:$0xff] }
 0x8b9   :  { %11930 = vmatprep.subr.bf16.mxu1 %v10947_v5  ;;  %v10868_v5 = vld [vmem:[#allocation9 + $0x170] sm:$0xff] }
 0x8ba   :  { %13750 = vmatmul.mubr.msk.bf16.gmra.mrb[12].mxu0 %vm11310_vm7, %v14041_v45 }
 0x8bb   :  { %11808 = vmatpush1.bf16.msra.mxu0 %v10850_v17 }
 0x8bc   :  { %11809 = vmatprep.subr.bf16.mxu0 %v10853_v47  ;;  %11931 = vmatpush1.bf16.msra.mxu1 %v10946_v6  ;;  %v10865_v47 = vld [vmem:[#allocation9 + $0x158] sm:$0xff]  ;;  %v10952_v6 = vld [vmem:[#allocation9 + $0x410] sm:$0xff] }
 0x8bd   :  { %11932 = vmatprep.subr.bf16.mxu1 %v10949_v10  ;;  %v10871_v10 = vld [vmem:[#allocation9 + $0x188] sm:$0xff] }
 0x8bf   :  { %11810 = vmatpush1.bf16.msra.mxu0 %v10852_v20 }
 0x8c0   :  { %11820 = vmatprep.subr.bf16.mxu0 %v10855_v31  ;;  %11933 = vmatpush1.bf16.msra.mxu1 %v10948_v19  ;;  %v10867_v31 = vld [vmem:[#allocation9 + $0x168] sm:$0xff] }
 0x8c1   :  { %11943 = vmatprep.subr.bf16.mxu1 %v10951_v11  ;;  %v10955_v19 = vld [vmem:[#allocation9 + $0x428] sm:$0xff] }
 0x955   :  { %v11388_v12 = vpop.f32.mrb[240].mxu0 }
 0x956   :  { %v13723_v13 = vpop.f32.mrb[241].mxu0 }
 0x957   :  { %v11391_v14 = vpop.f32.mrb[242].mxu0 }
 0x958   :  { %v12857_v15 = vpack.c.bf16 %v11391_v14, %v11388_v12  ;;  %v13724_v24 = vpop.f32.mrb[243].mxu0  ;;  %v10870_v14 = vld [vmem:[#allocation9 + $0x180] sm:$0xff] }
 0x959   :  { %v10873_v24 = vld [vmem:[#allocation9 + $0x198] sm:$0xff] }
 0x95a   :  { %12858 = vst [vmem:[#allocation6] sm:$0xff] %v12857_v15   ;;  %v10954_v15 = vld [vmem:[#allocation9 + $0x420] sm:$0xff] }
 0x95d   :  { %v11396_v9 = vpop.f32.mrb[244].mxu0 }
 0x95e   :  { %v13727_v35 = vpop.f32.mrb[245].mxu0 }
 0x95f   :  { %v11399_v48 = vpop.f32.mrb[246].mxu0  ;;  %v10872_v35 = vld [vmem:[#allocation9 + $0x190] sm:$0xff] }
 0x960   :  { %v12862_v49 = vpack.c.bf16 %v11399_v48, %v11396_v9  ;;  %v13728_v50 = vpop.f32.mrb[247].mxu0  ;;  %v10957_v9 = vld [vmem:[#allocation9 + $0x438] sm:$0xff]  ;;  %v10956_v48 = vld [vmem:[#allocation9 + $0x430] sm:$0xff] }
 0x961   :  { %v11616_v51 = vld [vmem:[#allocation6] sm:$0xff]   ;;  %v10959_v50 = vld [vmem:[#allocation9 + $0x448] sm:$0xff] }
 0x962   :  { %11617 = vst [vmem:[#allocation7] sm:$0xff] %v11616_v51   ;;  %12925 = vst [vmem:[#allocation6 + $0x8] sm:$0xff] %v12862_v49   ;;  %v10875_v49 = vld [vmem:[#allocation9 + $0x1a8] sm:$0xff]  ;;  %v10874_v51 = vld [vmem:[#allocation9 + $0x1a0] sm:$0xff] }
 0x965   :  { %v11404_v52 = vpop.f32.mrb[248].mxu0 }
 0x966   :  { %v13731_v53 = vpop.f32.mrb[249].mxu0 }
 0x967   :  { %v11407_v54 = vpop.f32.mrb[250].mxu0  ;;  %v10877_v53 = vld [vmem:[#allocation9 + $0x1b8] sm:$0xff] }
 0x968   :  { %v12867_v55 = vpack.c.bf16 %v11407_v54, %v11404_v52  ;;  %v13732_v56 = vpop.f32.mrb[251].mxu0  ;;  %v10958_v52 = vld [vmem:[#allocation9 + $0x440] sm:$0xff]  ;;  %v10961_v54 = vld [vmem:[#allocation9 + $0x458] sm:$0xff] }
 0x969   :  { %v11620_v57 = vld [vmem:[#allocation6 + $0x8] sm:$0xff]  }
 0x96a   :  { %v11666_v58 = vld [vmem:[#allocation7] sm:$0xff]  ;;  %11621 = vst [vmem:[#allocation7 + $0x8] sm:$0xff] %v11620_v57   ;;  %12926 = vst [vmem:[#allocation6 + $0x10] sm:$0xff] %v12867_v55   ;;  %v11452_v55 = vpop.f32.mrb[32].mxu1  ;;  %v10876_v57 = vld [vmem:[#allocation9 + $0x1b0] sm:$0xff] }
 0x96b   :  { %v12716_v7 = vcombine.low %v11666_v58, %v11666_v58  ;;  %v12717_v59 = vcombine.high %v11666_v58, %v11666_v58  ;;  %v13755_v56 = vpop.f32.mrb[33].mxu1  ;;  %v10960_v58 = vld [vmem:[#allocation9 + $0x450] sm:$0xff] }
 0x96c   :  { %v10980_v56 = vld [vmem:[#allocation9 + $0x4f0] sm:$0xff] }
 0x96d   :  { %11811 = vmatprep.mubr.bf16.mxu0 %v12717_v59  ;;  %v11412_v62 = vpop.f32.mrb[252].mxu0  ;;  %v10879_v59 = vld [vmem:[#allocation9 + $0x1c8] sm:$0xff] }
 0x96e   :  { %11812 = vmatmul.mubr.bf16.vlgmr.msra.gmra.mrb[16].mxu0 %v12716_v7  ;;  %v13735_v63 = vpop.f32.mrb[253].mxu0  ;;  %v11455_v7 = vpop.f32.mrb[34].mxu1 }
 0x96f   :  { %11821 = vmatpush1.bf16.msra.mxu0 %v10854_v60  ;;  %v11415_v18 = vpop.f32.mrb[254].mxu0  ;;  %v10963_v60 = vld [vmem:[#allocation9 + $0x468] sm:$0xff]  ;;  %v10878_v63 = vld [vmem:[#allocation9 + $0x1c0] sm:$0xff] }
 0x970   :  { %11822 = vmatprep.subr.bf16.mxu0 %v10857_v61  ;;  %v12872_v33 = vpack.c.bf16 %v11415_v18, %v11412_v62  ;;  %v13736_v29 = vpop.f32.mrb[255].mxu0  ;;  %v12897_v61 = vpack.c.bf16 %v11455_v7, %v11452_v55  ;;  %v13756_v62 = vpop.f32.mrb[35].mxu1  ;;  %v10962_v18 = vld [vmem:[#allocation9 + $0x460] sm:$0xff] }
 0x971   :  { %v11624_v22 = vld [vmem:[#allocation6 + $0x10] sm:$0xff]   ;;  %v10880_v29 = vld [vmem:[#allocation9 + $0x1d0] sm:$0xff]  ;;  %v10898_v62 = vld [vmem:[#allocation9 + $0x260] sm:$0xff] }
 0x972   :  { %v17997_v37 = vld [vmem:[#allocation7 + $0x8] sm:$0xff]  ;;  %11625 = vst [vmem:[#allocation7 + $0x10] sm:$0xff] %v11624_v22   ;;  %12927 = vst [vmem:[#allocation6 + $0x18] sm:$0xff] %v12872_v33   ;;  %v10965_v33 = vld [vmem:[#allocation9 + $0x478] sm:$0xff] }
 0x973   :  { %11823 = vmatpush1.bf16.msra.mxu0 %v10856_v38  ;;  %v12719_v28 = vcombine.high %v17997_v37, %v17997_v37  ;;  %12932 = vst [vmem:[#allocation6 + $0x40] sm:$0xff] %v12897_v61   ;;  %v10881_v38 = vld [vmem:[#allocation9 + $0x1d8] sm:$0xff]  ;;  %v10883_v22 = vld [vmem:[#allocation9 + $0x1e8] sm:$0xff] }
 0x974   :  { %11824 = vmatprep.subr.bf16.mxu0 %v10859_v43  ;;  %v10964_v43 = vld [vmem:[#allocation9 + $0x470] sm:$0xff] }
 0x975   :  { %11852 = vmatprep.mubr.bf16.mxu0 %v12719_v28  ;;  %v11420_v27 = vpop.f32.mrb[0].mxu0  ;;  %v10967_v28 = vld [vmem:[#allocation9 + $0x488] sm:$0xff] }
 0x976   :  { %v13739_v16 = vpop.f32.mrb[1].mxu0 }
 0x977   :  { %11825 = vmatpush1.bf16.msra.mxu0 %v10858_v26  ;;  %v11423_v25 = vpop.f32.mrb[2].mxu0  ;;  %v10885_v16 = vld [vmem:[#allocation9 + $0x1f8] sm:$0xff] }
 0x978   :  { %11826 = vmatprep.subr.bf16.mxu0 %v10861_v46  ;;  %v12877_v40 = vpack.c.bf16 %v11423_v25, %v11420_v27  ;;  %v13740_v45 = vpop.f32.mrb[3].mxu0  ;;  %v10882_v46 = vld [vmem:[#allocation9 + $0x1e0] sm:$0xff]  ;;  %v10884_v25 = vld [vmem:[#allocation9 + $0x1f0] sm:$0xff] }
 0x979   :  { %v11628_v17 = vld [vmem:[#allocation6 + $0x18] sm:$0xff]   ;;  %v10966_v27 = vld [vmem:[#allocation9 + $0x480] sm:$0xff]  ;;  %v10971_v45 = vld [vmem:[#allocation9 + $0x4a8] sm:$0xff] }
 0x97a   :  { %11629 = vst [vmem:[#allocation7 + $0x18] sm:$0xff] %v11628_v17   ;;  %12928 = vst [vmem:[#allocation6 + $0x20] sm:$0xff] %v12877_v40   ;;  %v11648_v26 = vld [vmem:[#allocation6 + $0x40] sm:$0xff]   ;;  %v10887_v40 = vld [vmem:[#allocation9 + $0x208] sm:$0xff] }
 0x97b   :  { %11827 = vmatpush1.bf16.msra.mxu0 %v10860_v21  ;;  %11649 = vst [vmem:[#allocation7 + $0x40] sm:$0xff] %v11648_v26   ;;  %v10969_v21 = vld [vmem:[#allocation9 + $0x498] sm:$0xff]  ;;  %v18005_v17 = vld [vmem:[#allocation7 + $0x10] sm:$0xff] }
 0x97c   :  { %11828 = vmatprep.subr.bf16.mxu0 %v10863_v32  ;;  %v10968_v32 = vld [vmem:[#allocation9 + $0x490] sm:$0xff] }
 0x97d   :  { %v11428_v23 = vpop.f32.mrb[4].mxu0  ;;  %v10984_v26 = vld [vmem:[#allocation9 + $0x510] sm:$0xff] }
 0x97e   :  { %v13743_v20 = vpop.f32.mrb[5].mxu0 }
 0x97f   :  { %11829 = vmatpush1.bf16.msra.mxu0 %v10862_v39  ;;  %v11431_v42 = vpop.f32.mrb[6].mxu0  ;;  %v12718_v39 = vcombine.low %v17997_v37, %v17997_v37  ;;  %v12721_v20 = vcombine.high %v18005_v17, %v18005_v17  ;;  %v10888_v37 = vld [vmem:[#allocation9 + $0x210] sm:$0xff] }
 0x980   :  { %11830 = vmatprep.subr.bf16.mxu0 %v10865_v47  ;;  %v12882_v34 = vpack.c.bf16 %v11431_v42, %v11428_v23  ;;  %v13744_v44 = vpop.f32.mrb[7].mxu0  ;;  %v10886_v47 = vld [vmem:[#allocation9 + $0x200] sm:$0xff]  ;;  %v10889_v42 = vld [vmem:[#allocation9 + $0x218] sm:$0xff] }
 0x981   :  { %v11669_v30 = vld [vmem:[#allocation7 + $0x18] sm:$0xff] }
 0x982   :  { %v11632_v8 = vld [vmem:[#allocation6 + $0x20] sm:$0xff]   ;;  %v12722_v0 = vcombine.low %v11669_v30, %v11669_v30  ;;  %v12723_v1 = vcombine.high %v11669_v30, %v11669_v30  ;;  %12929 = vst [vmem:[#allocation6 + $0x28] sm:$0xff] %v12882_v34  }
 0x983   :  { %11831 = vmatpush1.bf16.msra.mxu0 %v10864_v36  ;;  %11633 = vst [vmem:[#allocation7 + $0x20] sm:$0xff] %v11632_v8   ;;  %v10970_v36 = vld [vmem:[#allocation9 + $0x4a0] sm:$0xff]  ;;  %v10973_v34 = vld [vmem:[#allocation9 + $0x4b8] sm:$0xff] }
 0x984   :  { %11832 = vmatprep.subr.bf16.mxu0 %v10867_v31  ;;  %11934 = vmatprep.mubr.bf16.mxu1 %v12723_v1  ;;  %v10891_v1 = vld [vmem:[#allocation9 + $0x228] sm:$0xff] }
 0x985   :  { %11935 = vmatmul.mubr.bf16.vlgmr.msra.gmra.mrb[52].mxu1 %v12722_v0  ;;  %v11436_v23 = vpop.f32.mrb[8].mxu0  ;;  %v10972_v0 = vld [vmem:[#allocation9 + $0x4b0] sm:$0xff] }
 0x986   :  { %11944 = vmatpush1.bf16.msra.mxu1 %v10950_v3  ;;  %v13747_v31 = vpop.f32.mrb[9].mxu0  ;;  %v10890_v3 = vld [vmem:[#allocation9 + $0x220] sm:$0xff] }
 0x987   :  { %11833 = vmatpush1.bf16.msra.mxu0 %v10866_v2  ;;  %11945 = vmatprep.subr.bf16.mxu1 %v10953_v4  ;;  %v11439_v44 = vpop.f32.mrb[10].mxu0  ;;  %v10975_v2 = vld [vmem:[#allocation9 + $0x4c8] sm:$0xff]  ;;  %v10893_v4 = vld [vmem:[#allocation9 + $0x238] sm:$0xff] }
 0x988   :  { %11834 = vmatprep.subr.bf16.mxu0 %v10869_v41  ;;  %v12887_v30 = vpack.c.bf16 %v11439_v44, %v11436_v23  ;;  %v13748_v8 = vpop.f32.mrb[11].mxu0  ;;  %v10974_v41 = vld [vmem:[#allocation9 + $0x4c0] sm:$0xff]  ;;  %v10904_v23 = vld [vmem:[#allocation9 + $0x290] sm:$0xff]  ;;  %v10907_v31 = vld [vmem:[#allocation9 + $0x2a8] sm:$0xff] }
 0x989   :  { %v11636_v12 = vld [vmem:[#allocation6 + $0x28] sm:$0xff]   ;;  %v10991_v44 = vld [vmem:[#allocation9 + $0x548] sm:$0xff] }
 0x98a   :  { %v18001_v11 = vld [vmem:[#allocation7 + $0x20] sm:$0xff]  ;;  %11946 = vmatpush1.bf16.msra.mxu1 %v10952_v6  ;;  %11637 = vst [vmem:[#allocation7 + $0x28] sm:$0xff] %v11636_v12   ;;  %12930 = vst [vmem:[#allocation6 + $0x30] sm:$0xff] %v12887_v30   ;;  %v11460_v6 = vpop.f32.mrb[36].mxu1 }
 0x98b   :  { %11835 = vmatpush1.bf16.msra.mxu0 %v10868_v5  ;;  %v12725_v13 = vcombine.high %v18001_v11, %v18001_v11  ;;  %11947 = vmatprep.subr.bf16.mxu1 %v10955_v19  ;;  %v10977_v5 = vld [vmem:[#allocation9 + $0x4d8] sm:$0xff]  ;;  %v10892_v19 = vld [vmem:[#allocation9 + $0x230] sm:$0xff] }
 0x98c   :  { %11836 = vmatprep.subr.bf16.mxu0 %v10871_v10  ;;  %v13759_v10 = vpop.f32.mrb[37].mxu1 }
 0x98d   :  { %11975 = vmatprep.mubr.bf16.mxu1 %v12725_v13  ;;  %v11463_v13 = vpop.f32.mrb[38].mxu1  ;;  %v10910_v10 = vld [vmem:[#allocation9 + $0x2c0] sm:$0xff] }
 0x98e   :  { %11948 = vmatpush1.bf16.msra.mxu1 %v10954_v15  ;;  %v10895_v15 = vld [vmem:[#allocation9 + $0x248] sm:$0xff] }
 0x98f   :  { %11837 = vmatpush1.bf16.msra.mxu0 %v10870_v14  ;;  %11949 = vmatprep.subr.bf16.mxu1 %v10957_v9  ;;  %v10976_v14 = vld [vmem:[#allocation9 + $0x4d0] sm:$0xff]  ;;  %v13760_v9 = vpop.f32.mrb[39].mxu1 }
 0x990   :  { %11838 = vmatprep.subr.bf16.mxu0 %v10873_v24  ;;  %v12902_v24 = vpack.c.bf16 %v11463_v13, %v11460_v6  ;;  %v10995_v6 = vld [vmem:[#allocation9 + $0x568] sm:$0xff]  ;;  %v10997_v13 = vld [vmem:[#allocation9 + $0x578] sm:$0xff] }
 0x991   :  { %v11640_v12 = vld [vmem:[#allocation6 + $0x30] sm:$0xff]  }
 0x992   :  { %11950 = vmatpush1.bf16.msra.mxu1 %v10956_v48  ;;  %11641 = vst [vmem:[#allocation7 + $0x30] sm:$0xff] %v11640_v12   ;;  %12933 = vst [vmem:[#allocation6 + $0x48] sm:$0xff] %v12902_v24   ;;  %v10894_v48 = vld [vmem:[#allocation9 + $0x240] sm:$0xff]  ;;  %v10913_v12 = vld [vmem:[#allocation9 + $0x2d8] sm:$0xff] }
 0x993   :  { %11839 = vmatpush1.bf16.msra.mxu0 %v10872_v35  ;;  %11951 = vmatprep.subr.bf16.mxu1 %v10959_v50  ;;  %v10979_v35 = vld [vmem:[#allocation9 + $0x4e8] sm:$0xff]  ;;  %v10897_v50 = vld [vmem:[#allocation9 + $0x258] sm:$0xff] }
 0x994   :  { %11840 = vmatprep.subr.bf16.mxu0 %v10875_v49  ;;  %v10978_v49 = vld [vmem:[#allocation9 + $0x4e0] sm:$0xff]  ;;  %v10915_v24 = vld [vmem:[#allocation9 + $0x2e8] sm:$0xff] }
 0x995   :  { %v10999_v9 = vld [vmem:[#allocation9 + $0x588] sm:$0xff] }
 0x996   :  { %11952 = vmatpush1.bf16.msra.mxu1 %v10958_v52  ;;  %v11468_v52 = vpop.f32.mrb[40].mxu1 }
 0x997   :  { %11841 = vmatpush1.bf16.msra.mxu0 %v10874_v51  ;;  %11953 = vmatprep.subr.bf16.mxu1 %v10961_v54  ;;  %v10981_v51 = vld [vmem:[#allocation9 + $0x4f8] sm:$0xff]  ;;  %v10896_v54 = vld [vmem:[#allocation9 + $0x250] sm:$0xff] }
 0x998   :  { %11842 = vmatprep.subr.bf16.mxu0 %v10877_v53  ;;  %v13763_v53 = vpop.f32.mrb[41].mxu1 }
 0x999   :  { %v11471_v55 = vpop.f32.mrb[42].mxu1  ;;  %v11652_v61 = vld [vmem:[#allocation6 + $0x48] sm:$0xff]   ;;  %v11003_v53 = vld [vmem:[#allocation9 + $0x5a8] sm:$0xff] }
 0x99a   :  { %11954 = vmatpush1.bf16.msra.mxu1 %v10960_v58  ;;  %v12907_v58 = vpack.c.bf16 %v11471_v55, %v11468_v52  ;;  %v13764_v7 = vpop.f32.mrb[43].mxu1  ;;  %11653 = vst [vmem:[#allocation7 + $0x48] sm:$0xff] %v11652_v61   ;;  %v11000_v52 = vld [vmem:[#allocation9 + $0x590] sm:$0xff]  ;;  %v11444_v55 = vpop.f32.mrb[12].mxu0 }
 0x99b   :  { %11843 = vmatpush1.bf16.msra.mxu0 %v10876_v57  ;;  %11955 = vmatprep.subr.bf16.mxu1 %v10963_v60  ;;  %v10899_v57 = vld [vmem:[#allocation9 + $0x268] sm:$0xff] }
 0x99c   :  { %11844 = vmatprep.subr.bf16.mxu0 %v10879_v59  ;;  %v10983_v59 = vld [vmem:[#allocation9 + $0x508] sm:$0xff]  ;;  %12934 = vst [vmem:[#allocation6 + $0x50] sm:$0xff] %v12907_v58   ;;  %v11005_v58 = vld [vmem:[#allocation9 + $0x5b8] sm:$0xff] }
 0x99d   :  { %v18011_v60 = vld [vmem:[#allocation7 + $0x28] sm:$0xff] }
 0x99e   :  { %11956 = vmatpush1.bf16.msra.mxu1 %v10962_v18  ;;  %v10982_v18 = vld [vmem:[#allocation9 + $0x500] sm:$0xff] }
 0x99f   :  { %11845 = vmatpush1.bf16.msra.mxu0 %v10878_v63  ;;  %11957 = vmatprep.subr.bf16.mxu1 %v10965_v33  ;;  %v12724_v63 = vcombine.low %v18001_v11, %v18001_v11  ;;  %v12727_v33 = vcombine.high %v18011_v60, %v18011_v60  ;;  %v10987_v11 = vld [vmem:[#allocation9 + $0x528] sm:$0xff] }
 0x9a0   :  { %11846 = vmatprep.subr.bf16.mxu0 %v10881_v38  ;;  %v10901_v38 = vld [vmem:[#allocation9 + $0x278] sm:$0xff] }
 0x9a2   :  { %11958 = vmatpush1.bf16.msra.mxu1 %v10964_v43  ;;  %v11476_v43 = vpop.f32.mrb[44].mxu1 }
 0x9a3   :  { %11847 = vmatpush1.bf16.msra.mxu0 %v10880_v29  ;;  %11959 = vmatprep.subr.bf16.mxu1 %v10967_v28  ;;  %v10985_v29 = vld [vmem:[#allocation9 + $0x518] sm:$0xff]  ;;  %v13767_v28 = vpop.f32.mrb[45].mxu1 }
 0x9a4   :  { %11848 = vmatprep.subr.bf16.mxu0 %v10883_v22  ;;  %v10900_v22 = vld [vmem:[#allocation9 + $0x270] sm:$0xff] }
 0x9a5   :  { %v11012_v28 = vld [vmem:[#allocation9 + $0x5f0] sm:$0xff] }
 0x9a6   :  { %11960 = vmatpush1.bf16.msra.mxu1 %v10966_v27  ;;  %v11479_v27 = vpop.f32.mrb[46].mxu1 }
 0x9a7   :  { %11849 = vmatpush1.bf16.msra.mxu0 %v10882_v46  ;;  %11961 = vmatprep.subr.bf16.mxu1 %v10969_v21  ;;  %v10903_v46 = vld [vmem:[#allocation9 + $0x288] sm:$0xff]  ;;  %v12912_v21 = vpack.c.bf16 %v11479_v27, %v11476_v43  ;;  %v11010_v43 = vld [vmem:[#allocation9 + $0x5e0] sm:$0xff] }
 0x9a8   :  { %11850 = vmatprep.subr.bf16.mxu0 %v10885_v16  ;;  %v11656_v16 = vld [vmem:[#allocation6 + $0x50] sm:$0xff]  }
 0x9a9   :  { %11657 = vst [vmem:[#allocation7 + $0x50] sm:$0xff] %v11656_v16   ;;  %12935 = vst [vmem:[#allocation6 + $0x58] sm:$0xff] %v12912_v21   ;;  %v11014_v16 = vld [vmem:[#allocation9 + $0x600] sm:$0xff]  ;;  %v11017_v21 = vld [vmem:[#allocation9 + $0x618] sm:$0xff] }
 0x9aa   :  { %11962 = vmatpush1.bf16.msra.mxu1 %v10968_v32  ;;  %v10902_v32 = vld [vmem:[#allocation9 + $0x280] sm:$0xff] }
 0x9ab   :  { %11851 = vmatpush1.bf16.msra.mxu0 %v10884_v25  ;;  %11963 = vmatprep.subr.bf16.mxu1 %v10971_v45  ;;  %v13768_v25 = vpop.f32.mrb[47].mxu1  ;;  %v10905_v45 = vld [vmem:[#allocation9 + $0x298] sm:$0xff] }
 0x9ac   :  { %11861 = vmatprep.subr.bf16.mxu0 %v10887_v40  ;;  %v10986_v40 = vld [vmem:[#allocation9 + $0x520] sm:$0xff]  ;;  %v11016_v25 = vld [vmem:[#allocation9 + $0x610] sm:$0xff] }
 0x9ae   :  { %11853 = vmatmul.mubr.bf16.vlgmr.msra.gmra.mrb[16].mxu0 %v12718_v39  ;;  %11964 = vmatpush1.bf16.msra.mxu1 %v10970_v36  ;;  %v10989_v39 = vld [vmem:[#allocation9 + $0x538] sm:$0xff] }
 0x9af   :  { %11862 = vmatpush1.bf16.msra.mxu0 %v10886_v47  ;;  %11893 = vmatprep.mubr.bf16.mxu0 %v12721_v20  ;;  %v11484_v47 = vpop.f32.mrb[48].mxu1 }
 0x9b0   :  { %11863 = vmatprep.subr.bf16.mxu0 %v10889_v42  ;;  %11965 = vmatprep.subr.bf16.mxu1 %v10973_v34  ;;  %v12793_v20 = vpack.c.bf16 %v11484_v47, %v11484_v47  ;;  %v13771_v36 = vpop.f32.mrb[49].mxu1  ;;  %v10988_v42 = vld [vmem:[#allocation9 + $0x530] sm:$0xff]  ;;  %v11023_v47 = vld [vmem:[#allocation9 + $0x648] sm:$0xff] }
 0x9b1   :  { %v11487_v34 = vpop.f32.mrb[50].mxu1  ;;  %v11660_v8 = vld [vmem:[#allocation6 + $0x58] sm:$0xff]   ;;  %v11027_v36 = vld [vmem:[#allocation9 + $0x668] sm:$0xff] }
 0x9b2   :  { %11966 = vmatpush1.bf16.msra.mxu1 %v10972_v0  ;;  %11615 = vst [vmem:[#allocation6 + $0x60] sm:$0xf] %v12793_v20  ;;  %v13772_v30 = vpop.f32.mrb[51].mxu1  ;;  %11661 = vst [vmem:[#allocation7 + $0x58] sm:$0xff] %v11660_v8   ;;  %v10990_v0 = vld [vmem:[#allocation9 + $0x540] sm:$0xff]  ;;  %v11024_v20 = vld [vmem:[#allocation9 + $0x650] sm:$0xff] }
 0x9b3   :  { %11864 = vmatpush1.bf16.msra.mxu0 %v10888_v37  ;;  %11967 = vmatprep.subr.bf16.mxu1 %v10975_v2  ;;  %v10906_v37 = vld [vmem:[#allocation9 + $0x2a0] sm:$0xff]  ;;  %v10993_v2 = vld [vmem:[#allocation9 + $0x558] sm:$0xff]  ;;  %v11028_v34 = vld [vmem:[#allocation9 + $0x670] sm:$0xff] }
 0x9b4   :  { %11865 = vmatprep.subr.bf16.mxu0 %v10891_v1  ;;  %v10909_v1 = vld [vmem:[#allocation9 + $0x2b8] sm:$0xff]  ;;  %v11030_v30 = vld [vmem:[#allocation9 + $0x680] sm:$0xff] }
 0x9b5   :  { %v11033_v8 = vld [vmem:[#allocation9 + $0x698] sm:$0xff] }
 0x9b6   :  { %11968 = vmatpush1.bf16.msra.mxu1 %v10974_v41  ;;  %v10992_v41 = vld [vmem:[#allocation9 + $0x550] sm:$0xff] }
 0x9b7   :  { %11866 = vmatpush1.bf16.msra.mxu0 %v10890_v3  ;;  %11969 = vmatprep.subr.bf16.mxu1 %v10977_v5  ;;  %v10908_v3 = vld [vmem:[#allocation9 + $0x2b0] sm:$0xff] }
 0x9b8   :  { %11867 = vmatprep.subr.bf16.mxu0 %v10893_v4  ;;  %v10911_v4 = vld [vmem:[#allocation9 + $0x2c8] sm:$0xff] }
 0x9b9   :  { %v11664_v5 = vld [vmem:[#allocation6 + $0x60] sm:$0xf] }
 0x9ba   :  { %11970 = vmatpush1.bf16.msra.mxu1 %v10976_v14  ;;  %11665 = vst [vmem:[#allocation7 + $0x60] sm:$0xf] %v11664_v5  ;;  %v10912_v14 = vld [vmem:[#allocation9 + $0x2d0] sm:$0xff]  ;;  %v11041_v5 = vld [vmem:[#allocation9 + $0x6d8] sm:$0xff] }
 0x9bb   :  { %11868 = vmatpush1.bf16.msra.mxu0 %v10892_v19  ;;  %11971 = vmatprep.subr.bf16.mxu1 %v10979_v35  ;;  %v10994_v19 = vld [vmem:[#allocation9 + $0x560] sm:$0xff] }
 0x9bc   :  { %11869 = vmatprep.subr.bf16.mxu0 %v10895_v15  ;;  %v10996_v15 = vld [vmem:[#allocation9 + $0x570] sm:$0xff]  ;;  %v10914_v35 = vld [vmem:[#allocation9 + $0x2e0] sm:$0xff] }
 0x9be   :  { %11972 = vmatpush1.bf16.msra.mxu1 %v10978_v49  ;;  %v10917_v49 = vld [vmem:[#allocation9 + $0x2f8] sm:$0xff] }
 0x9bf   :  { %11870 = vmatpush1.bf16.msra.mxu0 %v10894_v48  ;;  %11973 = vmatprep.subr.bf16.mxu1 %v10981_v51  ;;  %v10998_v48 = vld [vmem:[#allocation9 + $0x580] sm:$0xff]  ;;  %v10916_v51 = vld [vmem:[#allocation9 + $0x2f0] sm:$0xff] }
 0x9c0   :  { %11871 = vmatprep.subr.bf16.mxu0 %v10897_v50  ;;  %v11001_v50 = vld [vmem:[#allocation9 + $0x598] sm:$0xff] }
 0x9c2   :  { %11974 = vmatpush1.bf16.msra.mxu1 %v10980_v56  ;;  %v11002_v56 = vld [vmem:[#allocation9 + $0x5a0] sm:$0xff] }
 0x9c3   :  { %11872 = vmatpush1.bf16.msra.mxu0 %v10896_v54  ;;  %11984 = vmatprep.subr.bf16.mxu1 %v10983_v59  ;;  %v12720_v54 = vcombine.low %v18005_v17, %v18005_v17 }
 0x9c4   :  { %11873 = vmatprep.subr.bf16.mxu0 %v10899_v57  ;;  %v13751_v57 = vpop.f32.mrb[13].mxu0 }
 0x9c5   :  { %11976 = vmatmul.mubr.bf16.vlgmr.msra.gmra.mrb[52].mxu1 %v12724_v63  ;;  %v11447_v7 = vpop.f32.mrb[14].mxu0  ;;  %v11007_v63 = vld [vmem:[#allocation9 + $0x5c8] sm:$0xff]  ;;  %v11056_v57 = vld [vmem:[#allocation9 + $0x750] sm:$0xff] }
 0x9c6   :  { %11985 = vmatpush1.bf16.msra.mxu1 %v10982_v18  ;;  %12016 = vmatprep.mubr.bf16.mxu1 %v12727_v33  ;;  %v12892_v59 = vpack.c.bf16 %v11447_v7, %v11444_v55  ;;  %v13752_v61 = vpop.f32.mrb[15].mxu0  ;;  %v11006_v18 = vld [vmem:[#allocation9 + $0x5c0] sm:$0xff]  ;;  %v11008_v33 = vld [vmem:[#allocation9 + $0x5d0] sm:$0xff] }
 0x9c7   :  { %11874 = vmatpush1.bf16.msra.mxu0 %v10898_v62  ;;  %11986 = vmatprep.subr.bf16.mxu1 %v10985_v29  ;;  %v11004_v62 = vld [vmem:[#allocation9 + $0x5b0] sm:$0xff]  ;;  %v11011_v29 = vld [vmem:[#allocation9 + $0x5e8] sm:$0xff]  ;;  %v11054_v55 = vld [vmem:[#allocation9 + $0x740] sm:$0xff] }
 0x9c8   :  { %11875 = vmatprep.subr.bf16.mxu0 %v10901_v38  ;;  %12931 = vst [vmem:[#allocation6 + $0x38] sm:$0xff] %v12892_v59   ;;  %v11009_v38 = vld [vmem:[#allocation9 + $0x5d8] sm:$0xff]  ;;  %v11058_v7 = vld [vmem:[#allocation9 + $0x760] sm:$0xff]  ;;  %v11060_v61 = vld [vmem:[#allocation9 + $0x770] sm:$0xff] }
 0x9c9   :  { %v11061_v59 = vld [vmem:[#allocation9 + $0x778] sm:$0xff] }
 0x9ca   :  { %11987 = vmatpush1.bf16.msra.mxu1 %v10984_v26  ;;  %v18019_v26 = vld [vmem:[#allocation7 + $0x30] sm:$0xff] }
 0x9cb   :  { %11876 = vmatpush1.bf16.msra.mxu0 %v10900_v22  ;;  %11988 = vmatprep.subr.bf16.mxu1 %v10987_v11  ;;  %v11013_v22 = vld [vmem:[#allocation9 + $0x5f8] sm:$0xff]  ;;  %v12729_v27 = vcombine.high %v18019_v26, %v18019_v26  ;;  %v12726_v11 = vcombine.low %v18011_v60, %v18011_v60  ;;  %v11022_v60 = vld [vmem:[#allocation9 + $0x640] sm:$0xff] }
 0x9cc   :  { %11877 = vmatprep.subr.bf16.mxu0 %v10903_v46  ;;  %v11015_v46 = vld [vmem:[#allocation9 + $0x608] sm:$0xff] }
 0x9ce   :  { %11989 = vmatpush1.bf16.msra.mxu1 %v10986_v40  ;;  %v11018_v40 = vld [vmem:[#allocation9 + $0x620] sm:$0xff] }
 0x9cf   :  { %11878 = vmatpush1.bf16.msra.mxu0 %v10902_v32  ;;  %11990 = vmatprep.subr.bf16.mxu1 %v10989_v39  ;;  %v11644_v17 = vld [vmem:[#allocation6 + $0x38] sm:$0xff]   ;;  %v11019_v32 = vld [vmem:[#allocation9 + $0x628] sm:$0xff] }
 0x9d0   :  { %11879 = vmatprep.subr.bf16.mxu0 %v10905_v45  ;;  %11645 = vst [vmem:[#allocation7 + $0x38] sm:$0xff] %v11644_v17   ;;  %v11021_v45 = vld [vmem:[#allocation9 + $0x638] sm:$0xff]  ;;  %v11020_v39 = vld [vmem:[#allocation9 + $0x630] sm:$0xff]  ;;  %v11067_v17 = vld [vmem:[#allocation9 + $0x7a8] sm:$0xff] }
 0x9d2   :  { %11991 = vmatpush1.bf16.msra.mxu1 %v10988_v42  ;;  %v11026_v42 = vld [vmem:[#allocation9 + $0x660] sm:$0xff] }
 0x9d3   :  { %11880 = vmatpush1.bf16.msra.mxu0 %v10904_v23  ;;  %11992 = vmatprep.subr.bf16.mxu1 %v10991_v44  ;;  %v11025_v23 = vld [vmem:[#allocation9 + $0x658] sm:$0xff]  ;;  %v11031_v44 = vld [vmem:[#allocation9 + $0x688] sm:$0xff] }
 0x9d4   :  { %11881 = vmatprep.subr.bf16.mxu0 %v10907_v31  ;;  %v11029_v31 = vld [vmem:[#allocation9 + $0x678] sm:$0xff] }
 0x9d6   :  { %11993 = vmatpush1.bf16.msra.mxu1 %v10990_v0  ;;  %v11035_v0 = vld [vmem:[#allocation9 + $0x6a8] sm:$0xff] }
 0x9d7   :  { %11882 = vmatpush1.bf16.msra.mxu0 %v10906_v37  ;;  %11994 = vmatprep.subr.bf16.mxu1 %v10993_v2  ;;  %v11032_v37 = vld [vmem:[#allocation9 + $0x690] sm:$0xff]  ;;  %v11037_v2 = vld [vmem:[#allocation9 + $0x6b8] sm:$0xff] }
 0x9d8   :  { %11883 = vmatprep.subr.bf16.mxu0 %v10909_v1  ;;  %v11034_v1 = vld [vmem:[#allocation9 + $0x6a0] sm:$0xff] }
 0x9da   :  { %11995 = vmatpush1.bf16.msra.mxu1 %v10992_v41  ;;  %v11039_v41 = vld [vmem:[#allocation9 + $0x6c8] sm:$0xff] }
 0x9db   :  { %11884 = vmatpush1.bf16.msra.mxu0 %v10908_v3  ;;  %11996 = vmatprep.subr.bf16.mxu1 %v10995_v6  ;;  %v11036_v3 = vld [vmem:[#allocation9 + $0x6b0] sm:$0xff] }
 0x9dc   :  { %11885 = vmatprep.subr.bf16.mxu0 %v10911_v4  ;;  %v11038_v4 = vld [vmem:[#allocation9 + $0x6c0] sm:$0xff]  ;;  %v11040_v6 = vld [vmem:[#allocation9 + $0x6d0] sm:$0xff] }
 0x9de   :  { %11997 = vmatpush1.bf16.msra.mxu1 %v10994_v19  ;;  %v11042_v19 = vld [vmem:[#allocation9 + $0x6e0] sm:$0xff] }
 0x9df   :  { %11886 = vmatpush1.bf16.msra.mxu0 %v10910_v10  ;;  %11998 = vmatprep.subr.bf16.mxu1 %v10997_v13  ;;  %v11043_v10 = vld [vmem:[#allocation9 + $0x6e8] sm:$0xff]  ;;  %v11044_v13 = vld [vmem:[#allocation9 + $0x6f0] sm:$0xff] }
 0x9e0   :  { %11887 = vmatprep.subr.bf16.mxu0 %v10913_v12  ;;  %v11045_v12 = vld [vmem:[#allocation9 + $0x6f8] sm:$0xff] }
 0x9e2   :  { %11999 = vmatpush1.bf16.msra.mxu1 %v10996_v15  ;;  %v11047_v15 = vld [vmem:[#allocation9 + $0x708] sm:$0xff] }
 0x9e3   :  { %11888 = vmatpush1.bf16.msra.mxu0 %v10912_v14  ;;  %12000 = vmatprep.subr.bf16.mxu1 %v10999_v9  ;;  %v18025_v14 = vld [vmem:[#allocation7 + $0x38] sm:$0xff]  ;;  %v12728_v9 = vcombine.low %v18019_v26, %v18019_v26 }
 0x9e4   :  { %11889 = vmatprep.subr.bf16.mxu0 %v10915_v24  ;;  %v12731_v24 = vcombine.high %v18025_v14, %v18025_v14  ;;  %v11073_v26 = vld [vmem:[#allocation9 + $0x7d8] sm:$0xff] }
 0x9e6   :  { %12001 = vmatpush1.bf16.msra.mxu1 %v10998_v48  ;;  %v11049_v48 = vld [vmem:[#allocation9 + $0x718] sm:$0xff] }
 0x9e7   :  { %11890 = vmatpush1.bf16.msra.mxu0 %v10914_v35  ;;  %12002 = vmatprep.subr.bf16.mxu1 %v11001_v50  ;;  %v11046_v35 = vld [vmem:[#allocation9 + $0x700] sm:$0xff]  ;;  %v11051_v50 = vld [vmem:[#allocation9 + $0x728] sm:$0xff] }
 0x9e8   :  { %11891 = vmatprep.subr.bf16.mxu0 %v10917_v49  ;;  %v11048_v49 = vld [vmem:[#allocation9 + $0x710] sm:$0xff] }
 0x9ea   :  { %12003 = vmatpush1.bf16.msra.mxu1 %v11000_v52  ;;  %v11053_v52 = vld [vmem:[#allocation9 + $0x738] sm:$0xff] }
 0x9eb   :  { %11892 = vmatpush1.bf16.msra.mxu0 %v10916_v51  ;;  %12004 = vmatprep.subr.bf16.mxu1 %v11003_v53  ;;  %v11050_v51 = vld [vmem:[#allocation9 + $0x720] sm:$0xff]  ;;  %v11052_v53 = vld [vmem:[#allocation9 + $0x730] sm:$0xff] }
 0x9ee   :  { %11894 = vmatmul.mubr.bf16.vlgmr.msra.gmra.mrb[16].mxu0 %v12720_v54  ;;  %12005 = vmatpush1.bf16.msra.mxu1 %v11002_v56  ;;  %v11055_v54 = vld [vmem:[#allocation9 + $0x748] sm:$0xff]  ;;  %v11057_v56 = vld [vmem:[#allocation9 + $0x758] sm:$0xff] }
 0x9ef   :  { %12006 = vmatprep.subr.bf16.mxu1 %v11005_v58  ;;  %v11059_v58 = vld [vmem:[#allocation9 + $0x768] sm:$0xff] }
 0x9f2   :  { %12007 = vmatpush1.bf16.msra.mxu1 %v11004_v62  ;;  %v11063_v62 = vld [vmem:[#allocation9 + $0x788] sm:$0xff] }
 0x9f3   :  { %12008 = vmatprep.subr.bf16.mxu1 %v11007_v63  ;;  %v11062_v63 = vld [vmem:[#allocation9 + $0x780] sm:$0xff] }
 0x9f6   :  { %12009 = vmatpush1.bf16.msra.mxu1 %v11006_v18  ;;  %v11065_v18 = vld [vmem:[#allocation9 + $0x798] sm:$0xff] }
 0x9f7   :  { %12010 = vmatprep.subr.bf16.mxu1 %v11009_v38  ;;  %v11064_v38 = vld [vmem:[#allocation9 + $0x790] sm:$0xff] }
 0x9fa   :  { %12011 = vmatpush1.bf16.msra.mxu1 %v11008_v33  ;;  %v11066_v33 = vld [vmem:[#allocation9 + $0x7a0] sm:$0xff] }
 0x9fb   :  { %12012 = vmatprep.subr.bf16.mxu1 %v11011_v29  ;;  %v11069_v29 = vld [vmem:[#allocation9 + $0x7b8] sm:$0xff] }
 0x9fe   :  { %12013 = vmatpush1.bf16.msra.mxu1 %v11010_v43  ;;  %v11068_v43 = vld [vmem:[#allocation9 + $0x7b0] sm:$0xff] }
 0x9ff   :  { %12014 = vmatprep.subr.bf16.mxu1 %v11013_v22  ;;  %v11071_v22 = vld [vmem:[#allocation9 + $0x7c8] sm:$0xff] }
 0xa02   :  { %12015 = vmatpush1.bf16.msra.mxu1 %v11012_v28  ;;  %v11070_v28 = vld [vmem:[#allocation9 + $0x7c0] sm:$0xff] }
 0xa03   :  { %12025 = vmatprep.subr.bf16.mxu1 %v11015_v46  ;;  %v11072_v46 = vld [vmem:[#allocation9 + $0x7d0] sm:$0xff] }
 0xa05   :  { %12017 = vmatmul.mubr.bf16.vlgmr.msra.gmra.mrb[52].mxu1 %v12726_v11  ;;  %v11074_v11 = vld [vmem:[#allocation9 + $0x7e0] sm:$0xff] }
 0xa06   :  { %12026 = vmatpush1.bf16.msra.mxu1 %v11014_v16  ;;  %12057 = vmatprep.mubr.bf16.mxu1 %v12729_v27  ;;  %v11075_v27 = vld [vmem:[#allocation9 + $0x7e8] sm:$0xff]  ;;  %v11077_v16 = vld [vmem:[#allocation9 + $0x7f8] sm:$0xff] }
 0xa07   :  { %12027 = vmatprep.subr.bf16.mxu1 %v11017_v21  ;;  %v11076_v21 = vld [vmem:[#allocation9 + $0x7f0] sm:$0xff] }
 0xa0a   :  { %12028 = vmatpush1.bf16.msra.mxu1 %v11016_v25  ;;  %v11079_v25 = vld [vmem:[#allocation9 + $0x808] sm:$0xff] }
 0xa0b   :  { %12029 = vmatprep.subr.bf16.mxu1 %v11019_v32  ;;  %v18031_v32 = vld [vmem:[#allocation7 + $0x40] sm:$0xff] }
 0xa0e   :  { %12030 = vmatpush1.bf16.msra.mxu1 %v11018_v40  ;;  %v12730_v40 = vcombine.low %v18025_v14, %v18025_v14  ;;  %v11105_v14 = vld [vmem:[#allocation9 + $0x8d8] sm:$0xff] }
 0xa0f   :  { %12031 = vmatprep.subr.bf16.mxu1 %v11021_v45  ;;  %v11078_v45 = vld [vmem:[#allocation9 + $0x800] sm:$0xff] }
 0xa12   :  { %12032 = vmatpush1.bf16.msra.mxu1 %v11020_v39  ;;  %v12733_v39 = vcombine.high %v18031_v32, %v18031_v32 }
 0xa13   :  { %12033 = vmatprep.subr.bf16.mxu1 %v11023_v47  ;;  %v11081_v47 = vld [vmem:[#allocation9 + $0x818] sm:$0xff] }
 0xa16   :  { %12034 = vmatpush1.bf16.msra.mxu1 %v11022_v60  ;;  %v11080_v60 = vld [vmem:[#allocation9 + $0x810] sm:$0xff] }
 0xa17   :  { %12035 = vmatprep.subr.bf16.mxu1 %v11025_v23  ;;  %v11083_v23 = vld [vmem:[#allocation9 + $0x828] sm:$0xff] }
 0xa1a   :  { %12036 = vmatpush1.bf16.msra.mxu1 %v11024_v20  ;;  %v11082_v20 = vld [vmem:[#allocation9 + $0x820] sm:$0xff] }
 0xa1b   :  { %12037 = vmatprep.subr.bf16.mxu1 %v11027_v36  ;;  %v11085_v36 = vld [vmem:[#allocation9 + $0x838] sm:$0xff] }
 0xa1e   :  { %12038 = vmatpush1.bf16.msra.mxu1 %v11026_v42  ;;  %v11084_v42 = vld [vmem:[#allocation9 + $0x830] sm:$0xff] }
 0xa1f   :  { %12039 = vmatprep.subr.bf16.mxu1 %v11029_v31  ;;  %v11087_v31 = vld [vmem:[#allocation9 + $0x848] sm:$0xff] }
 0xa22   :  { %12040 = vmatpush1.bf16.msra.mxu1 %v11028_v34  ;;  %v11086_v34 = vld [vmem:[#allocation9 + $0x840] sm:$0xff] }
 0xa23   :  { %12041 = vmatprep.subr.bf16.mxu1 %v11031_v44  ;;  %v11089_v44 = vld [vmem:[#allocation9 + $0x858] sm:$0xff] }
 0xa26   :  { %12042 = vmatpush1.bf16.msra.mxu1 %v11030_v30  ;;  %v11088_v30 = vld [vmem:[#allocation9 + $0x850] sm:$0xff] }
 0xa27   :  { %12043 = vmatprep.subr.bf16.mxu1 %v11033_v8  ;;  %v11091_v8 = vld [vmem:[#allocation9 + $0x868] sm:$0xff] }
 0xa2a   :  { %12044 = vmatpush1.bf16.msra.mxu1 %v11032_v37  ;;  %v11090_v37 = vld [vmem:[#allocation9 + $0x860] sm:$0xff] }
 0xa2b   :  { %12045 = vmatprep.subr.bf16.mxu1 %v11035_v0  ;;  %v11093_v0 = vld [vmem:[#allocation9 + $0x878] sm:$0xff] }
 0xa2e   :  { %12046 = vmatpush1.bf16.msra.mxu1 %v11034_v1  ;;  %v11092_v1 = vld [vmem:[#allocation9 + $0x870] sm:$0xff] }
 0xa2f   :  { %12047 = vmatprep.subr.bf16.mxu1 %v11037_v2  ;;  %v11095_v2 = vld [vmem:[#allocation9 + $0x888] sm:$0xff] }
 0xa32   :  { %12048 = vmatpush1.bf16.msra.mxu1 %v11036_v3  ;;  %v11094_v3 = vld [vmem:[#allocation9 + $0x880] sm:$0xff] }
 0xa33   :  { %12049 = vmatprep.subr.bf16.mxu1 %v11039_v41  ;;  %v11097_v41 = vld [vmem:[#allocation9 + $0x898] sm:$0xff] }
 0xa36   :  { %12050 = vmatpush1.bf16.msra.mxu1 %v11038_v4  ;;  %v11096_v4 = vld [vmem:[#allocation9 + $0x890] sm:$0xff] }
 0xa37   :  { %12051 = vmatprep.subr.bf16.mxu1 %v11041_v5  ;;  %v11099_v5 = vld [vmem:[#allocation9 + $0x8a8] sm:$0xff] }
 0xa3a   :  { %12052 = vmatpush1.bf16.msra.mxu1 %v11040_v6  ;;  %v11098_v6 = vld [vmem:[#allocation9 + $0x8a0] sm:$0xff] }
 0xa3b   :  { %12053 = vmatprep.subr.bf16.mxu1 %v11043_v10  ;;  %v11101_v10 = vld [vmem:[#allocation9 + $0x8b8] sm:$0xff] }
 0xa3e   :  { %12054 = vmatpush1.bf16.msra.mxu1 %v11042_v19  ;;  %v11100_v19 = vld [vmem:[#allocation9 + $0x8b0] sm:$0xff] }
 0xa3f   :  { %12055 = vmatprep.subr.bf16.mxu1 %v11045_v12  ;;  %v11103_v12 = vld [vmem:[#allocation9 + $0x8c8] sm:$0xff] }
 0xa42   :  { %12056 = vmatpush1.bf16.msra.mxu1 %v11044_v13  ;;  %v11102_v13 = vld [vmem:[#allocation9 + $0x8c0] sm:$0xff] }
 0xa43   :  { %12066 = vmatprep.subr.bf16.mxu1 %v11047_v15  ;;  %v11104_v15 = vld [vmem:[#allocation9 + $0x8d0] sm:$0xff] }
 0xa45   :  { %12058 = vmatmul.mubr.bf16.vlgmr.msra.gmra.mrb[52].mxu1 %v12728_v9  ;;  %v11106_v9 = vld [vmem:[#allocation9 + $0x8e0] sm:$0xff] }
 0xa46   :  { %12067 = vmatpush1.bf16.msra.mxu1 %v11046_v35  ;;  %12098 = vmatprep.mubr.bf16.mxu1 %v12731_v24  ;;  %v11107_v24 = vld [vmem:[#allocation9 + $0x8e8] sm:$0xff]  ;;  %v11109_v35 = vld [vmem:[#allocation9 + $0x8f8] sm:$0xff] }
 0xa47   :  { %12068 = vmatprep.subr.bf16.mxu1 %v11049_v48 }
 0xa4a   :  { %12069 = vmatpush1.bf16.msra.mxu1 %v11048_v49  ;;  %v11108_v49 = vld [vmem:[#allocation9 + $0x8f0] sm:$0xff] }
 0xa4b   :  { %12070 = vmatprep.subr.bf16.mxu1 %v11051_v50 }
 0xa4e   :  { %12071 = vmatpush1.bf16.msra.mxu1 %v11050_v51  ;;  %v11111_v51 = vld [vmem:[#allocation9 + $0x908] sm:$0xff] }
 0xa4f   :  { %12072 = vmatprep.subr.bf16.mxu1 %v11053_v52 }
 0xa52   :  { %12073 = vmatpush1.bf16.msra.mxu1 %v11052_v53  ;;  %v18041_v53 = vld [vmem:[#allocation7 + $0x48] sm:$0xff] }
 0xa53   :  { %12074 = vmatprep.subr.bf16.mxu1 %v11055_v54 }
 0xa56   :  { %12075 = vmatpush1.bf16.msra.mxu1 %v11054_v55  ;;  %v12732_v55 = vcombine.low %v18031_v32, %v18031_v32  ;;  %v11132_v32 = vld [vmem:[#allocation9 + $0x9b0] sm:$0xff] }
 0xa57   :  { %12076 = vmatprep.subr.bf16.mxu1 %v11057_v56  ;;  %v11110_v56 = vld [vmem:[#allocation9 + $0x900] sm:$0xff] }
 0xa5a   :  { %12077 = vmatpush1.bf16.msra.mxu1 %v11056_v57  ;;  %v12735_v57 = vcombine.high %v18041_v53, %v18041_v53 }
 0xa5b   :  { %12078 = vmatprep.subr.bf16.mxu1 %v11059_v58  ;;  %v11113_v58 = vld [vmem:[#allocation9 + $0x918] sm:$0xff] }
 0xa5e   :  { %12079 = vmatpush1.bf16.msra.mxu1 %v11058_v7  ;;  %v11112_v7 = vld [vmem:[#allocation9 + $0x910] sm:$0xff] }
 0xa5f   :  { %12080 = vmatprep.subr.bf16.mxu1 %v11061_v59  ;;  %v11115_v59 = vld [vmem:[#allocation9 + $0x928] sm:$0xff] }
 0xa62   :  { %12081 = vmatpush1.bf16.msra.mxu1 %v11060_v61  ;;  %v11114_v61 = vld [vmem:[#allocation9 + $0x920] sm:$0xff] }
 0xa63   :  { %12082 = vmatprep.subr.bf16.mxu1 %v11063_v62  ;;  %v11117_v62 = vld [vmem:[#allocation9 + $0x938] sm:$0xff] }
 0xa66   :  { %12083 = vmatpush1.bf16.msra.mxu1 %v11062_v63  ;;  %v11116_v63 = vld [vmem:[#allocation9 + $0x930] sm:$0xff] }
 0xa67   :  { %12084 = vmatprep.subr.bf16.mxu1 %v11065_v18  ;;  %v11119_v18 = vld [vmem:[#allocation9 + $0x948] sm:$0xff] }
 0xa6a   :  { %12085 = vmatpush1.bf16.msra.mxu1 %v11064_v38  ;;  %v11118_v38 = vld [vmem:[#allocation9 + $0x940] sm:$0xff] }
 0xa6b   :  { %12086 = vmatprep.subr.bf16.mxu1 %v11067_v17  ;;  %v11121_v17 = vld [vmem:[#allocation9 + $0x958] sm:$0xff] }
 0xa6e   :  { %12087 = vmatpush1.bf16.msra.mxu1 %v11066_v33  ;;  %v11120_v33 = vld [vmem:[#allocation9 + $0x950] sm:$0xff] }
 0xa6f   :  { %12088 = vmatprep.subr.bf16.mxu1 %v11069_v29  ;;  %v11123_v29 = vld [vmem:[#allocation9 + $0x968] sm:$0xff] }
 0xa72   :  { %12089 = vmatpush1.bf16.msra.mxu1 %v11068_v43  ;;  %v11122_v43 = vld [vmem:[#allocation9 + $0x960] sm:$0xff] }
 0xa73   :  { %12090 = vmatprep.subr.bf16.mxu1 %v11071_v22  ;;  %v11125_v22 = vld [vmem:[#allocation9 + $0x978] sm:$0xff] }
 0xa76   :  { %12091 = vmatpush1.bf16.msra.mxu1 %v11070_v28  ;;  %v11124_v28 = vld [vmem:[#allocation9 + $0x970] sm:$0xff] }
 0xa77   :  { %12092 = vmatprep.subr.bf16.mxu1 %v11073_v26  ;;  %v11127_v26 = vld [vmem:[#allocation9 + $0x988] sm:$0xff] }
 0xa7a   :  { %12093 = vmatpush1.bf16.msra.mxu1 %v11072_v46  ;;  %v11126_v46 = vld [vmem:[#allocation9 + $0x980] sm:$0xff] }
 0xa7b   :  { %12094 = vmatprep.subr.bf16.mxu1 %v11075_v27  ;;  %v11129_v27 = vld [vmem:[#allocation9 + $0x998] sm:$0xff] }
 0xa7e   :  { %12095 = vmatpush1.bf16.msra.mxu1 %v11074_v11  ;;  %v11128_v11 = vld [vmem:[#allocation9 + $0x990] sm:$0xff] }
 0xa7f   :  { %12096 = vmatprep.subr.bf16.mxu1 %v11077_v16  ;;  %v11131_v16 = vld [vmem:[#allocation9 + $0x9a8] sm:$0xff] }
 0xa82   :  { %12097 = vmatpush1.bf16.msra.mxu1 %v11076_v21  ;;  %v11130_v21 = vld [vmem:[#allocation9 + $0x9a0] sm:$0xff] }
 0xa83   :  { %12107 = vmatprep.subr.bf16.mxu1 %v11079_v25  ;;  %v11133_v25 = vld [vmem:[#allocation9 + $0x9b8] sm:$0xff] }
 0xa85   :  { %12099 = vmatmul.mubr.bf16.vlgmr.msra.gmra.mrb[52].mxu1 %v12730_v40  ;;  %v11135_v40 = vld [vmem:[#allocation9 + $0x9c8] sm:$0xff] }
 0xa86   :  { %12108 = vmatpush1.bf16.msra.mxu1 %v11078_v45  ;;  %12139 = vmatprep.mubr.bf16.mxu1 %v12733_v39  ;;  %v11134_v45 = vld [vmem:[#allocation9 + $0x9c0] sm:$0xff]  ;;  %v11137_v39 = vld [vmem:[#allocation9 + $0x9d8] sm:$0xff] }
 0xa87   :  { %12109 = vmatprep.subr.bf16.mxu1 %v11081_v47  ;;  %v11136_v47 = vld [vmem:[#allocation9 + $0x9d0] sm:$0xff] }
 0xa8a   :  { %12110 = vmatpush1.bf16.msra.mxu1 %v11080_v60  ;;  %v11139_v60 = vld [vmem:[#allocation9 + $0x9e8] sm:$0xff] }
 0xa8b   :  { %12111 = vmatprep.subr.bf16.mxu1 %v11083_v23  ;;  %v11138_v23 = vld [vmem:[#allocation9 + $0x9e0] sm:$0xff] }
 0xa8e   :  { %12112 = vmatpush1.bf16.msra.mxu1 %v11082_v20  ;;  %v11141_v20 = vld [vmem:[#allocation9 + $0x9f8] sm:$0xff] }
 0xa8f   :  { %12113 = vmatprep.subr.bf16.mxu1 %v11085_v36  ;;  %v11140_v36 = vld [vmem:[#allocation9 + $0x9f0] sm:$0xff] }
 0xa92   :  { %12114 = vmatpush1.bf16.msra.mxu1 %v11084_v42  ;;  %v11143_v42 = vld [vmem:[#allocation9 + $0xa08] sm:$0xff] }
 0xa93   :  { %12115 = vmatprep.subr.bf16.mxu1 %v11087_v31  ;;  %v18047_v31 = vld [vmem:[#allocation7 + $0x50] sm:$0xff] }
 0xa96   :  { %12116 = vmatpush1.bf16.msra.mxu1 %v11086_v34  ;;  %v12734_v34 = vcombine.low %v18041_v53, %v18041_v53  ;;  %v11167_v53 = vld [vmem:[#allocation9 + $0xac8] sm:$0xff] }
 0xa97   :  { %12117 = vmatprep.subr.bf16.mxu1 %v11089_v44  ;;  %v11142_v44 = vld [vmem:[#allocation9 + $0xa00] sm:$0xff] }
 0xa9a   :  { %12118 = vmatpush1.bf16.msra.mxu1 %v11088_v30  ;;  %v12737_v30 = vcombine.high %v18047_v31, %v18047_v31 }
 0xa9b   :  { %12119 = vmatprep.subr.bf16.mxu1 %v11091_v8  ;;  %v11145_v8 = vld [vmem:[#allocation9 + $0xa18] sm:$0xff] }
 0xa9e   :  { %12120 = vmatpush1.bf16.msra.mxu1 %v11090_v37  ;;  %v11144_v37 = vld [vmem:[#allocation9 + $0xa10] sm:$0xff] }
 0xa9f   :  { %12121 = vmatprep.subr.bf16.mxu1 %v11093_v0  ;;  %v11147_v0 = vld [vmem:[#allocation9 + $0xa28] sm:$0xff] }
 0xaa2   :  { %12122 = vmatpush1.bf16.msra.mxu1 %v11092_v1  ;;  %v11146_v1 = vld [vmem:[#allocation9 + $0xa20] sm:$0xff] }
 0xaa3   :  { %12123 = vmatprep.subr.bf16.mxu1 %v11095_v2  ;;  %v11149_v2 = vld [vmem:[#allocation9 + $0xa38] sm:$0xff] }
 0xaa6   :  { %12124 = vmatpush1.bf16.msra.mxu1 %v11094_v3  ;;  %v11148_v3 = vld [vmem:[#allocation9 + $0xa30] sm:$0xff] }
 0xaa7   :  { %12125 = vmatprep.subr.bf16.mxu1 %v11097_v41  ;;  %v11151_v41 = vld [vmem:[#allocation9 + $0xa48] sm:$0xff] }
 0xaaa   :  { %12126 = vmatpush1.bf16.msra.mxu1 %v11096_v4  ;;  %v11150_v4 = vld [vmem:[#allocation9 + $0xa40] sm:$0xff] }
 0xaab   :  { %12127 = vmatprep.subr.bf16.mxu1 %v11099_v5  ;;  %v11153_v5 = vld [vmem:[#allocation9 + $0xa58] sm:$0xff] }
 0xaae   :  { %12128 = vmatpush1.bf16.msra.mxu1 %v11098_v6  ;;  %v11152_v6 = vld [vmem:[#allocation9 + $0xa50] sm:$0xff] }
 0xaaf   :  { %12129 = vmatprep.subr.bf16.mxu1 %v11101_v10  ;;  %v11155_v10 = vld [vmem:[#allocation9 + $0xa68] sm:$0xff] }
 0xab2   :  { %12130 = vmatpush1.bf16.msra.mxu1 %v11100_v19  ;;  %v11154_v19 = vld [vmem:[#allocation9 + $0xa60] sm:$0xff] }
 0xab3   :  { %12131 = vmatprep.subr.bf16.mxu1 %v11103_v12  ;;  %v11157_v12 = vld [vmem:[#allocation9 + $0xa78] sm:$0xff] }
 0xab6   :  { %12132 = vmatpush1.bf16.msra.mxu1 %v11102_v13  ;;  %v11156_v13 = vld [vmem:[#allocation9 + $0xa70] sm:$0xff] }
 0xab7   :  { %12133 = vmatprep.subr.bf16.mxu1 %v11105_v14  ;;  %v11159_v14 = vld [vmem:[#allocation9 + $0xa88] sm:$0xff] }
 0xaba   :  { %12134 = vmatpush1.bf16.msra.mxu1 %v11104_v15  ;;  %v11158_v15 = vld [vmem:[#allocation9 + $0xa80] sm:$0xff] }
 0xabb   :  { %12135 = vmatprep.subr.bf16.mxu1 %v11107_v24  ;;  %v11161_v24 = vld [vmem:[#allocation9 + $0xa98] sm:$0xff] }
 0xabe   :  { %12136 = vmatpush1.bf16.msra.mxu1 %v11106_v9  ;;  %v11160_v9 = vld [vmem:[#allocation9 + $0xa90] sm:$0xff] }
 0xabf   :  { %12137 = vmatprep.subr.bf16.mxu1 %v11109_v35  ;;  %v11163_v35 = vld [vmem:[#allocation9 + $0xaa8] sm:$0xff] }
 0xac1   :  { %v18037_v48 = vpop.f32.mrb[16].mxu0 }
 0xac2   :  { %v18039_v50 = vpop.f32.mrb[17].mxu0  ;;  %12138 = vmatpush1.bf16.msra.mxu1 %v11108_v49  ;;  %v11162_v49 = vld [vmem:[#allocation9 + $0xaa0] sm:$0xff] }
 0xac3   :  { %v11899_v52 = vpop.f32.mrb[18].mxu0  ;;  %12148 = vmatprep.subr.bf16.mxu1 %v11111_v51  ;;  %v11165_v51 = vld [vmem:[#allocation9 + $0xab8] sm:$0xff] }
 0xac4   :  { %v11900_v54 = vpop.f32.mrb[19].mxu0  ;;  %v11164_v52 = vld [vmem:[#allocation9 + $0xab0] sm:$0xff] }
 0xac5   :  { %12140 = vmatmul.mubr.bf16.vlgmr.msra.gmra.mrb[52].mxu1 %v12732_v55  ;;  %v11166_v54 = vld [vmem:[#allocation9 + $0xac0] sm:$0xff]  ;;  %v11169_v55 = vld [vmem:[#allocation9 + $0xad8] sm:$0xff] }
 0xac6   :  { %12149 = vmatpush1.bf16.msra.mxu1 %v11110_v56  ;;  %12180 = vmatprep.mubr.bf16.mxu1 %v12735_v57  ;;  %v11168_v56 = vld [vmem:[#allocation9 + $0xad0] sm:$0xff]  ;;  %v11171_v57 = vld [vmem:[#allocation9 + $0xae8] sm:$0xff] }
 0xac7   :  { %12150 = vmatprep.subr.bf16.mxu1 %v11113_v58  ;;  %v11170_v58 = vld [vmem:[#allocation9 + $0xae0] sm:$0xff] }
 0xaca   :  { %12151 = vmatpush1.bf16.msra.mxu1 %v11112_v7  ;;  %v11173_v7 = vld [vmem:[#allocation9 + $0xaf8] sm:$0xff] }
 0xacb   :  { %12152 = vmatprep.subr.bf16.mxu1 %v11115_v59  ;;  %v11172_v59 = vld [vmem:[#allocation9 + $0xaf0] sm:$0xff] }
 0xace   :  { %12153 = vmatpush1.bf16.msra.mxu1 %v11114_v61  ;;  %v11175_v61 = vld [vmem:[#allocation9 + $0xb08] sm:$0xff] }
 0xacf   :  { %12154 = vmatprep.subr.bf16.mxu1 %v11117_v62  ;;  %v18053_v62 = vld [vmem:[#allocation7 + $0x58] sm:$0xff] }
 0xad2   :  { %12155 = vmatpush1.bf16.msra.mxu1 %v11116_v63  ;;  %v12736_v63 = vcombine.low %v18047_v31, %v18047_v31  ;;  %v11198_v31 = vld [vmem:[#allocation9 + $0xbc0] sm:$0xff] }
 0xad3   :  { %12156 = vmatprep.subr.bf16.mxu1 %v11119_v18  ;;  %v11174_v18 = vld [vmem:[#allocation9 + $0xb00] sm:$0xff] }
 0xad6   :  { %12157 = vmatpush1.bf16.msra.mxu1 %v11118_v38  ;;  %v12739_v38 = vcombine.high %v18053_v62, %v18053_v62 }
 0xad7   :  { %12158 = vmatprep.subr.bf16.mxu1 %v11121_v17  ;;  %v11177_v17 = vld [vmem:[#allocation9 + $0xb18] sm:$0xff] }
 0xada   :  { %12159 = vmatpush1.bf16.msra.mxu1 %v11120_v33  ;;  %v11176_v33 = vld [vmem:[#allocation9 + $0xb10] sm:$0xff] }
 0xadb   :  { %12160 = vmatprep.subr.bf16.mxu1 %v11123_v29  ;;  %v11179_v29 = vld [vmem:[#allocation9 + $0xb28] sm:$0xff] }
 0xade   :  { %12161 = vmatpush1.bf16.msra.mxu1 %v11122_v43  ;;  %v11178_v43 = vld [vmem:[#allocation9 + $0xb20] sm:$0xff] }
 0xadf   :  { %12162 = vmatprep.subr.bf16.mxu1 %v11125_v22  ;;  %v11181_v22 = vld [vmem:[#allocation9 + $0xb38] sm:$0xff] }
 0xae2   :  { %12163 = vmatpush1.bf16.msra.mxu1 %v11124_v28  ;;  %v11180_v28 = vld [vmem:[#allocation9 + $0xb30] sm:$0xff] }
 0xae3   :  { %12164 = vmatprep.subr.bf16.mxu1 %v11127_v26  ;;  %v11183_v26 = vld [vmem:[#allocation9 + $0xb48] sm:$0xff] }
 0xae6   :  { %12165 = vmatpush1.bf16.msra.mxu1 %v11126_v46  ;;  %v11182_v46 = vld [vmem:[#allocation9 + $0xb40] sm:$0xff] }
 0xae7   :  { %12166 = vmatprep.subr.bf16.mxu1 %v11129_v27  ;;  %v11185_v27 = vld [vmem:[#allocation9 + $0xb58] sm:$0xff] }
 0xaea   :  { %12167 = vmatpush1.bf16.msra.mxu1 %v11128_v11  ;;  %v11184_v11 = vld [vmem:[#allocation9 + $0xb50] sm:$0xff] }
 0xaeb   :  { %12168 = vmatprep.subr.bf16.mxu1 %v11131_v16  ;;  %v11187_v16 = vld [vmem:[#allocation9 + $0xb68] sm:$0xff] }
 0xaee   :  { %12169 = vmatpush1.bf16.msra.mxu1 %v11130_v21  ;;  %v11186_v21 = vld [vmem:[#allocation9 + $0xb60] sm:$0xff] }
 0xaef   :  { %12170 = vmatprep.subr.bf16.mxu1 %v11133_v25  ;;  %v11189_v25 = vld [vmem:[#allocation9 + $0xb78] sm:$0xff] }
 0xaf2   :  { %12171 = vmatpush1.bf16.msra.mxu1 %v11132_v32  ;;  %v11188_v32 = vld [vmem:[#allocation9 + $0xb70] sm:$0xff] }
 0xaf3   :  { %12172 = vmatprep.subr.bf16.mxu1 %v11135_v40  ;;  %v11191_v40 = vld [vmem:[#allocation9 + $0xb88] sm:$0xff] }
 0xaf6   :  { %12173 = vmatpush1.bf16.msra.mxu1 %v11134_v45  ;;  %v11190_v45 = vld [vmem:[#allocation9 + $0xb80] sm:$0xff] }
 0xaf7   :  { %12174 = vmatprep.subr.bf16.mxu1 %v11137_v39  ;;  %v11193_v39 = vld [vmem:[#allocation9 + $0xb98] sm:$0xff] }
 0xafa   :  { %12175 = vmatpush1.bf16.msra.mxu1 %v11136_v47  ;;  %v11192_v47 = vld [vmem:[#allocation9 + $0xb90] sm:$0xff] }
 0xafb   :  { %12176 = vmatprep.subr.bf16.mxu1 %v11139_v60  ;;  %v11195_v60 = vld [vmem:[#allocation9 + $0xba8] sm:$0xff] }
 0xafe   :  { %12177 = vmatpush1.bf16.msra.mxu1 %v11138_v23  ;;  %v11194_v23 = vld [vmem:[#allocation9 + $0xba0] sm:$0xff] }
 0xaff   :  { %12178 = vmatprep.subr.bf16.mxu1 %v11141_v20  ;;  %v11197_v20 = vld [vmem:[#allocation9 + $0xbb8] sm:$0xff] }
 0xb02   :  { %12179 = vmatpush1.bf16.msra.mxu1 %v11140_v36  ;;  %v11196_v36 = vld [vmem:[#allocation9 + $0xbb0] sm:$0xff] }
 0xb03   :  { %12189 = vmatprep.subr.bf16.mxu1 %v11143_v42  ;;  %v11199_v42 = vld [vmem:[#allocation9 + $0xbc8] sm:$0xff] }
 0xb05   :  { %12181 = vmatmul.mubr.bf16.vlgmr.msra.gmra.mrb[52].mxu1 %v12734_v34  ;;  %v11201_v34 = vld [vmem:[#allocation9 + $0xbd8] sm:$0xff] }
 0xb06   :  { %12190 = vmatpush1.bf16.msra.mxu1 %v11142_v44  ;;  %12221 = vmatprep.mubr.bf16.mxu1 %v12737_v30  ;;  %v11200_v44 = vld [vmem:[#allocation9 + $0xbd0] sm:$0xff]  ;;  %v11203_v30 = vld [vmem:[#allocation9 + $0xbe8] sm:$0xff] }
 0xb07   :  { %12191 = vmatprep.subr.bf16.mxu1 %v11145_v8  ;;  %v11202_v8 = vld [vmem:[#allocation9 + $0xbe0] sm:$0xff] }
 0xb0a   :  { %12192 = vmatpush1.bf16.msra.mxu1 %v11144_v37  ;;  %v11205_v37 = vld [vmem:[#allocation9 + $0xbf8] sm:$0xff] }
 0xb0b   :  { %12193 = vmatprep.subr.bf16.mxu1 %v11147_v0  ;;  %v11204_v0 = vld [vmem:[#allocation9 + $0xbf0] sm:$0xff] }
 0xb0e   :  { %12194 = vmatpush1.bf16.msra.mxu1 %v11146_v1  ;;  %v11207_v1 = vld [vmem:[#allocation9 + $0xc08] sm:$0xff] }
 0xb0f   :  { %12195 = vmatprep.subr.bf16.mxu1 %v11149_v2  ;;  %v12738_v2 = vcombine.low %v18053_v62, %v18053_v62 }
 0xb12   :  { %12196 = vmatpush1.bf16.msra.mxu1 %v11148_v3  ;;  %v11206_v3 = vld [vmem:[#allocation9 + $0xc00] sm:$0xff] }
 0xb13   :  { %12197 = vmatprep.subr.bf16.mxu1 %v11151_v41  ;;  %v11209_v41 = vld [vmem:[#allocation9 + $0xc18] sm:$0xff] }
 0xb16   :  { %12198 = vmatpush1.bf16.msra.mxu1 %v11150_v4  ;;  %v14101_v4 = vmov 0  }
 0xb17   :  { %12199 = vmatprep.subr.bf16.mxu1 %v11153_v5  ;;  %v11208_v5 = vld [vmem:[#allocation9 + $0xc10] sm:$0xff] }
 0xb1a   :  { %12200 = vmatpush1.bf16.msra.mxu1 %v11152_v6  ;;  %v11211_v6 = vld [vmem:[#allocation9 + $0xc28] sm:$0xff] }
 0xb1b   :  { %12201 = vmatprep.subr.bf16.mxu1 %v11155_v10  ;;  %v11210_v10 = vld [vmem:[#allocation9 + $0xc20] sm:$0xff] }
 0xb1e   :  { %12202 = vmatpush1.bf16.msra.mxu1 %v11154_v19  ;;  %v11213_v19 = vld [vmem:[#allocation9 + $0xc38] sm:$0xff] }
 0xb1f   :  { %12203 = vmatprep.subr.bf16.mxu1 %v11157_v12  ;;  %v11212_v12 = vld [vmem:[#allocation9 + $0xc30] sm:$0xff] }
 0xb22   :  { %12204 = vmatpush1.bf16.msra.mxu1 %v11156_v13  ;;  %v11215_v13 = vld [vmem:[#allocation9 + $0xc48] sm:$0xff] }
 0xb23   :  { %12205 = vmatprep.subr.bf16.mxu1 %v11159_v14  ;;  %v11214_v14 = vld [vmem:[#allocation9 + $0xc40] sm:$0xff] }
 0xb26   :  { %12206 = vmatpush1.bf16.msra.mxu1 %v11158_v15  ;;  %v11217_v15 = vld [vmem:[#allocation9 + $0xc58] sm:$0xff] }
 0xb27   :  { %12207 = vmatprep.subr.bf16.mxu1 %v11161_v24  ;;  %v11216_v24 = vld [vmem:[#allocation9 + $0xc50] sm:$0xff] }
 0xb2a   :  { %12208 = vmatpush1.bf16.msra.mxu1 %v11160_v9  ;;  %v11219_v9 = vld [vmem:[#allocation9 + $0xc68] sm:$0xff] }
 0xb2b   :  { %12209 = vmatprep.subr.bf16.mxu1 %v11163_v35  ;;  %v11218_v35 = vld [vmem:[#allocation9 + $0xc60] sm:$0xff] }
 0xb2e   :  { %12210 = vmatpush1.bf16.msra.mxu1 %v11162_v49  ;;  %v11221_v49 = vld [vmem:[#allocation9 + $0xc78] sm:$0xff] }
 0xb2f   :  { %12211 = vmatprep.subr.bf16.mxu1 %v11165_v51  ;;  %v11220_v51 = vld [vmem:[#allocation9 + $0xc70] sm:$0xff] }
 0xb32   :  { %12212 = vmatpush1.bf16.msra.mxu1 %v11164_v52  ;;  %v14069_v52 = vld [vmem:[#allocation7 + $0x60] ss:$0 sps:$4 sm:$0xff]  }
 0xb33   :  { %12213 = vmatprep.subr.bf16.mxu1 %v11167_v53  ;;  %v11681_v53 = vlaneseq }
 0xb36   :  { %12214 = vmatpush1.bf16.msra.mxu1 %v11166_v54  ;;  %v11682_v54 = vshrl.u32 %v11681_v53, 7 }
 0xb37   :  { %12215 = vmatprep.subr.bf16.mxu1 %v11169_v55 }
 0xb38   :  { %v11683_v55 = vsub.s32 0, %v11682_v54 }
 0xb3a   :  { %12216 = vmatpush1.bf16.msra.mxu1 %v11168_v56  ;;  %v11679_v56 = vld [vmem:[%s18089_s11] sm:$0x3]  ;;  %s14070_s11 = scalar_lea.vmem %s12333_s8, 64 }
 0xb3b   :  { %12217 = vmatprep.subr.bf16.mxu1 %v11171_v57  ;;  %v11687_v57 = vsub.s32 1, %v11682_v54  ;;  %p14071_p0 = scmp.ne.s32.totalorder %s12333_s8, %s14070_s11  ;;  %p14076_p2 = scmp.lt.s32.totalorder %s14070_s11, %s14070_s11 }
 0xb3d   :  { %p14077_p3 = por %p14076_p2, %p14075_p1 }
 0xb3e   :  { %12218 = vmatpush1.bf16.msra.mxu1 %v11170_v58  ;;  %v11684_v58 = vrot.slane %v11679_v56, %v11683_v55 }
 0xb3f   :  { %12219 = vmatprep.subr.bf16.mxu1 %v11173_v7  ;;  %v11688_v7 = vrot.slane %v11679_v56, %v11687_v57  ;;  %p14078_p4 = pnand %p14077_p3, %p14071_p0 }
 0xb42   :  { %12220 = vmatpush1.bf16.msra.mxu1 %v11172_v59  ;;  %v13775_v59 = vadd.f32 %v18037_v48, %v11684_v58 }
 0xb43   :  { %12230 = vmatprep.subr.bf16.mxu1 %v11175_v61  ;;  %v13777_v61 = vadd.f32 %v18039_v50, %v11688_v7 }
 0xb45   :  { %12222 = vmatmul.mubr.bf16.vlgmr.msra.gmra.mrb[52].mxu1 %v12736_v63 }
 0xb46   :  { %12231 = vmatpush1.bf16.msra.mxu1 %v11174_v18  ;;  %12262 = vmatprep.mubr.bf16.mxu1 %v12739_v38 }
 0xb47   :  { %12232 = vmatprep.subr.bf16.mxu1 %v11177_v17 }
 0xb4a   :  { %12233 = vmatpush1.bf16.msra.mxu1 %v11176_v33 }
 0xb4b   :  { %12234 = vmatprep.subr.bf16.mxu1 %v11179_v29 }
 0xb4e   :  { %12235 = vmatpush1.bf16.msra.mxu1 %v11178_v43 }
 0xb4f   :  { %12236 = vmatprep.subr.bf16.mxu1 %v11181_v22 }
 0xb52   :  { %12237 = vmatpush1.bf16.msra.mxu1 %v11180_v28 }
 0xb53   :  { %12238 = vmatprep.subr.bf16.mxu1 %v11183_v26 }
 0xb56   :  { %12239 = vmatpush1.bf16.msra.mxu1 %v11182_v46 }
 0xb57   :  { %12240 = vmatprep.subr.bf16.mxu1 %v11185_v27 }
 0xb5a   :  { %12241 = vmatpush1.bf16.msra.mxu1 %v11184_v11 }
 0xb5b   :  { %12242 = vmatprep.subr.bf16.mxu1 %v11187_v16 }
 0xb5e   :  { %12243 = vmatpush1.bf16.msra.mxu1 %v11186_v21 }
 0xb5f   :  { %12244 = vmatprep.subr.bf16.mxu1 %v11189_v25 }
 0xb62   :  { %12245 = vmatpush1.bf16.msra.mxu1 %v11188_v32 }
 0xb63   :  { %12246 = vmatprep.subr.bf16.mxu1 %v11191_v40 }
 0xb66   :  { %12247 = vmatpush1.bf16.msra.mxu1 %v11190_v45 }
 0xb67   :  { %12248 = vmatprep.subr.bf16.mxu1 %v11193_v39 }
 0xb6a   :  { %12249 = vmatpush1.bf16.msra.mxu1 %v11192_v47 }
 0xb6b   :  { %12250 = vmatprep.subr.bf16.mxu1 %v11195_v60 }
 0xb6e   :  { %12251 = vmatpush1.bf16.msra.mxu1 %v11194_v23 }
 0xb6f   :  { %12252 = vmatprep.subr.bf16.mxu1 %v11197_v20 }
 0xb72   :  { %12253 = vmatpush1.bf16.msra.mxu1 %v11196_v36 }
 0xb73   :  { %12254 = vmatprep.subr.bf16.mxu1 %v11199_v42 }
 0xb76   :  { %12255 = vmatpush1.bf16.msra.mxu1 %v11198_v31 }
 0xb77   :  { %12256 = vmatprep.subr.bf16.mxu1 %v11201_v34 }
 0xb7a   :  { %12257 = vmatpush1.bf16.msra.mxu1 %v11200_v44 }
 0xb7b   :  { %12258 = vmatprep.subr.bf16.mxu1 %v11203_v30 }
 0xb7e   :  { %12259 = vmatpush1.bf16.msra.mxu1 %v11202_v8 }
 0xb7f   :  { %12260 = vmatprep.subr.bf16.mxu1 %v11205_v37 }
 0xb82   :  { %12261 = vmatpush1.bf16.msra.mxu1 %v11204_v0 }
 0xb83   :  { %12271 = vmatprep.subr.bf16.mxu1 %v11207_v1 }
 0xb85   :  { %12263 = vmatmul.mubr.bf16.vlgmr.msra.gmra.mrb[52].mxu1 %v12738_v2 }
 0xb86   :  { %12272 = vmatpush1.bf16.msra.mxu1 %v11206_v3  ;;  %12303 = vmatprep.mubr.bf16.mxu1 %v14101_v4 }
 0xb87   :  { %12273 = vmatprep.subr.bf16.mxu1 %v11209_v41 }
 0xb8a   :  { %12274 = vmatpush1.bf16.msra.mxu1 %v11208_v5 }
 0xb8b   :  { %12275 = vmatprep.subr.bf16.mxu1 %v11211_v6 }
 0xb8e   :  { %12276 = vmatpush1.bf16.msra.mxu1 %v11210_v10 }
 0xb8f   :  { %12277 = vmatprep.subr.bf16.mxu1 %v11213_v19 }
 0xb92   :  { %12278 = vmatpush1.bf16.msra.mxu1 %v11212_v12 }
 0xb93   :  { %12279 = vmatprep.subr.bf16.mxu1 %v11215_v13 }
 0xb96   :  { %12280 = vmatpush1.bf16.msra.mxu1 %v11214_v14 }
 0xb97   :  { %12281 = vmatprep.subr.bf16.mxu1 %v11217_v15 }
 0xb9a   :  { %12282 = vmatpush1.bf16.msra.mxu1 %v11216_v24 }
 0xb9b   :  { %12283 = vmatprep.subr.bf16.mxu1 %v11219_v9 }
 0xb9e   :  { %12284 = vmatpush1.bf16.msra.mxu1 %v11218_v35 }
 0xb9f   :  { %12285 = vmatprep.subr.bf16.mxu1 %v11221_v49 }
 0xba2   :  { %12286 = vmatpush1.bf16.msra.mxu1 %v11220_v51 }
 0xba5   :  { %12304 = vmatmul.mubr.bf16.vlgmr.msra.gmra.mrb[52].mxu1 %v14069_v52 }
 0xc78   :  { %v12305_v62 = vpop.f32.mrb[52].mxu1 }
 0xc79   :  { %v13776_v63 = vadd.f32 %v13775_v59, %v12305_v62  ;;  %v12307_v18 = vpop.f32.mrb[53].mxu1 }
 0xc7a   :  { %v13778_v38 = vadd.f32 %v13777_v61, %v12307_v18  ;;  %v12309_v17 = vpop.f32.mrb[54].mxu1 }
 0xc7b   :  { %v12312_v33 = vmax.f32 %v13776_v63, 0.0  ;;  %v12310_v29 = vpop.f32.mrb[55].mxu1 }
 0xc7c   :  { %v12313_v43 = vmax.f32 %v13778_v38, 0.0 }
 0xc7e   :  { %v12316_v22 = vcombine.low %v12312_v33, %v12313_v43 }
 0xc80   :  { %12741 = vst.sshfl [vmem:[#allocation11] sm:$0x33 pattern:$0x76325410] %v12316_v22 }
 0xc81   :  { %14081 = shalt.err (!%p14078_p4)
}
 0xc82   :  { %s14082_s19 = scalar_lea.hbm %s18090_s12, 64 }
 0xc83   :  { %p14083_p5 = scmp.ne.s32.totalorder %s18090_s12, %s14082_s19  ;;  %p14086_p6 = scmp.lt.u32.totalorder %s14082_s19, %s18090_s12 }
 0xc85   :  { %p14088_p7 = pnand %p14086_p6, %p14083_p5 }
 0xc87   :  { %14091 = shalt.err (!%p14088_p7)
}
 0xc88   :  { %12335 = dma.vmem_to_hbm [thread:$0]  %s12333_s8, 64, %s18090_s12, [#allocation12]  }
 0xc89   :  { %14096 = dma.done.wait [#allocation12], 64  }
 0xc8a   :  { %14097 = vsyncadd [#allocation12], 4294967232 }
 0xc8b   :  { %12339 = vsyncpa [#allocation12], 1 }
 0xc8c   :  { %12340 = vsyncmov [#allocation10] }
 0xc8f   :  { %s12341_s24 = vpop.sfrf %12340 }
 0xc90   :  { %p12742_p8 = scmp.ne.s32.totalorder %s12341_s24, 0 }
 0xc92   :  { %12345 = shalt.err (%p12742_p8)  }
 0xc93   :  { %12347 = vsyncmov [#allocation10 + $0x1] }
 0xc96   :  { %s12348_s25 = vpop.sfrf %12347 }
 0xc97   :  { %p12743_p9 = scmp.ne.s32.totalorder %s12348_s25, 0 }
 0xc99   :  { %12352 = shalt.err (%p12743_p9)  }

</bundles_post_ra>
